<compile_context>
chip_gen: v6e
topology: v6e:2x2x1
jax: 0.10.0
libtpu: 0.0.40
codegen_flags: <defaults>
</compile_context>

<pallas_src>
import jax
import jax.numpy as jnp
import numpy as np
from jax.experimental import pallas as pl
from jax.experimental.pallas import tpu as pltpu

OH = OW = 25                  # 32 - 8 + 1
H_FC1 = 64
K_FC1 = 64 * OH * OW          # 40000
TK_FC1 = 20096                # 157 * 128
K_FC1_PAD = 2 * TK_FC1        # 40192
N_OUT = 64 * 64               # 4096


# ---------------------------------------------------------------------------
# Kernel 1: conv (im2col matmul) + bias + relu, bf16 out.  Single grid step.
# ---------------------------------------------------------------------------
def _conv_kernel(p_ref, w_ref, b_ref, o_ref):
    y = jnp.dot(p_ref[...], w_ref[...], preferred_element_type=jnp.float32)
    o_ref[...] = jnp.maximum(y + b_ref[...], 0.0).astype(o_ref.dtype)


def conv_matmul(patches, w, b):
    M, K = patches.shape
    K2, N = w.shape
    assert K == K2, (K, K2)
    return pl.pallas_call(
        _conv_kernel,
        out_shape=jax.ShapeDtypeStruct((M, N), jnp.bfloat16),
        grid_spec=pltpu.PrefetchScalarGridSpec(
            num_scalar_prefetch=0,
            grid=(1,),
            in_specs=[
                pl.BlockSpec((M, K), lambda i: (0, 0)),
                pl.BlockSpec((K, N), lambda i: (0, 0)),
                pl.BlockSpec((1, N), lambda i: (0, 0)),
            ],
            out_specs=pl.BlockSpec((M, N), lambda i: (0, 0)),
        ),
        compiler_params=pltpu.CompilerParams(
            dimension_semantics=("arbitrary",),
            vmem_limit_bytes=32 << 20,
        ),
    )(patches, w, b.reshape(1, N).astype(jnp.float32))


# ---------------------------------------------------------------------------
# Kernel 2: fused fc1 + relu + (fc2 folded into basis) + sigmoid.
#   Grid over the fc1 K reduction; (B,64) f32 accumulator in VMEM scratch.
# ---------------------------------------------------------------------------
def _fc_fused_kernel(a_ref, w1_ref, b1_ref, wc_ref, bc_ref, o_ref, acc_ref):
    k = pl.program_id(0)

    @pl.when(k == 0)
    def _():
        acc_ref[...] = jnp.zeros_like(acc_ref)

    acc_ref[...] += jnp.dot(a_ref[...], w1_ref[...],
                            preferred_element_type=jnp.float32)

    @pl.when(k == pl.num_programs(0) - 1)
    def _():
        h = jnp.maximum(acc_ref[...] + b1_ref[...], 0.0).astype(jnp.bfloat16)
        y = jnp.dot(h, wc_ref[...], preferred_element_type=jnp.float32)
        o_ref[...] = jax.nn.sigmoid(y + bc_ref[...]).astype(o_ref.dtype)


def fc_fused(flat, w1, b1, wcomb, bcomb):
    B, Kp = flat.shape
    Kp2, H = w1.shape
    H2, N = wcomb.shape
    assert Kp == Kp2 and H == H2 and Kp % TK_FC1 == 0, (Kp, Kp2, H, H2)
    grid_k = Kp // TK_FC1
    return pl.pallas_call(
        _fc_fused_kernel,
        out_shape=jax.ShapeDtypeStruct((B, N), jnp.float32),
        grid_spec=pltpu.PrefetchScalarGridSpec(
            num_scalar_prefetch=0,
            grid=(grid_k,),
            in_specs=[
                pl.BlockSpec((B, TK_FC1), lambda k: (0, k)),   # activations
                pl.BlockSpec((TK_FC1, H), lambda k: (k, 0)),   # fc1 weight stream
                pl.BlockSpec((1, H), lambda k: (0, 0)),        # fc1 bias (resident)
                pl.BlockSpec((H, N), lambda k: (0, 0)),        # wcomb (resident)
                pl.BlockSpec((1, N), lambda k: (0, 0)),        # bcomb (resident)
            ],
            out_specs=pl.BlockSpec((B, N), lambda k: (0, 0)),
            scratch_shapes=[pltpu.VMEM((B, H), jnp.float32)],
        ),
        compiler_params=pltpu.CompilerParams(
            dimension_semantics=("arbitrary",),
            vmem_limit_bytes=32 << 20,   # ~6 MiB used; explicit for v5e (16 MiB default)
        ),
    )(flat, w1, b1.reshape(1, H).astype(jnp.float32),
      wcomb, bcomb.reshape(1, N).astype(jnp.float32))


# ---------------------------------------------------------------------------
# Parameters (deterministic, PyTorch-default-like uniform init) and one-time
# weight preprocessing.
# ---------------------------------------------------------------------------
def init_raw_params(key=jax.random.PRNGKey(0)):
    ks = jax.random.split(key, 6)

    def uinit(k, shape, fan_in):
        bound = 1.0 / np.sqrt(fan_in)
        return jax.random.uniform(k, shape, jnp.float32, -bound, bound)

    cv1_w = uinit(ks[0], (64, 1, 8, 8), 1 * 8 * 8)      # (out_c, in_c, kh, kw)
    cv1_b = uinit(ks[1], (64,), 1 * 8 * 8)
    fc1_w = uinit(ks[2], (K_FC1, H_FC1), K_FC1)         # = torch W1.T, rows (c,h,w)-flat
    fc1_b = uinit(ks[3], (H_FC1,), K_FC1)
    fc2_w = uinit(ks[4], (H_FC1, 15), H_FC1)            # = torch W2.T
    fc2_b = uinit(ks[5], (15,), H_FC1)

    # torch.meshgrid(linspace, linspace) defaults to 'ij' indexing.
    ls = jnp.linspace(-3.0, 3.0, 64, dtype=jnp.float32)
    X, Y = jnp.meshgrid(ls, ls, indexing="ij")
    basis = jnp.stack(
        [X ** i * Y ** j for i in range(5) for j in range(5 - i)], axis=0
    )                                                   # (15, 64, 64)

    return dict(cv1_w=cv1_w, cv1_b=cv1_b, fc1_w=fc1_w, fc1_b=fc1_b,
                fc2_w=fc2_w, fc2_b=fc2_b, basis=basis)


def preprocess_params(raw):
    # (1) conv weight as im2col operand: (patch_feat=(kh,kw), out_c), bf16.
    cv1_w_mat = raw["cv1_w"].reshape(64, 64).T.astype(jnp.bfloat16)

    # (2) fc1 rows permuted (c,h,w)-flat -> (h,w,c)-flat so the conv output
    #     (rows=(b,oh,ow), cols=c) feeds fc1 with a free HBM reshape; K padded
    #     40000 -> 40192 and cast bf16 (this stream is HBM-bound).
    #     (Apply the same permutation when importing real PyTorch weights.)
    w = raw["fc1_w"].reshape(64, OH, OW, H_FC1).transpose(1, 2, 0, 3)
    w = w.reshape(K_FC1, H_FC1)
    fc1_w = jnp.pad(w, ((0, K_FC1_PAD - K_FC1), (0, 0))).astype(jnp.bfloat16)

    # (3) Fold fc2 into the basis einsum (no nonlinearity in between):
    #     (h @ W2ᵀ + b2) @ basis_flat == h @ (W2ᵀ @ basis_flat) + b2 @ basis_flat
    basis_flat = raw["basis"].reshape(15, N_OUT)
    wcomb = (raw["fc2_w"] @ basis_flat).astype(jnp.bfloat16)   # (64, 4096) bf16
    bcomb = raw["fc2_b"] @ basis_flat                          # (4096,) f32

    return dict(cv1_w_mat=cv1_w_mat, cv1_b=raw["cv1_b"],
                fc1_w=fc1_w, fc1_b=raw["fc1_b"],
                wcomb=wcomb, bcomb=bcomb)


# ---------------------------------------------------------------------------
# Forward pass.
# ---------------------------------------------------------------------------
def my_cnn_forward(x, params):
    # x: (B, 1, 32, 32) NCHW float32
    B = x.shape[0]
    xb = x[:, 0, :, :].astype(jnp.bfloat16)

    # im2col (XLA glue; 4 KB/sample).  Patch-feature axis ordered (kh, kw),
    # matching cv1_w.reshape(64, 64).
    # TODO(synk): could be fused into the conv pallas_call; kept in XLA for
    # robustness of lowering.
    patches = jnp.stack(
        [xb[:, i:i + OH, j:j + OW] for i in range(8) for j in range(8)],
        axis=-1,
    ).reshape(B * OH * OW, 64)                                  # rows = (b, oh, ow)

    conv = conv_matmul(patches, params["cv1_w_mat"], params["cv1_b"])  # (B*625,64) bf16

    # (B*625, 64) -> (B, 40000) is a free row-major reinterpretation; rows are
    # already (h, w, c)-flat, matching the permuted fc1 weight.  Pad K.
    flat = conv.reshape(B, K_FC1)
    flat = jnp.pad(flat, ((0, 0), (0, K_FC1_PAD - K_FC1)))      # (B, 40192) bf16

    out = fc_fused(flat, params["fc1_w"], params["fc1_b"],
                   params["wcomb"], params["bcomb"])            # (B, 4096) f32
    return out.reshape(B, 1, 64, 64)


# ---------------------------------------------------------------------------
# Pure-JAX f32 reference (mirrors the PyTorch module) for a tolerance check.
# ---------------------------------------------------------------------------
def reference_forward(x, raw):
    B = x.shape[0]
    y = jax.lax.conv_general_dilated(
        x, raw["cv1_w"], window_strides=(1, 1), padding="VALID",
        dimension_numbers=("NCHW", "OIHW", "NCHW"))
    y = jnp.maximum(y + raw["cv1_b"].reshape(1, 64, 1, 1), 0.0)  # (B,64,25,25)
    flat = y.reshape(B, K_FC1)                                   # (c,h,w)-flat
    h = jnp.maximum(flat @ raw["fc1_w"] + raw["fc1_b"], 0.0)
    z = h @ raw["fc2_w"] + raw["fc2_b"]
    out = jax.nn.sigmoid(jnp.einsum("li,ijk->ljk", z, raw["basis"]))
    return out.reshape(B, 1, 64, 64)


if __name__ == "__main__":
    raw = init_raw_params()
    params = preprocess_params(raw)

    # fc1 requires a 25x25 conv map -> input spatial must be 32x32; batch = 2.
    x = jax.random.normal(jax.random.PRNGKey(0), (2, 1, 32, 32), dtype=jnp.float32)

    fwd = jax.jit(my_cnn_forward)
    out = jax.block_until_ready(fwd(x, params))

    assert out.shape == (2, 1, 64, 64), out.shape
    assert bool(jnp.all(jnp.isfinite(out)))

    # Tolerance check vs the f32 reference (bf16 streams => not bit-identical).
    ref = reference_forward(x, raw)
    max_err = float(jnp.max(jnp.abs(out - ref)))
    assert max_err < 5e-2, f"max abs error vs f32 reference: {max_err}"

    print("KERNEL_OK")
</pallas_src>

<mosaic_0001>
module attributes {stable_mosaic.version = 11 : i64} {
  func.func @_conv_kernel(%arg0: i32, %arg1: memref<1250x64xbf16, #tpu.memory_space<vmem>>, %arg2: memref<64x64xbf16, #tpu.memory_space<vmem>>, %arg3: memref<1x64xf32, #tpu.memory_space<vmem>>, %arg4: memref<1250x64xbf16, #tpu.memory_space<vmem>>) attributes {dimension_semantics = [#tpu.dimension_semantics<arbitrary>], iteration_bounds = array<i64: 1>, scalar_prefetch = 0 : i64, scratch_operands = 0 : i64, tpu.core_type = #tpu.core_type<tc>, window_params = [{pipeline_mode = #tpu.pipeline_mode<synchronous>, transform_indices = @transform_0, window_bounds = array<i64: 1250, 64>}, {pipeline_mode = #tpu.pipeline_mode<synchronous>, transform_indices = @transform_1, window_bounds = array<i64: 64, 64>}, {pipeline_mode = #tpu.pipeline_mode<synchronous>, transform_indices = @transform_2, window_bounds = array<i64: 1, 64>}, {pipeline_mode = #tpu.pipeline_mode<synchronous>, transform_indices = @transform_3, window_bounds = array<i64: 1250, 64>}]} {
    %c0 = arith.constant 0 : index
    %c0_0 = arith.constant 0 : index
    %0 = vector.load %arg1[%c0, %c0_0] : memref<1250x64xbf16, #tpu.memory_space<vmem>>, vector<1250x64xbf16>
    %c0_1 = arith.constant 0 : index
    %c0_2 = arith.constant 0 : index
    %1 = vector.load %arg2[%c0_1, %c0_2] : memref<64x64xbf16, #tpu.memory_space<vmem>>, vector<64x64xbf16>
    %cst = arith.constant dense<0.000000e+00> : vector<1250x64xf32>
    %2 = tpu.matmul %0, %1, %cst {dimension_numbers = #tpu.dot_dimension_numbers<[1], [0], [0], [1], [0, 0, 1, 1], [], []>} : vector<1250x64xbf16>, vector<64x64xbf16>, vector<1250x64xf32> -> vector<1250x64xf32>
    %c0_3 = arith.constant 0 : index
    %c0_4 = arith.constant 0 : index
    %3 = vector.load %arg3[%c0_3, %c0_4] : memref<1x64xf32, #tpu.memory_space<vmem>>, vector<1x64xf32>
    %4 = vector.broadcast %3 : vector<1x64xf32> to vector<1250x64xf32>
    %5 = arith.addf %2, %4 : vector<1250x64xf32>
    %cst_5 = arith.constant 0.000000e+00 : f32
    %6 = vector.broadcast %cst_5 : f32 to vector<1250x64xf32>
    %7 = arith.maximumf %5, %6 : vector<1250x64xf32>
    %8 = arith.truncf %7 : vector<1250x64xf32> to vector<1250x64xbf16>
    %c0_6 = arith.constant 0 : index
    %c0_7 = arith.constant 0 : index
    %9 = vector.load %arg4[%c0_6, %c0_7] : memref<1250x64xbf16, #tpu.memory_space<vmem>>, vector<1250x64xbf16>
    tpu.vector_store %arg4[%c0_6, %c0_7], %8 {strides = array<i32>} : memref<1250x64xbf16, #tpu.memory_space<vmem>>, vector<1250x64xbf16>,
    return
  }
  func.func @transform_0(%arg0: i32) -> (i32, i32) {
    %c0_i32 = arith.constant 0 : i32
    %c0_i32_0 = arith.constant 0 : i32
    %c0_i32_1 = arith.constant 0 : i32
    return %c0_i32, %c0_i32_0 : i32, i32
  }
  func.func @transform_1(%arg0: i32) -> (i32, i32) {
    %c0_i32 = arith.constant 0 : i32
    %c0_i32_0 = arith.constant 0 : i32
    %c0_i32_1 = arith.constant 0 : i32
    return %c0_i32, %c0_i32_0 : i32, i32
  }
  func.func @transform_2(%arg0: i32) -> (i32, i32) {
    %c0_i32 = arith.constant 0 : i32
    %c0_i32_0 = arith.constant 0 : i32
    %c0_i32_1 = arith.constant 0 : i32
    return %c0_i32, %c0_i32_0 : i32, i32
  }
  func.func @transform_3(%arg0: i32) -> (i32, i32) {
    %c0_i32 = arith.constant 0 : i32
    %c0_i32_0 = arith.constant 0 : i32
    %c0_i32_1 = arith.constant 0 : i32
    return %c0_i32, %c0_i32_0 : i32, i32
  }
}

module attributes {stable_mosaic.version = 11 : i64} {
  func.func @_fc_fused_kernel(%arg0: i32, %arg1: memref<2x20096xbf16, #tpu.memory_space<vmem>>, %arg2: memref<20096x64xbf16, #tpu.memory_space<vmem>>, %arg3: memref<1x64xf32, #tpu.memory_space<vmem>>, %arg4: memref<64x4096xbf16, #tpu.memory_space<vmem>>, %arg5: memref<1x4096xf32, #tpu.memory_space<vmem>>, %arg6: memref<2x4096xf32, #tpu.memory_space<vmem>>, %arg7: memref<2x64xf32, #tpu.memory_space<vmem>>) attributes {dimension_semantics = [#tpu.dimension_semantics<arbitrary>], iteration_bounds = array<i64: 2>, scalar_prefetch = 0 : i64, scratch_operands = 1 : i64, tpu.core_type = #tpu.core_type<tc>, window_params = [{transform_indices = @transform_0, window_bounds = array<i64: 2, 20096>}, {transform_indices = @transform_1, window_bounds = array<i64: 20096, 64>}, {pipeline_mode = #tpu.pipeline_mode<synchronous>, transform_indices = @transform_2, window_bounds = array<i64: 1, 64>}, {pipeline_mode = #tpu.pipeline_mode<synchronous>, transform_indices = @transform_3, window_bounds = array<i64: 64, 4096>}, {pipeline_mode = #tpu.pipeline_mode<synchronous>, transform_indices = @transform_4, window_bounds = array<i64: 1, 4096>}, {pipeline_mode = #tpu.pipeline_mode<synchronous>, transform_indices = @transform_5, window_bounds = array<i64: 2, 4096>}]} {
    %c0_i32 = arith.constant 0 : i32
    %0 = arith.cmpi eq, %arg0, %c0_i32 : i32
    %1 = arith.extui %0 : i1 to i32
    %c0_i32_0 = arith.constant 0 : i32
    %2 = arith.cmpi ne, %1, %c0_i32_0 : i32
    scf.if %2 {
      %cst_9 = arith.constant 0.000000e+00 : f32
      %12 = vector.broadcast %cst_9 : f32 to vector<2x64xf32>
      %c0_10 = arith.constant 0 : index
      %c0_11 = arith.constant 0 : index
      %13 = vector.load %arg7[%c0_10, %c0_11] : memref<2x64xf32, #tpu.memory_space<vmem>>, vector<2x64xf32>
      tpu.vector_store %arg7[%c0_10, %c0_11], %12 {strides = array<i32>} : memref<2x64xf32, #tpu.memory_space<vmem>>, vector<2x64xf32>,
    } else {
    }
    %c0 = arith.constant 0 : index
    %c0_1 = arith.constant 0 : index
    %3 = vector.load %arg7[%c0, %c0_1] : memref<2x64xf32, #tpu.memory_space<vmem>>, vector<2x64xf32>
    %c0_2 = arith.constant 0 : index
    %c0_3 = arith.constant 0 : index
    %4 = vector.load %arg1[%c0_2, %c0_3] : memref<2x20096xbf16, #tpu.memory_space<vmem>>, vector<2x20096xbf16>
    %c0_4 = arith.constant 0 : index
    %c0_5 = arith.constant 0 : index
    %5 = vector.load %arg2[%c0_4, %c0_5] : memref<20096x64xbf16, #tpu.memory_space<vmem>>, vector<20096x64xbf16>
    %cst = arith.constant dense<0.000000e+00> : vector<2x64xf32>
    %6 = tpu.matmul %4, %5, %cst {dimension_numbers = #tpu.dot_dimension_numbers<[1], [0], [0], [1], [0, 0, 1, 1], [], []>} : vector<2x20096xbf16>, vector<20096x64xbf16>, vector<2x64xf32> -> vector<2x64xf32>
    %7 = arith.addf %3, %6 : vector<2x64xf32>
    %c0_6 = arith.constant 0 : index
    %c0_7 = arith.constant 0 : index
    %8 = vector.load %arg7[%c0_6, %c0_7] : memref<2x64xf32, #tpu.memory_space<vmem>>, vector<2x64xf32>
    tpu.vector_store %arg7[%c0_6, %c0_7], %7 {strides = array<i32>} : memref<2x64xf32, #tpu.memory_space<vmem>>, vector<2x64xf32>,
    %c1_i32 = arith.constant 1 : i32
    %9 = arith.cmpi eq, %arg0, %c1_i32 : i32
    %10 = arith.extui %9 : i1 to i32
    %c0_i32_8 = arith.constant 0 : i32
    %11 = arith.cmpi ne, %10, %c0_i32_8 : i32
    scf.if %11 {
      %c0_9 = arith.constant 0 : index
      %c0_10 = arith.constant 0 : index
      %12 = vector.load %arg7[%c0_9, %c0_10] : memref<2x64xf32, #tpu.memory_space<vmem>>, vector<2x64xf32>
      %c0_11 = arith.constant 0 : index
      %c0_12 = arith.constant 0 : index
      %13 = vector.load %arg3[%c0_11, %c0_12] : memref<1x64xf32, #tpu.memory_space<vmem>>, vector<1x64xf32>
      %14 = vector.broadcast %13 : vector<1x64xf32> to vector<2x64xf32>
      %15 = arith.addf %12, %14 : vector<2x64xf32>
      %cst_13 = arith.constant 0.000000e+00 : f32
      %16 = vector.broadcast %cst_13 : f32 to vector<2x64xf32>
      %17 = arith.maximumf %15, %16 : vector<2x64xf32>
      %18 = arith.truncf %17 : vector<2x64xf32> to vector<2x64xbf16>
      %c0_14 = arith.constant 0 : index
      %c0_15 = arith.constant 0 : index
      %19 = vector.load %arg4[%c0_14, %c0_15] : memref<64x4096xbf16, #tpu.memory_space<vmem>>, vector<64x4096xbf16>
      %cst_16 = arith.constant dense<0.000000e+00> : vector<2x4096xf32>
      %20 = tpu.matmul %18, %19, %cst_16 {dimension_numbers = #tpu.dot_dimension_numbers<[1], [0], [0], [1], [0, 0, 1, 1], [], []>} : vector<2x64xbf16>, vector<64x4096xbf16>, vector<2x4096xf32> -> vector<2x4096xf32>
      %c0_17 = arith.constant 0 : index
      %c0_18 = arith.constant 0 : index
      %21 = vector.load %arg5[%c0_17, %c0_18] : memref<1x4096xf32, #tpu.memory_space<vmem>>, vector<1x4096xf32>
      %22 = vector.broadcast %21 : vector<1x4096xf32> to vector<2x4096xf32>
      %23 = arith.addf %20, %22 : vector<2x4096xf32>
      %24 = arith.negf %23 : vector<2x4096xf32>
      %25 = math.exp %24 : vector<2x4096xf32>
      %cst_19 = arith.constant 1.000000e+00 : f32
      %26 = vector.broadcast %cst_19 : f32 to vector<2x4096xf32>
      %27 = arith.addf %26, %25 : vector<2x4096xf32>
      %28 = arith.divf %26, %27 : vector<2x4096xf32>
      %c0_20 = arith.constant 0 : index
      %c0_21 = arith.constant 0 : index
      %29 = vector.load %arg6[%c0_20, %c0_21] : memref<2x4096xf32, #tpu.memory_space<vmem>>, vector<2x4096xf32>
      tpu.vector_store %arg6[%c0_20, %c0_21], %28 {strides = array<i32>} : memref<2x4096xf32, #tpu.memory_space<vmem>>, vector<2x4096xf32>,
    } else {
    }
    return
  }
  func.func @transform_0(%arg0: i32) -> (i32, i32) {
    %c0_i32 = arith.constant 0 : i32
    %c0_i32_0 = arith.constant 0 : i32
    return %c0_i32, %arg0 : i32, i32
  }
  func.func @transform_1(%arg0: i32) -> (i32, i32) {
    %c0_i32 = arith.constant 0 : i32
    %c0_i32_0 = arith.constant 0 : i32
    return %arg0, %c0_i32 : i32, i32
  }
  func.func @transform_2(%arg0: i32) -> (i32, i32) {
    %c0_i32 = arith.constant 0 : i32
    %c0_i32_0 = arith.constant 0 : i32
    %c0_i32_1 = arith.constant 0 : i32
    return %c0_i32, %c0_i32_0 : i32, i32
  }
  func.func @transform_3(%arg0: i32) -> (i32, i32) {
    %c0_i32 = arith.constant 0 : i32
    %c0_i32_0 = arith.constant 0 : i32
    %c0_i32_1 = arith.constant 0 : i32
    return %c0_i32, %c0_i32_0 : i32, i32
  }
  func.func @transform_4(%arg0: i32) -> (i32, i32) {
    %c0_i32 = arith.constant 0 : i32
    %c0_i32_0 = arith.constant 0 : i32
    %c0_i32_1 = arith.constant 0 : i32
    return %c0_i32, %c0_i32_0 : i32, i32
  }
  func.func @transform_5(%arg0: i32) -> (i32, i32) {
    %c0_i32 = arith.constant 0 : i32
    %c0_i32_0 = arith.constant 0 : i32
    %c0_i32_1 = arith.constant 0 : i32
    return %c0_i32, %c0_i32_0 : i32, i32
  }
}

</mosaic_0001>

<bundles_post_ra>
// kernel: my_cnn_forward.2
= control target key start
LH: loop header
LB: loop body
LE: loop exit
PB: predicated region body
PF: predicated region fallthrough
CT: control target
= control target key end

     0   :  { %v3434_v0 = vmov 0.0   ;;  %vm3435_vm0 = vmmov 0   ;;  %vm604_vm1 = vcmask 523264   ;;  %vm2292_vm2 = vcmask 519168   ;;  %s4745_s1 = inlined_call_operand.vmem [shape: bf16[64,64], index: 1, kind: input, shape index: {}]   ;;  %s4746_s0 = inlined_call_operand.vmem [shape: bf16[1250,64], index: 0, kind: input, shape index: {}]   ;;  %s4747_s2 = inlined_call_operand.vmem [shape: f32[1,64], index: 2, kind: input, shape index: {}]   ;;  %s4748_s3 = inlined_call_operand.vmem [shape: bf16[1250,64], index: 3, kind: output, shape index: {}]  }
   0x1   :  { %3015 = vmatprep.subr.bf16.mxu0 %v3434_v0  ;;  %v3349_v1 = vld [vmem:[%s4745_s1 + $0x18] sm:$0xff]   ;;  %3339 = vmatprep.subr.bf16.mxu1 %v3434_v0  ;;  %v3350_v2 = vld [vmem:[%s4745_s1 + $0x10] sm:$0xff]   ;;  %v3351_v3 = vld [vmem:[%s4745_s1 + $0x8] sm:$0xff]   ;;  %vm2449_vm3 = vcmask 516096  }
   0x2   :  { %3023 = vmatprep.mubr.msk.bf16.mxu0 %vm3435_vm0, %v3434_v0  ;;  %3183 = vmatprep.mubr.msk.bf16.mxu1 %vm3435_vm0, %v3434_v0  ;;  %v3352_v4 = vld [vmem:[%s4745_s1] sm:$0xff]   ;;  %v3355_v7 = vld [vmem:[%s4746_s0 + $0x8] sm:$0xff]   ;;  %v3357_v9 = vld [vmem:[%s4746_s0 + $0x10] sm:$0xff]  }
   0x3   :  { %3016 = vmatpush3.bf16.msra.mxu0 %v3349_v1  ;;  %3343 = vmatpush3.bf16.msra.mxu1 %v3349_v1  ;;  %v3353_v5 = vld [vmem:[%s4746_s0] sm:$0xff]   ;;  %v3356_v8 = vld [vmem:[%s4746_s0 + $0x148] sm:$0xff]   ;;  %v3358_v10 = vld [vmem:[%s4746_s0 + $0x150] sm:$0xff]  }
   0x4   :  { %3017 = vmatprep.subr.bf16.mxu0 %v3434_v0  ;;  %3340 = vmatprep.subr.bf16.mxu1 %v3434_v0  ;;  %v3354_v6 = vld [vmem:[%s4746_s0 + $0x140] sm:$0xff]   ;;  %v3359_v11 = vld [vmem:[%s4746_s0 + $0x18] sm:$0xff]   ;;  %v3363_v15 = vld [vmem:[%s4746_s0 + $0x28] sm:$0xff]  }
   0x5   :  { %v3360_v12 = vld [vmem:[%s4746_s0 + $0x158] sm:$0xff]   ;;  %v3361_v13 = vld [vmem:[%s4746_s0 + $0x20] sm:$0xff]   ;;  %v3364_v16 = vld [vmem:[%s4746_s0 + $0x168] sm:$0xff]  }
   0x6   :  { %v3362_v14 = vld [vmem:[%s4746_s0 + $0x160] sm:$0xff]   ;;  %v3365_v17 = vld [vmem:[%s4746_s0 + $0x30] sm:$0xff]   ;;  %v3367_v19 = vld [vmem:[%s4746_s0 + $0x38] sm:$0xff]  }
   0x7   :  { %3018 = vmatpush3.bf16.msra.mxu0 %v3350_v2  ;;  %3344 = vmatpush3.bf16.msra.mxu1 %v3350_v2  ;;  %v3366_v18 = vld [vmem:[%s4746_s0 + $0x170] sm:$0xff]   ;;  %v3368_v20 = vld [vmem:[%s4746_s0 + $0x178] sm:$0xff]   ;;  %v3369_v21 = vld [vmem:[%s4746_s0 + $0x40] sm:$0xff]  }
   0x8   :  { %3019 = vmatprep.subr.bf16.mxu0 %v3434_v0  ;;  %3341 = vmatprep.subr.bf16.mxu1 %v3434_v0  ;;  %v3370_v22 = vld [vmem:[%s4746_s0 + $0x180] sm:$0xff]   ;;  %v3371_v23 = vld [vmem:[%s4746_s0 + $0x48] sm:$0xff]   ;;  %v3373_v25 = vld [vmem:[%s4746_s0 + $0x50] sm:$0xff]  }
   0x9   :  { %v3372_v24 = vld [vmem:[%s4746_s0 + $0x188] sm:$0xff]   ;;  %v3374_v26 = vld [vmem:[%s4746_s0 + $0x190] sm:$0xff]   ;;  %v3375_v27 = vld [vmem:[%s4746_s0 + $0x58] sm:$0xff]  }
   0xa   :  { %v3376_v28 = vld [vmem:[%s4746_s0 + $0x198] sm:$0xff]   ;;  %v3377_v29 = vld [vmem:[%s4746_s0 + $0x60] sm:$0xff]   ;;  %v3379_v31 = vld [vmem:[%s4746_s0 + $0x68] sm:$0xff]  }
   0xb   :  { %3020 = vmatpush3.bf16.msra.mxu0 %v3351_v3  ;;  %3345 = vmatpush3.bf16.msra.mxu1 %v3351_v3  ;;  %v3378_v30 = vld [vmem:[%s4746_s0 + $0x1a0] sm:$0xff]   ;;  %v3380_v32 = vld [vmem:[%s4746_s0 + $0x1a8] sm:$0xff]   ;;  %v3381_v33 = vld [vmem:[%s4746_s0 + $0x70] sm:$0xff]  }
   0xc   :  { %3021 = vmatprep.subr.bf16.mxu0 %v3434_v0  ;;  %3342 = vmatprep.subr.bf16.mxu1 %v3434_v0  ;;  %v3382_v34 = vld [vmem:[%s4746_s0 + $0x1b0] sm:$0xff]   ;;  %v3383_v35 = vld [vmem:[%s4746_s0 + $0x78] sm:$0xff]   ;;  %v3385_v37 = vld [vmem:[%s4746_s0 + $0x80] sm:$0xff]  }
   0xd   :  { %v3384_v36 = vld [vmem:[%s4746_s0 + $0x1b8] sm:$0xff]   ;;  %v3386_v38 = vld [vmem:[%s4746_s0 + $0x1c0] sm:$0xff]   ;;  %v3387_v39 = vld [vmem:[%s4746_s0 + $0x88] sm:$0xff]  }
   0xe   :  { %v3388_v40 = vld [vmem:[%s4746_s0 + $0x1c8] sm:$0xff]   ;;  %v3389_v41 = vld [vmem:[%s4746_s0 + $0x90] sm:$0xff]   ;;  %v3391_v43 = vld [vmem:[%s4746_s0 + $0x98] sm:$0xff]  }
   0xf   :  { %3022 = vmatpush3.bf16.msra.mxu0 %v3352_v4  ;;  %3346 = vmatpush3.bf16.msra.mxu1 %v3352_v4  ;;  %v3390_v42 = vld [vmem:[%s4746_s0 + $0x1d0] sm:$0xff]   ;;  %v3392_v44 = vld [vmem:[%s4746_s0 + $0x1d8] sm:$0xff]   ;;  %v3393_v45 = vld [vmem:[%s4746_s0 + $0xa0] sm:$0xff]  }
  0x10   :  { %v3394_v46 = vld [vmem:[%s4746_s0 + $0x1e0] sm:$0xff]   ;;  %v3395_v47 = vld [vmem:[%s4746_s0 + $0xa8] sm:$0xff]   ;;  %v3397_v49 = vld [vmem:[%s4746_s0 + $0xb0] sm:$0xff]  }
  0x11   :  { %v3396_v48 = vld [vmem:[%s4746_s0 + $0x1e8] sm:$0xff]   ;;  %v3398_v50 = vld [vmem:[%s4746_s0 + $0x1f0] sm:$0xff]   ;;  %v3399_v51 = vld [vmem:[%s4746_s0 + $0xb8] sm:$0xff]  }
  0x12   :  { %3024 = vmatmul.mubr.msk.bf16.vlgmr.msra.gmra.mxu0 %vm604_vm1, %v3353_v5  ;;  %3184 = vmatmul.mubr.msk.bf16.vlgmr.msra.gmra.mxu1 %vm604_vm1, %v3354_v6  ;;  %v3400_v52 = vld [vmem:[%s4746_s0 + $0x1f8] sm:$0xff]   ;;  %v3401_v53 = vld [vmem:[%s4746_s0 + $0xc0] sm:$0xff]   ;;  %v3403_v2 = vld [vmem:[%s4746_s0 + $0xc8] sm:$0xff]  }
  0x13   :  { %3027 = vmatprep.mubr.msk.bf16.mxu0 %vm3435_vm0, %v3434_v0  ;;  %3187 = vmatprep.mubr.msk.bf16.mxu1 %vm3435_vm0, %v3434_v0  ;;  %v3402_v54 = vld [vmem:[%s4746_s0 + $0x200] sm:$0xff]   ;;  %v3404_v4 = vld [vmem:[%s4746_s0 + $0x208] sm:$0xff]  }
  0x14   :  { %v3777_v55 = vld [vmem:[%s4747_s2] ss:$0 sm:$0xff] }
  0x1a   :  { %3028 = vmatmul.mubr.msk.bf16.gmra.mxu0 %vm604_vm1, %v3355_v7  ;;  %3188 = vmatmul.mubr.msk.bf16.gmra.mxu1 %vm604_vm1, %v3356_v8 }
  0x1b   :  { %3031 = vmatprep.mubr.msk.bf16.mxu0 %vm3435_vm0, %v3434_v0  ;;  %3191 = vmatprep.mubr.msk.bf16.mxu1 %vm3435_vm0, %v3434_v0 }
  0x22   :  { %3032 = vmatmul.mubr.msk.bf16.gmra.mxu0 %vm604_vm1, %v3357_v9  ;;  %3192 = vmatmul.mubr.msk.bf16.gmra.mxu1 %vm604_vm1, %v3358_v10 }
  0x23   :  { %3035 = vmatprep.mubr.msk.bf16.mxu0 %vm3435_vm0, %v3434_v0  ;;  %3195 = vmatprep.mubr.msk.bf16.mxu1 %vm3435_vm0, %v3434_v0 }
  0x2a   :  { %3036 = vmatmul.mubr.msk.bf16.gmra.mxu0 %vm604_vm1, %v3359_v11  ;;  %3196 = vmatmul.mubr.msk.bf16.gmra.mxu1 %vm604_vm1, %v3360_v12 }
  0x2b   :  { %3039 = vmatprep.mubr.msk.bf16.mxu0 %vm3435_vm0, %v3434_v0  ;;  %3199 = vmatprep.mubr.msk.bf16.mxu1 %vm3435_vm0, %v3434_v0 }
  0x32   :  { %3040 = vmatmul.mubr.msk.bf16.gmra.mxu0 %vm604_vm1, %v3361_v13  ;;  %3200 = vmatmul.mubr.msk.bf16.gmra.mxu1 %vm604_vm1, %v3362_v14 }
  0x33   :  { %3043 = vmatprep.mubr.msk.bf16.mxu0 %vm3435_vm0, %v3434_v0  ;;  %3203 = vmatprep.mubr.msk.bf16.mxu1 %vm3435_vm0, %v3434_v0 }
  0x3a   :  { %3044 = vmatmul.mubr.msk.bf16.gmra.mxu0 %vm604_vm1, %v3363_v15  ;;  %3204 = vmatmul.mubr.msk.bf16.gmra.mxu1 %vm604_vm1, %v3364_v16 }
  0x3b   :  { %3047 = vmatprep.mubr.msk.bf16.mxu0 %vm3435_vm0, %v3434_v0  ;;  %3207 = vmatprep.mubr.msk.bf16.mxu1 %vm3435_vm0, %v3434_v0 }
  0x42   :  { %3048 = vmatmul.mubr.msk.bf16.gmra.mxu0 %vm604_vm1, %v3365_v17  ;;  %3208 = vmatmul.mubr.msk.bf16.gmra.mxu1 %vm604_vm1, %v3366_v18 }
  0x43   :  { %3051 = vmatprep.mubr.msk.bf16.mxu0 %vm3435_vm0, %v3434_v0  ;;  %3211 = vmatprep.mubr.msk.bf16.mxu1 %vm3435_vm0, %v3434_v0 }
  0x4a   :  { %3052 = vmatmul.mubr.msk.bf16.gmra.mxu0 %vm604_vm1, %v3367_v19  ;;  %3212 = vmatmul.mubr.msk.bf16.gmra.mxu1 %vm604_vm1, %v3368_v20 }
  0x4b   :  { %3055 = vmatprep.mubr.msk.bf16.mxu0 %vm3435_vm0, %v3434_v0  ;;  %3215 = vmatprep.mubr.msk.bf16.mxu1 %vm3435_vm0, %v3434_v0 }
  0x52   :  { %3056 = vmatmul.mubr.msk.bf16.gmra.mxu0 %vm604_vm1, %v3369_v21  ;;  %3216 = vmatmul.mubr.msk.bf16.gmra.mxu1 %vm604_vm1, %v3370_v22 }
  0x53   :  { %3059 = vmatprep.mubr.msk.bf16.mxu0 %vm3435_vm0, %v3434_v0  ;;  %3219 = vmatprep.mubr.msk.bf16.mxu1 %vm3435_vm0, %v3434_v0 }
  0x5a   :  { %3060 = vmatmul.mubr.msk.bf16.gmra.mxu0 %vm604_vm1, %v3371_v23  ;;  %3220 = vmatmul.mubr.msk.bf16.gmra.mxu1 %vm604_vm1, %v3372_v24  ;;  %v3405_v24 = vld [vmem:[%s4746_s0 + $0xd0] sm:$0xff]  }
  0x5b   :  { %3063 = vmatprep.mubr.msk.bf16.mxu0 %vm3435_vm0, %v3434_v0  ;;  %3223 = vmatprep.mubr.msk.bf16.mxu1 %vm3435_vm0, %v3434_v0 }
  0x62   :  { %3064 = vmatmul.mubr.msk.bf16.gmra.mxu0 %vm604_vm1, %v3373_v25  ;;  %3224 = vmatmul.mubr.msk.bf16.gmra.mxu1 %vm604_vm1, %v3374_v26  ;;  %v3406_v26 = vld [vmem:[%s4746_s0 + $0x210] sm:$0xff]  }
  0x63   :  { %3067 = vmatprep.mubr.msk.bf16.mxu0 %vm3435_vm0, %v3434_v0  ;;  %3227 = vmatprep.mubr.msk.bf16.mxu1 %vm3435_vm0, %v3434_v0 }
  0x6a   :  { %3068 = vmatmul.mubr.msk.bf16.gmra.mxu0 %vm604_vm1, %v3375_v27  ;;  %3228 = vmatmul.mubr.msk.bf16.gmra.mxu1 %vm604_vm1, %v3376_v28 }
  0x6b   :  { %3071 = vmatprep.mubr.msk.bf16.mxu0 %vm3435_vm0, %v3434_v0  ;;  %3231 = vmatprep.mubr.msk.bf16.mxu1 %vm3435_vm0, %v3434_v0 }
  0x72   :  { %3072 = vmatmul.mubr.msk.bf16.gmra.mxu0 %vm604_vm1, %v3377_v29  ;;  %3232 = vmatmul.mubr.msk.bf16.gmra.mxu1 %vm604_vm1, %v3378_v30 }
  0x73   :  { %3075 = vmatprep.mubr.msk.bf16.mxu0 %vm3435_vm0, %v3434_v0  ;;  %3235 = vmatprep.mubr.msk.bf16.mxu1 %vm3435_vm0, %v3434_v0 }
  0x7a   :  { %3076 = vmatmul.mubr.msk.bf16.gmra.mxu0 %vm604_vm1, %v3379_v31  ;;  %3236 = vmatmul.mubr.msk.bf16.gmra.mxu1 %vm604_vm1, %v3380_v32 }
  0x7b   :  { %3079 = vmatprep.mubr.msk.bf16.mxu0 %vm3435_vm0, %v3434_v0  ;;  %3239 = vmatprep.mubr.msk.bf16.mxu1 %vm3435_vm0, %v3434_v0 }
  0x82   :  { %3080 = vmatmul.mubr.msk.bf16.gmra.mxu0 %vm604_vm1, %v3381_v33  ;;  %3240 = vmatmul.mubr.msk.bf16.gmra.mxu1 %vm604_vm1, %v3382_v34 }
  0x83   :  { %3083 = vmatprep.mubr.msk.bf16.mxu0 %vm3435_vm0, %v3434_v0  ;;  %3243 = vmatprep.mubr.msk.bf16.mxu1 %vm3435_vm0, %v3434_v0 }
  0x8a   :  { %3084 = vmatmul.mubr.msk.bf16.gmra.mxu0 %vm604_vm1, %v3383_v35  ;;  %3244 = vmatmul.mubr.msk.bf16.gmra.mxu1 %vm604_vm1, %v3384_v36 }
  0x8b   :  { %3087 = vmatprep.mubr.msk.bf16.mxu0 %vm3435_vm0, %v3434_v0  ;;  %3247 = vmatprep.mubr.msk.bf16.mxu1 %vm3435_vm0, %v3434_v0 }
  0x92   :  { %3088 = vmatmul.mubr.msk.bf16.gmra.mxu0 %vm604_vm1, %v3385_v37  ;;  %3248 = vmatmul.mubr.msk.bf16.gmra.mxu1 %vm604_vm1, %v3386_v38 }
  0x93   :  { %3091 = vmatprep.mubr.msk.bf16.mxu0 %vm3435_vm0, %v3434_v0  ;;  %3251 = vmatprep.mubr.msk.bf16.mxu1 %vm3435_vm0, %v3434_v0 }
  0x9a   :  { %3092 = vmatmul.mubr.msk.bf16.gmra.mxu0 %vm604_vm1, %v3387_v39  ;;  %3252 = vmatmul.mubr.msk.bf16.gmra.mxu1 %vm604_vm1, %v3388_v40 }
  0x9b   :  { %3095 = vmatprep.mubr.msk.bf16.mxu0 %vm3435_vm0, %v3434_v0  ;;  %3255 = vmatprep.mubr.msk.bf16.mxu1 %vm3435_vm0, %v3434_v0 }
  0xa2   :  { %3096 = vmatmul.mubr.msk.bf16.gmra.mxu0 %vm604_vm1, %v3389_v41  ;;  %3256 = vmatmul.mubr.msk.bf16.gmra.mxu1 %vm604_vm1, %v3390_v42 }
  0xa3   :  { %3099 = vmatprep.mubr.msk.bf16.mxu0 %vm3435_vm0, %v3434_v0  ;;  %3259 = vmatprep.mubr.msk.bf16.mxu1 %vm3435_vm0, %v3434_v0 }
  0xaa   :  { %3100 = vmatmul.mubr.msk.bf16.gmra.mxu0 %vm604_vm1, %v3391_v43  ;;  %3260 = vmatmul.mubr.msk.bf16.gmra.mxu1 %vm604_vm1, %v3392_v44 }
  0xab   :  { %3103 = vmatprep.mubr.msk.bf16.mxu0 %vm3435_vm0, %v3434_v0  ;;  %3263 = vmatprep.mubr.msk.bf16.mxu1 %vm3435_vm0, %v3434_v0 }
  0xb2   :  { %3104 = vmatmul.mubr.msk.bf16.gmra.mxu0 %vm604_vm1, %v3393_v45  ;;  %3264 = vmatmul.mubr.msk.bf16.gmra.mxu1 %vm604_vm1, %v3394_v46  ;;  %v3407_v46 = vld [vmem:[%s4746_s0 + $0xd8] sm:$0xff]  }
  0xb3   :  { %3107 = vmatprep.mubr.msk.bf16.mxu0 %vm3435_vm0, %v3434_v0  ;;  %3267 = vmatprep.mubr.msk.bf16.mxu1 %vm3435_vm0, %v3434_v0 }
  0xba   :  { %3108 = vmatmul.mubr.msk.bf16.gmra.mxu0 %vm604_vm1, %v3395_v47  ;;  %3268 = vmatmul.mubr.msk.bf16.gmra.mxu1 %vm604_vm1, %v3396_v48  ;;  %v3408_v48 = vld [vmem:[%s4746_s0 + $0x218] sm:$0xff]  }
  0xbb   :  { %3111 = vmatprep.mubr.msk.bf16.mxu0 %vm3435_vm0, %v3434_v0  ;;  %3271 = vmatprep.mubr.msk.bf16.mxu1 %vm3435_vm0, %v3434_v0 }
  0xc2   :  { %3112 = vmatmul.mubr.msk.bf16.gmra.mxu0 %vm604_vm1, %v3397_v49  ;;  %3272 = vmatmul.mubr.msk.bf16.gmra.mxu1 %vm604_vm1, %v3398_v50 }
  0xc3   :  { %3115 = vmatprep.mubr.msk.bf16.mxu0 %vm3435_vm0, %v3434_v0  ;;  %3275 = vmatprep.mubr.msk.bf16.mxu1 %vm3435_vm0, %v3434_v0 }
  0xca   :  { %3116 = vmatmul.mubr.msk.bf16.gmra.mxu0 %vm604_vm1, %v3399_v51  ;;  %3276 = vmatmul.mubr.msk.bf16.gmra.mxu1 %vm604_vm1, %v3400_v52 }
  0xcb   :  { %3119 = vmatprep.mubr.msk.bf16.mxu0 %vm3435_vm0, %v3434_v0  ;;  %3279 = vmatprep.mubr.msk.bf16.mxu1 %vm3435_vm0, %v3434_v0 }
  0xd2   :  { %v876_v56 = vpop.f32.mrf.mxu0  ;;  %3120 = vmatmul.mubr.msk.bf16.gmra.mxu0 %vm604_vm1, %v3401_v53  ;;  %v1196_v57 = vpop.f32.mrf.mxu1  ;;  %3280 = vmatmul.mubr.msk.bf16.gmra.mxu1 %vm604_vm1, %v3402_v54 }
  0xd3   :  { %v877_v58 = vadd.f32 %v3777_v55, %v876_v56  ;;  %v1197_v59 = vadd.f32 %v3777_v55, %v1196_v57  ;;  %3123 = vmatprep.mubr.msk.bf16.mxu0 %vm3435_vm0, %v3434_v0  ;;  %3283 = vmatprep.mubr.msk.bf16.mxu1 %vm3435_vm0, %v3434_v0 }
  0xd4   :  { %v3025_v60 = vpop.f32.mrf.mxu0  ;;  %v3185_v61 = vpop.f32.mrf.mxu1 }
  0xd5   :  { %v1506_v62 = vmax.f32 %v877_v58, 0.0  ;;  %v1586_v63 = vmax.f32 %v1197_v59, 0.0 }
  0xd6   :  { %v879_v1 = vpop.f32.mrf.mxu0  ;;  %v1199_v3 = vpop.f32.mrf.mxu1 }
  0xd7   :  { %v2775_v5 = vpack.c.bf16 %v1506_v62, %v1506_v62  ;;  %v880_v6 = vadd.f32 %v3777_v55, %v879_v1  ;;  %v2855_v7 = vpack.c.bf16 %v1586_v63, %v1586_v63  ;;  %v1200_v8 = vadd.f32 %v3777_v55, %v1199_v3 }
  0xd8   :  { %v3026_v9 = vpop.f32.mrf.mxu0  ;;  %v3186_v10 = vpop.f32.mrf.mxu1 }
  0xd9   :  { %2293 = vst.msk [vmem:[%s4748_s3] sm:$0xf] %vm2292_vm2, %v2775_v5  ;;  %v1507_v11 = vmax.f32 %v880_v6, 0.0  ;;  %2373 = vst.msk [vmem:[%s4748_s3 + $0x140] sm:$0xf] %vm2292_vm2, %v2855_v7  ;;  %v1587_v12 = vmax.f32 %v1200_v8, 0.0 }
  0xda   :  { %v884_v13 = vpop.f32.mrf.mxu0  ;;  %3124 = vmatmul.mubr.msk.bf16.gmra.mxu0 %vm604_vm1, %v3403_v2  ;;  %v1204_v14 = vpop.f32.mrf.mxu1  ;;  %3284 = vmatmul.mubr.msk.bf16.gmra.mxu1 %vm604_vm1, %v3404_v4  ;;  %v3409_v6 = vld [vmem:[%s4746_s0 + $0xe0] sm:$0xff]  }
  0xdb   :  { %v2776_v15 = vpack.c.bf16 %v1507_v11, %v1507_v11  ;;  %v885_v16 = vadd.f32 %v3777_v55, %v884_v13  ;;  %v2856_v17 = vpack.c.bf16 %v1587_v12, %v1587_v12  ;;  %v1205_v18 = vadd.f32 %v3777_v55, %v1204_v14  ;;  %3127 = vmatprep.mubr.msk.bf16.mxu0 %vm3435_vm0, %v3434_v0  ;;  %v3410_v8 = vld [vmem:[%s4746_s0 + $0x220] sm:$0xff]  }
  0xdc   :  { %v3029_v19 = vpop.f32.mrf.mxu0  ;;  %v3189_v20 = vpop.f32.mrf.mxu1  ;;  %3287 = vmatprep.mubr.msk.bf16.mxu1 %vm3435_vm0, %v3434_v0 }
  0xdd   :  { %2294 = vst.msk [vmem:[%s4748_s3 + $0x4] sm:$0xf] %vm2292_vm2, %v2776_v15  ;;  %v1508_v21 = vmax.f32 %v885_v16, 0.0  ;;  %2374 = vst.msk [vmem:[%s4748_s3 + $0x144] sm:$0xf] %vm2292_vm2, %v2856_v17  ;;  %v1588_v22 = vmax.f32 %v1205_v18, 0.0 }
  0xde   :  { %v887_v23 = vpop.f32.mrf.mxu0  ;;  %v1207_v25 = vpop.f32.mrf.mxu1 }
  0xdf   :  { %v2777_v27 = vpack.c.bf16 %v1508_v21, %v1508_v21  ;;  %v888_v28 = vadd.f32 %v3777_v55, %v887_v23  ;;  %v2857_v29 = vpack.c.bf16 %v1588_v22, %v1588_v22  ;;  %v1208_v30 = vadd.f32 %v3777_v55, %v1207_v25 }
  0xe0   :  { %v3030_v31 = vpop.f32.mrf.mxu0  ;;  %v3190_v32 = vpop.f32.mrf.mxu1 }
  0xe1   :  { %2295 = vst.msk [vmem:[%s4748_s3 + $0x8] sm:$0xf] %vm2292_vm2, %v2777_v27  ;;  %v1509_v33 = vmax.f32 %v888_v28, 0.0  ;;  %2375 = vst.msk [vmem:[%s4748_s3 + $0x148] sm:$0xf] %vm2292_vm2, %v2857_v29  ;;  %v1589_v34 = vmax.f32 %v1208_v30, 0.0 }
  0xe2   :  { %v892_v35 = vpop.f32.mrf.mxu0  ;;  %3128 = vmatmul.mubr.msk.bf16.gmra.mxu0 %vm604_vm1, %v3405_v24  ;;  %v1212_v36 = vpop.f32.mrf.mxu1  ;;  %3288 = vmatmul.mubr.msk.bf16.gmra.mxu1 %vm604_vm1, %v3406_v26  ;;  %v3411_v28 = vld [vmem:[%s4746_s0 + $0xe8] sm:$0xff]  }
  0xe3   :  { %v2778_v37 = vpack.c.bf16 %v1509_v33, %v1509_v33  ;;  %v893_v38 = vadd.f32 %v3777_v55, %v892_v35  ;;  %v2858_v39 = vpack.c.bf16 %v1589_v34, %v1589_v34  ;;  %v1213_v40 = vadd.f32 %v3777_v55, %v1212_v36  ;;  %3131 = vmatprep.mubr.msk.bf16.mxu0 %vm3435_vm0, %v3434_v0  ;;  %v3412_v30 = vld [vmem:[%s4746_s0 + $0x228] sm:$0xff]  }
  0xe4   :  { %v3033_v41 = vpop.f32.mrf.mxu0  ;;  %v3193_v42 = vpop.f32.mrf.mxu1  ;;  %3291 = vmatprep.mubr.msk.bf16.mxu1 %vm3435_vm0, %v3434_v0 }
  0xe5   :  { %2296 = vst.msk [vmem:[%s4748_s3 + $0xc] sm:$0xf] %vm2292_vm2, %v2778_v37  ;;  %v1510_v43 = vmax.f32 %v893_v38, 0.0  ;;  %2376 = vst.msk [vmem:[%s4748_s3 + $0x14c] sm:$0xf] %vm2292_vm2, %v2858_v39  ;;  %v1590_v44 = vmax.f32 %v1213_v40, 0.0 }
  0xe6   :  { %v895_v45 = vpop.f32.mrf.mxu0  ;;  %v1215_v47 = vpop.f32.mrf.mxu1 }
  0xe7   :  { %v2779_v49 = vpack.c.bf16 %v1510_v43, %v1510_v43  ;;  %v896_v50 = vadd.f32 %v3777_v55, %v895_v45  ;;  %v2859_v51 = vpack.c.bf16 %v1590_v44, %v1590_v44  ;;  %v1216_v52 = vadd.f32 %v3777_v55, %v1215_v47 }
  0xe8   :  { %v3034_v53 = vpop.f32.mrf.mxu0  ;;  %v3194_v54 = vpop.f32.mrf.mxu1 }
  0xe9   :  { %2297 = vst.msk [vmem:[%s4748_s3 + $0x10] sm:$0xf] %vm2292_vm2, %v2779_v49  ;;  %v1511_v56 = vmax.f32 %v896_v50, 0.0  ;;  %2377 = vst.msk [vmem:[%s4748_s3 + $0x150] sm:$0xf] %vm2292_vm2, %v2859_v51  ;;  %v1591_v57 = vmax.f32 %v1216_v52, 0.0 }
  0xea   :  { %v900_v58 = vpop.f32.mrf.mxu0  ;;  %3132 = vmatmul.mubr.msk.bf16.gmra.mxu0 %vm604_vm1, %v3407_v46  ;;  %v1220_v59 = vpop.f32.mrf.mxu1  ;;  %3292 = vmatmul.mubr.msk.bf16.gmra.mxu1 %vm604_vm1, %v3408_v48  ;;  %v3413_v50 = vld [vmem:[%s4746_s0 + $0xf0] sm:$0xff]  }
  0xeb   :  { %v2780_v60 = vpack.c.bf16 %v1511_v56, %v1511_v56  ;;  %v901_v61 = vadd.f32 %v3777_v55, %v900_v58  ;;  %v2860_v62 = vpack.c.bf16 %v1591_v57, %v1591_v57  ;;  %v1221_v63 = vadd.f32 %v3777_v55, %v1220_v59  ;;  %3135 = vmatprep.mubr.msk.bf16.mxu0 %vm3435_vm0, %v3434_v0  ;;  %v3414_v52 = vld [vmem:[%s4746_s0 + $0x230] sm:$0xff]  }
  0xec   :  { %v3037_v1 = vpop.f32.mrf.mxu0  ;;  %v3197_v2 = vpop.f32.mrf.mxu1  ;;  %3295 = vmatprep.mubr.msk.bf16.mxu1 %vm3435_vm0, %v3434_v0 }
  0xed   :  { %2298 = vst.msk [vmem:[%s4748_s3 + $0x14] sm:$0xf] %vm2292_vm2, %v2780_v60  ;;  %v1512_v3 = vmax.f32 %v901_v61, 0.0  ;;  %2378 = vst.msk [vmem:[%s4748_s3 + $0x154] sm:$0xf] %vm2292_vm2, %v2860_v62  ;;  %v1592_v4 = vmax.f32 %v1221_v63, 0.0 }
  0xee   :  { %v903_v5 = vpop.f32.mrf.mxu0  ;;  %v1223_v7 = vpop.f32.mrf.mxu1 }
  0xef   :  { %v2781_v9 = vpack.c.bf16 %v1512_v3, %v1512_v3  ;;  %v904_v10 = vadd.f32 %v3777_v55, %v903_v5  ;;  %v2861_v11 = vpack.c.bf16 %v1592_v4, %v1592_v4  ;;  %v1224_v12 = vadd.f32 %v3777_v55, %v1223_v7 }
  0xf0   :  { %v3038_v13 = vpop.f32.mrf.mxu0  ;;  %v3198_v14 = vpop.f32.mrf.mxu1 }
  0xf1   :  { %2299 = vst.msk [vmem:[%s4748_s3 + $0x18] sm:$0xf] %vm2292_vm2, %v2781_v9  ;;  %v1513_v15 = vmax.f32 %v904_v10, 0.0  ;;  %2379 = vst.msk [vmem:[%s4748_s3 + $0x158] sm:$0xf] %vm2292_vm2, %v2861_v11  ;;  %v1593_v16 = vmax.f32 %v1224_v12, 0.0 }
  0xf2   :  { %v908_v17 = vpop.f32.mrf.mxu0  ;;  %3136 = vmatmul.mubr.msk.bf16.gmra.mxu0 %vm604_vm1, %v3409_v6  ;;  %v1228_v18 = vpop.f32.mrf.mxu1  ;;  %3296 = vmatmul.mubr.msk.bf16.gmra.mxu1 %vm604_vm1, %v3410_v8  ;;  %v3415_v10 = vld [vmem:[%s4746_s0 + $0xf8] sm:$0xff]  }
  0xf3   :  { %v2782_v19 = vpack.c.bf16 %v1513_v15, %v1513_v15  ;;  %v909_v20 = vadd.f32 %v3777_v55, %v908_v17  ;;  %v2862_v21 = vpack.c.bf16 %v1593_v16, %v1593_v16  ;;  %v1229_v22 = vadd.f32 %v3777_v55, %v1228_v18  ;;  %3139 = vmatprep.mubr.msk.bf16.mxu0 %vm3435_vm0, %v3434_v0  ;;  %v3416_v12 = vld [vmem:[%s4746_s0 + $0x238] sm:$0xff]  }
  0xf4   :  { %v3041_v23 = vpop.f32.mrf.mxu0  ;;  %v3201_v24 = vpop.f32.mrf.mxu1  ;;  %3299 = vmatprep.mubr.msk.bf16.mxu1 %vm3435_vm0, %v3434_v0 }
  0xf5   :  { %2300 = vst.msk [vmem:[%s4748_s3 + $0x1c] sm:$0xf] %vm2292_vm2, %v2782_v19  ;;  %v1514_v25 = vmax.f32 %v909_v20, 0.0  ;;  %2380 = vst.msk [vmem:[%s4748_s3 + $0x15c] sm:$0xf] %vm2292_vm2, %v2862_v21  ;;  %v1594_v26 = vmax.f32 %v1229_v22, 0.0 }
  0xf6   :  { %v911_v27 = vpop.f32.mrf.mxu0  ;;  %v1231_v29 = vpop.f32.mrf.mxu1 }
  0xf7   :  { %v2783_v31 = vpack.c.bf16 %v1514_v25, %v1514_v25  ;;  %v912_v32 = vadd.f32 %v3777_v55, %v911_v27  ;;  %v2863_v33 = vpack.c.bf16 %v1594_v26, %v1594_v26  ;;  %v1232_v34 = vadd.f32 %v3777_v55, %v1231_v29 }
  0xf8   :  { %v3042_v35 = vpop.f32.mrf.mxu0  ;;  %v3202_v36 = vpop.f32.mrf.mxu1 }
  0xf9   :  { %2301 = vst.msk [vmem:[%s4748_s3 + $0x20] sm:$0xf] %vm2292_vm2, %v2783_v31  ;;  %v1515_v37 = vmax.f32 %v912_v32, 0.0  ;;  %2381 = vst.msk [vmem:[%s4748_s3 + $0x160] sm:$0xf] %vm2292_vm2, %v2863_v33  ;;  %v1595_v38 = vmax.f32 %v1232_v34, 0.0 }
  0xfa   :  { %v916_v39 = vpop.f32.mrf.mxu0  ;;  %3140 = vmatmul.mubr.msk.bf16.gmra.mxu0 %vm604_vm1, %v3411_v28  ;;  %v1236_v40 = vpop.f32.mrf.mxu1  ;;  %3300 = vmatmul.mubr.msk.bf16.gmra.mxu1 %vm604_vm1, %v3412_v30  ;;  %v3417_v32 = vld [vmem:[%s4746_s0 + $0x100] sm:$0xff]  }
  0xfb   :  { %v2784_v41 = vpack.c.bf16 %v1515_v37, %v1515_v37  ;;  %v917_v42 = vadd.f32 %v3777_v55, %v916_v39  ;;  %v2864_v43 = vpack.c.bf16 %v1595_v38, %v1595_v38  ;;  %v1237_v44 = vadd.f32 %v3777_v55, %v1236_v40  ;;  %3143 = vmatprep.mubr.msk.bf16.mxu0 %vm3435_vm0, %v3434_v0  ;;  %v3418_v34 = vld [vmem:[%s4746_s0 + $0x240] sm:$0xff]  }
  0xfc   :  { %v3045_v45 = vpop.f32.mrf.mxu0  ;;  %v3205_v46 = vpop.f32.mrf.mxu1  ;;  %3303 = vmatprep.mubr.msk.bf16.mxu1 %vm3435_vm0, %v3434_v0 }
  0xfd   :  { %2302 = vst.msk [vmem:[%s4748_s3 + $0x24] sm:$0xf] %vm2292_vm2, %v2784_v41  ;;  %v1516_v47 = vmax.f32 %v917_v42, 0.0  ;;  %2382 = vst.msk [vmem:[%s4748_s3 + $0x164] sm:$0xf] %vm2292_vm2, %v2864_v43  ;;  %v1596_v48 = vmax.f32 %v1237_v44, 0.0 }
  0xfe   :  { %v919_v49 = vpop.f32.mrf.mxu0  ;;  %v1239_v51 = vpop.f32.mrf.mxu1 }
  0xff   :  { %v2785_v53 = vpack.c.bf16 %v1516_v47, %v1516_v47  ;;  %v920_v54 = vadd.f32 %v3777_v55, %v919_v49  ;;  %v2865_v56 = vpack.c.bf16 %v1596_v48, %v1596_v48  ;;  %v1240_v57 = vadd.f32 %v3777_v55, %v1239_v51 }
 0x100   :  { %v3046_v58 = vpop.f32.mrf.mxu0  ;;  %v3206_v59 = vpop.f32.mrf.mxu1 }
 0x101   :  { %2303 = vst.msk [vmem:[%s4748_s3 + $0x28] sm:$0xf] %vm2292_vm2, %v2785_v53  ;;  %v1517_v60 = vmax.f32 %v920_v54, 0.0  ;;  %2383 = vst.msk [vmem:[%s4748_s3 + $0x168] sm:$0xf] %vm2292_vm2, %v2865_v56  ;;  %v1597_v61 = vmax.f32 %v1240_v57, 0.0 }
 0x102   :  { %v924_v62 = vpop.f32.mrf.mxu0  ;;  %3144 = vmatmul.mubr.msk.bf16.gmra.mxu0 %vm604_vm1, %v3413_v50  ;;  %v1244_v63 = vpop.f32.mrf.mxu1  ;;  %3304 = vmatmul.mubr.msk.bf16.gmra.mxu1 %vm604_vm1, %v3414_v52  ;;  %v3419_v54 = vld [vmem:[%s4746_s0 + $0x108] sm:$0xff]  }
 0x103   :  { %v2786_v1 = vpack.c.bf16 %v1517_v60, %v1517_v60  ;;  %v925_v2 = vadd.f32 %v3777_v55, %v924_v62  ;;  %v2866_v3 = vpack.c.bf16 %v1597_v61, %v1597_v61  ;;  %v1245_v4 = vadd.f32 %v3777_v55, %v1244_v63  ;;  %3147 = vmatprep.mubr.msk.bf16.mxu0 %vm3435_vm0, %v3434_v0  ;;  %v3420_v57 = vld [vmem:[%s4746_s0 + $0x248] sm:$0xff]  }
 0x104   :  { %v3049_v5 = vpop.f32.mrf.mxu0  ;;  %v3209_v6 = vpop.f32.mrf.mxu1  ;;  %3307 = vmatprep.mubr.msk.bf16.mxu1 %vm3435_vm0, %v3434_v0 }
 0x105   :  { %2304 = vst.msk [vmem:[%s4748_s3 + $0x2c] sm:$0xf] %vm2292_vm2, %v2786_v1  ;;  %v1518_v7 = vmax.f32 %v925_v2, 0.0  ;;  %2384 = vst.msk [vmem:[%s4748_s3 + $0x16c] sm:$0xf] %vm2292_vm2, %v2866_v3  ;;  %v1598_v8 = vmax.f32 %v1245_v4, 0.0 }
 0x106   :  { %v927_v9 = vpop.f32.mrf.mxu0  ;;  %v1247_v11 = vpop.f32.mrf.mxu1 }
 0x107   :  { %v2787_v13 = vpack.c.bf16 %v1518_v7, %v1518_v7  ;;  %v928_v14 = vadd.f32 %v3777_v55, %v927_v9  ;;  %v2867_v15 = vpack.c.bf16 %v1598_v8, %v1598_v8  ;;  %v1248_v16 = vadd.f32 %v3777_v55, %v1247_v11 }
 0x108   :  { %v3050_v17 = vpop.f32.mrf.mxu0  ;;  %v3210_v18 = vpop.f32.mrf.mxu1 }
 0x109   :  { %2305 = vst.msk [vmem:[%s4748_s3 + $0x30] sm:$0xf] %vm2292_vm2, %v2787_v13  ;;  %v1519_v19 = vmax.f32 %v928_v14, 0.0  ;;  %2385 = vst.msk [vmem:[%s4748_s3 + $0x170] sm:$0xf] %vm2292_vm2, %v2867_v15  ;;  %v1599_v20 = vmax.f32 %v1248_v16, 0.0 }
 0x10a   :  { %v932_v21 = vpop.f32.mrf.mxu0  ;;  %3148 = vmatmul.mubr.msk.bf16.gmra.mxu0 %vm604_vm1, %v3415_v10  ;;  %v1252_v22 = vpop.f32.mrf.mxu1  ;;  %3308 = vmatmul.mubr.msk.bf16.gmra.mxu1 %vm604_vm1, %v3416_v12  ;;  %v3421_v14 = vld [vmem:[%s4746_s0 + $0x110] sm:$0xff]  }
 0x10b   :  { %v2788_v23 = vpack.c.bf16 %v1519_v19, %v1519_v19  ;;  %v933_v24 = vadd.f32 %v3777_v55, %v932_v21  ;;  %v2868_v25 = vpack.c.bf16 %v1599_v20, %v1599_v20  ;;  %v1253_v26 = vadd.f32 %v3777_v55, %v1252_v22  ;;  %3151 = vmatprep.mubr.msk.bf16.mxu0 %vm3435_vm0, %v3434_v0  ;;  %v3422_v16 = vld [vmem:[%s4746_s0 + $0x250] sm:$0xff]  }
 0x10c   :  { %v3053_v27 = vpop.f32.mrf.mxu0  ;;  %v3213_v28 = vpop.f32.mrf.mxu1  ;;  %3311 = vmatprep.mubr.msk.bf16.mxu1 %vm3435_vm0, %v3434_v0 }
 0x10d   :  { %2306 = vst.msk [vmem:[%s4748_s3 + $0x34] sm:$0xf] %vm2292_vm2, %v2788_v23  ;;  %v1520_v29 = vmax.f32 %v933_v24, 0.0  ;;  %2386 = vst.msk [vmem:[%s4748_s3 + $0x174] sm:$0xf] %vm2292_vm2, %v2868_v25  ;;  %v1600_v30 = vmax.f32 %v1253_v26, 0.0 }
 0x10e   :  { %v935_v31 = vpop.f32.mrf.mxu0  ;;  %v1255_v33 = vpop.f32.mrf.mxu1 }
 0x10f   :  { %v2789_v35 = vpack.c.bf16 %v1520_v29, %v1520_v29  ;;  %v936_v36 = vadd.f32 %v3777_v55, %v935_v31  ;;  %v2869_v37 = vpack.c.bf16 %v1600_v30, %v1600_v30  ;;  %v1256_v38 = vadd.f32 %v3777_v55, %v1255_v33 }
 0x110   :  { %v3054_v39 = vpop.f32.mrf.mxu0  ;;  %v3214_v40 = vpop.f32.mrf.mxu1 }
 0x111   :  { %2307 = vst.msk [vmem:[%s4748_s3 + $0x38] sm:$0xf] %vm2292_vm2, %v2789_v35  ;;  %v1521_v41 = vmax.f32 %v936_v36, 0.0  ;;  %2387 = vst.msk [vmem:[%s4748_s3 + $0x178] sm:$0xf] %vm2292_vm2, %v2869_v37  ;;  %v1601_v42 = vmax.f32 %v1256_v38, 0.0 }
 0x112   :  { %v940_v43 = vpop.f32.mrf.mxu0  ;;  %3152 = vmatmul.mubr.msk.bf16.gmra.mxu0 %vm604_vm1, %v3417_v32  ;;  %v1260_v44 = vpop.f32.mrf.mxu1  ;;  %3312 = vmatmul.mubr.msk.bf16.gmra.mxu1 %vm604_vm1, %v3418_v34  ;;  %v3423_v36 = vld [vmem:[%s4746_s0 + $0x118] sm:$0xff]  }
 0x113   :  { %v2790_v45 = vpack.c.bf16 %v1521_v41, %v1521_v41  ;;  %v941_v46 = vadd.f32 %v3777_v55, %v940_v43  ;;  %v2870_v47 = vpack.c.bf16 %v1601_v42, %v1601_v42  ;;  %v1261_v48 = vadd.f32 %v3777_v55, %v1260_v44  ;;  %3155 = vmatprep.mubr.msk.bf16.mxu0 %vm3435_vm0, %v3434_v0  ;;  %v3424_v38 = vld [vmem:[%s4746_s0 + $0x258] sm:$0xff]  }
 0x114   :  { %v3057_v49 = vpop.f32.mrf.mxu0  ;;  %v3217_v50 = vpop.f32.mrf.mxu1  ;;  %3315 = vmatprep.mubr.msk.bf16.mxu1 %vm3435_vm0, %v3434_v0 }
 0x115   :  { %2308 = vst.msk [vmem:[%s4748_s3 + $0x3c] sm:$0xf] %vm2292_vm2, %v2790_v45  ;;  %v1522_v51 = vmax.f32 %v941_v46, 0.0  ;;  %2388 = vst.msk [vmem:[%s4748_s3 + $0x17c] sm:$0xf] %vm2292_vm2, %v2870_v47  ;;  %v1602_v52 = vmax.f32 %v1261_v48, 0.0 }
 0x116   :  { %v943_v53 = vpop.f32.mrf.mxu0  ;;  %v1263_v56 = vpop.f32.mrf.mxu1 }
 0x117   :  { %v2791_v58 = vpack.c.bf16 %v1522_v51, %v1522_v51  ;;  %v944_v59 = vadd.f32 %v3777_v55, %v943_v53  ;;  %v2871_v60 = vpack.c.bf16 %v1602_v52, %v1602_v52  ;;  %v1264_v61 = vadd.f32 %v3777_v55, %v1263_v56 }
 0x118   :  { %v3058_v62 = vpop.f32.mrf.mxu0  ;;  %v3218_v63 = vpop.f32.mrf.mxu1 }
 0x119   :  { %2309 = vst.msk [vmem:[%s4748_s3 + $0x40] sm:$0xf] %vm2292_vm2, %v2791_v58  ;;  %v1523_v1 = vmax.f32 %v944_v59, 0.0  ;;  %2389 = vst.msk [vmem:[%s4748_s3 + $0x180] sm:$0xf] %vm2292_vm2, %v2871_v60  ;;  %v1603_v2 = vmax.f32 %v1264_v61, 0.0 }
 0x11a   :  { %v948_v3 = vpop.f32.mrf.mxu0  ;;  %3156 = vmatmul.mubr.msk.bf16.gmra.mxu0 %vm604_vm1, %v3419_v54  ;;  %v1268_v4 = vpop.f32.mrf.mxu1  ;;  %3316 = vmatmul.mubr.msk.bf16.gmra.mxu1 %vm604_vm1, %v3420_v57  ;;  %v3425_v59 = vld [vmem:[%s4746_s0 + $0x120] sm:$0xff]  }
 0x11b   :  { %v2792_v5 = vpack.c.bf16 %v1523_v1, %v1523_v1  ;;  %v949_v6 = vadd.f32 %v3777_v55, %v948_v3  ;;  %v2872_v7 = vpack.c.bf16 %v1603_v2, %v1603_v2  ;;  %v1269_v8 = vadd.f32 %v3777_v55, %v1268_v4  ;;  %3159 = vmatprep.mubr.msk.bf16.mxu0 %vm3435_vm0, %v3434_v0  ;;  %v3426_v61 = vld [vmem:[%s4746_s0 + $0x260] sm:$0xff]  }
 0x11c   :  { %v3061_v9 = vpop.f32.mrf.mxu0  ;;  %v3221_v10 = vpop.f32.mrf.mxu1  ;;  %3319 = vmatprep.mubr.msk.bf16.mxu1 %vm3435_vm0, %v3434_v0 }
 0x11d   :  { %2310 = vst.msk [vmem:[%s4748_s3 + $0x44] sm:$0xf] %vm2292_vm2, %v2792_v5  ;;  %v1524_v11 = vmax.f32 %v949_v6, 0.0  ;;  %2390 = vst.msk [vmem:[%s4748_s3 + $0x184] sm:$0xf] %vm2292_vm2, %v2872_v7  ;;  %v1604_v12 = vmax.f32 %v1269_v8, 0.0 }
 0x11e   :  { %v951_v13 = vpop.f32.mrf.mxu0  ;;  %v1271_v15 = vpop.f32.mrf.mxu1 }
 0x11f   :  { %v2793_v17 = vpack.c.bf16 %v1524_v11, %v1524_v11  ;;  %v952_v18 = vadd.f32 %v3777_v55, %v951_v13  ;;  %v2873_v19 = vpack.c.bf16 %v1604_v12, %v1604_v12  ;;  %v1272_v20 = vadd.f32 %v3777_v55, %v1271_v15 }
 0x120   :  { %v3062_v21 = vpop.f32.mrf.mxu0  ;;  %v3222_v22 = vpop.f32.mrf.mxu1 }
 0x121   :  { %2311 = vst.msk [vmem:[%s4748_s3 + $0x48] sm:$0xf] %vm2292_vm2, %v2793_v17  ;;  %v1525_v23 = vmax.f32 %v952_v18, 0.0  ;;  %2391 = vst.msk [vmem:[%s4748_s3 + $0x188] sm:$0xf] %vm2292_vm2, %v2873_v19  ;;  %v1605_v24 = vmax.f32 %v1272_v20, 0.0 }
 0x122   :  { %v956_v25 = vpop.f32.mrf.mxu0  ;;  %3160 = vmatmul.mubr.msk.bf16.gmra.mxu0 %vm604_vm1, %v3421_v14  ;;  %v1276_v26 = vpop.f32.mrf.mxu1  ;;  %3320 = vmatmul.mubr.msk.bf16.gmra.mxu1 %vm604_vm1, %v3422_v16  ;;  %v3427_v18 = vld [vmem:[%s4746_s0 + $0x128] sm:$0xff]  }
 0x123   :  { %v2794_v27 = vpack.c.bf16 %v1525_v23, %v1525_v23  ;;  %v957_v28 = vadd.f32 %v3777_v55, %v956_v25  ;;  %v2874_v29 = vpack.c.bf16 %v1605_v24, %v1605_v24  ;;  %v1277_v30 = vadd.f32 %v3777_v55, %v1276_v26  ;;  %3163 = vmatprep.mubr.msk.bf16.mxu0 %vm3435_vm0, %v3434_v0  ;;  %v3428_v20 = vld [vmem:[%s4746_s0 + $0x268] sm:$0xff]  }
 0x124   :  { %v3065_v31 = vpop.f32.mrf.mxu0  ;;  %v3225_v32 = vpop.f32.mrf.mxu1  ;;  %3323 = vmatprep.mubr.msk.bf16.mxu1 %vm3435_vm0, %v3434_v0 }
 0x125   :  { %2312 = vst.msk [vmem:[%s4748_s3 + $0x4c] sm:$0xf] %vm2292_vm2, %v2794_v27  ;;  %v1526_v33 = vmax.f32 %v957_v28, 0.0  ;;  %2392 = vst.msk [vmem:[%s4748_s3 + $0x18c] sm:$0xf] %vm2292_vm2, %v2874_v29  ;;  %v1606_v34 = vmax.f32 %v1277_v30, 0.0 }
 0x126   :  { %v959_v35 = vpop.f32.mrf.mxu0  ;;  %v1279_v37 = vpop.f32.mrf.mxu1 }
 0x127   :  { %v2795_v39 = vpack.c.bf16 %v1526_v33, %v1526_v33  ;;  %v960_v40 = vadd.f32 %v3777_v55, %v959_v35  ;;  %v2875_v41 = vpack.c.bf16 %v1606_v34, %v1606_v34  ;;  %v1280_v42 = vadd.f32 %v3777_v55, %v1279_v37 }
 0x128   :  { %v3066_v43 = vpop.f32.mrf.mxu0  ;;  %v3226_v44 = vpop.f32.mrf.mxu1 }
 0x129   :  { %2313 = vst.msk [vmem:[%s4748_s3 + $0x50] sm:$0xf] %vm2292_vm2, %v2795_v39  ;;  %v1527_v45 = vmax.f32 %v960_v40, 0.0  ;;  %2393 = vst.msk [vmem:[%s4748_s3 + $0x190] sm:$0xf] %vm2292_vm2, %v2875_v41  ;;  %v1607_v46 = vmax.f32 %v1280_v42, 0.0 }
 0x12a   :  { %v964_v47 = vpop.f32.mrf.mxu0  ;;  %3164 = vmatmul.mubr.msk.bf16.gmra.mxu0 %vm604_vm1, %v3423_v36  ;;  %v1284_v48 = vpop.f32.mrf.mxu1  ;;  %3324 = vmatmul.mubr.msk.bf16.gmra.mxu1 %vm604_vm1, %v3424_v38  ;;  %v3429_v40 = vld [vmem:[%s4746_s0 + $0x130] sm:$0xff]  }
 0x12b   :  { %v2796_v49 = vpack.c.bf16 %v1527_v45, %v1527_v45  ;;  %v965_v50 = vadd.f32 %v3777_v55, %v964_v47  ;;  %v2876_v51 = vpack.c.bf16 %v1607_v46, %v1607_v46  ;;  %v1285_v52 = vadd.f32 %v3777_v55, %v1284_v48  ;;  %3167 = vmatprep.mubr.msk.bf16.mxu0 %vm3435_vm0, %v3434_v0  ;;  %v3430_v42 = vld [vmem:[%s4746_s0 + $0x270] ss:$0 sps:$4 sm:$0x11]  }
 0x12c   :  { %v3069_v53 = vpop.f32.mrf.mxu0  ;;  %v3229_v54 = vpop.f32.mrf.mxu1  ;;  %3327 = vmatprep.mubr.msk.bf16.mxu1 %vm3435_vm0, %v3434_v0 }
 0x12d   :  { %2314 = vst.msk [vmem:[%s4748_s3 + $0x54] sm:$0xf] %vm2292_vm2, %v2796_v49  ;;  %v1528_v56 = vmax.f32 %v965_v50, 0.0  ;;  %2394 = vst.msk [vmem:[%s4748_s3 + $0x194] sm:$0xf] %vm2292_vm2, %v2876_v51  ;;  %v1608_v57 = vmax.f32 %v1285_v52, 0.0 }
 0x12e   :  { %v967_v58 = vpop.f32.mrf.mxu0  ;;  %v1287_v60 = vpop.f32.mrf.mxu1 }
 0x12f   :  { %v2797_v62 = vpack.c.bf16 %v1528_v56, %v1528_v56  ;;  %v968_v63 = vadd.f32 %v3777_v55, %v967_v58  ;;  %v2877_v1 = vpack.c.bf16 %v1608_v57, %v1608_v57  ;;  %v1288_v2 = vadd.f32 %v3777_v55, %v1287_v60 }
 0x130   :  { %v3070_v3 = vpop.f32.mrf.mxu0  ;;  %v3230_v4 = vpop.f32.mrf.mxu1 }
 0x131   :  { %2315 = vst.msk [vmem:[%s4748_s3 + $0x58] sm:$0xf] %vm2292_vm2, %v2797_v62  ;;  %v1529_v5 = vmax.f32 %v968_v63, 0.0  ;;  %2395 = vst.msk [vmem:[%s4748_s3 + $0x198] sm:$0xf] %vm2292_vm2, %v2877_v1  ;;  %v1609_v6 = vmax.f32 %v1288_v2, 0.0 }
 0x132   :  { %v972_v7 = vpop.f32.mrf.mxu0  ;;  %3168 = vmatmul.mubr.msk.bf16.gmra.mxu0 %vm604_vm1, %v3425_v59  ;;  %v1292_v8 = vpop.f32.mrf.mxu1  ;;  %3328 = vmatmul.mubr.msk.bf16.gmra.mxu1 %vm604_vm1, %v3426_v61  ;;  %v3431_v63 = vld [vmem:[%s4746_s0 + $0x138] sm:$0xff]  }
 0x133   :  { %v2798_v9 = vpack.c.bf16 %v1529_v5, %v1529_v5  ;;  %v973_v10 = vadd.f32 %v3777_v55, %v972_v7  ;;  %v2878_v11 = vpack.c.bf16 %v1609_v6, %v1609_v6  ;;  %v1293_v12 = vadd.f32 %v3777_v55, %v1292_v8  ;;  %3171 = vmatprep.mubr.msk.bf16.mxu0 %vm3435_vm0, %v3434_v0 }
 0x134   :  { %v3073_v13 = vpop.f32.mrf.mxu0  ;;  %v3233_v14 = vpop.f32.mrf.mxu1  ;;  %3331 = vmatprep.mubr.msk.bf16.mxu1 %vm3435_vm0, %v3434_v0 }
 0x135   :  { %2316 = vst.msk [vmem:[%s4748_s3 + $0x5c] sm:$0xf] %vm2292_vm2, %v2798_v9  ;;  %v1530_v15 = vmax.f32 %v973_v10, 0.0  ;;  %2396 = vst.msk [vmem:[%s4748_s3 + $0x19c] sm:$0xf] %vm2292_vm2, %v2878_v11  ;;  %v1610_v16 = vmax.f32 %v1293_v12, 0.0 }
 0x136   :  { %v975_v17 = vpop.f32.mrf.mxu0  ;;  %v1295_v19 = vpop.f32.mrf.mxu1 }
 0x137   :  { %v2799_v21 = vpack.c.bf16 %v1530_v15, %v1530_v15  ;;  %v976_v22 = vadd.f32 %v3777_v55, %v975_v17  ;;  %v2879_v23 = vpack.c.bf16 %v1610_v16, %v1610_v16  ;;  %v1296_v24 = vadd.f32 %v3777_v55, %v1295_v19 }
 0x138   :  { %v3074_v25 = vpop.f32.mrf.mxu0  ;;  %v3234_v26 = vpop.f32.mrf.mxu1 }
 0x139   :  { %2317 = vst.msk [vmem:[%s4748_s3 + $0x60] sm:$0xf] %vm2292_vm2, %v2799_v21  ;;  %v1531_v27 = vmax.f32 %v976_v22, 0.0  ;;  %2397 = vst.msk [vmem:[%s4748_s3 + $0x1a0] sm:$0xf] %vm2292_vm2, %v2879_v23  ;;  %v1611_v28 = vmax.f32 %v1296_v24, 0.0 }
 0x13a   :  { %v980_v29 = vpop.f32.mrf.mxu0  ;;  %3172 = vmatmul.mubr.msk.bf16.gmra.mxu0 %vm604_vm1, %v3427_v18  ;;  %v1300_v30 = vpop.f32.mrf.mxu1  ;;  %3332 = vmatmul.mubr.msk.bf16.gmra.mxu1 %vm604_vm1, %v3428_v20 }
 0x13b   :  { %v2800_v31 = vpack.c.bf16 %v1531_v27, %v1531_v27  ;;  %v981_v32 = vadd.f32 %v3777_v55, %v980_v29  ;;  %v2880_v33 = vpack.c.bf16 %v1611_v28, %v1611_v28  ;;  %v1301_v34 = vadd.f32 %v3777_v55, %v1300_v30  ;;  %3175 = vmatprep.mubr.msk.bf16.mxu0 %vm3435_vm0, %v3434_v0 }
 0x13c   :  { %v3077_v35 = vpop.f32.mrf.mxu0  ;;  %v3237_v36 = vpop.f32.mrf.mxu1  ;;  %3335 = vmatprep.mubr.msk.bf16.mxu1 %vm3435_vm0, %v3434_v0 }
 0x13d   :  { %2318 = vst.msk [vmem:[%s4748_s3 + $0x64] sm:$0xf] %vm2292_vm2, %v2800_v31  ;;  %v1532_v37 = vmax.f32 %v981_v32, 0.0  ;;  %2398 = vst.msk [vmem:[%s4748_s3 + $0x1a4] sm:$0xf] %vm2292_vm2, %v2880_v33  ;;  %v1612_v38 = vmax.f32 %v1301_v34, 0.0 }
 0x13e   :  { %v983_v39 = vpop.f32.mrf.mxu0  ;;  %v1303_v41 = vpop.f32.mrf.mxu1 }
 0x13f   :  { %v2801_v43 = vpack.c.bf16 %v1532_v37, %v1532_v37  ;;  %v984_v44 = vadd.f32 %v3777_v55, %v983_v39  ;;  %v2881_v45 = vpack.c.bf16 %v1612_v38, %v1612_v38  ;;  %v1304_v46 = vadd.f32 %v3777_v55, %v1303_v41 }
 0x140   :  { %v3078_v47 = vpop.f32.mrf.mxu0  ;;  %v3238_v48 = vpop.f32.mrf.mxu1 }
 0x141   :  { %2319 = vst.msk [vmem:[%s4748_s3 + $0x68] sm:$0xf] %vm2292_vm2, %v2801_v43  ;;  %v1533_v49 = vmax.f32 %v984_v44, 0.0  ;;  %2399 = vst.msk [vmem:[%s4748_s3 + $0x1a8] sm:$0xf] %vm2292_vm2, %v2881_v45  ;;  %v1613_v50 = vmax.f32 %v1304_v46, 0.0 }
 0x142   :  { %v988_v51 = vpop.f32.mrf.mxu0  ;;  %3176 = vmatmul.mubr.msk.bf16.gmra.mxu0 %vm604_vm1, %v3429_v40  ;;  %v1308_v52 = vpop.f32.mrf.mxu1  ;;  %3336 = vmatmul.mubr.msk.bf16.gmra.mxu1 %vm604_vm1, %v3430_v42 }
 0x143   :  { %v2802_v53 = vpack.c.bf16 %v1533_v49, %v1533_v49  ;;  %v989_v54 = vadd.f32 %v3777_v55, %v988_v51  ;;  %v2882_v56 = vpack.c.bf16 %v1613_v50, %v1613_v50  ;;  %v1309_v57 = vadd.f32 %v3777_v55, %v1308_v52  ;;  %3179 = vmatprep.mubr.msk.bf16.mxu0 %vm3435_vm0, %v3434_v0 }
 0x144   :  { %v3081_v58 = vpop.f32.mrf.mxu0  ;;  %v3241_v59 = vpop.f32.mrf.mxu1 }
 0x145   :  { %2320 = vst.msk [vmem:[%s4748_s3 + $0x6c] sm:$0xf] %vm2292_vm2, %v2802_v53  ;;  %v1534_v60 = vmax.f32 %v989_v54, 0.0  ;;  %2400 = vst.msk [vmem:[%s4748_s3 + $0x1ac] sm:$0xf] %vm2292_vm2, %v2882_v56  ;;  %v1614_v61 = vmax.f32 %v1309_v57, 0.0 }
 0x146   :  { %v991_v62 = vpop.f32.mrf.mxu0  ;;  %v1311_v0 = vpop.f32.mrf.mxu1 }
 0x147   :  { %v2803_v1 = vpack.c.bf16 %v1534_v60, %v1534_v60  ;;  %v992_v2 = vadd.f32 %v3777_v55, %v991_v62  ;;  %v2883_v3 = vpack.c.bf16 %v1614_v61, %v1614_v61  ;;  %v1312_v4 = vadd.f32 %v3777_v55, %v1311_v0 }
 0x148   :  { %v3082_v5 = vpop.f32.mrf.mxu0  ;;  %v3242_v6 = vpop.f32.mrf.mxu1 }
 0x149   :  { %2321 = vst.msk [vmem:[%s4748_s3 + $0x70] sm:$0xf] %vm2292_vm2, %v2803_v1  ;;  %v1535_v7 = vmax.f32 %v992_v2, 0.0  ;;  %2401 = vst.msk [vmem:[%s4748_s3 + $0x1b0] sm:$0xf] %vm2292_vm2, %v2883_v3  ;;  %v1615_v8 = vmax.f32 %v1312_v4, 0.0 }
 0x14a   :  { %v996_v9 = vpop.f32.mrf.mxu0  ;;  %3180 = vmatmul.mubr.msk.bf16.gmra.mxu0 %vm604_vm1, %v3431_v63  ;;  %v1316_v10 = vpop.f32.mrf.mxu1  ;;  %v4301_v1 = vld [vmem:[%s4747_s2] ss:$0 sm:$0xff] }
 0x14b   :  { %v2804_v11 = vpack.c.bf16 %v1535_v7, %v1535_v7  ;;  %v997_v12 = vadd.f32 %v3777_v55, %v996_v9  ;;  %v2884_v13 = vpack.c.bf16 %v1615_v8, %v1615_v8  ;;  %v1317_v14 = vadd.f32 %v3777_v55, %v1316_v10 }
 0x14c   :  { %v3085_v15 = vpop.f32.mrf.mxu0  ;;  %v3245_v16 = vpop.f32.mrf.mxu1 }
 0x14d   :  { %2322 = vst.msk [vmem:[%s4748_s3 + $0x74] sm:$0xf] %vm2292_vm2, %v2804_v11  ;;  %v1536_v17 = vmax.f32 %v997_v12, 0.0  ;;  %2402 = vst.msk [vmem:[%s4748_s3 + $0x1b4] sm:$0xf] %vm2292_vm2, %v2884_v13  ;;  %v1616_v18 = vmax.f32 %v1317_v14, 0.0 }
 0x14e   :  { %v999_v19 = vpop.f32.mrf.mxu0  ;;  %v1319_v20 = vpop.f32.mrf.mxu1 }
 0x14f   :  { %v2805_v21 = vpack.c.bf16 %v1536_v17, %v1536_v17  ;;  %v1000_v22 = vadd.f32 %v3777_v55, %v999_v19  ;;  %v2885_v23 = vpack.c.bf16 %v1616_v18, %v1616_v18  ;;  %v1320_v24 = vadd.f32 %v3777_v55, %v1319_v20 }
 0x150   :  { %v3086_v25 = vpop.f32.mrf.mxu0  ;;  %v3246_v26 = vpop.f32.mrf.mxu1 }
 0x151   :  { %2323 = vst.msk [vmem:[%s4748_s3 + $0x78] sm:$0xf] %vm2292_vm2, %v2805_v21  ;;  %v1537_v27 = vmax.f32 %v1000_v22, 0.0  ;;  %2403 = vst.msk [vmem:[%s4748_s3 + $0x1b8] sm:$0xf] %vm2292_vm2, %v2885_v23  ;;  %v1617_v28 = vmax.f32 %v1320_v24, 0.0 }
 0x152   :  { %v1004_v29 = vpop.f32.mrf.mxu0  ;;  %v1324_v30 = vpop.f32.mrf.mxu1 }
 0x153   :  { %v2806_v31 = vpack.c.bf16 %v1537_v27, %v1537_v27  ;;  %v1005_v32 = vadd.f32 %v3777_v55, %v1004_v29  ;;  %v2886_v33 = vpack.c.bf16 %v1617_v28, %v1617_v28  ;;  %v1325_v34 = vadd.f32 %v3777_v55, %v1324_v30 }
 0x154   :  { %v3089_v35 = vpop.f32.mrf.mxu0  ;;  %v3249_v36 = vpop.f32.mrf.mxu1 }
 0x155   :  { %2324 = vst.msk [vmem:[%s4748_s3 + $0x7c] sm:$0xf] %vm2292_vm2, %v2806_v31  ;;  %v1538_v37 = vmax.f32 %v1005_v32, 0.0  ;;  %2404 = vst.msk [vmem:[%s4748_s3 + $0x1bc] sm:$0xf] %vm2292_vm2, %v2886_v33  ;;  %v1618_v38 = vmax.f32 %v1325_v34, 0.0 }
 0x156   :  { %v1007_v39 = vpop.f32.mrf.mxu0  ;;  %v1327_v40 = vpop.f32.mrf.mxu1 }
 0x157   :  { %v2807_v41 = vpack.c.bf16 %v1538_v37, %v1538_v37  ;;  %v1008_v42 = vadd.f32 %v3777_v55, %v1007_v39  ;;  %v2887_v43 = vpack.c.bf16 %v1618_v38, %v1618_v38  ;;  %v1328_v44 = vadd.f32 %v3777_v55, %v1327_v40 }
 0x158   :  { %v3090_v45 = vpop.f32.mrf.mxu0  ;;  %v3250_v46 = vpop.f32.mrf.mxu1 }
 0x159   :  { %2325 = vst.msk [vmem:[%s4748_s3 + $0x80] sm:$0xf] %vm2292_vm2, %v2807_v41  ;;  %v1539_v47 = vmax.f32 %v1008_v42, 0.0  ;;  %2405 = vst.msk [vmem:[%s4748_s3 + $0x1c0] sm:$0xf] %vm2292_vm2, %v2887_v43  ;;  %v1619_v48 = vmax.f32 %v1328_v44, 0.0 }
 0x15a   :  { %v1012_v49 = vpop.f32.mrf.mxu0  ;;  %v1332_v50 = vpop.f32.mrf.mxu1 }
 0x15b   :  { %v2808_v51 = vpack.c.bf16 %v1539_v47, %v1539_v47  ;;  %v1013_v52 = vadd.f32 %v3777_v55, %v1012_v49  ;;  %v2888_v53 = vpack.c.bf16 %v1619_v48, %v1619_v48  ;;  %v1333_v54 = vadd.f32 %v3777_v55, %v1332_v50 }
 0x15c   :  { %v3093_v56 = vpop.f32.mrf.mxu0  ;;  %v3253_v57 = vpop.f32.mrf.mxu1 }
 0x15d   :  { %2326 = vst.msk [vmem:[%s4748_s3 + $0x84] sm:$0xf] %vm2292_vm2, %v2808_v51  ;;  %v1540_v58 = vmax.f32 %v1013_v52, 0.0  ;;  %2406 = vst.msk [vmem:[%s4748_s3 + $0x1c4] sm:$0xf] %vm2292_vm2, %v2888_v53  ;;  %v1620_v59 = vmax.f32 %v1333_v54, 0.0 }
 0x15e   :  { %v1015_v60 = vpop.f32.mrf.mxu0  ;;  %v1335_v61 = vpop.f32.mrf.mxu1 }
 0x15f   :  { %v2809_v62 = vpack.c.bf16 %v1540_v58, %v1540_v58  ;;  %v1016_v63 = vadd.f32 %v3777_v55, %v1015_v60  ;;  %v2889_v0 = vpack.c.bf16 %v1620_v59, %v1620_v59  ;;  %v1336_v2 = vadd.f32 %v4301_v1, %v1335_v61 }
 0x160   :  { %v3094_v3 = vpop.f32.mrf.mxu0  ;;  %v3254_v4 = vpop.f32.mrf.mxu1 }
 0x161   :  { %2327 = vst.msk [vmem:[%s4748_s3 + $0x88] sm:$0xf] %vm2292_vm2, %v2809_v62  ;;  %v1541_v5 = vmax.f32 %v1016_v63, 0.0  ;;  %2407 = vst.msk [vmem:[%s4748_s3 + $0x1c8] sm:$0xf] %vm2292_vm2, %v2889_v0  ;;  %v1621_v55 = vmax.f32 %v1336_v2, 0.0 }
 0x162   :  { %v1020_v6 = vpop.f32.mrf.mxu0  ;;  %v1340_v7 = vpop.f32.mrf.mxu1 }
 0x163   :  { %v2810_v8 = vpack.c.bf16 %v1541_v5, %v1541_v5  ;;  %v1021_v9 = vadd.f32 %v4301_v1, %v1020_v6  ;;  %v2890_v10 = vpack.c.bf16 %v1621_v55, %v1621_v55  ;;  %v1341_v11 = vadd.f32 %v4301_v1, %v1340_v7 }
 0x164   :  { %v3097_v12 = vpop.f32.mrf.mxu0  ;;  %v3257_v13 = vpop.f32.mrf.mxu1 }
 0x165   :  { %2328 = vst.msk [vmem:[%s4748_s3 + $0x8c] sm:$0xf] %vm2292_vm2, %v2810_v8  ;;  %v1542_v14 = vmax.f32 %v1021_v9, 0.0  ;;  %2408 = vst.msk [vmem:[%s4748_s3 + $0x1cc] sm:$0xf] %vm2292_vm2, %v2890_v10  ;;  %v1622_v15 = vmax.f32 %v1341_v11, 0.0 }
 0x166   :  { %v1023_v16 = vpop.f32.mrf.mxu0  ;;  %v1343_v17 = vpop.f32.mrf.mxu1 }
 0x167   :  { %v2811_v18 = vpack.c.bf16 %v1542_v14, %v1542_v14  ;;  %v1024_v19 = vadd.f32 %v4301_v1, %v1023_v16  ;;  %v2891_v20 = vpack.c.bf16 %v1622_v15, %v1622_v15  ;;  %v1344_v21 = vadd.f32 %v4301_v1, %v1343_v17 }
 0x168   :  { %v3098_v22 = vpop.f32.mrf.mxu0  ;;  %v3258_v23 = vpop.f32.mrf.mxu1 }
 0x169   :  { %2329 = vst.msk [vmem:[%s4748_s3 + $0x90] sm:$0xf] %vm2292_vm2, %v2811_v18  ;;  %v1543_v24 = vmax.f32 %v1024_v19, 0.0  ;;  %2409 = vst.msk [vmem:[%s4748_s3 + $0x1d0] sm:$0xf] %vm2292_vm2, %v2891_v20  ;;  %v1623_v25 = vmax.f32 %v1344_v21, 0.0 }
 0x16a   :  { %v1028_v26 = vpop.f32.mrf.mxu0  ;;  %v1348_v27 = vpop.f32.mrf.mxu1 }
 0x16b   :  { %v2812_v28 = vpack.c.bf16 %v1543_v24, %v1543_v24  ;;  %v1029_v29 = vadd.f32 %v4301_v1, %v1028_v26  ;;  %v2892_v30 = vpack.c.bf16 %v1623_v25, %v1623_v25  ;;  %v1349_v31 = vadd.f32 %v4301_v1, %v1348_v27 }
 0x16c   :  { %v3101_v32 = vpop.f32.mrf.mxu0  ;;  %v3261_v33 = vpop.f32.mrf.mxu1 }
 0x16d   :  { %2330 = vst.msk [vmem:[%s4748_s3 + $0x94] sm:$0xf] %vm2292_vm2, %v2812_v28  ;;  %v1544_v34 = vmax.f32 %v1029_v29, 0.0  ;;  %2410 = vst.msk [vmem:[%s4748_s3 + $0x1d4] sm:$0xf] %vm2292_vm2, %v2892_v30  ;;  %v1624_v35 = vmax.f32 %v1349_v31, 0.0 }
 0x16e   :  { %v1031_v36 = vpop.f32.mrf.mxu0  ;;  %v1351_v37 = vpop.f32.mrf.mxu1 }
 0x16f   :  { %v2813_v38 = vpack.c.bf16 %v1544_v34, %v1544_v34  ;;  %v1032_v39 = vadd.f32 %v4301_v1, %v1031_v36  ;;  %v2893_v40 = vpack.c.bf16 %v1624_v35, %v1624_v35  ;;  %v1352_v41 = vadd.f32 %v4301_v1, %v1351_v37 }
 0x170   :  { %v3102_v42 = vpop.f32.mrf.mxu0  ;;  %v3262_v43 = vpop.f32.mrf.mxu1 }
 0x171   :  { %2331 = vst.msk [vmem:[%s4748_s3 + $0x98] sm:$0xf] %vm2292_vm2, %v2813_v38  ;;  %v1545_v44 = vmax.f32 %v1032_v39, 0.0  ;;  %2411 = vst.msk [vmem:[%s4748_s3 + $0x1d8] sm:$0xf] %vm2292_vm2, %v2893_v40  ;;  %v1625_v45 = vmax.f32 %v1352_v41, 0.0 }
 0x172   :  { %v1036_v46 = vpop.f32.mrf.mxu0  ;;  %v1356_v47 = vpop.f32.mrf.mxu1 }
 0x173   :  { %v2814_v48 = vpack.c.bf16 %v1545_v44, %v1545_v44  ;;  %v1037_v49 = vadd.f32 %v4301_v1, %v1036_v46  ;;  %v2894_v50 = vpack.c.bf16 %v1625_v45, %v1625_v45  ;;  %v1357_v51 = vadd.f32 %v4301_v1, %v1356_v47 }
 0x174   :  { %v3105_v52 = vpop.f32.mrf.mxu0  ;;  %v3265_v53 = vpop.f32.mrf.mxu1 }
 0x175   :  { %2332 = vst.msk [vmem:[%s4748_s3 + $0x9c] sm:$0xf] %vm2292_vm2, %v2814_v48  ;;  %v1546_v54 = vmax.f32 %v1037_v49, 0.0  ;;  %2412 = vst.msk [vmem:[%s4748_s3 + $0x1dc] sm:$0xf] %vm2292_vm2, %v2894_v50  ;;  %v1626_v56 = vmax.f32 %v1357_v51, 0.0 }
 0x176   :  { %v1039_v57 = vpop.f32.mrf.mxu0  ;;  %v1359_v58 = vpop.f32.mrf.mxu1 }
 0x177   :  { %v2815_v59 = vpack.c.bf16 %v1546_v54, %v1546_v54  ;;  %v1040_v60 = vadd.f32 %v4301_v1, %v1039_v57  ;;  %v2895_v61 = vpack.c.bf16 %v1626_v56, %v1626_v56  ;;  %v1360_v62 = vadd.f32 %v4301_v1, %v1359_v58 }
 0x178   :  { %v3106_v63 = vpop.f32.mrf.mxu0  ;;  %v3266_v0 = vpop.f32.mrf.mxu1 }
 0x179   :  { %2333 = vst.msk [vmem:[%s4748_s3 + $0xa0] sm:$0xf] %vm2292_vm2, %v2815_v59  ;;  %v1547_v2 = vmax.f32 %v1040_v60, 0.0  ;;  %2413 = vst.msk [vmem:[%s4748_s3 + $0x1e0] sm:$0xf] %vm2292_vm2, %v2895_v61  ;;  %v1627_v3 = vmax.f32 %v1360_v62, 0.0 }
 0x17a   :  { %v1044_v4 = vpop.f32.mrf.mxu0  ;;  %v1364_v5 = vpop.f32.mrf.mxu1 }
 0x17b   :  { %v2816_v55 = vpack.c.bf16 %v1547_v2, %v1547_v2  ;;  %v1045_v6 = vadd.f32 %v4301_v1, %v1044_v4  ;;  %v2896_v7 = vpack.c.bf16 %v1627_v3, %v1627_v3  ;;  %v1365_v8 = vadd.f32 %v4301_v1, %v1364_v5 }
 0x17c   :  { %v3109_v9 = vpop.f32.mrf.mxu0  ;;  %v3269_v10 = vpop.f32.mrf.mxu1 }
 0x17d   :  { %2334 = vst.msk [vmem:[%s4748_s3 + $0xa4] sm:$0xf] %vm2292_vm2, %v2816_v55  ;;  %v1548_v11 = vmax.f32 %v1045_v6, 0.0  ;;  %2414 = vst.msk [vmem:[%s4748_s3 + $0x1e4] sm:$0xf] %vm2292_vm2, %v2896_v7  ;;  %v1628_v12 = vmax.f32 %v1365_v8, 0.0 }
 0x17e   :  { %v1047_v13 = vpop.f32.mrf.mxu0  ;;  %v1367_v14 = vpop.f32.mrf.mxu1 }
 0x17f   :  { %v2817_v15 = vpack.c.bf16 %v1548_v11, %v1548_v11  ;;  %v1048_v16 = vadd.f32 %v4301_v1, %v1047_v13  ;;  %v2897_v17 = vpack.c.bf16 %v1628_v12, %v1628_v12  ;;  %v1368_v18 = vadd.f32 %v4301_v1, %v1367_v14 }
 0x180   :  { %v3110_v19 = vpop.f32.mrf.mxu0  ;;  %v3270_v20 = vpop.f32.mrf.mxu1 }
 0x181   :  { %2335 = vst.msk [vmem:[%s4748_s3 + $0xa8] sm:$0xf] %vm2292_vm2, %v2817_v15  ;;  %v1549_v21 = vmax.f32 %v1048_v16, 0.0  ;;  %2415 = vst.msk [vmem:[%s4748_s3 + $0x1e8] sm:$0xf] %vm2292_vm2, %v2897_v17  ;;  %v1629_v22 = vmax.f32 %v1368_v18, 0.0 }
 0x182   :  { %v1052_v23 = vpop.f32.mrf.mxu0  ;;  %v1372_v24 = vpop.f32.mrf.mxu1 }
 0x183   :  { %v2818_v25 = vpack.c.bf16 %v1549_v21, %v1549_v21  ;;  %v1053_v26 = vadd.f32 %v4301_v1, %v1052_v23  ;;  %v2898_v27 = vpack.c.bf16 %v1629_v22, %v1629_v22  ;;  %v1373_v28 = vadd.f32 %v4301_v1, %v1372_v24 }
 0x184   :  { %v3113_v29 = vpop.f32.mrf.mxu0  ;;  %v3273_v30 = vpop.f32.mrf.mxu1 }
 0x185   :  { %2336 = vst.msk [vmem:[%s4748_s3 + $0xac] sm:$0xf] %vm2292_vm2, %v2818_v25  ;;  %v1550_v31 = vmax.f32 %v1053_v26, 0.0  ;;  %2416 = vst.msk [vmem:[%s4748_s3 + $0x1ec] sm:$0xf] %vm2292_vm2, %v2898_v27  ;;  %v1630_v32 = vmax.f32 %v1373_v28, 0.0 }
 0x186   :  { %v1055_v33 = vpop.f32.mrf.mxu0  ;;  %v1375_v34 = vpop.f32.mrf.mxu1 }
 0x187   :  { %v2819_v35 = vpack.c.bf16 %v1550_v31, %v1550_v31  ;;  %v1056_v36 = vadd.f32 %v4301_v1, %v1055_v33  ;;  %v2899_v37 = vpack.c.bf16 %v1630_v32, %v1630_v32  ;;  %v1376_v38 = vadd.f32 %v4301_v1, %v1375_v34 }
 0x188   :  { %v3114_v39 = vpop.f32.mrf.mxu0  ;;  %v3274_v40 = vpop.f32.mrf.mxu1 }
 0x189   :  { %2337 = vst.msk [vmem:[%s4748_s3 + $0xb0] sm:$0xf] %vm2292_vm2, %v2819_v35  ;;  %v1551_v41 = vmax.f32 %v1056_v36, 0.0  ;;  %2417 = vst.msk [vmem:[%s4748_s3 + $0x1f0] sm:$0xf] %vm2292_vm2, %v2899_v37  ;;  %v1631_v42 = vmax.f32 %v1376_v38, 0.0 }
 0x18a   :  { %v1060_v43 = vpop.f32.mrf.mxu0  ;;  %v1380_v44 = vpop.f32.mrf.mxu1 }
 0x18b   :  { %v2820_v45 = vpack.c.bf16 %v1551_v41, %v1551_v41  ;;  %v1061_v46 = vadd.f32 %v4301_v1, %v1060_v43  ;;  %v2900_v47 = vpack.c.bf16 %v1631_v42, %v1631_v42  ;;  %v1381_v48 = vadd.f32 %v4301_v1, %v1380_v44 }
 0x18c   :  { %v3117_v49 = vpop.f32.mrf.mxu0  ;;  %v3277_v50 = vpop.f32.mrf.mxu1 }
 0x18d   :  { %2338 = vst.msk [vmem:[%s4748_s3 + $0xb4] sm:$0xf] %vm2292_vm2, %v2820_v45  ;;  %v1552_v51 = vmax.f32 %v1061_v46, 0.0  ;;  %2418 = vst.msk [vmem:[%s4748_s3 + $0x1f4] sm:$0xf] %vm2292_vm2, %v2900_v47  ;;  %v1632_v52 = vmax.f32 %v1381_v48, 0.0 }
 0x18e   :  { %v1063_v53 = vpop.f32.mrf.mxu0  ;;  %v1383_v54 = vpop.f32.mrf.mxu1 }
 0x18f   :  { %v2821_v56 = vpack.c.bf16 %v1552_v51, %v1552_v51  ;;  %v1064_v57 = vadd.f32 %v4301_v1, %v1063_v53  ;;  %v2901_v58 = vpack.c.bf16 %v1632_v52, %v1632_v52  ;;  %v1384_v59 = vadd.f32 %v4301_v1, %v1383_v54 }
 0x190   :  { %v3118_v60 = vpop.f32.mrf.mxu0  ;;  %v3278_v61 = vpop.f32.mrf.mxu1 }
 0x191   :  { %2339 = vst.msk [vmem:[%s4748_s3 + $0xb8] sm:$0xf] %vm2292_vm2, %v2821_v56  ;;  %v1553_v62 = vmax.f32 %v1064_v57, 0.0  ;;  %2419 = vst.msk [vmem:[%s4748_s3 + $0x1f8] sm:$0xf] %vm2292_vm2, %v2901_v58  ;;  %v1633_v63 = vmax.f32 %v1384_v59, 0.0 }
 0x192   :  { %v1068_v0 = vpop.f32.mrf.mxu0  ;;  %v1388_v2 = vpop.f32.mrf.mxu1 }
 0x193   :  { %v2822_v3 = vpack.c.bf16 %v1553_v62, %v1553_v62  ;;  %v1069_v4 = vadd.f32 %v4301_v1, %v1068_v0  ;;  %v2902_v5 = vpack.c.bf16 %v1633_v63, %v1633_v63  ;;  %v1389_v55 = vadd.f32 %v4301_v1, %v1388_v2 }
 0x194   :  { %v3121_v6 = vpop.f32.mrf.mxu0  ;;  %v3281_v7 = vpop.f32.mrf.mxu1 }
 0x195   :  { %2340 = vst.msk [vmem:[%s4748_s3 + $0xbc] sm:$0xf] %vm2292_vm2, %v2822_v3  ;;  %v1554_v8 = vmax.f32 %v1069_v4, 0.0  ;;  %2420 = vst.msk [vmem:[%s4748_s3 + $0x1fc] sm:$0xf] %vm2292_vm2, %v2902_v5  ;;  %v1634_v9 = vmax.f32 %v1389_v55, 0.0 }
 0x196   :  { %v1071_v10 = vpop.f32.mrf.mxu0  ;;  %v1391_v11 = vpop.f32.mrf.mxu1 }
 0x197   :  { %v2823_v12 = vpack.c.bf16 %v1554_v8, %v1554_v8  ;;  %v1072_v13 = vadd.f32 %v4301_v1, %v1071_v10  ;;  %v2903_v14 = vpack.c.bf16 %v1634_v9, %v1634_v9  ;;  %v1392_v15 = vadd.f32 %v4301_v1, %v1391_v11 }
 0x198   :  { %v3122_v16 = vpop.f32.mrf.mxu0  ;;  %v3282_v17 = vpop.f32.mrf.mxu1 }
 0x199   :  { %2341 = vst.msk [vmem:[%s4748_s3 + $0xc0] sm:$0xf] %vm2292_vm2, %v2823_v12  ;;  %v1555_v18 = vmax.f32 %v1072_v13, 0.0  ;;  %2421 = vst.msk [vmem:[%s4748_s3 + $0x200] sm:$0xf] %vm2292_vm2, %v2903_v14  ;;  %v1635_v19 = vmax.f32 %v1392_v15, 0.0 }
 0x19a   :  { %v1076_v20 = vpop.f32.mrf.mxu0  ;;  %v1396_v21 = vpop.f32.mrf.mxu1 }
 0x19b   :  { %v2824_v22 = vpack.c.bf16 %v1555_v18, %v1555_v18  ;;  %v1077_v23 = vadd.f32 %v4301_v1, %v1076_v20  ;;  %v2904_v24 = vpack.c.bf16 %v1635_v19, %v1635_v19  ;;  %v1397_v25 = vadd.f32 %v4301_v1, %v1396_v21 }
 0x19c   :  { %v3125_v26 = vpop.f32.mrf.mxu0  ;;  %v3285_v27 = vpop.f32.mrf.mxu1 }
 0x19d   :  { %2342 = vst.msk [vmem:[%s4748_s3 + $0xc4] sm:$0xf] %vm2292_vm2, %v2824_v22  ;;  %v1556_v28 = vmax.f32 %v1077_v23, 0.0  ;;  %2422 = vst.msk [vmem:[%s4748_s3 + $0x204] sm:$0xf] %vm2292_vm2, %v2904_v24  ;;  %v1636_v29 = vmax.f32 %v1397_v25, 0.0 }
 0x19e   :  { %v1079_v30 = vpop.f32.mrf.mxu0  ;;  %v1399_v31 = vpop.f32.mrf.mxu1 }
 0x19f   :  { %v2825_v32 = vpack.c.bf16 %v1556_v28, %v1556_v28  ;;  %v1080_v33 = vadd.f32 %v4301_v1, %v1079_v30  ;;  %v2905_v34 = vpack.c.bf16 %v1636_v29, %v1636_v29  ;;  %v1400_v35 = vadd.f32 %v4301_v1, %v1399_v31 }
 0x1a0   :  { %v3126_v36 = vpop.f32.mrf.mxu0  ;;  %v3286_v37 = vpop.f32.mrf.mxu1 }
 0x1a1   :  { %2343 = vst.msk [vmem:[%s4748_s3 + $0xc8] sm:$0xf] %vm2292_vm2, %v2825_v32  ;;  %v1557_v38 = vmax.f32 %v1080_v33, 0.0  ;;  %2423 = vst.msk [vmem:[%s4748_s3 + $0x208] sm:$0xf] %vm2292_vm2, %v2905_v34  ;;  %v1637_v39 = vmax.f32 %v1400_v35, 0.0 }
 0x1a2   :  { %v1084_v40 = vpop.f32.mrf.mxu0  ;;  %v1404_v41 = vpop.f32.mrf.mxu1 }
 0x1a3   :  { %v2826_v42 = vpack.c.bf16 %v1557_v38, %v1557_v38  ;;  %v1085_v43 = vadd.f32 %v4301_v1, %v1084_v40  ;;  %v2906_v44 = vpack.c.bf16 %v1637_v39, %v1637_v39  ;;  %v1405_v45 = vadd.f32 %v4301_v1, %v1404_v41 }
 0x1a4   :  { %v3129_v46 = vpop.f32.mrf.mxu0  ;;  %v3289_v47 = vpop.f32.mrf.mxu1 }
 0x1a5   :  { %2344 = vst.msk [vmem:[%s4748_s3 + $0xcc] sm:$0xf] %vm2292_vm2, %v2826_v42  ;;  %v1558_v48 = vmax.f32 %v1085_v43, 0.0  ;;  %2424 = vst.msk [vmem:[%s4748_s3 + $0x20c] sm:$0xf] %vm2292_vm2, %v2906_v44  ;;  %v1638_v49 = vmax.f32 %v1405_v45, 0.0 }
 0x1a6   :  { %v1087_v50 = vpop.f32.mrf.mxu0  ;;  %v1407_v51 = vpop.f32.mrf.mxu1 }
 0x1a7   :  { %v2827_v52 = vpack.c.bf16 %v1558_v48, %v1558_v48  ;;  %v1088_v53 = vadd.f32 %v4301_v1, %v1087_v50  ;;  %v2907_v54 = vpack.c.bf16 %v1638_v49, %v1638_v49  ;;  %v1408_v56 = vadd.f32 %v4301_v1, %v1407_v51 }
 0x1a8   :  { %v3130_v57 = vpop.f32.mrf.mxu0  ;;  %v3290_v58 = vpop.f32.mrf.mxu1 }
 0x1a9   :  { %2345 = vst.msk [vmem:[%s4748_s3 + $0xd0] sm:$0xf] %vm2292_vm2, %v2827_v52  ;;  %v1559_v59 = vmax.f32 %v1088_v53, 0.0  ;;  %2425 = vst.msk [vmem:[%s4748_s3 + $0x210] sm:$0xf] %vm2292_vm2, %v2907_v54  ;;  %v1639_v60 = vmax.f32 %v1408_v56, 0.0 }
 0x1aa   :  { %v1092_v61 = vpop.f32.mrf.mxu0  ;;  %v1412_v62 = vpop.f32.mrf.mxu1 }
 0x1ab   :  { %v2828_v63 = vpack.c.bf16 %v1559_v59, %v1559_v59  ;;  %v1093_v0 = vadd.f32 %v4301_v1, %v1092_v61  ;;  %v2908_v2 = vpack.c.bf16 %v1639_v60, %v1639_v60  ;;  %v1413_v3 = vadd.f32 %v4301_v1, %v1412_v62 }
 0x1ac   :  { %v3133_v4 = vpop.f32.mrf.mxu0  ;;  %v3293_v5 = vpop.f32.mrf.mxu1 }
 0x1ad   :  { %2346 = vst.msk [vmem:[%s4748_s3 + $0xd4] sm:$0xf] %vm2292_vm2, %v2828_v63  ;;  %v1560_v55 = vmax.f32 %v1093_v0, 0.0  ;;  %2426 = vst.msk [vmem:[%s4748_s3 + $0x214] sm:$0xf] %vm2292_vm2, %v2908_v2  ;;  %v1640_v6 = vmax.f32 %v1413_v3, 0.0 }
 0x1ae   :  { %v1095_v7 = vpop.f32.mrf.mxu0  ;;  %v1415_v8 = vpop.f32.mrf.mxu1 }
 0x1af   :  { %v2829_v9 = vpack.c.bf16 %v1560_v55, %v1560_v55  ;;  %v1096_v10 = vadd.f32 %v4301_v1, %v1095_v7  ;;  %v2909_v11 = vpack.c.bf16 %v1640_v6, %v1640_v6  ;;  %v1416_v12 = vadd.f32 %v4301_v1, %v1415_v8 }
 0x1b0   :  { %v3134_v13 = vpop.f32.mrf.mxu0  ;;  %v3294_v14 = vpop.f32.mrf.mxu1 }
 0x1b1   :  { %2347 = vst.msk [vmem:[%s4748_s3 + $0xd8] sm:$0xf] %vm2292_vm2, %v2829_v9  ;;  %v1561_v15 = vmax.f32 %v1096_v10, 0.0  ;;  %2427 = vst.msk [vmem:[%s4748_s3 + $0x218] sm:$0xf] %vm2292_vm2, %v2909_v11  ;;  %v1641_v16 = vmax.f32 %v1416_v12, 0.0 }
 0x1b2   :  { %v1100_v17 = vpop.f32.mrf.mxu0  ;;  %v1420_v18 = vpop.f32.mrf.mxu1 }
 0x1b3   :  { %v2830_v19 = vpack.c.bf16 %v1561_v15, %v1561_v15  ;;  %v1101_v20 = vadd.f32 %v4301_v1, %v1100_v17  ;;  %v2910_v21 = vpack.c.bf16 %v1641_v16, %v1641_v16  ;;  %v1421_v22 = vadd.f32 %v4301_v1, %v1420_v18 }
 0x1b4   :  { %v3137_v23 = vpop.f32.mrf.mxu0  ;;  %v3297_v24 = vpop.f32.mrf.mxu1 }
 0x1b5   :  { %2348 = vst.msk [vmem:[%s4748_s3 + $0xdc] sm:$0xf] %vm2292_vm2, %v2830_v19  ;;  %v1562_v25 = vmax.f32 %v1101_v20, 0.0  ;;  %2428 = vst.msk [vmem:[%s4748_s3 + $0x21c] sm:$0xf] %vm2292_vm2, %v2910_v21  ;;  %v1642_v26 = vmax.f32 %v1421_v22, 0.0 }
 0x1b6   :  { %v1103_v27 = vpop.f32.mrf.mxu0  ;;  %v1423_v28 = vpop.f32.mrf.mxu1 }
 0x1b7   :  { %v2831_v29 = vpack.c.bf16 %v1562_v25, %v1562_v25  ;;  %v1104_v30 = vadd.f32 %v4301_v1, %v1103_v27  ;;  %v2911_v31 = vpack.c.bf16 %v1642_v26, %v1642_v26  ;;  %v1424_v32 = vadd.f32 %v4301_v1, %v1423_v28 }
 0x1b8   :  { %v3138_v33 = vpop.f32.mrf.mxu0  ;;  %v3298_v34 = vpop.f32.mrf.mxu1 }
 0x1b9   :  { %2349 = vst.msk [vmem:[%s4748_s3 + $0xe0] sm:$0xf] %vm2292_vm2, %v2831_v29  ;;  %v1563_v35 = vmax.f32 %v1104_v30, 0.0  ;;  %2429 = vst.msk [vmem:[%s4748_s3 + $0x220] sm:$0xf] %vm2292_vm2, %v2911_v31  ;;  %v1643_v36 = vmax.f32 %v1424_v32, 0.0 }
 0x1ba   :  { %v1108_v37 = vpop.f32.mrf.mxu0  ;;  %v1428_v38 = vpop.f32.mrf.mxu1 }
 0x1bb   :  { %v2832_v39 = vpack.c.bf16 %v1563_v35, %v1563_v35  ;;  %v1109_v40 = vadd.f32 %v4301_v1, %v1108_v37  ;;  %v2912_v41 = vpack.c.bf16 %v1643_v36, %v1643_v36  ;;  %v1429_v42 = vadd.f32 %v4301_v1, %v1428_v38 }
 0x1bc   :  { %v3141_v43 = vpop.f32.mrf.mxu0  ;;  %v3301_v44 = vpop.f32.mrf.mxu1 }
 0x1bd   :  { %2350 = vst.msk [vmem:[%s4748_s3 + $0xe4] sm:$0xf] %vm2292_vm2, %v2832_v39  ;;  %v1564_v45 = vmax.f32 %v1109_v40, 0.0  ;;  %2430 = vst.msk [vmem:[%s4748_s3 + $0x224] sm:$0xf] %vm2292_vm2, %v2912_v41  ;;  %v1644_v46 = vmax.f32 %v1429_v42, 0.0 }
 0x1be   :  { %v1111_v47 = vpop.f32.mrf.mxu0  ;;  %v1431_v48 = vpop.f32.mrf.mxu1 }
 0x1bf   :  { %v2833_v49 = vpack.c.bf16 %v1564_v45, %v1564_v45  ;;  %v1112_v50 = vadd.f32 %v4301_v1, %v1111_v47  ;;  %v2913_v51 = vpack.c.bf16 %v1644_v46, %v1644_v46  ;;  %v1432_v52 = vadd.f32 %v4301_v1, %v1431_v48 }
 0x1c0   :  { %v3142_v53 = vpop.f32.mrf.mxu0  ;;  %v3302_v54 = vpop.f32.mrf.mxu1 }
 0x1c1   :  { %2351 = vst.msk [vmem:[%s4748_s3 + $0xe8] sm:$0xf] %vm2292_vm2, %v2833_v49  ;;  %v1565_v56 = vmax.f32 %v1112_v50, 0.0  ;;  %2431 = vst.msk [vmem:[%s4748_s3 + $0x228] sm:$0xf] %vm2292_vm2, %v2913_v51  ;;  %v1645_v57 = vmax.f32 %v1432_v52, 0.0 }
 0x1c2   :  { %v1116_v58 = vpop.f32.mrf.mxu0  ;;  %v1436_v59 = vpop.f32.mrf.mxu1 }
 0x1c3   :  { %v2834_v60 = vpack.c.bf16 %v1565_v56, %v1565_v56  ;;  %v1117_v61 = vadd.f32 %v4301_v1, %v1116_v58  ;;  %v2914_v62 = vpack.c.bf16 %v1645_v57, %v1645_v57  ;;  %v1437_v63 = vadd.f32 %v4301_v1, %v1436_v59 }
 0x1c4   :  { %v3145_v0 = vpop.f32.mrf.mxu0  ;;  %v3305_v2 = vpop.f32.mrf.mxu1 }
 0x1c5   :  { %2352 = vst.msk [vmem:[%s4748_s3 + $0xec] sm:$0xf] %vm2292_vm2, %v2834_v60  ;;  %v1566_v3 = vmax.f32 %v1117_v61, 0.0  ;;  %2432 = vst.msk [vmem:[%s4748_s3 + $0x22c] sm:$0xf] %vm2292_vm2, %v2914_v62  ;;  %v1646_v4 = vmax.f32 %v1437_v63, 0.0 }
 0x1c6   :  { %v1119_v5 = vpop.f32.mrf.mxu0  ;;  %v1439_v55 = vpop.f32.mrf.mxu1 }
 0x1c7   :  { %v2835_v6 = vpack.c.bf16 %v1566_v3, %v1566_v3  ;;  %v1120_v7 = vadd.f32 %v4301_v1, %v1119_v5  ;;  %v2915_v8 = vpack.c.bf16 %v1646_v4, %v1646_v4  ;;  %v1440_v9 = vadd.f32 %v4301_v1, %v1439_v55 }
 0x1c8   :  { %v3146_v10 = vpop.f32.mrf.mxu0  ;;  %v3306_v11 = vpop.f32.mrf.mxu1 }
 0x1c9   :  { %2353 = vst.msk [vmem:[%s4748_s3 + $0xf0] sm:$0xf] %vm2292_vm2, %v2835_v6  ;;  %v1567_v12 = vmax.f32 %v1120_v7, 0.0  ;;  %2433 = vst.msk [vmem:[%s4748_s3 + $0x230] sm:$0xf] %vm2292_vm2, %v2915_v8  ;;  %v1647_v13 = vmax.f32 %v1440_v9, 0.0 }
 0x1ca   :  { %v1124_v14 = vpop.f32.mrf.mxu0  ;;  %v1444_v15 = vpop.f32.mrf.mxu1 }
 0x1cb   :  { %v2836_v16 = vpack.c.bf16 %v1567_v12, %v1567_v12  ;;  %v1125_v17 = vadd.f32 %v4301_v1, %v1124_v14  ;;  %v2916_v18 = vpack.c.bf16 %v1647_v13, %v1647_v13  ;;  %v1445_v19 = vadd.f32 %v4301_v1, %v1444_v15 }
 0x1cc   :  { %v3149_v20 = vpop.f32.mrf.mxu0  ;;  %v3309_v21 = vpop.f32.mrf.mxu1 }
 0x1cd   :  { %2354 = vst.msk [vmem:[%s4748_s3 + $0xf4] sm:$0xf] %vm2292_vm2, %v2836_v16  ;;  %v1568_v22 = vmax.f32 %v1125_v17, 0.0  ;;  %2434 = vst.msk [vmem:[%s4748_s3 + $0x234] sm:$0xf] %vm2292_vm2, %v2916_v18  ;;  %v1648_v23 = vmax.f32 %v1445_v19, 0.0 }
 0x1ce   :  { %v1127_v24 = vpop.f32.mrf.mxu0  ;;  %v1447_v25 = vpop.f32.mrf.mxu1 }
 0x1cf   :  { %v2837_v26 = vpack.c.bf16 %v1568_v22, %v1568_v22  ;;  %v1128_v27 = vadd.f32 %v4301_v1, %v1127_v24  ;;  %v2917_v28 = vpack.c.bf16 %v1648_v23, %v1648_v23  ;;  %v1448_v29 = vadd.f32 %v4301_v1, %v1447_v25 }
 0x1d0   :  { %v3150_v30 = vpop.f32.mrf.mxu0  ;;  %v3310_v31 = vpop.f32.mrf.mxu1 }
 0x1d1   :  { %2355 = vst.msk [vmem:[%s4748_s3 + $0xf8] sm:$0xf] %vm2292_vm2, %v2837_v26  ;;  %v1569_v32 = vmax.f32 %v1128_v27, 0.0  ;;  %2435 = vst.msk [vmem:[%s4748_s3 + $0x238] sm:$0xf] %vm2292_vm2, %v2917_v28  ;;  %v1649_v33 = vmax.f32 %v1448_v29, 0.0 }
 0x1d2   :  { %v1132_v34 = vpop.f32.mrf.mxu0  ;;  %v1452_v35 = vpop.f32.mrf.mxu1 }
 0x1d3   :  { %v2838_v36 = vpack.c.bf16 %v1569_v32, %v1569_v32  ;;  %v1133_v37 = vadd.f32 %v4301_v1, %v1132_v34  ;;  %v2918_v38 = vpack.c.bf16 %v1649_v33, %v1649_v33  ;;  %v1453_v39 = vadd.f32 %v4301_v1, %v1452_v35 }
 0x1d4   :  { %v3153_v40 = vpop.f32.mrf.mxu0  ;;  %v3313_v41 = vpop.f32.mrf.mxu1 }
 0x1d5   :  { %2356 = vst.msk [vmem:[%s4748_s3 + $0xfc] sm:$0xf] %vm2292_vm2, %v2838_v36  ;;  %v1570_v42 = vmax.f32 %v1133_v37, 0.0  ;;  %2436 = vst.msk [vmem:[%s4748_s3 + $0x23c] sm:$0xf] %vm2292_vm2, %v2918_v38  ;;  %v1650_v43 = vmax.f32 %v1453_v39, 0.0 }
 0x1d6   :  { %v1135_v44 = vpop.f32.mrf.mxu0  ;;  %v1455_v45 = vpop.f32.mrf.mxu1 }
 0x1d7   :  { %v2839_v46 = vpack.c.bf16 %v1570_v42, %v1570_v42  ;;  %v1136_v47 = vadd.f32 %v4301_v1, %v1135_v44  ;;  %v2919_v48 = vpack.c.bf16 %v1650_v43, %v1650_v43  ;;  %v1456_v49 = vadd.f32 %v4301_v1, %v1455_v45 }
 0x1d8   :  { %v3154_v50 = vpop.f32.mrf.mxu0  ;;  %v3314_v51 = vpop.f32.mrf.mxu1 }
 0x1d9   :  { %2357 = vst.msk [vmem:[%s4748_s3 + $0x100] sm:$0xf] %vm2292_vm2, %v2839_v46  ;;  %v1571_v52 = vmax.f32 %v1136_v47, 0.0  ;;  %2437 = vst.msk [vmem:[%s4748_s3 + $0x240] sm:$0xf] %vm2292_vm2, %v2919_v48  ;;  %v1651_v53 = vmax.f32 %v1456_v49, 0.0 }
 0x1da   :  { %v1140_v54 = vpop.f32.mrf.mxu0  ;;  %v1460_v56 = vpop.f32.mrf.mxu1 }
 0x1db   :  { %v2840_v57 = vpack.c.bf16 %v1571_v52, %v1571_v52  ;;  %v1141_v58 = vadd.f32 %v4301_v1, %v1140_v54  ;;  %v2920_v59 = vpack.c.bf16 %v1651_v53, %v1651_v53  ;;  %v1461_v60 = vadd.f32 %v4301_v1, %v1460_v56 }
 0x1dc   :  { %v3157_v61 = vpop.f32.mrf.mxu0  ;;  %v3317_v62 = vpop.f32.mrf.mxu1 }
 0x1dd   :  { %2358 = vst.msk [vmem:[%s4748_s3 + $0x104] sm:$0xf] %vm2292_vm2, %v2840_v57  ;;  %v1572_v63 = vmax.f32 %v1141_v58, 0.0  ;;  %2438 = vst.msk [vmem:[%s4748_s3 + $0x244] sm:$0xf] %vm2292_vm2, %v2920_v59  ;;  %v1652_v0 = vmax.f32 %v1461_v60, 0.0 }
 0x1de   :  { %v1143_v2 = vpop.f32.mrf.mxu0  ;;  %v1463_v3 = vpop.f32.mrf.mxu1 }
 0x1df   :  { %v2841_v4 = vpack.c.bf16 %v1572_v63, %v1572_v63  ;;  %v1144_v5 = vadd.f32 %v4301_v1, %v1143_v2  ;;  %v2921_v55 = vpack.c.bf16 %v1652_v0, %v1652_v0  ;;  %v1464_v6 = vadd.f32 %v4301_v1, %v1463_v3 }
 0x1e0   :  { %v3158_v7 = vpop.f32.mrf.mxu0  ;;  %v3318_v8 = vpop.f32.mrf.mxu1 }
 0x1e1   :  { %2359 = vst.msk [vmem:[%s4748_s3 + $0x108] sm:$0xf] %vm2292_vm2, %v2841_v4  ;;  %v1573_v9 = vmax.f32 %v1144_v5, 0.0  ;;  %2439 = vst.msk [vmem:[%s4748_s3 + $0x248] sm:$0xf] %vm2292_vm2, %v2921_v55  ;;  %v1653_v10 = vmax.f32 %v1464_v6, 0.0 }
 0x1e2   :  { %v1148_v11 = vpop.f32.mrf.mxu0  ;;  %v1468_v12 = vpop.f32.mrf.mxu1 }
 0x1e3   :  { %v2842_v13 = vpack.c.bf16 %v1573_v9, %v1573_v9  ;;  %v1149_v14 = vadd.f32 %v4301_v1, %v1148_v11  ;;  %v2922_v15 = vpack.c.bf16 %v1653_v10, %v1653_v10  ;;  %v1469_v16 = vadd.f32 %v4301_v1, %v1468_v12 }
 0x1e4   :  { %v3161_v17 = vpop.f32.mrf.mxu0  ;;  %v3321_v18 = vpop.f32.mrf.mxu1 }
 0x1e5   :  { %2360 = vst.msk [vmem:[%s4748_s3 + $0x10c] sm:$0xf] %vm2292_vm2, %v2842_v13  ;;  %v1574_v19 = vmax.f32 %v1149_v14, 0.0  ;;  %2440 = vst.msk [vmem:[%s4748_s3 + $0x24c] sm:$0xf] %vm2292_vm2, %v2922_v15  ;;  %v1654_v20 = vmax.f32 %v1469_v16, 0.0 }
 0x1e6   :  { %v1151_v21 = vpop.f32.mrf.mxu0  ;;  %v1471_v22 = vpop.f32.mrf.mxu1 }
 0x1e7   :  { %v2843_v23 = vpack.c.bf16 %v1574_v19, %v1574_v19  ;;  %v1152_v24 = vadd.f32 %v4301_v1, %v1151_v21  ;;  %v2923_v25 = vpack.c.bf16 %v1654_v20, %v1654_v20  ;;  %v1472_v26 = vadd.f32 %v4301_v1, %v1471_v22 }
 0x1e8   :  { %v3162_v27 = vpop.f32.mrf.mxu0  ;;  %v3322_v28 = vpop.f32.mrf.mxu1 }
 0x1e9   :  { %2361 = vst.msk [vmem:[%s4748_s3 + $0x110] sm:$0xf] %vm2292_vm2, %v2843_v23  ;;  %v1575_v29 = vmax.f32 %v1152_v24, 0.0  ;;  %2441 = vst.msk [vmem:[%s4748_s3 + $0x250] sm:$0xf] %vm2292_vm2, %v2923_v25  ;;  %v1655_v30 = vmax.f32 %v1472_v26, 0.0 }
 0x1ea   :  { %v1156_v31 = vpop.f32.mrf.mxu0  ;;  %v1476_v32 = vpop.f32.mrf.mxu1 }
 0x1eb   :  { %v2844_v33 = vpack.c.bf16 %v1575_v29, %v1575_v29  ;;  %v1157_v34 = vadd.f32 %v4301_v1, %v1156_v31  ;;  %v2924_v35 = vpack.c.bf16 %v1655_v30, %v1655_v30  ;;  %v1477_v36 = vadd.f32 %v4301_v1, %v1476_v32 }
 0x1ec   :  { %v3165_v37 = vpop.f32.mrf.mxu0  ;;  %v3325_v38 = vpop.f32.mrf.mxu1 }
 0x1ed   :  { %2362 = vst.msk [vmem:[%s4748_s3 + $0x114] sm:$0xf] %vm2292_vm2, %v2844_v33  ;;  %v1576_v39 = vmax.f32 %v1157_v34, 0.0  ;;  %2442 = vst.msk [vmem:[%s4748_s3 + $0x254] sm:$0xf] %vm2292_vm2, %v2924_v35  ;;  %v1656_v40 = vmax.f32 %v1477_v36, 0.0 }
 0x1ee   :  { %v1159_v41 = vpop.f32.mrf.mxu0  ;;  %v1479_v42 = vpop.f32.mrf.mxu1 }
 0x1ef   :  { %v2845_v43 = vpack.c.bf16 %v1576_v39, %v1576_v39  ;;  %v1160_v44 = vadd.f32 %v4301_v1, %v1159_v41  ;;  %v2925_v45 = vpack.c.bf16 %v1656_v40, %v1656_v40  ;;  %v1480_v46 = vadd.f32 %v4301_v1, %v1479_v42 }
 0x1f0   :  { %v3166_v47 = vpop.f32.mrf.mxu0  ;;  %v3326_v48 = vpop.f32.mrf.mxu1 }
 0x1f1   :  { %2363 = vst.msk [vmem:[%s4748_s3 + $0x118] sm:$0xf] %vm2292_vm2, %v2845_v43  ;;  %v1577_v49 = vmax.f32 %v1160_v44, 0.0  ;;  %2443 = vst.msk [vmem:[%s4748_s3 + $0x258] sm:$0xf] %vm2292_vm2, %v2925_v45  ;;  %v1657_v50 = vmax.f32 %v1480_v46, 0.0 }
 0x1f2   :  { %v1164_v51 = vpop.f32.mrf.mxu0  ;;  %v1484_v52 = vpop.f32.mrf.mxu1  ;;  %v3433_v48 = vld [vmem:[%s4747_s2] ss:$0 sm:$0xff] }
 0x1f3   :  { %v2846_v53 = vpack.c.bf16 %v1577_v49, %v1577_v49  ;;  %v1165_v54 = vadd.f32 %v4301_v1, %v1164_v51  ;;  %v2926_v56 = vpack.c.bf16 %v1657_v50, %v1657_v50  ;;  %v1485_v57 = vadd.f32 %v4301_v1, %v1484_v52 }
 0x1f4   :  { %v3169_v58 = vpop.f32.mrf.mxu0  ;;  %v3329_v59 = vpop.f32.mrf.mxu1 }
 0x1f5   :  { %2364 = vst.msk [vmem:[%s4748_s3 + $0x11c] sm:$0xf] %vm2292_vm2, %v2846_v53  ;;  %v1578_v60 = vmax.f32 %v1165_v54, 0.0  ;;  %2444 = vst.msk [vmem:[%s4748_s3 + $0x25c] sm:$0xf] %vm2292_vm2, %v2926_v56  ;;  %v1658_v61 = vmax.f32 %v1485_v57, 0.0 }
 0x1f6   :  { %v1167_v62 = vpop.f32.mrf.mxu0  ;;  %v1487_v63 = vpop.f32.mrf.mxu1 }
 0x1f7   :  { %v2847_v0 = vpack.c.bf16 %v1578_v60, %v1578_v60  ;;  %v1168_v2 = vadd.f32 %v4301_v1, %v1167_v62  ;;  %v2927_v3 = vpack.c.bf16 %v1658_v61, %v1658_v61  ;;  %v1488_v4 = vadd.f32 %v4301_v1, %v1487_v63 }
 0x1f8   :  { %v3170_v5 = vpop.f32.mrf.mxu0  ;;  %v3330_v55 = vpop.f32.mrf.mxu1 }
 0x1f9   :  { %2365 = vst.msk [vmem:[%s4748_s3 + $0x120] sm:$0xf] %vm2292_vm2, %v2847_v0  ;;  %v1579_v6 = vmax.f32 %v1168_v2, 0.0  ;;  %2445 = vst.msk [vmem:[%s4748_s3 + $0x260] sm:$0xf] %vm2292_vm2, %v2927_v3  ;;  %v1659_v7 = vmax.f32 %v1488_v4, 0.0 }
 0x1fa   :  { %v1172_v8 = vpop.f32.mrf.mxu0  ;;  %v1492_v9 = vpop.f32.mrf.mxu1 }
 0x1fb   :  { %v2848_v10 = vpack.c.bf16 %v1579_v6, %v1579_v6  ;;  %v1173_v11 = vadd.f32 %v4301_v1, %v1172_v8  ;;  %v2928_v12 = vpack.c.bf16 %v1659_v7, %v1659_v7  ;;  %v1493_v13 = vadd.f32 %v4301_v1, %v1492_v9 }
 0x1fc   :  { %v3173_v14 = vpop.f32.mrf.mxu0  ;;  %v3333_v15 = vpop.f32.mrf.mxu1 }
 0x1fd   :  { %2366 = vst.msk [vmem:[%s4748_s3 + $0x124] sm:$0xf] %vm2292_vm2, %v2848_v10  ;;  %v1580_v16 = vmax.f32 %v1173_v11, 0.0  ;;  %2446 = vst.msk [vmem:[%s4748_s3 + $0x264] sm:$0xf] %vm2292_vm2, %v2928_v12  ;;  %v1660_v17 = vmax.f32 %v1493_v13, 0.0 }
 0x1fe   :  { %v1175_v18 = vpop.f32.mrf.mxu0  ;;  %v1495_v19 = vpop.f32.mrf.mxu1 }
 0x1ff   :  { %v2849_v20 = vpack.c.bf16 %v1580_v16, %v1580_v16  ;;  %v1176_v21 = vadd.f32 %v4301_v1, %v1175_v18  ;;  %v2929_v22 = vpack.c.bf16 %v1660_v17, %v1660_v17  ;;  %v1496_v23 = vadd.f32 %v4301_v1, %v1495_v19 }
 0x200   :  { %v3174_v24 = vpop.f32.mrf.mxu0  ;;  %v3334_v25 = vpop.f32.mrf.mxu1 }
 0x201   :  { %2367 = vst.msk [vmem:[%s4748_s3 + $0x128] sm:$0xf] %vm2292_vm2, %v2849_v20  ;;  %v1581_v26 = vmax.f32 %v1176_v21, 0.0  ;;  %2447 = vst.msk [vmem:[%s4748_s3 + $0x268] sm:$0xf] %vm2292_vm2, %v2929_v22  ;;  %v1661_v27 = vmax.f32 %v1496_v23, 0.0 }
 0x202   :  { %v1180_v28 = vpop.f32.mrf.mxu0  ;;  %v1500_v29 = vpop.f32.mrf.mxu1 }
 0x203   :  { %v2850_v30 = vpack.c.bf16 %v1581_v26, %v1581_v26  ;;  %v1181_v31 = vadd.f32 %v4301_v1, %v1180_v28  ;;  %v2930_v32 = vpack.c.bf16 %v1661_v27, %v1661_v27  ;;  %v1501_v33 = vadd.f32 %v4301_v1, %v1500_v29 }
 0x204   :  { %v3177_v34 = vpop.f32.mrf.mxu0  ;;  %v3337_v35 = vpop.f32.mrf.mxu1 }
 0x205   :  { %2368 = vst.msk [vmem:[%s4748_s3 + $0x12c] sm:$0xf] %vm2292_vm2, %v2850_v30  ;;  %v1582_v36 = vmax.f32 %v1181_v31, 0.0  ;;  %2448 = vst.msk [vmem:[%s4748_s3 + $0x26c] sm:$0xf] %vm2292_vm2, %v2930_v32  ;;  %v1662_v37 = vmax.f32 %v1501_v33, 0.0 }
 0x206   :  { %v1183_v38 = vpop.f32.mrf.mxu0  ;;  %v1503_v39 = vpop.f32.mrf.mxu1 }
 0x207   :  { %v2851_v40 = vpack.c.bf16 %v1582_v36, %v1582_v36  ;;  %v1184_v41 = vadd.f32 %v4301_v1, %v1183_v38  ;;  %v2931_v42 = vpack.c.bf16 %v1662_v37, %v1662_v37 }
 0x208   :  { %v3178_v43 = vpop.f32.mrf.mxu0  ;;  %v3338_v44 = vpop.f32.mrf.mxu1 }
 0x209   :  { %2369 = vst.msk [vmem:[%s4748_s3 + $0x130] sm:$0xf] %vm2292_vm2, %v2851_v40  ;;  %v1583_v45 = vmax.f32 %v1184_v41, 0.0 }
 0x20a   :  { %2450 = vst.msk [vmem:[%s4748_s3 + $0x270] sm:$0x1] %vm2449_vm3, %v2931_v42  ;;  %v1188_v46 = vpop.f32.mrf.mxu0 }
 0x20b   :  { %v2852_v47 = vpack.c.bf16 %v1583_v45, %v1583_v45  ;;  %v1189_v1 = vadd.f32 %v3433_v48, %v1188_v46 }
 0x20c   :  { %v3181_v49 = vpop.f32.mrf.mxu0 }
 0x20d   :  { %2370 = vst.msk [vmem:[%s4748_s3 + $0x134] sm:$0xf] %vm2292_vm2, %v2852_v47  ;;  %v1584_v50 = vmax.f32 %v1189_v1, 0.0 }
 0x20e   :  { %v1191_v51 = vpop.f32.mrf.mxu0 }
 0x20f   :  { %v2853_v52 = vpack.c.bf16 %v1584_v50, %v1584_v50  ;;  %v1192_v53 = vadd.f32 %v3433_v48, %v1191_v51 }
 0x210   :  { %v3182_v54 = vpop.f32.mrf.mxu0 }
 0x211   :  { %2371 = vst.msk [vmem:[%s4748_s3 + $0x138] sm:$0xf] %vm2292_vm2, %v2853_v52  ;;  %v1585_v56 = vmax.f32 %v1192_v53, 0.0 }
 0x213   :  { %v2854_v57 = vpack.c.bf16 %v1585_v56, %v1585_v56 }
 0x215   :  { %2372 = vst.msk [vmem:[%s4748_s3 + $0x13c] sm:$0xf] %vm2292_vm2, %v2854_v57 }

// kernel: my_cnn_forward.3
= control target key start
LH: loop header
LB: loop body
LE: loop exit
PB: predicated region body
PF: predicated region fallthrough
CT: control target
= control target key end

     0   :  { %s21290_s18 = smov 0   ;;  %s23486_s0 = inlined_call_operand.vmem [shape: bf16[2,40192], index: 0, kind: input, shape index: {}]   ;;  %s23487_s1 = inlined_call_operand.vmem [shape: bf16[40192,64], index: 1, kind: input, shape index: {}]   ;;  %s23488_s2 = inlined_call_operand.vmem [shape: f32[1,64], index: 2, kind: input, shape index: {}]   ;;  %s23489_s3 = inlined_call_operand.vmem [shape: bf16[64,4096], index: 3, kind: input, shape index: {}]   ;;  %s23490_s4 = inlined_call_operand.vmem [shape: f32[1,4096], index: 4, kind: input, shape index: {}]   ;;  %s23491_s5 = inlined_call_operand.vmem [shape: f32[2,4096], index: 5, kind: output, shape index: {}]  }
   0x1 LB: > { %s21296_s19 = sadd.s32 4294967295, %s21252_s18   ;;  %p16644_p0 = scmp.ge.s32.totalorder %s21252_s18, 1  ;;  %s21252_s18 = sphi %s21290_s18, %s15_s18  }
   0x2   : > { %p193_p1 = scmp.lt.s32.totalorder %s21252_s18, 3 }
   0x4   : > { %p194_p2 = pnand %p16644_p0, %p193_p1 }
   0x5   : > { %s220_s20 = smul.u32 (!%p194_p2), 157, %s21296_s19  ;;  %p16646_p5 = scmp.ne.s32.totalorder (!%p194_p2), %s21296_s19, 0 }
   0x6   : > { %197 = sbr.rel (%p194_p2) target bundleno = 1874 (0x752), region = 40 }
   0x7   : > { %s225_s21 = smul.u32 (!%p194_p2), 2512, %s21296_s19  ;;  %p221_p3 = scmp.lt.s32.totalorder (!%p194_p2), %s220_s20, 313 }
   0x9   : > { %p226_p4 = scmp.lt.s32.totalorder (!%p194_p2), %s225_s21, 5023 }
   0xb   : > { %s23493_s20 = smov (!%p221_p3, %s220_s20), 313  ;;  %s23495_s21 = smov (!%p226_p4, %s225_s21), 5023 }
   0xc   : > { %s21305_s24 = scalar_lea.vmem %s23486_s0, %s23493_s20  ;;  %s16645_s25 = sshll.u32 %s23495_s21, 2 }
   0xd   : > { %s21310_s28 = scalar_lea.vmem %s23487_s1, %s16645_s25  ;;  %235 = sbr.rel (%p16646_p5) target bundleno = 20 (0x14), region = 44 }
  0x12   : > { %vm236_vm0 = vcmask 517120   ;;  %v21254_v0 = vmov 0.0  }
  0x13   : > { %237 = vst.msk [vmem:[#allocation2] sm:$0x3] %vm236_vm0, %v21254_v0 }
  0x14 PF: > { %v19842_v1 = vld [vmem:[%s21310_s28 + $0x78] sm:$0xff]   ;;  %v19846_v5 = vld [vmem:[%s21310_s28 + $0x70] sm:$0xff]   ;;  %v19850_v9 = vld [vmem:[%s21310_s28 + $0x68] sm:$0xff]   ;;  %v2795_v30 = vlaneseq  ;;  %v21255_v36 = vmov 1966171168   ;;  %vm21257_vm1 = vmmov 0  }
  0x15   : > { %v19843_v2 = vld [vmem:[%s21310_s28 + $0xf8] sm:$0xff]   ;;  %18083 = vmatprep.subr.bf16.mxu0 %v19842_v1  ;;  %v19847_v6 = vld [vmem:[%s21310_s28 + $0xf0] sm:$0xff]   ;;  %v19851_v10 = vld [vmem:[%s21310_s28 + $0xe8] sm:$0xff]   ;;  %v2793_v37 = vunpack.c.l.s4 %v21255_v36  ;;  %vm14615_vm2 = vcmask 517120   ;;  %p17903_p6 = scmp.ne.s32.totalorder %s21296_s19, 1 }
  0x16   : > { %v19844_v3 = vld [vmem:[%s21310_s28 + $0x38] sm:$0xff]   ;;  %18105 = vmatprep.subr.bf16.mxu1 %v19843_v2  ;;  %v19848_v7 = vld [vmem:[%s21310_s28 + $0x30] sm:$0xff]   ;;  %v19852_v11 = vld [vmem:[%s21310_s28 + $0x28] sm:$0xff]   ;;  %v21345_v34 = vshrl.u32 %v2795_v30, 7 }
  0x17   : > { %v19845_v4 = vld [vmem:[%s21310_s28 + $0xb8] sm:$0xff]   ;;  %18084 = vmatpush3.bf16.msra.mxu0 %v19844_v3  ;;  %v19849_v8 = vld [vmem:[%s21310_s28 + $0xb0] sm:$0xff]   ;;  %v19853_v12 = vld [vmem:[%s21310_s28 + $0xa8] sm:$0xff]   ;;  %v2794_v40 = vunpack.c.0.s8 %v2793_v37 }
  0x18   : > { %18106 = vmatpush3.bf16.msra.mxu1 %v19845_v4  ;;  %18085 = vmatprep.subr.bf16.mxu0 %v19846_v5  ;;  %v19854_v13 = vld [vmem:[%s21310_s28 + $0x60] sm:$0xff]   ;;  %v19858_v17 = vld [vmem:[%s21310_s28 + $0x58] sm:$0xff]   ;;  %v19862_v21 = vld [vmem:[%s21310_s28 + $0x50] sm:$0xff]  }
  0x19   : > { %18107 = vmatprep.subr.bf16.mxu1 %v19847_v6  ;;  %v19855_v14 = vld [vmem:[%s21310_s28 + $0xe0] sm:$0xff]   ;;  %v19859_v18 = vld [vmem:[%s21310_s28 + $0xd8] sm:$0xff]   ;;  %v19863_v22 = vld [vmem:[%s21310_s28 + $0xd0] sm:$0xff]   ;;  %v21351_v42 = vsub.s32 %v2794_v40, %v21345_v34 }
  0x1a   : > { %v19856_v15 = vld [vmem:[%s21310_s28 + $0x20] sm:$0xff]   ;;  %v19860_v19 = vld [vmem:[%s21310_s28 + $0x18] sm:$0xff]   ;;  %v19864_v23 = vld [vmem:[%s21310_s28 + $0x10] sm:$0xff]  }
  0x1b   : > { %18086 = vmatpush3.bf16.msra.mxu0 %v19848_v7  ;;  %v19857_v16 = vld [vmem:[%s21310_s28 + $0xa0] sm:$0xff]   ;;  %v19861_v20 = vld [vmem:[%s21310_s28 + $0x98] sm:$0xff]   ;;  %v19865_v24 = vld [vmem:[%s21310_s28 + $0x90] sm:$0xff]  }
  0x1c   : > { %18108 = vmatpush3.bf16.msra.mxu1 %v19849_v8  ;;  %18087 = vmatprep.subr.bf16.mxu0 %v19850_v9  ;;  %v19866_v25 = vld [vmem:[%s21310_s28 + $0x48] sm:$0xff]   ;;  %v19870_v29 = vld [vmem:[%s21310_s28 + $0x40] sm:$0xff]   ;;  %v19875_v35 = vld [vmem:[%s21310_s28 + $0x178] sm:$0xff]  }
  0x1d   : > { %18109 = vmatprep.subr.bf16.mxu1 %v19851_v10  ;;  %v19867_v26 = vld [vmem:[%s21310_s28 + $0xc8] sm:$0xff]   ;;  %v19871_v31 = vld [vmem:[%s21310_s28 + $0xc0] sm:$0xff]   ;;  %v19877_v41 = vld [vmem:[%s21310_s28 + $0x1f8] sm:$0xff]  }
  0x1e   : > { %v19868_v27 = vld [vmem:[%s21310_s28 + $0x8] sm:$0xff]   ;;  %v19872_v32 = vld [vmem:[%s21310_s28] sm:$0xff]   ;;  %v19876_v48 = vld [vmem:[%s21310_s28 + $0x138] sm:$0xff]  }
  0x1f   : > { %18088 = vmatpush3.bf16.msra.mxu0 %v19852_v11  ;;  %v19869_v28 = vld [vmem:[%s21310_s28 + $0x88] sm:$0xff]   ;;  %v19873_v33 = vld [vmem:[%s21310_s28 + $0x80] sm:$0xff]   ;;  %v19878_v50 = vld [vmem:[%s21310_s28 + $0x1b8] sm:$0xff]  }
  0x20   : > { %18110 = vmatpush3.bf16.msra.mxu1 %v19853_v12  ;;  %18089 = vmatprep.subr.bf16.mxu0 %v19854_v13  ;;  %v239_v38 = vld [vmem:[%s21305_s24] sm:$0xff]  ;;  %v19879_v53 = vld [vmem:[%s21310_s28 + $0x170] sm:$0xff]   ;;  %v19883_v59 = vld [vmem:[%s21310_s28 + $0x168] sm:$0xff]  }
  0x21   : > { %18111 = vmatprep.subr.bf16.mxu1 %v19855_v14  ;;  %v2791_v39 = vcombine.high %v239_v38, %v239_v38  ;;  %v2798_v43 = vrot.slane %v239_v38, %v21351_v42  ;;  %v19880_v55 = vld [vmem:[%s21310_s28 + $0x130] sm:$0xff]   ;;  %v19884_v60 = vld [vmem:[%s21310_s28 + $0x128] sm:$0xff]   ;;  %v19887_v63 = vld [vmem:[%s21310_s28 + $0x160] sm:$0xff]  }
  0x22   : > { %v19881_v56 = vld [vmem:[%s21310_s28 + $0x1f0] sm:$0xff]   ;;  %v19885_v61 = vld [vmem:[%s21310_s28 + $0x1e8] sm:$0xff]   ;;  %v19888_v0 = vld [vmem:[%s21310_s28 + $0x120] sm:$0xff]  }
  0x23   : > { %18090 = vmatpush3.bf16.msra.mxu0 %v19856_v15  ;;  %v21355_v44 = vrot.slane %v2791_v39, %v21351_v42  ;;  %v2806_v45 = vcombine.high %v2798_v43, %v2798_v43  ;;  %v2814_v46 = vrot.slane %v2798_v43, %v21351_v42  ;;  %v19882_v58 = vld [vmem:[%s21310_s28 + $0x1b0] sm:$0xff]   ;;  %v19886_v62 = vld [vmem:[%s21310_s28 + $0x1a8] sm:$0xff]   ;;  %v19889_v1 = vld [vmem:[%s21310_s28 + $0x1e0] sm:$0xff]  }
  0x24   : > { %18112 = vmatpush3.bf16.msra.mxu1 %v19857_v16  ;;  %18091 = vmatprep.subr.bf16.mxu0 %v19858_v17  ;;  %v19890_v2 = vld [vmem:[%s21310_s28 + $0x1a0] sm:$0xff]   ;;  %v19891_v3 = vld [vmem:[%s21310_s28 + $0x158] sm:$0xff]   ;;  %v19895_v7 = vld [vmem:[%s21310_s28 + $0x150] sm:$0xff]  }
  0x25   : > { %18113 = vmatprep.subr.bf16.mxu1 %v19859_v18  ;;  %v2807_v47 = vcombine.high %v21355_v44, %v21355_v44  ;;  %v2828_v49 = vrot.slane %v2806_v45, %v21351_v42  ;;  %v2836_v52 = vcombine.high %v2814_v46, %v2814_v46  ;;  %v19892_v4 = vld [vmem:[%s21310_s28 + $0x118] sm:$0xff]   ;;  %v19896_v8 = vld [vmem:[%s21310_s28 + $0x110] sm:$0xff]   ;;  %v19899_v11 = vld [vmem:[%s21310_s28 + $0x148] sm:$0xff]  }
  0x26   : > { %v19893_v5 = vld [vmem:[%s21310_s28 + $0x1d8] sm:$0xff]   ;;  %v19897_v9 = vld [vmem:[%s21310_s28 + $0x1d0] sm:$0xff]   ;;  %v19900_v12 = vld [vmem:[%s21310_s28 + $0x108] sm:$0xff]  }
  0x27   : > { %18092 = vmatpush3.bf16.msra.mxu0 %v19860_v19  ;;  %v2835_v51 = vrot.slane %v2807_v47, %v21351_v42  ;;  %11486 = vmatprep.mubr.bf16.mxu0 %v2828_v49  ;;  %v2838_v54 = vcombine.high %v2828_v49, %v2828_v49  ;;  %v19894_v6 = vld [vmem:[%s21310_s28 + $0x198] sm:$0xff]   ;;  %v19898_v10 = vld [vmem:[%s21310_s28 + $0x190] sm:$0xff]   ;;  %v19901_v13 = vld [vmem:[%s21310_s28 + $0x1c8] sm:$0xff]   ;;  %v2821_v19 = vrot.slane %v21355_v44, %v21351_v42 }
  0x28   : > { %18114 = vmatpush3.bf16.msra.mxu1 %v19861_v20  ;;  %18093 = vmatprep.subr.bf16.mxu0 %v19862_v21  ;;  %v19902_v14 = vld [vmem:[%s21310_s28 + $0x188] sm:$0xff]   ;;  %v19903_v15 = vld [vmem:[%s21310_s28 + $0x140] sm:$0xff]   ;;  %v19907_v20 = vld [vmem:[%s21310_s28 + $0x278] sm:$0xff]  }
  0x29   : > { %18115 = vmatprep.subr.bf16.mxu1 %v19863_v22  ;;  %v2839_v57 = vcombine.high %v2835_v51, %v2835_v51  ;;  %11526 = vmatprep.mubr.bf16.mxu1 %v2838_v54  ;;  %v19904_v16 = vld [vmem:[%s21310_s28 + $0x100] sm:$0xff]   ;;  %v19908_v21 = vld [vmem:[%s21310_s28 + $0x238] sm:$0xff]   ;;  %v19916_v30 = vld [vmem:[%s21310_s28 + $0x228] sm:$0xff]  }
  0x2a   : > { %v19905_v17 = vld [vmem:[%s21310_s28 + $0x1c0] sm:$0xff]   ;;  %v19909_v22 = vld [vmem:[%s21310_s28 + $0x2f8] sm:$0xff]   ;;  %v19927_v43 = vld [vmem:[%s21310_s28 + $0x250] sm:$0xff]  }
  0x2b   : > { %18094 = vmatpush3.bf16.msra.mxu0 %v19864_v23  ;;  %v19906_v18 = vld [vmem:[%s21310_s28 + $0x180] sm:$0xff]   ;;  %v19910_v23 = vld [vmem:[%s21310_s28 + $0x2b8] sm:$0xff]   ;;  %v19928_v44 = vld [vmem:[%s21310_s28 + $0x210] sm:$0xff]  }
  0x2c   : > { %18116 = vmatpush3.bf16.msra.mxu1 %v19865_v24  ;;  %18095 = vmatprep.subr.bf16.mxu0 %v19866_v25  ;;  %v2837_v24 = vcombine.high %v2821_v19, %v2821_v19  ;;  %v19911_v25 = vld [vmem:[%s21310_s28 + $0x270] sm:$0xff]   ;;  %v19921_v36 = vld [vmem:[%s21310_s28 + $0x2e0] sm:$0xff]   ;;  %v19923_v38 = vld [vmem:[%s21310_s28 + $0x258] sm:$0xff]  }
  0x2d   : > { %18117 = vmatprep.subr.bf16.mxu1 %v19867_v26  ;;  %v19912_v26 = vld [vmem:[%s21310_s28 + $0x230] sm:$0xff]   ;;  %v19922_v37 = vld [vmem:[%s21310_s28 + $0x2a0] sm:$0xff]   ;;  %v19924_v39 = vld [vmem:[%s21310_s28 + $0x218] sm:$0xff]  }
  0x2e   : > { %v19925_v40 = vld [vmem:[%s21310_s28 + $0x2d8] sm:$0xff]   ;;  %v19929_v45 = vld [vmem:[%s21310_s28 + $0x2d0] sm:$0xff]   ;;  %v240_v47 = vld [vmem:[%s21305_s24 + $0x8] sm:$0xff] }
  0x2f   : > { %18096 = vmatpush3.bf16.msra.mxu0 %v19868_v27  ;;  %v19913_v27 = vld [vmem:[%s21310_s28 + $0x2f0] sm:$0xff]   ;;  %v2847_v49 = vrot.slane %v240_v47, %v21351_v42 }
  0x30   : > { %18118 = vmatpush3.bf16.msra.mxu1 %v19869_v28  ;;  %18097 = vmatprep.subr.bf16.mxu0 %v19870_v29  ;;  %v19914_v28 = vld [vmem:[%s21310_s28 + $0x2b0] sm:$0xff]   ;;  %v19915_v29 = vld [vmem:[%s21310_s28 + $0x268] sm:$0xff]  }
  0x31   : > { %18119 = vmatprep.subr.bf16.mxu1 %v19871_v31  ;;  %v19917_v31 = vld [vmem:[%s21310_s28 + $0x2e8] sm:$0xff]  }
  0x33   : > { %18098 = vmatpush3.bf16.msra.mxu0 %v19872_v32  ;;  %v19918_v32 = vld [vmem:[%s21310_s28 + $0x2a8] sm:$0xff]  }
  0x34   : > { %18120 = vmatpush3.bf16.msra.mxu1 %v19873_v33  ;;  %18127 = vmatprep.subr.bf16.mxu0 %v19875_v35  ;;  %v19919_v33 = vld [vmem:[%s21310_s28 + $0x260] sm:$0xff]  }
  0x35   : > { %18149 = vmatprep.subr.bf16.mxu1 %v19877_v41  ;;  %v19920_v35 = vld [vmem:[%s21310_s28 + $0x220] sm:$0xff]   ;;  %v19926_v41 = vld [vmem:[%s21310_s28 + $0x298] sm:$0xff]  }
  0x36   : > { %11487 = vmatmul.mubr.bf16.vlgmr.msra.gmra.mxu0 %v2814_v46  ;;  %v19930_v46 = vld [vmem:[%s21310_s28 + $0x290] sm:$0xff]  }
  0x37   : > { %18128 = vmatpush3.bf16.msra.mxu0 %v19876_v48  ;;  %11527 = vmatmul.mubr.bf16.vlgmr.msra.gmra.mxu1 %v2836_v52  ;;  %v19931_v48 = vld [vmem:[%s21310_s28 + $0x248] sm:$0xff]  }
  0x38   : > { %18129 = vmatprep.subr.bf16.mxu0 %v19879_v53  ;;  %18150 = vmatpush3.bf16.msra.mxu1 %v19878_v50  ;;  %v2840_v50 = vcombine.high %v240_v47, %v240_v47  ;;  %v19933_v52 = vld [vmem:[%s21310_s28 + $0x2c8] sm:$0xff]   ;;  %v2855_v53 = vcombine.high %v2847_v49, %v2847_v49 }
  0x39   : > { %11566 = vmatprep.mubr.bf16.mxu0 %v2835_v51  ;;  %18151 = vmatprep.subr.bf16.mxu1 %v19881_v56  ;;  %v19932_v51 = vld [vmem:[%s21310_s28 + $0x208] sm:$0xff]   ;;  %v19935_v56 = vld [vmem:[%s21310_s28 + $0x240] sm:$0xff]  }
  0x3a   : > { %11606 = vmatprep.mubr.bf16.mxu1 %v2839_v57  ;;  %v21424_v54 = vrot.slane %v2840_v50, %v21351_v42  ;;  %v2877_v57 = vrot.slane %v2855_v53, %v21351_v42  ;;  %v19980_v47 = vld [vmem:[%s21310_s28 + $0x468] sm:$0xff]   ;;  %v19986_v53 = vld [vmem:[%s21310_s28 + $0x4e0] sm:$0xff]  }
  0x3b   : > { %18130 = vmatpush3.bf16.msra.mxu0 %v19880_v55  ;;  %v19934_v55 = vld [vmem:[%s21310_s28 + $0x288] sm:$0xff]  }
  0x3c   : > { %18131 = vmatprep.subr.bf16.mxu0 %v19883_v59  ;;  %18152 = vmatpush3.bf16.msra.mxu1 %v19882_v58  ;;  %v19936_v58 = vld [vmem:[%s21310_s28 + $0x200] sm:$0xff]   ;;  %v2856_v59 = vcombine.high %v21424_v54, %v21424_v54  ;;  %v19983_v50 = vld [vmem:[%s21310_s28 + $0x4a8] sm:$0xff]  }
  0x3d   : > { %18153 = vmatprep.subr.bf16.mxu1 %v19885_v61  ;;  %v2887_v61 = vcombine.high %v2877_v57, %v2877_v57 }
  0x3f   : > { %18132 = vmatpush3.bf16.msra.mxu0 %v19884_v60  ;;  %v19937_v60 = vld [vmem:[%s21310_s28 + $0x2c0] sm:$0xff]  }
  0x40   : > { %18133 = vmatprep.subr.bf16.mxu0 %v19887_v63  ;;  %18154 = vmatpush3.bf16.msra.mxu1 %v19886_v62  ;;  %v19938_v62 = vld [vmem:[%s21310_s28 + $0x280] sm:$0xff]   ;;  %v2863_v63 = vrot.slane %v2847_v49, %v21351_v42  ;;  %v19982_v49 = vld [vmem:[%s21310_s28 + $0x4e8] sm:$0xff]  }
  0x41   : > { %18155 = vmatprep.subr.bf16.mxu1 %v19889_v1  ;;  %v19940_v1 = vld [vmem:[%s21310_s28 + $0x338] sm:$0xff]  }
  0x43   : > { %18134 = vmatpush3.bf16.msra.mxu0 %v19888_v0  ;;  %v19939_v0 = vld [vmem:[%s21310_s28 + $0x378] sm:$0xff]  }
  0x44   : > { %18135 = vmatprep.subr.bf16.mxu0 %v19891_v3  ;;  %18156 = vmatpush3.bf16.msra.mxu1 %v19890_v2  ;;  %v2884_v2 = vrot.slane %v2856_v59, %v21351_v42  ;;  %v19941_v3 = vld [vmem:[%s21310_s28 + $0x3f8] sm:$0xff]   ;;  %v19992_v59 = vld [vmem:[%s21310_s28 + $0x450] sm:$0xff]  }
  0x45   : > { %18157 = vmatprep.subr.bf16.mxu1 %v19893_v5  ;;  %v2885_v5 = vcombine.high %v2863_v63, %v2863_v63 }
  0x47   : > { %18136 = vmatpush3.bf16.msra.mxu0 %v19892_v4  ;;  %v19942_v4 = vld [vmem:[%s21310_s28 + $0x3b8] sm:$0xff]  }
  0x48   : > { %18137 = vmatprep.subr.bf16.mxu0 %v19895_v7  ;;  %18158 = vmatpush3.bf16.msra.mxu1 %v19894_v6  ;;  %v19943_v6 = vld [vmem:[%s21310_s28 + $0x370] sm:$0xff]  }
  0x49   : > { %18159 = vmatprep.subr.bf16.mxu1 %v19897_v9  ;;  %v19944_v7 = vld [vmem:[%s21310_s28 + $0x330] sm:$0xff]  }
  0x4a   : > { %v19945_v9 = vld [vmem:[%s21310_s28 + $0x3f0] sm:$0xff]  }
  0x4b   : > { %18138 = vmatpush3.bf16.msra.mxu0 %v19896_v8  ;;  %v2888_v8 = vcombine.high %v2884_v2, %v2884_v2 }
  0x4c   : > { %18139 = vmatprep.subr.bf16.mxu0 %v19899_v11  ;;  %18160 = vmatpush3.bf16.msra.mxu1 %v19898_v10  ;;  %v19946_v10 = vld [vmem:[%s21310_s28 + $0x3b0] sm:$0xff]   ;;  %v19947_v11 = vld [vmem:[%s21310_s28 + $0x368] sm:$0xff]  }
  0x4d   : > { %18161 = vmatprep.subr.bf16.mxu1 %v19901_v13  ;;  %v19949_v13 = vld [vmem:[%s21310_s28 + $0x3e8] sm:$0xff]  }
  0x4f   : > { %18140 = vmatpush3.bf16.msra.mxu0 %v19900_v12  ;;  %v19948_v12 = vld [vmem:[%s21310_s28 + $0x328] sm:$0xff]  }
  0x50   : > { %18141 = vmatprep.subr.bf16.mxu0 %v19903_v15  ;;  %18162 = vmatpush3.bf16.msra.mxu1 %v19902_v14  ;;  %v19950_v14 = vld [vmem:[%s21310_s28 + $0x3a8] sm:$0xff]   ;;  %v19951_v15 = vld [vmem:[%s21310_s28 + $0x360] sm:$0xff]  }
  0x51   : > { %18163 = vmatprep.subr.bf16.mxu1 %v19905_v17  ;;  %v19953_v17 = vld [vmem:[%s21310_s28 + $0x3e0] sm:$0xff]  }
  0x53   : > { %18142 = vmatpush3.bf16.msra.mxu0 %v19904_v16  ;;  %v19952_v16 = vld [vmem:[%s21310_s28 + $0x320] sm:$0xff]  }
  0x54   : > { %18171 = vmatprep.subr.bf16.mxu0 %v19907_v20  ;;  %18164 = vmatpush3.bf16.msra.mxu1 %v19906_v18  ;;  %v19954_v18 = vld [vmem:[%s21310_s28 + $0x3a0] sm:$0xff]   ;;  %v19956_v20 = vld [vmem:[%s21310_s28 + $0x318] sm:$0xff]  }
  0x55   : > { %18193 = vmatprep.subr.bf16.mxu1 %v19909_v22  ;;  %v19958_v22 = vld [vmem:[%s21310_s28 + $0x398] sm:$0xff]  }
  0x56   : > { %11567 = vmatmul.mubr.bf16.vlgmr.msra.gmra.mxu0 %v2821_v19  ;;  %v19955_v19 = vld [vmem:[%s21310_s28 + $0x358] sm:$0xff]  }
  0x57   : > { %18172 = vmatpush3.bf16.msra.mxu0 %v19908_v21  ;;  %11607 = vmatmul.mubr.bf16.vlgmr.msra.gmra.mxu1 %v2837_v24  ;;  %v19957_v21 = vld [vmem:[%s21310_s28 + $0x3d8] sm:$0xff]   ;;  %v19960_v24 = vld [vmem:[%s21310_s28 + $0x310] sm:$0xff]  }
  0x58   : > { %18173 = vmatprep.subr.bf16.mxu0 %v19911_v25  ;;  %18194 = vmatpush3.bf16.msra.mxu1 %v19910_v23  ;;  %v19959_v23 = vld [vmem:[%s21310_s28 + $0x350] sm:$0xff]  }
  0x59   : > { %18195 = vmatprep.subr.bf16.mxu1 %v19913_v27  ;;  %11646 = vmatprep.mubr.bf16.mxu0 %v2877_v57  ;;  %v19961_v25 = vld [vmem:[%s21310_s28 + $0x3d0] sm:$0xff]   ;;  %v19963_v27 = vld [vmem:[%s21310_s28 + $0x348] sm:$0xff]   ;;  %v19990_v57 = vld [vmem:[%s21310_s28 + $0x4d8] sm:$0xff]  }
  0x5a   : > { %11686 = vmatprep.mubr.bf16.mxu1 %v2887_v61  ;;  %v19994_v61 = vld [vmem:[%s21310_s28 + $0x4d0] sm:$0xff]  }
  0x5b   : > { %18174 = vmatpush3.bf16.msra.mxu0 %v19912_v26  ;;  %v19962_v26 = vld [vmem:[%s21310_s28 + $0x390] sm:$0xff]  }
  0x5c   : > { %18175 = vmatprep.subr.bf16.mxu0 %v19915_v29  ;;  %18196 = vmatpush3.bf16.msra.mxu1 %v19914_v28  ;;  %v19964_v28 = vld [vmem:[%s21310_s28 + $0x308] sm:$0xff]  }
  0x5d   : > { %18197 = vmatprep.subr.bf16.mxu1 %v19917_v31  ;;  %v19965_v29 = vld [vmem:[%s21310_s28 + $0x3c8] sm:$0xff]   ;;  %v19967_v31 = vld [vmem:[%s21310_s28 + $0x340] sm:$0xff]  }
  0x5f   : > { %18176 = vmatpush3.bf16.msra.mxu0 %v19916_v30  ;;  %v19966_v30 = vld [vmem:[%s21310_s28 + $0x388] sm:$0xff]  }
  0x60   : > { %18177 = vmatprep.subr.bf16.mxu0 %v19919_v33  ;;  %18198 = vmatpush3.bf16.msra.mxu1 %v19918_v32  ;;  %v19968_v32 = vld [vmem:[%s21310_s28 + $0x300] sm:$0xff]  }
  0x61   : > { %18199 = vmatprep.subr.bf16.mxu1 %v19921_v36  ;;  %v19969_v33 = vld [vmem:[%s21310_s28 + $0x3c0] sm:$0xff]   ;;  %v2870_v36 = vrot.slane %v21424_v54, %v21351_v42 }
  0x62   : > { %v19987_v54 = vld [vmem:[%s21310_s28 + $0x4a0] sm:$0xff]  }
  0x63   : > { %18178 = vmatpush3.bf16.msra.mxu0 %v19920_v35  ;;  %v19971_v35 = vld [vmem:[%s21310_s28 + $0x380] sm:$0xff]  }
  0x64   : > { %18179 = vmatprep.subr.bf16.mxu0 %v19923_v38  ;;  %18200 = vmatpush3.bf16.msra.mxu1 %v19922_v37  ;;  %v19972_v37 = vld [vmem:[%s21310_s28 + $0x478] sm:$0xff]  }
  0x65   : > { %18201 = vmatprep.subr.bf16.mxu1 %v19925_v40  ;;  %v19973_v38 = vld [vmem:[%s21310_s28 + $0x438] sm:$0xff]  }
  0x66   : > { %v19975_v40 = vld [vmem:[%s21310_s28 + $0x4b8] sm:$0xff]  }
  0x67   : > { %18180 = vmatpush3.bf16.msra.mxu0 %v19924_v39  ;;  %v19974_v39 = vld [vmem:[%s21310_s28 + $0x4f8] sm:$0xff]  }
  0x68   : > { %18181 = vmatprep.subr.bf16.mxu0 %v19927_v43  ;;  %18202 = vmatpush3.bf16.msra.mxu1 %v19926_v41  ;;  %v2886_v41 = vcombine.high %v2870_v36, %v2870_v36  ;;  %v19976_v43 = vld [vmem:[%s21310_s28 + $0x470] sm:$0xff]  }
  0x69   : > { %18203 = vmatprep.subr.bf16.mxu1 %v19929_v45  ;;  %v19978_v45 = vld [vmem:[%s21310_s28 + $0x4f0] sm:$0xff]  }
  0x6b   : > { %18182 = vmatpush3.bf16.msra.mxu0 %v19928_v44  ;;  %v19977_v44 = vld [vmem:[%s21310_s28 + $0x430] sm:$0xff]  }
  0x6c   : > { %18183 = vmatprep.subr.bf16.mxu0 %v19931_v48  ;;  %18204 = vmatpush3.bf16.msra.mxu1 %v19930_v46  ;;  %v19979_v46 = vld [vmem:[%s21310_s28 + $0x4b0] sm:$0xff]   ;;  %v19981_v48 = vld [vmem:[%s21310_s28 + $0x428] sm:$0xff]  }
  0x6d   : > { %18205 = vmatprep.subr.bf16.mxu1 %v19933_v52  ;;  %v19985_v52 = vld [vmem:[%s21310_s28 + $0x420] sm:$0xff]  }
  0x6f   : > { %18184 = vmatpush3.bf16.msra.mxu0 %v19932_v51  ;;  %v19984_v51 = vld [vmem:[%s21310_s28 + $0x460] sm:$0xff]  }
  0x70   : > { %18185 = vmatprep.subr.bf16.mxu0 %v19935_v56  ;;  %18206 = vmatpush3.bf16.msra.mxu1 %v19934_v55  ;;  %v19988_v55 = vld [vmem:[%s21310_s28 + $0x458] sm:$0xff]  }
  0x71   : > { %18207 = vmatprep.subr.bf16.mxu1 %v19937_v60  ;;  %v19989_v56 = vld [vmem:[%s21310_s28 + $0x418] sm:$0xff]   ;;  %v19993_v60 = vld [vmem:[%s21310_s28 + $0x410] sm:$0xff]  }
  0x73   : > { %18186 = vmatpush3.bf16.msra.mxu0 %v19936_v58  ;;  %v19991_v58 = vld [vmem:[%s21310_s28 + $0x498] sm:$0xff]  }
  0x74   : > { %18215 = vmatprep.subr.bf16.mxu0 %v19939_v0  ;;  %18208 = vmatpush3.bf16.msra.mxu1 %v19938_v62  ;;  %v19995_v62 = vld [vmem:[%s21310_s28 + $0x490] sm:$0xff]   ;;  %v19996_v0 = vld [vmem:[%s21310_s28 + $0x448] sm:$0xff]  }
  0x75   : > { %18237 = vmatprep.subr.bf16.mxu1 %v19941_v3  ;;  %v19997_v3 = vld [vmem:[%s21310_s28 + $0x408] sm:$0xff]  }
  0x76   : > { %11647 = vmatmul.mubr.bf16.vlgmr.msra.gmra.mxu0 %v2863_v63  ;;  %v241_v63 = vld [vmem:[%s21305_s24 + $0x10] sm:$0xff] }
  0x77   : > { %18216 = vmatpush3.bf16.msra.mxu0 %v19940_v1  ;;  %11726 = vmatprep.mubr.bf16.mxu0 %v2884_v2  ;;  %v2896_v1 = vrot.slane %v241_v63, %v21351_v42  ;;  %v2889_v2 = vcombine.high %v241_v63, %v241_v63  ;;  %v20045_v63 = vld [vmem:[%s21310_s28 + $0x668] sm:$0xff]  }
  0x78   : > { %11687 = vmatmul.mubr.bf16.vlgmr.msra.gmra.mxu1 %v2885_v5  ;;  %18217 = vmatprep.subr.bf16.mxu0 %v19943_v6 }
  0x79   : > { %18238 = vmatpush3.bf16.msra.mxu1 %v19942_v4  ;;  %11766 = vmatprep.mubr.bf16.mxu1 %v2888_v8  ;;  %v19998_v4 = vld [vmem:[%s21310_s28 + $0x4c8] sm:$0xff]   ;;  %v2904_v5 = vcombine.high %v2896_v1, %v2896_v1  ;;  %v21500_v6 = vrot.slane %v2889_v2, %v21351_v42  ;;  %v20000_v8 = vld [vmem:[%s21310_s28 + $0x440] sm:$0xff]  }
  0x7a   : > { %18239 = vmatprep.subr.bf16.mxu1 %v19945_v9  ;;  %v20048_v2 = vld [vmem:[%s21310_s28 + $0x6a8] sm:$0xff]  }
  0x7b   : > { %18218 = vmatpush3.bf16.msra.mxu0 %v19944_v7  ;;  %v19999_v7 = vld [vmem:[%s21310_s28 + $0x488] sm:$0xff]   ;;  %v2926_v9 = vrot.slane %v2904_v5, %v21351_v42  ;;  %v20051_v5 = vld [vmem:[%s21310_s28 + $0x6e0] sm:$0xff]  }
  0x7c   : > { %18219 = vmatprep.subr.bf16.mxu0 %v19947_v11  ;;  %v2905_v11 = vcombine.high %v21500_v6, %v21500_v6 }
  0x7d   : > { %18240 = vmatpush3.bf16.msra.mxu1 %v19946_v10  ;;  %v20001_v10 = vld [vmem:[%s21310_s28 + $0x400] sm:$0xff]  }
  0x7e   : > { %18241 = vmatprep.subr.bf16.mxu1 %v19949_v13  ;;  %v2936_v13 = vcombine.high %v2926_v9, %v2926_v9 }
  0x7f   : > { %18220 = vmatpush3.bf16.msra.mxu0 %v19948_v12  ;;  %v20002_v12 = vld [vmem:[%s21310_s28 + $0x4c0] sm:$0xff]  }
  0x80   : > { %18221 = vmatprep.subr.bf16.mxu0 %v19951_v15  ;;  %v2912_v15 = vrot.slane %v2896_v1, %v21351_v42  ;;  %v20047_v1 = vld [vmem:[%s21310_s28 + $0x6e8] sm:$0xff]  }
  0x81   : > { %18242 = vmatpush3.bf16.msra.mxu1 %v19950_v14  ;;  %v20003_v14 = vld [vmem:[%s21310_s28 + $0x480] sm:$0xff]  }
  0x82   : > { %18243 = vmatprep.subr.bf16.mxu1 %v19953_v17  ;;  %v20005_v17 = vld [vmem:[%s21310_s28 + $0x538] sm:$0xff]  }
  0x83   : > { %18222 = vmatpush3.bf16.msra.mxu0 %v19952_v16  ;;  %v20004_v16 = vld [vmem:[%s21310_s28 + $0x578] sm:$0xff]  }
  0x84   : > { %18223 = vmatprep.subr.bf16.mxu0 %v19955_v19  ;;  %v20006_v19 = vld [vmem:[%s21310_s28 + $0x5f8] sm:$0xff]  }
  0x85   : > { %18244 = vmatpush3.bf16.msra.mxu1 %v19954_v18  ;;  %v2933_v18 = vrot.slane %v2905_v11, %v21351_v42  ;;  %v20057_v11 = vld [vmem:[%s21310_s28 + $0x650] sm:$0xff]  }
  0x86   : > { %18245 = vmatprep.subr.bf16.mxu1 %v19957_v21  ;;  %v2934_v21 = vcombine.high %v2912_v15, %v2912_v15 }
  0x87   : > { %18224 = vmatpush3.bf16.msra.mxu0 %v19956_v20  ;;  %v20007_v20 = vld [vmem:[%s21310_s28 + $0x5b8] sm:$0xff]  }
  0x88   : > { %18225 = vmatprep.subr.bf16.mxu0 %v19959_v23  ;;  %v20009_v23 = vld [vmem:[%s21310_s28 + $0x530] sm:$0xff]  }
  0x89   : > { %18246 = vmatpush3.bf16.msra.mxu1 %v19958_v22  ;;  %v20008_v22 = vld [vmem:[%s21310_s28 + $0x570] sm:$0xff]  }
  0x8a   : > { %18247 = vmatprep.subr.bf16.mxu1 %v19961_v25  ;;  %v20010_v25 = vld [vmem:[%s21310_s28 + $0x5f0] sm:$0xff]  }
  0x8b   : > { %18226 = vmatpush3.bf16.msra.mxu0 %v19960_v24  ;;  %v2937_v24 = vcombine.high %v2933_v18, %v2933_v18 }
  0x8c   : > { %18227 = vmatprep.subr.bf16.mxu0 %v19963_v27  ;;  %v20012_v27 = vld [vmem:[%s21310_s28 + $0x568] sm:$0xff]  }
  0x8d   : > { %18248 = vmatpush3.bf16.msra.mxu1 %v19962_v26  ;;  %v20011_v26 = vld [vmem:[%s21310_s28 + $0x5b0] sm:$0xff]  }
  0x8e   : > { %18249 = vmatprep.subr.bf16.mxu1 %v19965_v29  ;;  %v20014_v29 = vld [vmem:[%s21310_s28 + $0x5e8] sm:$0xff]  }
  0x8f   : > { %18228 = vmatpush3.bf16.msra.mxu0 %v19964_v28  ;;  %v20013_v28 = vld [vmem:[%s21310_s28 + $0x528] sm:$0xff]  }
  0x90   : > { %18229 = vmatprep.subr.bf16.mxu0 %v19967_v31  ;;  %v20016_v31 = vld [vmem:[%s21310_s28 + $0x560] sm:$0xff]  }
  0x91   : > { %18250 = vmatpush3.bf16.msra.mxu1 %v19966_v30  ;;  %v20015_v30 = vld [vmem:[%s21310_s28 + $0x5a8] sm:$0xff]  }
  0x92   : > { %18251 = vmatprep.subr.bf16.mxu1 %v19969_v33  ;;  %v20018_v33 = vld [vmem:[%s21310_s28 + $0x5e0] sm:$0xff]  }
  0x93   : > { %18230 = vmatpush3.bf16.msra.mxu0 %v19968_v32  ;;  %v20017_v32 = vld [vmem:[%s21310_s28 + $0x520] sm:$0xff]  }
  0x94   : > { %18259 = vmatprep.subr.bf16.mxu0 %v19972_v37  ;;  %v20021_v37 = vld [vmem:[%s21310_s28 + $0x518] sm:$0xff]  }
  0x95   : > { %18252 = vmatpush3.bf16.msra.mxu1 %v19971_v35  ;;  %v20019_v35 = vld [vmem:[%s21310_s28 + $0x5a0] sm:$0xff]  }
  0x96   : > { %11727 = vmatmul.mubr.bf16.vlgmr.msra.gmra.mxu0 %v2870_v36  ;;  %18281 = vmatprep.subr.bf16.mxu1 %v19974_v39  ;;  %v20020_v36 = vld [vmem:[%s21310_s28 + $0x558] sm:$0xff]  }
  0x97   : > { %18260 = vmatpush3.bf16.msra.mxu0 %v19973_v38  ;;  %11806 = vmatprep.mubr.bf16.mxu0 %v2926_v9  ;;  %v20022_v38 = vld [vmem:[%s21310_s28 + $0x5d8] sm:$0xff]  }
  0x98   : > { %11767 = vmatmul.mubr.bf16.vlgmr.msra.gmra.mxu1 %v2886_v41  ;;  %18261 = vmatprep.subr.bf16.mxu0 %v19976_v43  ;;  %v20023_v39 = vld [vmem:[%s21310_s28 + $0x598] sm:$0xff]   ;;  %v20025_v41 = vld [vmem:[%s21310_s28 + $0x510] sm:$0xff]  }
  0x99   : > { %18282 = vmatpush3.bf16.msra.mxu1 %v19975_v40  ;;  %11846 = vmatprep.mubr.bf16.mxu1 %v2936_v13  ;;  %v20024_v40 = vld [vmem:[%s21310_s28 + $0x550] sm:$0xff]   ;;  %v20055_v9 = vld [vmem:[%s21310_s28 + $0x6d8] sm:$0xff]  }
  0x9a   : > { %18283 = vmatprep.subr.bf16.mxu1 %v19978_v45  ;;  %v20026_v43 = vld [vmem:[%s21310_s28 + $0x5d0] sm:$0xff]   ;;  %v20028_v45 = vld [vmem:[%s21310_s28 + $0x548] sm:$0xff]  }
  0x9b   : > { %18262 = vmatpush3.bf16.msra.mxu0 %v19977_v44  ;;  %v20027_v44 = vld [vmem:[%s21310_s28 + $0x590] sm:$0xff]  }
  0x9c   : > { %18263 = vmatprep.subr.bf16.mxu0 %v19980_v47  ;;  %v20030_v47 = vld [vmem:[%s21310_s28 + $0x5c8] sm:$0xff]   ;;  %v20059_v13 = vld [vmem:[%s21310_s28 + $0x6d0] sm:$0xff]  }
  0x9d   : > { %18284 = vmatpush3.bf16.msra.mxu1 %v19979_v46  ;;  %v20029_v46 = vld [vmem:[%s21310_s28 + $0x508] sm:$0xff]  }
  0x9e   : > { %18285 = vmatprep.subr.bf16.mxu1 %v19982_v49  ;;  %v20032_v49 = vld [vmem:[%s21310_s28 + $0x540] sm:$0xff]  }
  0x9f   : > { %18264 = vmatpush3.bf16.msra.mxu0 %v19981_v48  ;;  %v20031_v48 = vld [vmem:[%s21310_s28 + $0x588] sm:$0xff]  }
  0xa0   : > { %18265 = vmatprep.subr.bf16.mxu0 %v19984_v51  ;;  %v20034_v51 = vld [vmem:[%s21310_s28 + $0x5c0] sm:$0xff]  }
  0xa1   : > { %18286 = vmatpush3.bf16.msra.mxu1 %v19983_v50  ;;  %v20033_v50 = vld [vmem:[%s21310_s28 + $0x500] sm:$0xff]  }
  0xa2   : > { %18287 = vmatprep.subr.bf16.mxu1 %v19986_v53  ;;  %v2919_v53 = vrot.slane %v21500_v6, %v21351_v42  ;;  %v20052_v6 = vld [vmem:[%s21310_s28 + $0x6a0] sm:$0xff]  }
  0xa3   : > { %18266 = vmatpush3.bf16.msra.mxu0 %v19985_v52  ;;  %v20036_v52 = vld [vmem:[%s21310_s28 + $0x580] sm:$0xff]  }
  0xa4   : > { %18267 = vmatprep.subr.bf16.mxu0 %v19988_v55  ;;  %v20038_v55 = vld [vmem:[%s21310_s28 + $0x638] sm:$0xff]  }
  0xa5   : > { %18288 = vmatpush3.bf16.msra.mxu1 %v19987_v54  ;;  %v20037_v54 = vld [vmem:[%s21310_s28 + $0x678] sm:$0xff]  }
  0xa6   : > { %18289 = vmatprep.subr.bf16.mxu1 %v19990_v57  ;;  %v20040_v57 = vld [vmem:[%s21310_s28 + $0x6b8] sm:$0xff]  }
  0xa7   : > { %18268 = vmatpush3.bf16.msra.mxu0 %v19989_v56  ;;  %v20039_v56 = vld [vmem:[%s21310_s28 + $0x6f8] sm:$0xff]  }
  0xa8   : > { %18269 = vmatprep.subr.bf16.mxu0 %v19992_v59  ;;  %v20041_v59 = vld [vmem:[%s21310_s28 + $0x670] sm:$0xff]  }
  0xa9   : > { %18290 = vmatpush3.bf16.msra.mxu1 %v19991_v58  ;;  %v2935_v58 = vcombine.high %v2919_v53, %v2919_v53 }
  0xaa   : > { %18291 = vmatprep.subr.bf16.mxu1 %v19994_v61  ;;  %v20043_v61 = vld [vmem:[%s21310_s28 + $0x6f0] sm:$0xff]  }
  0xab   : > { %18270 = vmatpush3.bf16.msra.mxu0 %v19993_v60  ;;  %v20042_v60 = vld [vmem:[%s21310_s28 + $0x630] sm:$0xff]  }
  0xac   : > { %18271 = vmatprep.subr.bf16.mxu0 %v19996_v0  ;;  %v20046_v0 = vld [vmem:[%s21310_s28 + $0x628] sm:$0xff]  }
  0xad   : > { %18292 = vmatpush3.bf16.msra.mxu1 %v19995_v62  ;;  %v20044_v62 = vld [vmem:[%s21310_s28 + $0x6b0] sm:$0xff]  }
  0xae   : > { %18293 = vmatprep.subr.bf16.mxu1 %v19998_v4  ;;  %v20050_v4 = vld [vmem:[%s21310_s28 + $0x620] sm:$0xff]  }
  0xaf   : > { %18272 = vmatpush3.bf16.msra.mxu0 %v19997_v3  ;;  %v20049_v3 = vld [vmem:[%s21310_s28 + $0x660] sm:$0xff]  }
  0xb0   : > { %18273 = vmatprep.subr.bf16.mxu0 %v20000_v8  ;;  %v20054_v8 = vld [vmem:[%s21310_s28 + $0x618] sm:$0xff]  }
  0xb1   : > { %18294 = vmatpush3.bf16.msra.mxu1 %v19999_v7  ;;  %v20053_v7 = vld [vmem:[%s21310_s28 + $0x658] sm:$0xff]  }
  0xb2   : > { %18295 = vmatprep.subr.bf16.mxu1 %v20002_v12  ;;  %v20058_v12 = vld [vmem:[%s21310_s28 + $0x610] sm:$0xff]  }
  0xb3   : > { %18274 = vmatpush3.bf16.msra.mxu0 %v20001_v10  ;;  %v20056_v10 = vld [vmem:[%s21310_s28 + $0x698] sm:$0xff]  }
  0xb4   : > { %18303 = vmatprep.subr.bf16.mxu0 %v20004_v16  ;;  %v242_v16 = vld [vmem:[%s21305_s24 + $0x18] sm:$0xff] }
  0xb5   : > { %18296 = vmatpush3.bf16.msra.mxu1 %v20003_v14  ;;  %v20060_v14 = vld [vmem:[%s21310_s28 + $0x690] sm:$0xff]  }
  0xb6   : > { %11807 = vmatmul.mubr.bf16.vlgmr.msra.gmra.mxu0 %v2912_v15  ;;  %18325 = vmatprep.subr.bf16.mxu1 %v20006_v19  ;;  %v20061_v15 = vld [vmem:[%s21310_s28 + $0x648] sm:$0xff]   ;;  %v2938_v19 = vcombine.high %v242_v16, %v242_v16 }
  0xb7   : > { %18304 = vmatpush3.bf16.msra.mxu0 %v20005_v17  ;;  %11886 = vmatprep.mubr.bf16.mxu0 %v2933_v18  ;;  %v20062_v17 = vld [vmem:[%s21310_s28 + $0x608] sm:$0xff]   ;;  %v2945_v18 = vrot.slane %v242_v16, %v21351_v42 }
  0xb8   : > { %11847 = vmatmul.mubr.bf16.vlgmr.msra.gmra.mxu1 %v2934_v21  ;;  %18305 = vmatprep.subr.bf16.mxu0 %v20008_v22  ;;  %v20064_v21 = vld [vmem:[%s21310_s28 + $0x688] sm:$0xff]  }
  0xb9   : > { %18326 = vmatpush3.bf16.msra.mxu1 %v20007_v20  ;;  %11926 = vmatprep.mubr.bf16.mxu1 %v2937_v24  ;;  %v20063_v20 = vld [vmem:[%s21310_s28 + $0x6c8] sm:$0xff]   ;;  %v2953_v22 = vcombine.high %v2945_v18, %v2945_v18  ;;  %v20065_v24 = vld [vmem:[%s21310_s28 + $0x640] sm:$0xff]  }
  0xba   : > { %18327 = vmatprep.subr.bf16.mxu1 %v20010_v25  ;;  %v20066_v25 = vld [vmem:[%s21310_s28 + $0x600] sm:$0xff]  }
  0xbb   : > { %18306 = vmatpush3.bf16.msra.mxu0 %v20009_v23  ;;  %v21577_v23 = vrot.slane %v2938_v19, %v21351_v42  ;;  %v20104_v19 = vld [vmem:[%s21310_s28 + $0x8f8] sm:$0xff]  }
  0xbc   : > { %18307 = vmatprep.subr.bf16.mxu0 %v20012_v27 }
  0xbd   : > { %18328 = vmatpush3.bf16.msra.mxu1 %v20011_v26  ;;  %v2975_v26 = vrot.slane %v2953_v22, %v21351_v42  ;;  %v2954_v27 = vcombine.high %v21577_v23, %v21577_v23  ;;  %v2968_v16 = vrot.slane %v21577_v23, %v21351_v42  ;;  %v20106_v22 = vld [vmem:[%s21310_s28 + $0x870] sm:$0xff]  }
  0xbe   : > { %18329 = vmatprep.subr.bf16.mxu1 %v20014_v29  ;;  %v20068_v29 = vld [vmem:[%s21310_s28 + $0x680] sm:$0xff]   ;;  %v20108_v23 = vld [vmem:[%s21310_s28 + $0x8f0] sm:$0xff]  }
  0xbf   : > { %18308 = vmatpush3.bf16.msra.mxu0 %v20013_v28  ;;  %v20067_v28 = vld [vmem:[%s21310_s28 + $0x6c0] sm:$0xff]  }
  0xc0   : > { %18309 = vmatprep.subr.bf16.mxu0 %v20016_v31  ;;  %v2961_v31 = vrot.slane %v2945_v18, %v21351_v42  ;;  %v20103_v18 = vld [vmem:[%s21310_s28 + $0x838] sm:$0xff]  }
  0xc1   : > { %18330 = vmatpush3.bf16.msra.mxu1 %v20015_v30  ;;  %v2985_v30 = vcombine.high %v2975_v26, %v2975_v26 }
  0xc2   : > { %18331 = vmatprep.subr.bf16.mxu1 %v20018_v33  ;;  %v20070_v33 = vld [vmem:[%s21310_s28 + $0x738] sm:$0xff]  }
  0xc3   : > { %18310 = vmatpush3.bf16.msra.mxu0 %v20017_v32  ;;  %v20069_v32 = vld [vmem:[%s21310_s28 + $0x778] sm:$0xff]  }
  0xc4   : > { %18311 = vmatprep.subr.bf16.mxu0 %v20020_v36  ;;  %v20071_v36 = vld [vmem:[%s21310_s28 + $0x7f8] sm:$0xff]  }
  0xc5   : > { %18332 = vmatpush3.bf16.msra.mxu1 %v20019_v35  ;;  %v2982_v35 = vrot.slane %v2954_v27, %v21351_v42 }
  0xc6   : > { %18333 = vmatprep.subr.bf16.mxu1 %v20022_v38  ;;  %v2983_v38 = vcombine.high %v2961_v31, %v2961_v31 }
  0xc7   : > { %18312 = vmatpush3.bf16.msra.mxu0 %v20021_v37  ;;  %v20072_v37 = vld [vmem:[%s21310_s28 + $0x7b8] sm:$0xff]  }
  0xc8   : > { %18313 = vmatprep.subr.bf16.mxu0 %v20024_v40  ;;  %v20074_v40 = vld [vmem:[%s21310_s28 + $0x730] sm:$0xff]  }
  0xc9   : > { %18334 = vmatpush3.bf16.msra.mxu1 %v20023_v39  ;;  %v20073_v39 = vld [vmem:[%s21310_s28 + $0x770] sm:$0xff]  }
  0xca   : > { %18335 = vmatprep.subr.bf16.mxu1 %v20026_v43 }
  0xcb   : > { %18314 = vmatpush3.bf16.msra.mxu0 %v20025_v41  ;;  %v2986_v41 = vcombine.high %v2982_v35, %v2982_v35 }
  0xcc   : > { %18315 = vmatprep.subr.bf16.mxu0 %v20028_v45  ;;  %v20076_v45 = vld [vmem:[%s21310_s28 + $0x7b0] sm:$0xff]  }
  0xcd   : > { %18336 = vmatpush3.bf16.msra.mxu1 %v20027_v44  ;;  %v20075_v44 = vld [vmem:[%s21310_s28 + $0x7f0] sm:$0xff]  }
  0xce   : > { %18337 = vmatprep.subr.bf16.mxu1 %v20030_v47 }
  0xcf   : > { %18316 = vmatpush3.bf16.msra.mxu0 %v20029_v46 }
  0xd0   : > { %18317 = vmatprep.subr.bf16.mxu0 %v20032_v49 }
  0xd1   : > { %18338 = vmatpush3.bf16.msra.mxu1 %v20031_v48  ;;  %v20077_v48 = vld [vmem:[%s21310_s28 + $0x768] sm:$0xff]  }
  0xd2   : > { %18339 = vmatprep.subr.bf16.mxu1 %v20034_v51 }
  0xd3   : > { %18318 = vmatpush3.bf16.msra.mxu0 %v20033_v50  ;;  %v20078_v50 = vld [vmem:[%s21310_s28 + $0x728] sm:$0xff]  }
  0xd4   : > { %18347 = vmatprep.subr.bf16.mxu0 %v20037_v54 }
  0xd5   : > { %18340 = vmatpush3.bf16.msra.mxu1 %v20036_v52 }
  0xd6   : > { %11887 = vmatmul.mubr.bf16.vlgmr.msra.gmra.mxu0 %v2919_v53  ;;  %18369 = vmatprep.subr.bf16.mxu1 %v20039_v56  ;;  %v20079_v53 = vld [vmem:[%s21310_s28 + $0x7e8] sm:$0xff]  }
  0xd7   : > { %18348 = vmatpush3.bf16.msra.mxu0 %v20038_v55  ;;  %11966 = vmatprep.mubr.bf16.mxu0 %v2975_v26  ;;  %v20080_v55 = vld [vmem:[%s21310_s28 + $0x7a8] sm:$0xff]   ;;  %v20109_v26 = vld [vmem:[%s21310_s28 + $0x8b0] sm:$0xff]  }
  0xd8   : > { %11927 = vmatmul.mubr.bf16.vlgmr.msra.gmra.mxu1 %v2935_v58  ;;  %18349 = vmatprep.subr.bf16.mxu0 %v20041_v59 }
  0xd9   : > { %18370 = vmatpush3.bf16.msra.mxu1 %v20040_v57  ;;  %12006 = vmatprep.mubr.bf16.mxu1 %v2985_v30  ;;  %v20081_v57 = vld [vmem:[%s21310_s28 + $0x760] sm:$0xff]  }
  0xda   : > { %18371 = vmatprep.subr.bf16.mxu1 %v20043_v61  ;;  %v20083_v61 = vld [vmem:[%s21310_s28 + $0x7e0] sm:$0xff]  }
  0xdb   : > { %18350 = vmatpush3.bf16.msra.mxu0 %v20042_v60  ;;  %v20082_v60 = vld [vmem:[%s21310_s28 + $0x720] sm:$0xff]  }
  0xdc   : > { %18351 = vmatprep.subr.bf16.mxu0 %v20045_v63  ;;  %v20084_v63 = vld [vmem:[%s21310_s28 + $0x7a0] sm:$0xff]  }
  0xdd   : > { %18372 = vmatpush3.bf16.msra.mxu1 %v20044_v62 }
  0xde   : > { %18373 = vmatprep.subr.bf16.mxu1 %v20047_v1  ;;  %v20086_v1 = vld [vmem:[%s21310_s28 + $0x718] sm:$0xff]  }
  0xdf   : > { %18352 = vmatpush3.bf16.msra.mxu0 %v20046_v0  ;;  %v20085_v0 = vld [vmem:[%s21310_s28 + $0x758] sm:$0xff]  }
  0xe0   : > { %18353 = vmatprep.subr.bf16.mxu0 %v20049_v3  ;;  %v20088_v3 = vld [vmem:[%s21310_s28 + $0x798] sm:$0xff]  }
  0xe1   : > { %18374 = vmatpush3.bf16.msra.mxu1 %v20048_v2  ;;  %v20087_v2 = vld [vmem:[%s21310_s28 + $0x7d8] sm:$0xff]  }
  0xe2   : > { %18375 = vmatprep.subr.bf16.mxu1 %v20051_v5  ;;  %v20090_v5 = vld [vmem:[%s21310_s28 + $0x710] sm:$0xff]  }
  0xe3   : > { %18354 = vmatpush3.bf16.msra.mxu0 %v20050_v4  ;;  %v20089_v4 = vld [vmem:[%s21310_s28 + $0x750] sm:$0xff]  }
  0xe4   : > { %18355 = vmatprep.subr.bf16.mxu0 %v20053_v7  ;;  %v20092_v7 = vld [vmem:[%s21310_s28 + $0x790] sm:$0xff]  }
  0xe5   : > { %18376 = vmatpush3.bf16.msra.mxu1 %v20052_v6  ;;  %v20091_v6 = vld [vmem:[%s21310_s28 + $0x7d0] sm:$0xff]  }
  0xe6   : > { %18377 = vmatprep.subr.bf16.mxu1 %v20055_v9  ;;  %v20094_v9 = vld [vmem:[%s21310_s28 + $0x708] sm:$0xff]  }
  0xe7   : > { %18356 = vmatpush3.bf16.msra.mxu0 %v20054_v8  ;;  %v20093_v8 = vld [vmem:[%s21310_s28 + $0x748] sm:$0xff]  }
  0xe8   : > { %18357 = vmatprep.subr.bf16.mxu0 %v20057_v11  ;;  %v20096_v11 = vld [vmem:[%s21310_s28 + $0x788] sm:$0xff]  }
  0xe9   : > { %18378 = vmatpush3.bf16.msra.mxu1 %v20056_v10  ;;  %v20095_v10 = vld [vmem:[%s21310_s28 + $0x7c8] sm:$0xff]  }
  0xea   : > { %18379 = vmatprep.subr.bf16.mxu1 %v20059_v13  ;;  %v20098_v13 = vld [vmem:[%s21310_s28 + $0x700] sm:$0xff]  }
  0xeb   : > { %18358 = vmatpush3.bf16.msra.mxu0 %v20058_v12  ;;  %v20097_v12 = vld [vmem:[%s21310_s28 + $0x740] sm:$0xff]  }
  0xec   : > { %18359 = vmatprep.subr.bf16.mxu0 %v20061_v15  ;;  %v20101_v15 = vld [vmem:[%s21310_s28 + $0x780] sm:$0xff]  }
  0xed   : > { %18380 = vmatpush3.bf16.msra.mxu1 %v20060_v14  ;;  %v20099_v14 = vld [vmem:[%s21310_s28 + $0x7c0] sm:$0xff]  }
  0xee   : > { %18381 = vmatprep.subr.bf16.mxu1 %v20063_v20  ;;  %v20105_v20 = vld [vmem:[%s21310_s28 + $0x8b8] sm:$0xff]  }
  0xef   : > { %18360 = vmatpush3.bf16.msra.mxu0 %v20062_v17  ;;  %v20102_v17 = vld [vmem:[%s21310_s28 + $0x878] sm:$0xff]  }
  0xf0   : > { %18361 = vmatprep.subr.bf16.mxu0 %v20065_v24  ;;  %v20107_v24 = vld [vmem:[%s21310_s28 + $0x830] sm:$0xff]  }
  0xf1   : > { %18382 = vmatpush3.bf16.msra.mxu1 %v20064_v21  ;;  %v2984_v21 = vcombine.high %v2968_v16, %v2968_v16 }
  0xf2   : > { %18383 = vmatprep.subr.bf16.mxu1 %v20067_v28 }
  0xf3   : > { %18362 = vmatpush3.bf16.msra.mxu0 %v20066_v25 }
  0xf4   : > { %18391 = vmatprep.subr.bf16.mxu0 %v20069_v32 }
  0xf5   : > { %18384 = vmatpush3.bf16.msra.mxu1 %v20068_v29  ;;  %v20110_v29 = vld [vmem:[%s21310_s28 + $0x868] sm:$0xff]  }
  0xf6   : > { %v18099_v43 = vpop.f32.mrf.mxu0  ;;  %11967 = vmatmul.mubr.bf16.vlgmr.msra.gmra.mxu0 %v2961_v31  ;;  %18413 = vmatprep.subr.bf16.mxu1 %v20071_v36  ;;  %v20111_v31 = vld [vmem:[%s21310_s28 + $0x828] sm:$0xff]  }
  0xf7   : > { %18392 = vmatpush3.bf16.msra.mxu0 %v20070_v33  ;;  %12046 = vmatprep.mubr.bf16.mxu0 %v2982_v35  ;;  %v18121_v46 = vpop.f32.mrf.mxu1  ;;  %v20112_v35 = vld [vmem:[%s21310_s28 + $0x8e8] sm:$0xff]  }
  0xf8   : > { %v18100_v47 = vpop.f32.mrf.mxu0  ;;  %12007 = vmatmul.mubr.bf16.vlgmr.msra.gmra.mxu1 %v2983_v38  ;;  %18393 = vmatprep.subr.bf16.mxu0 %v20073_v39  ;;  %v20113_v38 = vld [vmem:[%s21310_s28 + $0x8a8] sm:$0xff]  }
  0xf9   : > { %v18101_v49 = vadd.f32 %v18100_v47, %v18099_v43  ;;  %18414 = vmatpush3.bf16.msra.mxu1 %v20072_v37  ;;  %12086 = vmatprep.mubr.bf16.mxu1 %v2986_v41  ;;  %v18122_v51 = vpop.f32.mrf.mxu1  ;;  %v20117_v47 = vld [vmem:[%s21310_s28 + $0x8a0] sm:$0xff]  }
  0xfa   : > { %v18102_v52 = vpop.f32.mrf.mxu0  ;;  %18415 = vmatprep.subr.bf16.mxu1 %v20075_v44  ;;  %v18123_v54 = vadd.f32 %v18122_v51, %v18121_v46  ;;  %v20115_v44 = vld [vmem:[%s21310_s28 + $0x820] sm:$0xff]   ;;  %v20121_v51 = vld [vmem:[%s21310_s28 + $0x898] sm:$0xff]  }
  0xfb   : > { %18394 = vmatpush3.bf16.msra.mxu0 %v20074_v40  ;;  %v18124_v58 = vpop.f32.mrf.mxu1  ;;  %v20114_v40 = vld [vmem:[%s21310_s28 + $0x860] sm:$0xff]   ;;  %v20122_v52 = vld [vmem:[%s21310_s28 + $0x850] sm:$0xff]  }
  0xfc   : > { %v18103_v56 = vpop.f32.mrf.mxu0  ;;  %18395 = vmatprep.subr.bf16.mxu0 %v20077_v48  ;;  %v21601_v59 = vadd.f32 %v18123_v54, %v18101_v49  ;;  %v20118_v48 = vld [vmem:[%s21310_s28 + $0x858] sm:$0xff]   ;;  %v20124_v54 = vld [vmem:[%s21310_s28 + $0x8d0] sm:$0xff]   ;;  %v20127_v58 = vld [vmem:[%s21310_s28 + $0x808] sm:$0xff]  }
  0xfd   : > { %18416 = vmatpush3.bf16.msra.mxu1 %v20076_v45  ;;  %v18125_v62 = vpop.f32.mrf.mxu1  ;;  %v20116_v45 = vld [vmem:[%s21310_s28 + $0x8e0] sm:$0xff]   ;;  %v20119_v49 = vld [vmem:[%s21310_s28 + $0x818] sm:$0xff]   ;;  %v20126_v56 = vld [vmem:[%s21310_s28 + $0x848] sm:$0xff]  }
  0xfe   : > { %18417 = vmatprep.subr.bf16.mxu1 %v20079_v53  ;;  %v20123_v53 = vld [vmem:[%s21310_s28 + $0x810] sm:$0xff]   ;;  %v20129_v62 = vld [vmem:[%s21310_s28 + $0x888] sm:$0xff]  }
  0xff   : > { %18396 = vmatpush3.bf16.msra.mxu0 %v20078_v50  ;;  %v20120_v50 = vld [vmem:[%s21310_s28 + $0x8d8] sm:$0xff]  }
 0x100   : > { %18397 = vmatprep.subr.bf16.mxu0 %v20081_v57  ;;  %v243_v57 = vld [vmem:[%s21305_s24 + $0x20] sm:$0xff] }
 0x101   : > { %18418 = vmatpush3.bf16.msra.mxu1 %v20080_v55  ;;  %v20125_v55 = vld [vmem:[%s21310_s28 + $0x890] sm:$0xff]  }
 0x102   : > { %18419 = vmatprep.subr.bf16.mxu1 %v20083_v61  ;;  %v20128_v61 = vld [vmem:[%s21310_s28 + $0x8c8] sm:$0xff]  }
 0x103   : > { %18398 = vmatpush3.bf16.msra.mxu0 %v20082_v60  ;;  %v2987_v60 = vcombine.high %v243_v57, %v243_v57 }
 0x104   : > { %18399 = vmatprep.subr.bf16.mxu0 %v20085_v0 }
 0x105   : > { %18420 = vmatpush3.bf16.msra.mxu1 %v20084_v63  ;;  %v21658_v0 = vrot.slane %v2987_v60, %v21351_v42  ;;  %v20168_v60 = vld [vmem:[%s21310_s28 + $0xa38] sm:$0xff]  }
 0x106   : > { %18421 = vmatprep.subr.bf16.mxu1 %v20087_v2  ;;  %v20131_v2 = vld [vmem:[%s21310_s28 + $0x800] sm:$0xff]  }
 0x107   : > { %18400 = vmatpush3.bf16.msra.mxu0 %v20086_v1  ;;  %v20130_v1 = vld [vmem:[%s21310_s28 + $0x840] sm:$0xff]  }
 0x108   : > { %18401 = vmatprep.subr.bf16.mxu0 %v20089_v4  ;;  %v3003_v4 = vcombine.high %v21658_v0, %v21658_v0 }
 0x109   : > { %18422 = vmatpush3.bf16.msra.mxu1 %v20088_v3 }
 0x10a   : > { %18423 = vmatprep.subr.bf16.mxu1 %v20091_v6  ;;  %v20133_v6 = vld [vmem:[%s21310_s28 + $0x880] sm:$0xff]  }
 0x10b   : > { %18402 = vmatpush3.bf16.msra.mxu0 %v20090_v5  ;;  %v20132_v5 = vld [vmem:[%s21310_s28 + $0x8c0] sm:$0xff]  }
 0x10c   : > { %18403 = vmatprep.subr.bf16.mxu0 %v20093_v8 }
 0x10d   : > { %18424 = vmatpush3.bf16.msra.mxu1 %v20092_v7 }
 0x10e   : > { %18425 = vmatprep.subr.bf16.mxu1 %v20095_v10  ;;  %v20135_v10 = vld [vmem:[%s21310_s28 + $0x938] sm:$0xff]  }
 0x10f   : > { %18404 = vmatpush3.bf16.msra.mxu0 %v20094_v9  ;;  %v20134_v9 = vld [vmem:[%s21310_s28 + $0x978] sm:$0xff]  }
 0x110   : > { %18405 = vmatprep.subr.bf16.mxu0 %v20097_v12  ;;  %v20136_v12 = vld [vmem:[%s21310_s28 + $0x9f8] sm:$0xff]  }
 0x111   : > { %18426 = vmatpush3.bf16.msra.mxu1 %v20096_v11  ;;  %v3031_v11 = vrot.slane %v3003_v4, %v21351_v42  ;;  %v20174_v4 = vld [vmem:[%s21310_s28 + $0xab0] sm:$0xff]  }
 0x112   : > { %18427 = vmatprep.subr.bf16.mxu1 %v20099_v14 }
 0x113   : > { %18406 = vmatpush3.bf16.msra.mxu0 %v20098_v13  ;;  %v20137_v13 = vld [vmem:[%s21310_s28 + $0x9b8] sm:$0xff]  }
 0x114   : > { %18435 = vmatprep.subr.bf16.mxu0 %v20102_v17  ;;  %v3035_v17 = vcombine.high %v3031_v11, %v3031_v11 }
 0x115   : > { %18428 = vmatpush3.bf16.msra.mxu1 %v20101_v15  ;;  %v20138_v15 = vld [vmem:[%s21310_s28 + $0x970] sm:$0xff]  }
 0x116   : > { %v18143_v25 = vpop.f32.mrf.mxu0  ;;  %12047 = vmatmul.mubr.bf16.vlgmr.msra.gmra.mxu0 %v2968_v16  ;;  %18457 = vmatprep.subr.bf16.mxu1 %v20104_v19  ;;  %v20139_v16 = vld [vmem:[%s21310_s28 + $0x930] sm:$0xff]  }
 0x117   : > { %18436 = vmatpush3.bf16.msra.mxu0 %v20103_v18  ;;  %v18165_v28 = vpop.f32.mrf.mxu1  ;;  %v20140_v19 = vld [vmem:[%s21310_s28 + $0x9f0] sm:$0xff]  }
 0x118   : > { %v18144_v27 = vpop.f32.mrf.mxu0  ;;  %12087 = vmatmul.mubr.bf16.vlgmr.msra.gmra.mxu1 %v2984_v21  ;;  %18437 = vmatprep.subr.bf16.mxu0 %v20106_v22 }
 0x119   : > { %v18145_v30 = vadd.f32 %v18144_v27, %v18143_v25  ;;  %18458 = vmatpush3.bf16.msra.mxu1 %v20105_v20  ;;  %v18166_v33 = vpop.f32.mrf.mxu1  ;;  %v20141_v20 = vld [vmem:[%s21310_s28 + $0x9b0] sm:$0xff]  }
 0x11a   : > { %v18146_v32 = vpop.f32.mrf.mxu0  ;;  %18459 = vmatprep.subr.bf16.mxu1 %v20108_v23  ;;  %v18167_v37 = vadd.f32 %v18166_v33, %v18165_v28  ;;  %v20143_v23 = vld [vmem:[%s21310_s28 + $0x928] sm:$0xff]   ;;  %v20146_v33 = vld [vmem:[%s21310_s28 + $0x960] sm:$0xff]  }
 0x11b   : > { %v11569_v36 = vadd.f32 %v18145_v30, %v21601_v59  ;;  %18438 = vmatpush3.bf16.msra.mxu0 %v20107_v24  ;;  %v18168_v41 = vpop.f32.mrf.mxu1  ;;  %v2994_v59 = vrot.slane %v243_v57, %v21351_v42  ;;  %v20142_v24 = vld [vmem:[%s21310_s28 + $0x968] sm:$0xff]   ;;  %v20166_v57 = vld [vmem:[%s21310_s28 + $0x980] sm:$0xff]  }
 0x11c   : > { %v18147_v39 = vpop.f32.mrf.mxu0  ;;  %18439 = vmatprep.subr.bf16.mxu0 %v20110_v29  ;;  %v20144_v28 = vld [vmem:[%s21310_s28 + $0x9e8] sm:$0xff]   ;;  %v20150_v41 = vld [vmem:[%s21310_s28 + $0x958] sm:$0xff]  }
 0x11d   : > { %v21638_v43 = vadd.f32 %v18167_v37, %v11569_v36  ;;  %18460 = vmatpush3.bf16.msra.mxu1 %v20109_v26  ;;  %v18169_v46 = vpop.f32.mrf.mxu1  ;;  %v3002_v63 = vcombine.high %v2994_v59, %v2994_v59  ;;  %v3010_v8 = vrot.slane %v2994_v59, %v21351_v42  ;;  %v20147_v37 = vld [vmem:[%s21310_s28 + $0x920] sm:$0xff]   ;;  %v20167_v59 = vld [vmem:[%s21310_s28 + $0xa78] sm:$0xff]  }
 0x11e   : > { %18461 = vmatprep.subr.bf16.mxu1 %v20112_v35  ;;  %v20154_v46 = vld [vmem:[%s21310_s28 + $0x950] sm:$0xff]  }
 0x11f   : > { %18440 = vmatpush3.bf16.msra.mxu0 %v20111_v31  ;;  %v3024_v3 = vrot.slane %v3002_v63, %v21351_v42  ;;  %v3032_v14 = vcombine.high %v3010_v8, %v3010_v8  ;;  %v20145_v31 = vld [vmem:[%s21310_s28 + $0x9a8] sm:$0xff]  }
 0x120   : > { %18441 = vmatprep.subr.bf16.mxu0 %v20114_v40  ;;  %v20149_v40 = vld [vmem:[%s21310_s28 + $0x9a0] sm:$0xff]  }
 0x121   : > { %18462 = vmatpush3.bf16.msra.mxu1 %v20113_v38  ;;  %12126 = vmatprep.mubr.bf16.mxu0 %v3024_v3  ;;  %v3034_v7 = vcombine.high %v3024_v3, %v3024_v3  ;;  %v20148_v38 = vld [vmem:[%s21310_s28 + $0x9e0] sm:$0xff]  }
 0x122   : > { %18463 = vmatprep.subr.bf16.mxu1 %v20116_v45  ;;  %v20153_v45 = vld [vmem:[%s21310_s28 + $0x998] sm:$0xff]  }
 0x123   : > { %18442 = vmatpush3.bf16.msra.mxu0 %v20115_v44  ;;  %12166 = vmatprep.mubr.bf16.mxu1 %v3034_v7  ;;  %v20152_v44 = vld [vmem:[%s21310_s28 + $0x9d8] sm:$0xff]   ;;  %v20175_v7 = vld [vmem:[%s21310_s28 + $0xa68] sm:$0xff]  }
 0x124   : > { %18443 = vmatprep.subr.bf16.mxu0 %v20118_v48  ;;  %v20156_v48 = vld [vmem:[%s21310_s28 + $0x9d0] sm:$0xff]  }
 0x125   : > { %18464 = vmatpush3.bf16.msra.mxu1 %v20117_v47  ;;  %v20155_v47 = vld [vmem:[%s21310_s28 + $0x910] sm:$0xff]  }
 0x126   : > { %18465 = vmatprep.subr.bf16.mxu1 %v20120_v50  ;;  %v20158_v50 = vld [vmem:[%s21310_s28 + $0x948] sm:$0xff]  }
 0x127   : > { %18444 = vmatpush3.bf16.msra.mxu0 %v20119_v49  ;;  %v20157_v49 = vld [vmem:[%s21310_s28 + $0x990] sm:$0xff]  }
 0x128   : > { %18445 = vmatprep.subr.bf16.mxu0 %v20122_v52  ;;  %v20160_v52 = vld [vmem:[%s21310_s28 + $0x9c8] sm:$0xff]  }
 0x129   : > { %18466 = vmatpush3.bf16.msra.mxu1 %v20121_v51  ;;  %v20159_v51 = vld [vmem:[%s21310_s28 + $0x908] sm:$0xff]  }
 0x12a   : > { %18467 = vmatprep.subr.bf16.mxu1 %v20124_v54  ;;  %v20162_v54 = vld [vmem:[%s21310_s28 + $0x940] sm:$0xff]  }
 0x12b   : > { %18446 = vmatpush3.bf16.msra.mxu0 %v20123_v53  ;;  %v20161_v53 = vld [vmem:[%s21310_s28 + $0x988] sm:$0xff]  }
 0x12c   : > { %18447 = vmatprep.subr.bf16.mxu0 %v20126_v56  ;;  %v20164_v56 = vld [vmem:[%s21310_s28 + $0x9c0] sm:$0xff]  }
 0x12d   : > { %18468 = vmatpush3.bf16.msra.mxu1 %v20125_v55  ;;  %v20163_v55 = vld [vmem:[%s21310_s28 + $0x900] sm:$0xff]  }
 0x12e   : > { %18469 = vmatprep.subr.bf16.mxu1 %v20128_v61  ;;  %v20169_v61 = vld [vmem:[%s21310_s28 + $0xaf8] sm:$0xff]  }
 0x12f   : > { %18448 = vmatpush3.bf16.msra.mxu0 %v20127_v58  ;;  %v3017_v58 = vrot.slane %v21658_v0, %v21351_v42  ;;  %v20173_v0 = vld [vmem:[%s21310_s28 + $0xaf0] sm:$0xff]  }
 0x130   : > { %18449 = vmatprep.subr.bf16.mxu0 %v20130_v1  ;;  %v20171_v1 = vld [vmem:[%s21310_s28 + $0xa70] sm:$0xff]  }
 0x131   : > { %18470 = vmatpush3.bf16.msra.mxu1 %v20129_v62  ;;  %v20170_v62 = vld [vmem:[%s21310_s28 + $0xab8] sm:$0xff]   ;;  %v3033_v63 = vcombine.high %v3017_v58, %v3017_v58 }
 0x132   : > { %18471 = vmatprep.subr.bf16.mxu1 %v20132_v5 }
 0x133   : > { %18450 = vmatpush3.bf16.msra.mxu0 %v20131_v2  ;;  %v20172_v2 = vld [vmem:[%s21310_s28 + $0xa30] sm:$0xff]  }
 0x134   : > { %18479 = vmatprep.subr.bf16.mxu0 %v20134_v9  ;;  %v20176_v9 = vld [vmem:[%s21310_s28 + $0xa28] sm:$0xff]  }
 0x135   : > { %18472 = vmatpush3.bf16.msra.mxu1 %v20133_v6 }
 0x136   : > { %v18187_v18 = vpop.f32.mrf.mxu0  ;;  %12127 = vmatmul.mubr.bf16.vlgmr.msra.gmra.mxu0 %v3010_v8  ;;  %18501 = vmatprep.subr.bf16.mxu1 %v20136_v12  ;;  %v20177_v12 = vld [vmem:[%s21310_s28 + $0xae8] sm:$0xff]  }
 0x137   : > { %18480 = vmatpush3.bf16.msra.mxu0 %v20135_v10  ;;  %12206 = vmatprep.mubr.bf16.mxu0 %v3031_v11 }
 0x138   : > { %v18188_v21 = vpop.f32.mrf.mxu0  ;;  %v18209_v22 = vpop.f32.mrf.mxu1  ;;  %12167 = vmatmul.mubr.bf16.vlgmr.msra.gmra.mxu1 %v3032_v14  ;;  %18481 = vmatprep.subr.bf16.mxu0 %v20138_v15  ;;  %v20178_v15 = vld [vmem:[%s21310_s28 + $0xaa8] sm:$0xff]  }
 0x139   : > { %v18189_v25 = vadd.f32 %v18188_v21, %v18187_v18  ;;  %18502 = vmatpush3.bf16.msra.mxu1 %v20137_v13  ;;  %12246 = vmatprep.mubr.bf16.mxu1 %v3035_v17  ;;  %v20179_v17 = vld [vmem:[%s21310_s28 + $0xa60] sm:$0xff]  }
 0x13a   : > { %v18190_v26 = vpop.f32.mrf.mxu0  ;;  %v18210_v27 = vpop.f32.mrf.mxu1  ;;  %18503 = vmatprep.subr.bf16.mxu1 %v20140_v19  ;;  %v20181_v21 = vld [vmem:[%s21310_s28 + $0xae0] sm:$0xff]  }
 0x13b   : > { %v11649_v29 = vadd.f32 %v18189_v25, %v21638_v43  ;;  %v18211_v30 = vadd.f32 %v18210_v27, %v18209_v22  ;;  %18482 = vmatpush3.bf16.msra.mxu0 %v20139_v16  ;;  %v20151_v43 = vld [vmem:[%s21310_s28 + $0x918] sm:$0xff]  }
 0x13c   : > { %v18191_v32 = vpop.f32.mrf.mxu0  ;;  %18483 = vmatprep.subr.bf16.mxu0 %v20142_v24  ;;  %v18212_v35 = vpop.f32.mrf.mxu1  ;;  %v20182_v24 = vld [vmem:[%s21310_s28 + $0xaa0] sm:$0xff]   ;;  %v20183_v25 = vld [vmem:[%s21310_s28 + $0xa58] sm:$0xff]  }
 0x13d   : > { %v21683_v36 = vadd.f32 %v18211_v30, %v11649_v29  ;;  %18504 = vmatpush3.bf16.msra.mxu1 %v20141_v20  ;;  %v20180_v20 = vld [vmem:[%s21310_s28 + $0xa20] sm:$0xff]   ;;  %v20185_v26 = vld [vmem:[%s21310_s28 + $0xad8] sm:$0xff]   ;;  %v20188_v29 = vld [vmem:[%s21310_s28 + $0xa10] sm:$0xff]  }
 0x13e   : > { %18505 = vmatprep.subr.bf16.mxu1 %v20144_v28  ;;  %v18213_v39 = vpop.f32.mrf.mxu1  ;;  %v20186_v27 = vld [vmem:[%s21310_s28 + $0xa98] sm:$0xff]   ;;  %v20187_v28 = vld [vmem:[%s21310_s28 + $0xa50] sm:$0xff]   ;;  %v20191_v32 = vld [vmem:[%s21310_s28 + $0xa48] sm:$0xff]  }
 0x13f   : > { %18484 = vmatpush3.bf16.msra.mxu0 %v20143_v23  ;;  %v20184_v23 = vld [vmem:[%s21310_s28 + $0xa18] sm:$0xff]   ;;  %v20189_v30 = vld [vmem:[%s21310_s28 + $0xad0] sm:$0xff]   ;;  %v20192_v35 = vld [vmem:[%s21310_s28 + $0xa08] sm:$0xff]  }
 0x140   : > { %18485 = vmatprep.subr.bf16.mxu0 %v20146_v33  ;;  %v244_v33 = vld [vmem:[%s21305_s24 + $0x28] sm:$0xff] }
 0x141   : > { %18506 = vmatpush3.bf16.msra.mxu1 %v20145_v31  ;;  %v20190_v31 = vld [vmem:[%s21310_s28 + $0xa90] sm:$0xff]   ;;  %v20194_v39 = vld [vmem:[%s21310_s28 + $0xa88] sm:$0xff]  }
 0x142   : > { %18507 = vmatprep.subr.bf16.mxu1 %v20148_v38  ;;  %v20193_v38 = vld [vmem:[%s21310_s28 + $0xac8] sm:$0xff]  }
 0x143   : > { %18486 = vmatpush3.bf16.msra.mxu0 %v20147_v37  ;;  %v3036_v37 = vcombine.high %v244_v33, %v244_v33 }
 0x144   : > { %18487 = vmatprep.subr.bf16.mxu0 %v20150_v41 }
 0x145   : > { %18508 = vmatpush3.bf16.msra.mxu1 %v20149_v40  ;;  %v21740_v41 = vrot.slane %v3036_v37, %v21351_v42  ;;  %v20233_v37 = vld [vmem:[%s21310_s28 + $0xc38] sm:$0xff]  }
 0x146   : > { %18509 = vmatprep.subr.bf16.mxu1 %v20152_v44  ;;  %v20196_v44 = vld [vmem:[%s21310_s28 + $0xa00] sm:$0xff]  }
 0x147   : > { %18488 = vmatpush3.bf16.msra.mxu0 %v20151_v43  ;;  %v20195_v43 = vld [vmem:[%s21310_s28 + $0xa40] sm:$0xff]  }
 0x148   : > { %18489 = vmatprep.subr.bf16.mxu0 %v20154_v46  ;;  %v3052_v46 = vcombine.high %v21740_v41, %v21740_v41 }
 0x149   : > { %18510 = vmatpush3.bf16.msra.mxu1 %v20153_v45 }
 0x14a   : > { %18511 = vmatprep.subr.bf16.mxu1 %v20156_v48  ;;  %v20198_v48 = vld [vmem:[%s21310_s28 + $0xa80] sm:$0xff]  }
 0x14b   : > { %18490 = vmatpush3.bf16.msra.mxu0 %v20155_v47  ;;  %v20197_v47 = vld [vmem:[%s21310_s28 + $0xac0] sm:$0xff]  }
 0x14c   : > { %18491 = vmatprep.subr.bf16.mxu0 %v20158_v50 }
 0x14d   : > { %18512 = vmatpush3.bf16.msra.mxu1 %v20157_v49 }
 0x14e   : > { %18513 = vmatprep.subr.bf16.mxu1 %v20160_v52  ;;  %v20200_v52 = vld [vmem:[%s21310_s28 + $0xb38] sm:$0xff]  }
 0x14f   : > { %18492 = vmatpush3.bf16.msra.mxu0 %v20159_v51  ;;  %v20199_v51 = vld [vmem:[%s21310_s28 + $0xb78] sm:$0xff]  }
 0x150   : > { %18493 = vmatprep.subr.bf16.mxu0 %v20162_v54  ;;  %v20201_v54 = vld [vmem:[%s21310_s28 + $0xbf8] sm:$0xff]  }
 0x151   : > { %18514 = vmatpush3.bf16.msra.mxu1 %v20161_v53  ;;  %v3080_v53 = vrot.slane %v3052_v46, %v21351_v42  ;;  %v20239_v46 = vld [vmem:[%s21310_s28 + $0xcb0] sm:$0xff]  }
 0x152   : > { %18515 = vmatprep.subr.bf16.mxu1 %v20164_v56 }
 0x153   : > { %18494 = vmatpush3.bf16.msra.mxu0 %v20163_v55  ;;  %v20202_v55 = vld [vmem:[%s21310_s28 + $0xbb8] sm:$0xff]  }
 0x154   : > { %18523 = vmatprep.subr.bf16.mxu0 %v20167_v59  ;;  %v3084_v59 = vcombine.high %v3080_v53, %v3080_v53 }
 0x155   : > { %18516 = vmatpush3.bf16.msra.mxu1 %v20166_v57  ;;  %v20203_v57 = vld [vmem:[%s21310_s28 + $0xb70] sm:$0xff]  }
 0x156   : > { %v18231_v3 = vpop.f32.mrf.mxu0  ;;  %12207 = vmatmul.mubr.bf16.vlgmr.msra.gmra.mxu0 %v3017_v58  ;;  %18545 = vmatprep.subr.bf16.mxu1 %v20169_v61  ;;  %v20204_v58 = vld [vmem:[%s21310_s28 + $0xb30] sm:$0xff]  }
 0x157   : > { %18524 = vmatpush3.bf16.msra.mxu0 %v20168_v60  ;;  %v20205_v61 = vld [vmem:[%s21310_s28 + $0xbf0] sm:$0xff]  }
 0x158   : > { %v18232_v5 = vpop.f32.mrf.mxu0  ;;  %v18253_v6 = vpop.f32.mrf.mxu1  ;;  %12247 = vmatmul.mubr.bf16.vlgmr.msra.gmra.mxu1 %v3033_v63  ;;  %18525 = vmatprep.subr.bf16.mxu0 %v20171_v1 }
 0x159   : > { %v18233_v8 = vadd.f32 %v18232_v5, %v18231_v3  ;;  %18546 = vmatpush3.bf16.msra.mxu1 %v20170_v62  ;;  %v20206_v62 = vld [vmem:[%s21310_s28 + $0xbb0] sm:$0xff]  }
 0x15a   : > { %v18234_v10 = vpop.f32.mrf.mxu0  ;;  %v18254_v11 = vpop.f32.mrf.mxu1  ;;  %18547 = vmatprep.subr.bf16.mxu1 %v20173_v0  ;;  %v20208_v0 = vld [vmem:[%s21310_s28 + $0xb28] sm:$0xff]  }
 0x15b   : > { %v11729_v13 = vadd.f32 %v18233_v8, %v21683_v36  ;;  %v18255_v14 = vadd.f32 %v18254_v11, %v18253_v6  ;;  %18526 = vmatpush3.bf16.msra.mxu0 %v20172_v2  ;;  %v3043_v36 = vrot.slane %v244_v33, %v21351_v42  ;;  %v20207_v2 = vld [vmem:[%s21310_s28 + $0xb68] sm:$0xff]   ;;  %v20211_v11 = vld [vmem:[%s21310_s28 + $0xb60] sm:$0xff]  }
 0x15c   : > { %v18235_v16 = vpop.f32.mrf.mxu0  ;;  %18527 = vmatprep.subr.bf16.mxu0 %v20175_v7  ;;  %v18256_v18 = vpop.f32.mrf.mxu1  ;;  %v20209_v6 = vld [vmem:[%s21310_s28 + $0xbe8] sm:$0xff]   ;;  %v20231_v33 = vld [vmem:[%s21310_s28 + $0xb80] sm:$0xff]  }
 0x15d   : > { %v21720_v19 = vadd.f32 %v18255_v14, %v11729_v13  ;;  %18548 = vmatpush3.bf16.msra.mxu1 %v20174_v4  ;;  %v3051_v40 = vcombine.high %v3043_v36, %v3043_v36  ;;  %v3059_v50 = vrot.slane %v3043_v36, %v21351_v42  ;;  %v20212_v14 = vld [vmem:[%s21310_s28 + $0xb20] sm:$0xff]   ;;  %v20215_v18 = vld [vmem:[%s21310_s28 + $0xb58] sm:$0xff]  }
 0x15e   : > { %18549 = vmatprep.subr.bf16.mxu1 %v20177_v12  ;;  %v18257_v22 = vpop.f32.mrf.mxu1  ;;  %v20232_v36 = vld [vmem:[%s21310_s28 + $0xc78] sm:$0xff]  }
 0x15f   : > { %18528 = vmatpush3.bf16.msra.mxu0 %v20176_v9  ;;  %v3073_v45 = vrot.slane %v3051_v40, %v21351_v42  ;;  %v3081_v56 = vcombine.high %v3059_v50, %v3059_v50  ;;  %v20210_v9 = vld [vmem:[%s21310_s28 + $0xba8] sm:$0xff]   ;;  %v20219_v22 = vld [vmem:[%s21310_s28 + $0xb50] sm:$0xff]  }
 0x160   : > { %18529 = vmatprep.subr.bf16.mxu0 %v20179_v17  ;;  %v20214_v17 = vld [vmem:[%s21310_s28 + $0xba0] sm:$0xff]  }
 0x161   : > { %18550 = vmatpush3.bf16.msra.mxu1 %v20178_v15  ;;  %12286 = vmatprep.mubr.bf16.mxu0 %v3073_v45  ;;  %v3083_v49 = vcombine.high %v3073_v45, %v3073_v45  ;;  %v20213_v15 = vld [vmem:[%s21310_s28 + $0xbe0] sm:$0xff]  }
 0x162   : > { %18551 = vmatprep.subr.bf16.mxu1 %v20181_v21  ;;  %v20218_v21 = vld [vmem:[%s21310_s28 + $0xb98] sm:$0xff]  }
 0x163   : > { %18530 = vmatpush3.bf16.msra.mxu0 %v20180_v20  ;;  %12326 = vmatprep.mubr.bf16.mxu1 %v3083_v49  ;;  %v20217_v20 = vld [vmem:[%s21310_s28 + $0xbd8] sm:$0xff]   ;;  %v20240_v49 = vld [vmem:[%s21310_s28 + $0xc68] sm:$0xff]  }
 0x164   : > { %18531 = vmatprep.subr.bf16.mxu0 %v20183_v25  ;;  %v20221_v25 = vld [vmem:[%s21310_s28 + $0xbd0] sm:$0xff]  }
 0x165   : > { %18552 = vmatpush3.bf16.msra.mxu1 %v20182_v24  ;;  %v20220_v24 = vld [vmem:[%s21310_s28 + $0xb10] sm:$0xff]  }
 0x166   : > { %18553 = vmatprep.subr.bf16.mxu1 %v20185_v26  ;;  %v20223_v26 = vld [vmem:[%s21310_s28 + $0xb48] sm:$0xff]  }
 0x167   : > { %18532 = vmatpush3.bf16.msra.mxu0 %v20184_v23  ;;  %v20222_v23 = vld [vmem:[%s21310_s28 + $0xb90] sm:$0xff]  }
 0x168   : > { %18533 = vmatprep.subr.bf16.mxu0 %v20187_v28  ;;  %v20225_v28 = vld [vmem:[%s21310_s28 + $0xbc8] sm:$0xff]  }
 0x169   : > { %18554 = vmatpush3.bf16.msra.mxu1 %v20186_v27  ;;  %v20224_v27 = vld [vmem:[%s21310_s28 + $0xb08] sm:$0xff]  }
 0x16a   : > { %18555 = vmatprep.subr.bf16.mxu1 %v20189_v30  ;;  %v20227_v30 = vld [vmem:[%s21310_s28 + $0xb40] sm:$0xff]  }
 0x16b   : > { %18534 = vmatpush3.bf16.msra.mxu0 %v20188_v29  ;;  %v20226_v29 = vld [vmem:[%s21310_s28 + $0xb88] sm:$0xff]  }
 0x16c   : > { %18535 = vmatprep.subr.bf16.mxu0 %v20191_v32  ;;  %v20229_v32 = vld [vmem:[%s21310_s28 + $0xbc0] sm:$0xff]  }
 0x16d   : > { %18556 = vmatpush3.bf16.msra.mxu1 %v20190_v31  ;;  %v20228_v31 = vld [vmem:[%s21310_s28 + $0xb00] sm:$0xff]  }
 0x16e   : > { %18557 = vmatprep.subr.bf16.mxu1 %v20193_v38  ;;  %v20234_v38 = vld [vmem:[%s21310_s28 + $0xcf8] sm:$0xff]  }
 0x16f   : > { %18536 = vmatpush3.bf16.msra.mxu0 %v20192_v35  ;;  %v3066_v35 = vrot.slane %v21740_v41, %v21351_v42  ;;  %v20238_v41 = vld [vmem:[%s21310_s28 + $0xcf0] sm:$0xff]  }
 0x170   : > { %18537 = vmatprep.subr.bf16.mxu0 %v20195_v43  ;;  %v20236_v43 = vld [vmem:[%s21310_s28 + $0xc70] sm:$0xff]  }
 0x171   : > { %18558 = vmatpush3.bf16.msra.mxu1 %v20194_v39  ;;  %v20235_v39 = vld [vmem:[%s21310_s28 + $0xcb8] sm:$0xff]   ;;  %v3082_v40 = vcombine.high %v3066_v35, %v3066_v35 }
 0x172   : > { %18559 = vmatprep.subr.bf16.mxu1 %v20197_v47 }
 0x173   : > { %18538 = vmatpush3.bf16.msra.mxu0 %v20196_v44  ;;  %v20237_v44 = vld [vmem:[%s21310_s28 + $0xc30] sm:$0xff]  }
 0x174   : > { %18567 = vmatprep.subr.bf16.mxu0 %v20199_v51  ;;  %v20241_v51 = vld [vmem:[%s21310_s28 + $0xc28] sm:$0xff]  }
 0x175   : > { %18560 = vmatpush3.bf16.msra.mxu1 %v20198_v48 }
 0x176   : > { %v18275_v60 = vpop.f32.mrf.mxu0  ;;  %12287 = vmatmul.mubr.bf16.vlgmr.msra.gmra.mxu0 %v3059_v50  ;;  %18589 = vmatprep.subr.bf16.mxu1 %v20201_v54  ;;  %v20242_v54 = vld [vmem:[%s21310_s28 + $0xce8] sm:$0xff]  }
 0x177   : > { %18568 = vmatpush3.bf16.msra.mxu0 %v20200_v52  ;;  %12366 = vmatprep.mubr.bf16.mxu0 %v3080_v53 }
 0x178   : > { %v18276_v63 = vpop.f32.mrf.mxu0  ;;  %v18297_v1 = vpop.f32.mrf.mxu1  ;;  %12327 = vmatmul.mubr.bf16.vlgmr.msra.gmra.mxu1 %v3081_v56  ;;  %18569 = vmatprep.subr.bf16.mxu0 %v20203_v57  ;;  %v20243_v57 = vld [vmem:[%s21310_s28 + $0xca8] sm:$0xff]  }
 0x179   : > { %v18277_v3 = vadd.f32 %v18276_v63, %v18275_v60  ;;  %18590 = vmatpush3.bf16.msra.mxu1 %v20202_v55  ;;  %12406 = vmatprep.mubr.bf16.mxu1 %v3084_v59  ;;  %v20244_v59 = vld [vmem:[%s21310_s28 + $0xc60] sm:$0xff]  }
 0x17a   : > { %v18278_v4 = vpop.f32.mrf.mxu0  ;;  %v18298_v5 = vpop.f32.mrf.mxu1  ;;  %18591 = vmatprep.subr.bf16.mxu1 %v20205_v61  ;;  %v20246_v63 = vld [vmem:[%s21310_s28 + $0xce0] sm:$0xff]  }
 0x17b   : > { %v11809_v7 = vadd.f32 %v18277_v3, %v21720_v19  ;;  %v18299_v8 = vadd.f32 %v18298_v5, %v18297_v1  ;;  %18570 = vmatpush3.bf16.msra.mxu0 %v20204_v58  ;;  %v20216_v19 = vld [vmem:[%s21310_s28 + $0xb18] sm:$0xff]  }
 0x17c   : > { %v18279_v10 = vpop.f32.mrf.mxu0  ;;  %18571 = vmatprep.subr.bf16.mxu0 %v20207_v2  ;;  %v18300_v12 = vpop.f32.mrf.mxu1  ;;  %v20247_v2 = vld [vmem:[%s21310_s28 + $0xca0] sm:$0xff]   ;;  %v20248_v3 = vld [vmem:[%s21310_s28 + $0xc58] sm:$0xff]  }
 0x17d   : > { %v21765_v13 = vadd.f32 %v18299_v8, %v11809_v7  ;;  %18592 = vmatpush3.bf16.msra.mxu1 %v20206_v62  ;;  %v20245_v62 = vld [vmem:[%s21310_s28 + $0xc20] sm:$0xff]   ;;  %v20250_v4 = vld [vmem:[%s21310_s28 + $0xcd8] sm:$0xff]   ;;  %v20253_v7 = vld [vmem:[%s21310_s28 + $0xc10] sm:$0xff]  }
 0x17e   : > { %18593 = vmatprep.subr.bf16.mxu1 %v20209_v6  ;;  %v18301_v16 = vpop.f32.mrf.mxu1  ;;  %v20251_v5 = vld [vmem:[%s21310_s28 + $0xc98] sm:$0xff]   ;;  %v20252_v6 = vld [vmem:[%s21310_s28 + $0xc50] sm:$0xff]   ;;  %v20256_v10 = vld [vmem:[%s21310_s28 + $0xc48] sm:$0xff]  }
 0x17f   : > { %18572 = vmatpush3.bf16.msra.mxu0 %v20208_v0  ;;  %v20249_v0 = vld [vmem:[%s21310_s28 + $0xc18] sm:$0xff]   ;;  %v20254_v8 = vld [vmem:[%s21310_s28 + $0xcd0] sm:$0xff]   ;;  %v20259_v16 = vld [vmem:[%s21310_s28 + $0xc88] sm:$0xff]  }
 0x180   : > { %18573 = vmatprep.subr.bf16.mxu0 %v20211_v11  ;;  %v20257_v11 = vld [vmem:[%s21310_s28 + $0xc08] sm:$0xff]   ;;  %v245_v12 = vld [vmem:[%s21305_s24 + $0x30] sm:$0xff] }
 0x181   : > { %18594 = vmatpush3.bf16.msra.mxu1 %v20210_v9  ;;  %v20255_v9 = vld [vmem:[%s21310_s28 + $0xc90] sm:$0xff]  }
 0x182   : > { %18595 = vmatprep.subr.bf16.mxu1 %v20213_v15  ;;  %v3085_v15 = vcombine.high %v245_v12, %v245_v12 }
 0x183   : > { %18574 = vmatpush3.bf16.msra.mxu0 %v20212_v14  ;;  %v3092_v14 = vrot.slane %v245_v12, %v21351_v42 }
 0x184   : > { %18575 = vmatprep.subr.bf16.mxu0 %v20215_v18 }
 0x185   : > { %18596 = vmatpush3.bf16.msra.mxu1 %v20214_v17  ;;  %v20260_v17 = vld [vmem:[%s21310_s28 + $0xc40] sm:$0xff]   ;;  %v3100_v18 = vcombine.high %v3092_v14, %v3092_v14 }
 0x186   : > { %18597 = vmatprep.subr.bf16.mxu1 %v20217_v20  ;;  %v20261_v20 = vld [vmem:[%s21310_s28 + $0xc00] sm:$0xff]  }
 0x187   : > { %18576 = vmatpush3.bf16.msra.mxu0 %v20216_v19  ;;  %v21823_v19 = vrot.slane %v3085_v15, %v21351_v42  ;;  %v20299_v15 = vld [vmem:[%s21310_s28 + $0xef8] sm:$0xff]  }
 0x188   : > { %18577 = vmatprep.subr.bf16.mxu0 %v20219_v22  ;;  %v3122_v22 = vrot.slane %v3100_v18, %v21351_v42  ;;  %v20301_v18 = vld [vmem:[%s21310_s28 + $0xe70] sm:$0xff]  }
 0x189   : > { %18598 = vmatpush3.bf16.msra.mxu1 %v20218_v21  ;;  %v20262_v21 = vld [vmem:[%s21310_s28 + $0xcc0] sm:$0xff]   ;;  %v3115_v12 = vrot.slane %v21823_v19, %v21351_v42 }
 0x18a   : > { %18599 = vmatprep.subr.bf16.mxu1 %v20221_v25  ;;  %v20263_v25 = vld [vmem:[%s21310_s28 + $0xc80] sm:$0xff]  }
 0x18b   : > { %18578 = vmatpush3.bf16.msra.mxu0 %v20220_v24  ;;  %v3101_v24 = vcombine.high %v21823_v19, %v21823_v19  ;;  %v20303_v19 = vld [vmem:[%s21310_s28 + $0xef0] sm:$0xff]  }
 0x18c   : > { %18579 = vmatprep.subr.bf16.mxu0 %v20223_v26  ;;  %v20264_v26 = vld [vmem:[%s21310_s28 + $0xd78] sm:$0xff]  }
 0x18d   : > { %18600 = vmatpush3.bf16.msra.mxu1 %v20222_v23  ;;  %v3108_v23 = vrot.slane %v3092_v14, %v21351_v42  ;;  %v20298_v14 = vld [vmem:[%s21310_s28 + $0xe38] sm:$0xff]  }
 0x18e   : > { %18601 = vmatprep.subr.bf16.mxu1 %v20225_v28  ;;  %v20265_v28 = vld [vmem:[%s21310_s28 + $0xd38] sm:$0xff]  }
 0x18f   : > { %18580 = vmatpush3.bf16.msra.mxu0 %v20224_v27  ;;  %v3132_v27 = vcombine.high %v3122_v22, %v3122_v22 }
 0x190   : > { %18581 = vmatprep.subr.bf16.mxu0 %v20227_v30  ;;  %v20266_v30 = vld [vmem:[%s21310_s28 + $0xdf8] sm:$0xff]  }
 0x191   : > { %18602 = vmatpush3.bf16.msra.mxu1 %v20226_v29  ;;  %v3129_v29 = vrot.slane %v3101_v24, %v21351_v42 }
 0x192   : > { %18603 = vmatprep.subr.bf16.mxu1 %v20229_v32  ;;  %v3130_v32 = vcombine.high %v3108_v23, %v3108_v23 }
 0x193   : > { %18582 = vmatpush3.bf16.msra.mxu0 %v20228_v31  ;;  %v20267_v31 = vld [vmem:[%s21310_s28 + $0xdb8] sm:$0xff]  }
 0x194   : > { %18611 = vmatprep.subr.bf16.mxu0 %v20232_v36  ;;  %v3133_v36 = vcombine.high %v3129_v29, %v3129_v29 }
 0x195   : > { %18604 = vmatpush3.bf16.msra.mxu1 %v20231_v33  ;;  %v20268_v33 = vld [vmem:[%s21310_s28 + $0xd70] sm:$0xff]  }
 0x196   : > { %v18319_v45 = vpop.f32.mrf.mxu0  ;;  %12367 = vmatmul.mubr.bf16.vlgmr.msra.gmra.mxu0 %v3066_v35  ;;  %18633 = vmatprep.subr.bf16.mxu1 %v20234_v38  ;;  %v20269_v35 = vld [vmem:[%s21310_s28 + $0xd30] sm:$0xff]  }
 0x197   : > { %18612 = vmatpush3.bf16.msra.mxu0 %v20233_v37  ;;  %12446 = vmatprep.mubr.bf16.mxu0 %v3122_v22  ;;  %v20270_v38 = vld [vmem:[%s21310_s28 + $0xdf0] sm:$0xff]  }
 0x198   : > { %v18320_v47 = vpop.f32.mrf.mxu0  ;;  %v18341_v48 = vpop.f32.mrf.mxu1  ;;  %12407 = vmatmul.mubr.bf16.vlgmr.msra.gmra.mxu1 %v3082_v40  ;;  %18613 = vmatprep.subr.bf16.mxu0 %v20236_v43  ;;  %v20304_v22 = vld [vmem:[%s21310_s28 + $0xeb0] sm:$0xff]  }
 0x199   : > { %v18321_v50 = vadd.f32 %v18320_v47, %v18319_v45  ;;  %18634 = vmatpush3.bf16.msra.mxu1 %v20235_v39  ;;  %12486 = vmatprep.mubr.bf16.mxu1 %v3132_v27  ;;  %v20271_v39 = vld [vmem:[%s21310_s28 + $0xdb0] sm:$0xff]   ;;  %v20306_v27 = vld [vmem:[%s21310_s28 + $0xe28] sm:$0xff]  }
 0x19a   : > { %v18322_v52 = vpop.f32.mrf.mxu0  ;;  %v18342_v53 = vpop.f32.mrf.mxu1  ;;  %18635 = vmatprep.subr.bf16.mxu1 %v20238_v41  ;;  %v20273_v41 = vld [vmem:[%s21310_s28 + $0xd28] sm:$0xff]  }
 0x19b   : > { %v11889_v55 = vadd.f32 %v18321_v50, %v21765_v13  ;;  %v18343_v56 = vadd.f32 %v18342_v53, %v18341_v48  ;;  %18614 = vmatpush3.bf16.msra.mxu0 %v20237_v44  ;;  %v20258_v13 = vld [vmem:[%s21310_s28 + $0xcc8] sm:$0xff]   ;;  %v20276_v53 = vld [vmem:[%s21310_s28 + $0xd60] sm:$0xff]  }
 0x19c   : > { %v18323_v58 = vpop.f32.mrf.mxu0  ;;  %18615 = vmatprep.subr.bf16.mxu0 %v20240_v49  ;;  %v18344_v60 = vpop.f32.mrf.mxu1  ;;  %v20272_v44 = vld [vmem:[%s21310_s28 + $0xd68] sm:$0xff]  }
 0x19d   : > { %v21802_v61 = vadd.f32 %v18343_v56, %v11889_v55  ;;  %18636 = vmatpush3.bf16.msra.mxu1 %v20239_v46  ;;  %v20274_v48 = vld [vmem:[%s21310_s28 + $0xde8] sm:$0xff]   ;;  %v20277_v56 = vld [vmem:[%s21310_s28 + $0xd20] sm:$0xff]   ;;  %v20280_v60 = vld [vmem:[%s21310_s28 + $0xd58] sm:$0xff]  }
 0x19e   : > { %18637 = vmatprep.subr.bf16.mxu1 %v20242_v54  ;;  %v18345_v1 = vpop.f32.mrf.mxu1 }
 0x19f   : > { %18616 = vmatpush3.bf16.msra.mxu0 %v20241_v51  ;;  %v20275_v51 = vld [vmem:[%s21310_s28 + $0xda8] sm:$0xff]   ;;  %v20284_v1 = vld [vmem:[%s21310_s28 + $0xd50] sm:$0xff]  }
 0x1a0   : > { %18617 = vmatprep.subr.bf16.mxu0 %v20244_v59  ;;  %v20279_v59 = vld [vmem:[%s21310_s28 + $0xda0] sm:$0xff]  }
 0x1a1   : > { %18638 = vmatpush3.bf16.msra.mxu1 %v20243_v57  ;;  %v20278_v57 = vld [vmem:[%s21310_s28 + $0xde0] sm:$0xff]  }
 0x1a2   : > { %18639 = vmatprep.subr.bf16.mxu1 %v20246_v63  ;;  %v20283_v63 = vld [vmem:[%s21310_s28 + $0xd98] sm:$0xff]  }
 0x1a3   : > { %18618 = vmatpush3.bf16.msra.mxu0 %v20245_v62  ;;  %v20282_v62 = vld [vmem:[%s21310_s28 + $0xdd8] sm:$0xff]  }
 0x1a4   : > { %18619 = vmatprep.subr.bf16.mxu0 %v20248_v3  ;;  %v20286_v3 = vld [vmem:[%s21310_s28 + $0xdd0] sm:$0xff]  }
 0x1a5   : > { %18640 = vmatpush3.bf16.msra.mxu1 %v20247_v2  ;;  %v20285_v2 = vld [vmem:[%s21310_s28 + $0xd10] sm:$0xff]  }
 0x1a6   : > { %18641 = vmatprep.subr.bf16.mxu1 %v20250_v4  ;;  %v20288_v4 = vld [vmem:[%s21310_s28 + $0xd48] sm:$0xff]  }
 0x1a7   : > { %18620 = vmatpush3.bf16.msra.mxu0 %v20249_v0  ;;  %v20287_v0 = vld [vmem:[%s21310_s28 + $0xd90] sm:$0xff]  }
 0x1a8   : > { %18621 = vmatprep.subr.bf16.mxu0 %v20252_v6  ;;  %v20290_v6 = vld [vmem:[%s21310_s28 + $0xdc8] sm:$0xff]  }
 0x1a9   : > { %18642 = vmatpush3.bf16.msra.mxu1 %v20251_v5  ;;  %v20289_v5 = vld [vmem:[%s21310_s28 + $0xd08] sm:$0xff]  }
 0x1aa   : > { %18643 = vmatprep.subr.bf16.mxu1 %v20254_v8  ;;  %v20292_v8 = vld [vmem:[%s21310_s28 + $0xd40] sm:$0xff]  }
 0x1ab   : > { %18622 = vmatpush3.bf16.msra.mxu0 %v20253_v7  ;;  %v20291_v7 = vld [vmem:[%s21310_s28 + $0xd88] sm:$0xff]  }
 0x1ac   : > { %18623 = vmatprep.subr.bf16.mxu0 %v20256_v10  ;;  %v20294_v10 = vld [vmem:[%s21310_s28 + $0xdc0] sm:$0xff]  }
 0x1ad   : > { %18644 = vmatpush3.bf16.msra.mxu1 %v20255_v9  ;;  %v20293_v9 = vld [vmem:[%s21310_s28 + $0xd00] sm:$0xff]  }
 0x1ae   : > { %18645 = vmatprep.subr.bf16.mxu1 %v20258_v13  ;;  %v20297_v13 = vld [vmem:[%s21310_s28 + $0xe78] sm:$0xff]  }
 0x1af   : > { %18624 = vmatpush3.bf16.msra.mxu0 %v20257_v11  ;;  %v20296_v11 = vld [vmem:[%s21310_s28 + $0xd80] sm:$0xff]  }
 0x1b0   : > { %18625 = vmatprep.subr.bf16.mxu0 %v20260_v17  ;;  %v3131_v17 = vcombine.high %v3115_v12, %v3115_v12 }
 0x1b1   : > { %18646 = vmatpush3.bf16.msra.mxu1 %v20259_v16  ;;  %v20300_v16 = vld [vmem:[%s21310_s28 + $0xeb8] sm:$0xff]  }
 0x1b2   : > { %18647 = vmatprep.subr.bf16.mxu1 %v20262_v21 }
 0x1b3   : > { %18626 = vmatpush3.bf16.msra.mxu0 %v20261_v20  ;;  %v20302_v20 = vld [vmem:[%s21310_s28 + $0xe30] sm:$0xff]  }
 0x1b4   : > { %18655 = vmatprep.subr.bf16.mxu0 %v20264_v26 }
 0x1b5   : > { %18648 = vmatpush3.bf16.msra.mxu1 %v20263_v25 }
 0x1b6   : > { %v18363_v37 = vpop.f32.mrf.mxu0  ;;  %12447 = vmatmul.mubr.bf16.vlgmr.msra.gmra.mxu0 %v3108_v23  ;;  %18677 = vmatprep.subr.bf16.mxu1 %v20266_v30  ;;  %v20305_v23 = vld [vmem:[%s21310_s28 + $0xe68] sm:$0xff]  }
 0x1b7   : > { %18656 = vmatpush3.bf16.msra.mxu0 %v20265_v28  ;;  %12526 = vmatprep.mubr.bf16.mxu0 %v3129_v29  ;;  %v20307_v30 = vld [vmem:[%s21310_s28 + $0xee8] sm:$0xff]  }
 0x1b8   : > { %v18364_v40 = vpop.f32.mrf.mxu0  ;;  %v18385_v43 = vpop.f32.mrf.mxu1  ;;  %12487 = vmatmul.mubr.bf16.vlgmr.msra.gmra.mxu1 %v3130_v32  ;;  %18657 = vmatprep.subr.bf16.mxu0 %v20268_v33  ;;  %v20308_v33 = vld [vmem:[%s21310_s28 + $0xea8] sm:$0xff]  }
 0x1b9   : > { %v18365_v45 = vadd.f32 %v18364_v40, %v18363_v37  ;;  %18678 = vmatpush3.bf16.msra.mxu1 %v20267_v31  ;;  %12566 = vmatprep.mubr.bf16.mxu1 %v3133_v36  ;;  %v20309_v36 = vld [vmem:[%s21310_s28 + $0xe60] sm:$0xff]  }
 0x1ba   : > { %v18366_v46 = vpop.f32.mrf.mxu0  ;;  %v18386_v47 = vpop.f32.mrf.mxu1  ;;  %18679 = vmatprep.subr.bf16.mxu1 %v20270_v38  ;;  %v20311_v40 = vld [vmem:[%s21310_s28 + $0xee0] sm:$0xff]  }
 0x1bb   : > { %v11969_v49 = vadd.f32 %v18365_v45, %v21802_v61  ;;  %v18387_v50 = vadd.f32 %v18386_v47, %v18385_v43  ;;  %18658 = vmatpush3.bf16.msra.mxu0 %v20269_v35  ;;  %v20281_v61 = vld [vmem:[%s21310_s28 + $0xd18] sm:$0xff]  }
 0x1bc   : > { %v18367_v52 = vpop.f32.mrf.mxu0  ;;  %18659 = vmatprep.subr.bf16.mxu0 %v20272_v44  ;;  %v18388_v54 = vpop.f32.mrf.mxu1  ;;  %v20312_v44 = vld [vmem:[%s21310_s28 + $0xea0] sm:$0xff]   ;;  %v20313_v45 = vld [vmem:[%s21310_s28 + $0xe58] sm:$0xff]  }
 0x1bd   : > { %v21847_v55 = vadd.f32 %v18387_v50, %v11969_v49  ;;  %18680 = vmatpush3.bf16.msra.mxu1 %v20271_v39  ;;  %v20310_v39 = vld [vmem:[%s21310_s28 + $0xe20] sm:$0xff]   ;;  %v20315_v46 = vld [vmem:[%s21310_s28 + $0xed8] sm:$0xff]   ;;  %v20318_v49 = vld [vmem:[%s21310_s28 + $0xe10] sm:$0xff]  }
 0x1be   : > { %18681 = vmatprep.subr.bf16.mxu1 %v20274_v48  ;;  %v18389_v58 = vpop.f32.mrf.mxu1  ;;  %v20316_v47 = vld [vmem:[%s21310_s28 + $0xe98] sm:$0xff]   ;;  %v20317_v48 = vld [vmem:[%s21310_s28 + $0xe50] sm:$0xff]   ;;  %v20321_v52 = vld [vmem:[%s21310_s28 + $0xe48] sm:$0xff]  }
 0x1bf   : > { %18660 = vmatpush3.bf16.msra.mxu0 %v20273_v41  ;;  %v20314_v41 = vld [vmem:[%s21310_s28 + $0xe18] sm:$0xff]   ;;  %v20319_v50 = vld [vmem:[%s21310_s28 + $0xed0] sm:$0xff]   ;;  %v20324_v58 = vld [vmem:[%s21310_s28 + $0xe88] sm:$0xff]  }
 0x1c0   : > { %18661 = vmatprep.subr.bf16.mxu0 %v20276_v53  ;;  %v20322_v53 = vld [vmem:[%s21310_s28 + $0xe08] sm:$0xff]   ;;  %v246_v54 = vld [vmem:[%s21305_s24 + $0x38] sm:$0xff] }
 0x1c1   : > { %18682 = vmatpush3.bf16.msra.mxu1 %v20275_v51  ;;  %v20320_v51 = vld [vmem:[%s21310_s28 + $0xe90] sm:$0xff]  }
 0x1c2   : > { %18683 = vmatprep.subr.bf16.mxu1 %v20278_v57  ;;  %v3134_v57 = vcombine.high %v246_v54, %v246_v54 }
 0x1c3   : > { %18662 = vmatpush3.bf16.msra.mxu0 %v20277_v56  ;;  %v3141_v56 = vrot.slane %v246_v54, %v21351_v42 }
 0x1c4   : > { %18663 = vmatprep.subr.bf16.mxu0 %v20280_v60 }
 0x1c5   : > { %18684 = vmatpush3.bf16.msra.mxu1 %v20279_v59  ;;  %v20325_v59 = vld [vmem:[%s21310_s28 + $0xe40] sm:$0xff]   ;;  %v3149_v60 = vcombine.high %v3141_v56, %v3141_v56 }
 0x1c6   : > { %18685 = vmatprep.subr.bf16.mxu1 %v20282_v62  ;;  %v20326_v62 = vld [vmem:[%s21310_s28 + $0xe00] sm:$0xff]  }
 0x1c7   : > { %18664 = vmatpush3.bf16.msra.mxu0 %v20281_v61  ;;  %v21905_v61 = vrot.slane %v3134_v57, %v21351_v42  ;;  %v20364_v57 = vld [vmem:[%s21310_s28 + $0x10f8] sm:$0xff]  }
 0x1c8   : > { %18665 = vmatprep.subr.bf16.mxu0 %v20284_v1  ;;  %v3171_v1 = vrot.slane %v3149_v60, %v21351_v42  ;;  %v20366_v60 = vld [vmem:[%s21310_s28 + $0x1070] sm:$0xff]  }
 0x1c9   : > { %18686 = vmatpush3.bf16.msra.mxu1 %v20283_v63  ;;  %v20327_v63 = vld [vmem:[%s21310_s28 + $0xec0] sm:$0xff]   ;;  %v3164_v54 = vrot.slane %v21905_v61, %v21351_v42 }
 0x1ca   : > { %18687 = vmatprep.subr.bf16.mxu1 %v20286_v3  ;;  %v20328_v3 = vld [vmem:[%s21310_s28 + $0xe80] sm:$0xff]  }
 0x1cb   : > { %18666 = vmatpush3.bf16.msra.mxu0 %v20285_v2  ;;  %v3150_v2 = vcombine.high %v21905_v61, %v21905_v61  ;;  %v20368_v61 = vld [vmem:[%s21310_s28 + $0x10f0] sm:$0xff]  }
 0x1cc   : > { %18667 = vmatprep.subr.bf16.mxu0 %v20288_v4  ;;  %v20329_v4 = vld [vmem:[%s21310_s28 + $0xf78] sm:$0xff]  }
 0x1cd   : > { %18688 = vmatpush3.bf16.msra.mxu1 %v20287_v0  ;;  %v3157_v0 = vrot.slane %v3141_v56, %v21351_v42  ;;  %v20363_v56 = vld [vmem:[%s21310_s28 + $0x1038] sm:$0xff]  }
 0x1ce   : > { %18689 = vmatprep.subr.bf16.mxu1 %v20290_v6  ;;  %v20330_v6 = vld [vmem:[%s21310_s28 + $0xf38] sm:$0xff]  }
 0x1cf   : > { %18668 = vmatpush3.bf16.msra.mxu0 %v20289_v5  ;;  %v3181_v5 = vcombine.high %v3171_v1, %v3171_v1 }
 0x1d0   : > { %18669 = vmatprep.subr.bf16.mxu0 %v20292_v8  ;;  %v20331_v8 = vld [vmem:[%s21310_s28 + $0xff8] sm:$0xff]  }
 0x1d1   : > { %18690 = vmatpush3.bf16.msra.mxu1 %v20291_v7  ;;  %v3178_v7 = vrot.slane %v3150_v2, %v21351_v42 }
 0x1d2   : > { %18691 = vmatprep.subr.bf16.mxu1 %v20294_v10  ;;  %v3179_v10 = vcombine.high %v3157_v0, %v3157_v0 }
 0x1d3   : > { %18670 = vmatpush3.bf16.msra.mxu0 %v20293_v9  ;;  %v20332_v9 = vld [vmem:[%s21310_s28 + $0xfb8] sm:$0xff]  }
 0x1d4   : > { %18699 = vmatprep.subr.bf16.mxu0 %v20297_v13  ;;  %v3182_v13 = vcombine.high %v3178_v7, %v3178_v7 }
 0x1d5   : > { %18692 = vmatpush3.bf16.msra.mxu1 %v20296_v11  ;;  %v20333_v11 = vld [vmem:[%s21310_s28 + $0xf70] sm:$0xff]  }
 0x1d6   : > { %v18407_v21 = vpop.f32.mrf.mxu0  ;;  %12527 = vmatmul.mubr.bf16.vlgmr.msra.gmra.mxu0 %v3115_v12  ;;  %18721 = vmatprep.subr.bf16.mxu1 %v20299_v15  ;;  %v20334_v12 = vld [vmem:[%s21310_s28 + $0xf30] sm:$0xff]  }
 0x1d7   : > { %18700 = vmatpush3.bf16.msra.mxu0 %v20298_v14  ;;  %12606 = vmatprep.mubr.bf16.mxu0 %v3171_v1  ;;  %v20335_v15 = vld [vmem:[%s21310_s28 + $0xff0] sm:$0xff]  }
 0x1d8   : > { %v18408_v24 = vpop.f32.mrf.mxu0  ;;  %v18429_v25 = vpop.f32.mrf.mxu1  ;;  %12567 = vmatmul.mubr.bf16.vlgmr.msra.gmra.mxu1 %v3131_v17  ;;  %18701 = vmatprep.subr.bf16.mxu0 %v20301_v18  ;;  %v20369_v1 = vld [vmem:[%s21310_s28 + $0x10b0] sm:$0xff]  }
 0x1d9   : > { %v18409_v26 = vadd.f32 %v18408_v24, %v18407_v21  ;;  %18722 = vmatpush3.bf16.msra.mxu1 %v20300_v16  ;;  %12646 = vmatprep.mubr.bf16.mxu1 %v3181_v5  ;;  %v20336_v16 = vld [vmem:[%s21310_s28 + $0xfb0] sm:$0xff]   ;;  %v20371_v5 = vld [vmem:[%s21310_s28 + $0x1028] sm:$0xff]  }
 0x1da   : > { %v18410_v28 = vpop.f32.mrf.mxu0  ;;  %v18430_v29 = vpop.f32.mrf.mxu1  ;;  %18723 = vmatprep.subr.bf16.mxu1 %v20303_v19  ;;  %v20338_v19 = vld [vmem:[%s21310_s28 + $0xf28] sm:$0xff]  }
 0x1db   : > { %v12049_v31 = vadd.f32 %v18409_v26, %v21847_v55  ;;  %v18431_v32 = vadd.f32 %v18430_v29, %v18429_v25  ;;  %18702 = vmatpush3.bf16.msra.mxu0 %v20302_v20  ;;  %v20323_v55 = vld [vmem:[%s21310_s28 + $0xec8] sm:$0xff]   ;;  %v20341_v29 = vld [vmem:[%s21310_s28 + $0xf60] sm:$0xff]  }
 0x1dc   : > { %v18411_v35 = vpop.f32.mrf.mxu0  ;;  %18703 = vmatprep.subr.bf16.mxu0 %v20305_v23  ;;  %v18432_v37 = vpop.f32.mrf.mxu1  ;;  %v20337_v20 = vld [vmem:[%s21310_s28 + $0xf68] sm:$0xff]  }
 0x1dd   : > { %v21884_v38 = vadd.f32 %v18431_v32, %v12049_v31  ;;  %18724 = vmatpush3.bf16.msra.mxu1 %v20304_v22  ;;  %v20339_v25 = vld [vmem:[%s21310_s28 + $0xfe8] sm:$0xff]   ;;  %v20342_v32 = vld [vmem:[%s21310_s28 + $0xf20] sm:$0xff]   ;;  %v20345_v37 = vld [vmem:[%s21310_s28 + $0xf58] sm:$0xff]  }
 0x1de   : > { %18725 = vmatprep.subr.bf16.mxu1 %v20307_v30  ;;  %v18433_v43 = vpop.f32.mrf.mxu1 }
 0x1df   : > { %18704 = vmatpush3.bf16.msra.mxu0 %v20306_v27  ;;  %v20340_v27 = vld [vmem:[%s21310_s28 + $0xfa8] sm:$0xff]   ;;  %v20349_v43 = vld [vmem:[%s21310_s28 + $0xf50] sm:$0xff]  }
 0x1e0   : > { %18705 = vmatprep.subr.bf16.mxu0 %v20309_v36  ;;  %v20344_v36 = vld [vmem:[%s21310_s28 + $0xfa0] sm:$0xff]  }
 0x1e1   : > { %18726 = vmatpush3.bf16.msra.mxu1 %v20308_v33  ;;  %v20343_v33 = vld [vmem:[%s21310_s28 + $0xfe0] sm:$0xff]  }
 0x1e2   : > { %18727 = vmatprep.subr.bf16.mxu1 %v20311_v40  ;;  %v20348_v40 = vld [vmem:[%s21310_s28 + $0xf98] sm:$0xff]  }
 0x1e3   : > { %18706 = vmatpush3.bf16.msra.mxu0 %v20310_v39  ;;  %v20347_v39 = vld [vmem:[%s21310_s28 + $0xfd8] sm:$0xff]  }
 0x1e4   : > { %18707 = vmatprep.subr.bf16.mxu0 %v20313_v45  ;;  %v20351_v45 = vld [vmem:[%s21310_s28 + $0xfd0] sm:$0xff]  }
 0x1e5   : > { %18728 = vmatpush3.bf16.msra.mxu1 %v20312_v44  ;;  %v20350_v44 = vld [vmem:[%s21310_s28 + $0xf10] sm:$0xff]  }
 0x1e6   : > { %18729 = vmatprep.subr.bf16.mxu1 %v20315_v46  ;;  %v20353_v46 = vld [vmem:[%s21310_s28 + $0xf48] sm:$0xff]  }
 0x1e7   : > { %18708 = vmatpush3.bf16.msra.mxu0 %v20314_v41  ;;  %v20352_v41 = vld [vmem:[%s21310_s28 + $0xf90] sm:$0xff]  }
 0x1e8   : > { %18709 = vmatprep.subr.bf16.mxu0 %v20317_v48  ;;  %v20355_v48 = vld [vmem:[%s21310_s28 + $0xfc8] sm:$0xff]  }
 0x1e9   : > { %18730 = vmatpush3.bf16.msra.mxu1 %v20316_v47  ;;  %v20354_v47 = vld [vmem:[%s21310_s28 + $0xf08] sm:$0xff]  }
 0x1ea   : > { %18731 = vmatprep.subr.bf16.mxu1 %v20319_v50  ;;  %v20357_v50 = vld [vmem:[%s21310_s28 + $0xf40] sm:$0xff]  }
 0x1eb   : > { %18710 = vmatpush3.bf16.msra.mxu0 %v20318_v49  ;;  %v20356_v49 = vld [vmem:[%s21310_s28 + $0xf88] sm:$0xff]  }
 0x1ec   : > { %18711 = vmatprep.subr.bf16.mxu0 %v20321_v52  ;;  %v20359_v52 = vld [vmem:[%s21310_s28 + $0xfc0] sm:$0xff]  }
 0x1ed   : > { %18732 = vmatpush3.bf16.msra.mxu1 %v20320_v51  ;;  %v20358_v51 = vld [vmem:[%s21310_s28 + $0xf00] sm:$0xff]  }
 0x1ee   : > { %18733 = vmatprep.subr.bf16.mxu1 %v20323_v55  ;;  %v20362_v55 = vld [vmem:[%s21310_s28 + $0x1078] sm:$0xff]  }
 0x1ef   : > { %18712 = vmatpush3.bf16.msra.mxu0 %v20322_v53  ;;  %v20361_v53 = vld [vmem:[%s21310_s28 + $0xf80] sm:$0xff]  }
 0x1f0   : > { %18713 = vmatprep.subr.bf16.mxu0 %v20325_v59  ;;  %v3180_v59 = vcombine.high %v3164_v54, %v3164_v54 }
 0x1f1   : > { %18734 = vmatpush3.bf16.msra.mxu1 %v20324_v58  ;;  %v20365_v58 = vld [vmem:[%s21310_s28 + $0x10b8] sm:$0xff]  }
 0x1f2   : > { %18735 = vmatprep.subr.bf16.mxu1 %v20327_v63 }
 0x1f3   : > { %18714 = vmatpush3.bf16.msra.mxu0 %v20326_v62  ;;  %v20367_v62 = vld [vmem:[%s21310_s28 + $0x1030] sm:$0xff]  }
 0x1f4   : > { %18743 = vmatprep.subr.bf16.mxu0 %v20329_v4 }
 0x1f5   : > { %18736 = vmatpush3.bf16.msra.mxu1 %v20328_v3 }
 0x1f6   : > { %v18451_v14 = vpop.f32.mrf.mxu0  ;;  %12607 = vmatmul.mubr.bf16.vlgmr.msra.gmra.mxu0 %v3157_v0  ;;  %18765 = vmatprep.subr.bf16.mxu1 %v20331_v8  ;;  %v20370_v0 = vld [vmem:[%s21310_s28 + $0x1068] sm:$0xff]  }
 0x1f7   : > { %18744 = vmatpush3.bf16.msra.mxu0 %v20330_v6  ;;  %12686 = vmatprep.mubr.bf16.mxu0 %v3178_v7  ;;  %v20372_v8 = vld [vmem:[%s21310_s28 + $0x10e8] sm:$0xff]  }
 0x1f8   : > { %v18452_v17 = vpop.f32.mrf.mxu0  ;;  %v18473_v18 = vpop.f32.mrf.mxu1  ;;  %12647 = vmatmul.mubr.bf16.vlgmr.msra.gmra.mxu1 %v3179_v10  ;;  %18745 = vmatprep.subr.bf16.mxu0 %v20333_v11  ;;  %v20373_v11 = vld [vmem:[%s21310_s28 + $0x10a8] sm:$0xff]  }
 0x1f9   : > { %v18453_v21 = vadd.f32 %v18452_v17, %v18451_v14  ;;  %18766 = vmatpush3.bf16.msra.mxu1 %v20332_v9  ;;  %12726 = vmatprep.mubr.bf16.mxu1 %v3182_v13  ;;  %v20374_v13 = vld [vmem:[%s21310_s28 + $0x1060] sm:$0xff]  }
 0x1fa   : > { %v18454_v22 = vpop.f32.mrf.mxu0  ;;  %v18474_v24 = vpop.f32.mrf.mxu1  ;;  %18767 = vmatprep.subr.bf16.mxu1 %v20335_v15  ;;  %v20376_v17 = vld [vmem:[%s21310_s28 + $0x10e0] sm:$0xff]  }
 0x1fb   : > { %v12129_v23 = vadd.f32 %v18453_v21, %v21884_v38  ;;  %v18475_v26 = vadd.f32 %v18474_v24, %v18473_v18  ;;  %18746 = vmatpush3.bf16.msra.mxu0 %v20334_v12  ;;  %v20346_v38 = vld [vmem:[%s21310_s28 + $0xf18] sm:$0xff]  }
 0x1fc   : > { %v18455_v28 = vpop.f32.mrf.mxu0  ;;  %18747 = vmatprep.subr.bf16.mxu0 %v20337_v20  ;;  %v18476_v30 = vpop.f32.mrf.mxu1  ;;  %v20377_v20 = vld [vmem:[%s21310_s28 + $0x10a0] sm:$0xff]   ;;  %v20378_v21 = vld [vmem:[%s21310_s28 + $0x1058] sm:$0xff]  }
 0x1fd   : > { %v21929_v31 = vadd.f32 %v18475_v26, %v12129_v23  ;;  %18768 = vmatpush3.bf16.msra.mxu1 %v20336_v16  ;;  %v20375_v16 = vld [vmem:[%s21310_s28 + $0x1020] sm:$0xff]   ;;  %v20380_v22 = vld [vmem:[%s21310_s28 + $0x10d8] sm:$0xff]   ;;  %v20383_v23 = vld [vmem:[%s21310_s28 + $0x1010] sm:$0xff]  }
 0x1fe   : > { %18769 = vmatprep.subr.bf16.mxu1 %v20339_v25  ;;  %v18477_v35 = vpop.f32.mrf.mxu1  ;;  %v20381_v24 = vld [vmem:[%s21310_s28 + $0x1098] sm:$0xff]   ;;  %v20382_v25 = vld [vmem:[%s21310_s28 + $0x1050] sm:$0xff]   ;;  %v20386_v28 = vld [vmem:[%s21310_s28 + $0x1048] sm:$0xff]  }
 0x1ff   : > { %18748 = vmatpush3.bf16.msra.mxu0 %v20338_v19  ;;  %v20379_v19 = vld [vmem:[%s21310_s28 + $0x1018] sm:$0xff]   ;;  %v20384_v26 = vld [vmem:[%s21310_s28 + $0x10d0] sm:$0xff]   ;;  %v247_v30 = vld [vmem:[%s21305_s24 + $0x40] sm:$0xff] }
 0x200   : > { %18749 = vmatprep.subr.bf16.mxu0 %v20341_v29  ;;  %v20387_v29 = vld [vmem:[%s21310_s28 + $0x1008] sm:$0xff]  }
 0x201   : > { %18770 = vmatpush3.bf16.msra.mxu1 %v20340_v27  ;;  %v20385_v27 = vld [vmem:[%s21310_s28 + $0x1090] sm:$0xff]   ;;  %v20389_v35 = vld [vmem:[%s21310_s28 + $0x1088] sm:$0xff]  }
 0x202   : > { %18771 = vmatprep.subr.bf16.mxu1 %v20343_v33  ;;  %v3183_v33 = vcombine.high %v247_v30, %v247_v30 }
 0x203   : > { %18750 = vmatpush3.bf16.msra.mxu0 %v20342_v32  ;;  %v3190_v32 = vrot.slane %v247_v30, %v21351_v42 }
 0x204   : > { %18751 = vmatprep.subr.bf16.mxu0 %v20345_v37 }
 0x205   : > { %18772 = vmatpush3.bf16.msra.mxu1 %v20344_v36  ;;  %v20390_v36 = vld [vmem:[%s21310_s28 + $0x1040] sm:$0xff]   ;;  %v3198_v37 = vcombine.high %v3190_v32, %v3190_v32 }
 0x206   : > { %18773 = vmatprep.subr.bf16.mxu1 %v20347_v39  ;;  %v20391_v39 = vld [vmem:[%s21310_s28 + $0x1000] sm:$0xff]  }
 0x207   : > { %18752 = vmatpush3.bf16.msra.mxu0 %v20346_v38  ;;  %v21987_v38 = vrot.slane %v3183_v33, %v21351_v42  ;;  %v20429_v33 = vld [vmem:[%s21310_s28 + $0x12f8] sm:$0xff]  }
 0x208   : > { %18753 = vmatprep.subr.bf16.mxu0 %v20349_v43  ;;  %v3220_v43 = vrot.slane %v3198_v37, %v21351_v42  ;;  %v20431_v37 = vld [vmem:[%s21310_s28 + $0x1270] sm:$0xff]  }
 0x209   : > { %18774 = vmatpush3.bf16.msra.mxu1 %v20348_v40  ;;  %v20392_v40 = vld [vmem:[%s21310_s28 + $0x10c0] sm:$0xff]   ;;  %v3213_v30 = vrot.slane %v21987_v38, %v21351_v42 }
 0x20a   : > { %18775 = vmatprep.subr.bf16.mxu1 %v20351_v45  ;;  %v20393_v45 = vld [vmem:[%s21310_s28 + $0x1080] sm:$0xff]  }
 0x20b   : > { %18754 = vmatpush3.bf16.msra.mxu0 %v20350_v44  ;;  %v3199_v44 = vcombine.high %v21987_v38, %v21987_v38  ;;  %v20433_v38 = vld [vmem:[%s21310_s28 + $0x12f0] sm:$0xff]  }
 0x20c   : > { %18755 = vmatprep.subr.bf16.mxu0 %v20353_v46  ;;  %v20394_v46 = vld [vmem:[%s21310_s28 + $0x1178] sm:$0xff]  }
 0x20d   : > { %18776 = vmatpush3.bf16.msra.mxu1 %v20352_v41  ;;  %v3206_v41 = vrot.slane %v3190_v32, %v21351_v42  ;;  %v20428_v32 = vld [vmem:[%s21310_s28 + $0x1238] sm:$0xff]  }
 0x20e   : > { %18777 = vmatprep.subr.bf16.mxu1 %v20355_v48  ;;  %v20395_v48 = vld [vmem:[%s21310_s28 + $0x1138] sm:$0xff]  }
 0x20f   : > { %18756 = vmatpush3.bf16.msra.mxu0 %v20354_v47  ;;  %v3230_v47 = vcombine.high %v3220_v43, %v3220_v43 }
 0x210   : > { %18757 = vmatprep.subr.bf16.mxu0 %v20357_v50  ;;  %v20396_v50 = vld [vmem:[%s21310_s28 + $0x11f8] sm:$0xff]  }
 0x211   : > { %18778 = vmatpush3.bf16.msra.mxu1 %v20356_v49  ;;  %v3227_v49 = vrot.slane %v3199_v44, %v21351_v42 }
 0x212   : > { %18779 = vmatprep.subr.bf16.mxu1 %v20359_v52  ;;  %v3228_v52 = vcombine.high %v3206_v41, %v3206_v41 }
 0x213   : > { %18758 = vmatpush3.bf16.msra.mxu0 %v20358_v51  ;;  %v20397_v51 = vld [vmem:[%s21310_s28 + $0x11b8] sm:$0xff]  }
 0x214   : > { %18787 = vmatprep.subr.bf16.mxu0 %v20362_v55  ;;  %v3231_v55 = vcombine.high %v3227_v49, %v3227_v49 }
 0x215   : > { %18780 = vmatpush3.bf16.msra.mxu1 %v20361_v53  ;;  %v20398_v53 = vld [vmem:[%s21310_s28 + $0x1170] sm:$0xff]  }
 0x216   : > { %v18495_v63 = vpop.f32.mrf.mxu0  ;;  %12687 = vmatmul.mubr.bf16.vlgmr.msra.gmra.mxu0 %v3164_v54  ;;  %18809 = vmatprep.subr.bf16.mxu1 %v20364_v57  ;;  %v20399_v54 = vld [vmem:[%s21310_s28 + $0x1130] sm:$0xff]  }
 0x217   : > { %18788 = vmatpush3.bf16.msra.mxu0 %v20363_v56  ;;  %12766 = vmatprep.mubr.bf16.mxu0 %v3220_v43  ;;  %v20400_v57 = vld [vmem:[%s21310_s28 + $0x11f0] sm:$0xff]  }
 0x218   : > { %v18496_v2 = vpop.f32.mrf.mxu0  ;;  %v18517_v3 = vpop.f32.mrf.mxu1  ;;  %12727 = vmatmul.mubr.bf16.vlgmr.msra.gmra.mxu1 %v3180_v59  ;;  %18789 = vmatprep.subr.bf16.mxu0 %v20366_v60  ;;  %v20434_v43 = vld [vmem:[%s21310_s28 + $0x12b0] sm:$0xff]  }
 0x219   : > { %v18497_v4 = vadd.f32 %v18496_v2, %v18495_v63  ;;  %18810 = vmatpush3.bf16.msra.mxu1 %v20365_v58  ;;  %12806 = vmatprep.mubr.bf16.mxu1 %v3230_v47  ;;  %v20401_v58 = vld [vmem:[%s21310_s28 + $0x11b0] sm:$0xff]   ;;  %v20436_v47 = vld [vmem:[%s21310_s28 + $0x1228] sm:$0xff]  }
 0x21a   : > { %v18498_v6 = vpop.f32.mrf.mxu0  ;;  %v18518_v7 = vpop.f32.mrf.mxu1  ;;  %18811 = vmatprep.subr.bf16.mxu1 %v20368_v61  ;;  %v20403_v61 = vld [vmem:[%s21310_s28 + $0x1128] sm:$0xff]  }
 0x21b   : > { %v12209_v9 = vadd.f32 %v18497_v4, %v21929_v31  ;;  %v18519_v10 = vadd.f32 %v18518_v7, %v18517_v3  ;;  %18790 = vmatpush3.bf16.msra.mxu0 %v20367_v62  ;;  %v20388_v31 = vld [vmem:[%s21310_s28 + $0x10c8] sm:$0xff]   ;;  %v20406_v7 = vld [vmem:[%s21310_s28 + $0x1160] sm:$0xff]  }
 0x21c   : > { %v18499_v12 = vpop.f32.mrf.mxu0  ;;  %18791 = vmatprep.subr.bf16.mxu0 %v20370_v0  ;;  %v18520_v14 = vpop.f32.mrf.mxu1  ;;  %v20402_v62 = vld [vmem:[%s21310_s28 + $0x1168] sm:$0xff]  }
 0x21d   : > { %v21966_v15 = vadd.f32 %v18519_v10, %v12209_v9  ;;  %18812 = vmatpush3.bf16.msra.mxu1 %v20369_v1  ;;  %v20404_v3 = vld [vmem:[%s21310_s28 + $0x11e8] sm:$0xff]   ;;  %v20407_v10 = vld [vmem:[%s21310_s28 + $0x1120] sm:$0xff]   ;;  %v20410_v14 = vld [vmem:[%s21310_s28 + $0x1158] sm:$0xff]  }
 0x21e   : > { %18813 = vmatprep.subr.bf16.mxu1 %v20372_v8  ;;  %v18521_v18 = vpop.f32.mrf.mxu1 }
 0x21f   : > { %18792 = vmatpush3.bf16.msra.mxu0 %v20371_v5  ;;  %v20405_v5 = vld [vmem:[%s21310_s28 + $0x11a8] sm:$0xff]   ;;  %v20414_v18 = vld [vmem:[%s21310_s28 + $0x1150] sm:$0xff]  }
 0x220   : > { %18793 = vmatprep.subr.bf16.mxu0 %v20374_v13  ;;  %v20409_v13 = vld [vmem:[%s21310_s28 + $0x11a0] sm:$0xff]  }
 0x221   : > { %18814 = vmatpush3.bf16.msra.mxu1 %v20373_v11  ;;  %v20408_v11 = vld [vmem:[%s21310_s28 + $0x11e0] sm:$0xff]  }
 0x222   : > { %18815 = vmatprep.subr.bf16.mxu1 %v20376_v17  ;;  %v20413_v17 = vld [vmem:[%s21310_s28 + $0x1198] sm:$0xff]  }
 0x223   : > { %18794 = vmatpush3.bf16.msra.mxu0 %v20375_v16  ;;  %v20412_v16 = vld [vmem:[%s21310_s28 + $0x11d8] sm:$0xff]  }
 0x224   : > { %18795 = vmatprep.subr.bf16.mxu0 %v20378_v21  ;;  %v20416_v21 = vld [vmem:[%s21310_s28 + $0x11d0] sm:$0xff]  }
 0x225   : > { %18816 = vmatpush3.bf16.msra.mxu1 %v20377_v20  ;;  %v20415_v20 = vld [vmem:[%s21310_s28 + $0x1110] sm:$0xff]  }
 0x226   : > { %18817 = vmatprep.subr.bf16.mxu1 %v20380_v22  ;;  %v20418_v22 = vld [vmem:[%s21310_s28 + $0x1148] sm:$0xff]  }
 0x227   : > { %18796 = vmatpush3.bf16.msra.mxu0 %v20379_v19  ;;  %v20417_v19 = vld [vmem:[%s21310_s28 + $0x1190] sm:$0xff]  }
 0x228   : > { %18797 = vmatprep.subr.bf16.mxu0 %v20382_v25  ;;  %v20420_v25 = vld [vmem:[%s21310_s28 + $0x11c8] sm:$0xff]  }
 0x229   : > { %18818 = vmatpush3.bf16.msra.mxu1 %v20381_v24  ;;  %v20419_v24 = vld [vmem:[%s21310_s28 + $0x1108] sm:$0xff]  }
 0x22a   : > { %18819 = vmatprep.subr.bf16.mxu1 %v20384_v26  ;;  %v20422_v26 = vld [vmem:[%s21310_s28 + $0x1140] sm:$0xff]  }
 0x22b   : > { %18798 = vmatpush3.bf16.msra.mxu0 %v20383_v23  ;;  %v20421_v23 = vld [vmem:[%s21310_s28 + $0x1188] sm:$0xff]  }
 0x22c   : > { %18799 = vmatprep.subr.bf16.mxu0 %v20386_v28  ;;  %v20424_v28 = vld [vmem:[%s21310_s28 + $0x11c0] sm:$0xff]  }
 0x22d   : > { %18820 = vmatpush3.bf16.msra.mxu1 %v20385_v27  ;;  %v20423_v27 = vld [vmem:[%s21310_s28 + $0x1100] sm:$0xff]  }
 0x22e   : > { %18821 = vmatprep.subr.bf16.mxu1 %v20388_v31  ;;  %v20427_v31 = vld [vmem:[%s21310_s28 + $0x1278] sm:$0xff]  }
 0x22f   : > { %18800 = vmatpush3.bf16.msra.mxu0 %v20387_v29  ;;  %v20426_v29 = vld [vmem:[%s21310_s28 + $0x1180] sm:$0xff]  }
 0x230   : > { %18801 = vmatprep.subr.bf16.mxu0 %v20390_v36  ;;  %v3229_v36 = vcombine.high %v3213_v30, %v3213_v30 }
 0x231   : > { %18822 = vmatpush3.bf16.msra.mxu1 %v20389_v35  ;;  %v20430_v35 = vld [vmem:[%s21310_s28 + $0x12b8] sm:$0xff]  }
 0x232   : > { %18823 = vmatprep.subr.bf16.mxu1 %v20392_v40 }
 0x233   : > { %18802 = vmatpush3.bf16.msra.mxu0 %v20391_v39  ;;  %v20432_v39 = vld [vmem:[%s21310_s28 + $0x1230] sm:$0xff]  }
 0x234   : > { %18831 = vmatprep.subr.bf16.mxu0 %v20394_v46 }
 0x235   : > { %18824 = vmatpush3.bf16.msra.mxu1 %v20393_v45 }
 0x236   : > { %v18539_v56 = vpop.f32.mrf.mxu0  ;;  %12767 = vmatmul.mubr.bf16.vlgmr.msra.gmra.mxu0 %v3206_v41  ;;  %18853 = vmatprep.subr.bf16.mxu1 %v20396_v50  ;;  %v20435_v41 = vld [vmem:[%s21310_s28 + $0x1268] sm:$0xff]  }
 0x237   : > { %18832 = vmatpush3.bf16.msra.mxu0 %v20395_v48  ;;  %12846 = vmatprep.mubr.bf16.mxu0 %v3227_v49  ;;  %v20437_v50 = vld [vmem:[%s21310_s28 + $0x12e8] sm:$0xff]  }
 0x238   : > { %v18540_v59 = vpop.f32.mrf.mxu0  ;;  %v18561_v60 = vpop.f32.mrf.mxu1  ;;  %12807 = vmatmul.mubr.bf16.vlgmr.msra.gmra.mxu1 %v3228_v52  ;;  %18833 = vmatprep.subr.bf16.mxu0 %v20398_v53  ;;  %v20438_v53 = vld [vmem:[%s21310_s28 + $0x12a8] sm:$0xff]  }
 0x239   : > { %v18541_v63 = vadd.f32 %v18540_v59, %v18539_v56  ;;  %18854 = vmatpush3.bf16.msra.mxu1 %v20397_v51  ;;  %12886 = vmatprep.mubr.bf16.mxu1 %v3231_v55  ;;  %v20439_v55 = vld [vmem:[%s21310_s28 + $0x1260] sm:$0xff]  }
 0x23a   : > { %v18542_v1 = vpop.f32.mrf.mxu0  ;;  %v18562_v2 = vpop.f32.mrf.mxu1  ;;  %18855 = vmatprep.subr.bf16.mxu1 %v20400_v57  ;;  %v20441_v59 = vld [vmem:[%s21310_s28 + $0x12e0] sm:$0xff]  }
 0x23b   : > { %v12289_v0 = vadd.f32 %v18541_v63, %v21966_v15  ;;  %v18563_v4 = vadd.f32 %v18562_v2, %v18561_v60  ;;  %18834 = vmatpush3.bf16.msra.mxu0 %v20399_v54  ;;  %v20411_v15 = vld [vmem:[%s21310_s28 + $0x1118] sm:$0xff]  }
 0x23c   : > { %v18543_v6 = vpop.f32.mrf.mxu0  ;;  %18835 = vmatprep.subr.bf16.mxu0 %v20402_v62  ;;  %v18564_v8 = vpop.f32.mrf.mxu1  ;;  %v20442_v62 = vld [vmem:[%s21310_s28 + $0x12a0] sm:$0xff]   ;;  %v20443_v63 = vld [vmem:[%s21310_s28 + $0x1258] sm:$0xff]  }
 0x23d   : > { %v22011_v9 = vadd.f32 %v18563_v4, %v12289_v0  ;;  %18856 = vmatpush3.bf16.msra.mxu1 %v20401_v58  ;;  %v20440_v58 = vld [vmem:[%s21310_s28 + $0x1220] sm:$0xff]   ;;  %v20445_v1 = vld [vmem:[%s21310_s28 + $0x12d8] sm:$0xff]   ;;  %v20448_v0 = vld [vmem:[%s21310_s28 + $0x1210] sm:$0xff]  }
 0x23e   : > { %18857 = vmatprep.subr.bf16.mxu1 %v20404_v3  ;;  %v18565_v12 = vpop.f32.mrf.mxu1  ;;  %v20446_v2 = vld [vmem:[%s21310_s28 + $0x1298] sm:$0xff]   ;;  %v20447_v3 = vld [vmem:[%s21310_s28 + $0x1250] sm:$0xff]   ;;  %v20451_v6 = vld [vmem:[%s21310_s28 + $0x1248] sm:$0xff]  }
 0x23f   : > { %18836 = vmatpush3.bf16.msra.mxu0 %v20403_v61  ;;  %v20444_v61 = vld [vmem:[%s21310_s28 + $0x1218] sm:$0xff]   ;;  %v20449_v4 = vld [vmem:[%s21310_s28 + $0x12d0] sm:$0xff]   ;;  %v20453_v8 = vld [vmem:[%s21310_s28 + $0x12c8] sm:$0xff]  }
 0x240   : > { %18837 = vmatprep.subr.bf16.mxu0 %v20406_v7  ;;  %v20452_v7 = vld [vmem:[%s21310_s28 + $0x1208] sm:$0xff]  }
 0x241   : > { %18858 = vmatpush3.bf16.msra.mxu1 %v20405_v5  ;;  %v20450_v5 = vld [vmem:[%s21310_s28 + $0x1290] sm:$0xff]  }
 0x242   : > { %18859 = vmatprep.subr.bf16.mxu1 %v20408_v11 }
 0x243   : > { %18838 = vmatpush3.bf16.msra.mxu0 %v20407_v10  ;;  %v20454_v10 = vld [vmem:[%s21310_s28 + $0x1288] sm:$0xff]  }
 0x244   : > { %18839 = vmatprep.subr.bf16.mxu0 %v20410_v14  ;;  %v20456_v14 = vld [vmem:[%s21310_s28 + $0x1200] sm:$0xff]  }
 0x245   : > { %18860 = vmatpush3.bf16.msra.mxu1 %v20409_v13  ;;  %v20455_v13 = vld [vmem:[%s21310_s28 + $0x1240] sm:$0xff]  }
 0x246   : > { %18861 = vmatprep.subr.bf16.mxu1 %v20412_v16 }
 0x247   : > { %18840 = vmatpush3.bf16.msra.mxu0 %v20411_v15 }
 0x248   : > { %18841 = vmatprep.subr.bf16.mxu0 %v20414_v18 }
 0x249   : > { %18862 = vmatpush3.bf16.msra.mxu1 %v20413_v17  ;;  %v20457_v17 = vld [vmem:[%s21310_s28 + $0x12c0] sm:$0xff]  }
 0x24a   : > { %18863 = vmatprep.subr.bf16.mxu1 %v20416_v21 }
 0x24b   : > { %18842 = vmatpush3.bf16.msra.mxu0 %v20415_v20  ;;  %v20458_v20 = vld [vmem:[%s21310_s28 + $0x1280] sm:$0xff]  }
 0x24c   : > { %18843 = vmatprep.subr.bf16.mxu0 %v20418_v22  ;;  %v20459_v22 = vld [vmem:[%s21310_s28 + $0x1378] sm:$0xff]  }
 0x24d   : > { %18864 = vmatpush3.bf16.msra.mxu1 %v20417_v19 }
 0x24e   : > { %18865 = vmatprep.subr.bf16.mxu1 %v20420_v25  ;;  %v20460_v25 = vld [vmem:[%s21310_s28 + $0x1338] sm:$0xff]  }
 0x24f   : > { %18844 = vmatpush3.bf16.msra.mxu0 %v20419_v24 }
 0x250   : > { %18845 = vmatprep.subr.bf16.mxu0 %v20422_v26  ;;  %v20461_v26 = vld [vmem:[%s21310_s28 + $0x13f8] sm:$0xff]  }
 0x251   : > { %18866 = vmatpush3.bf16.msra.mxu1 %v20421_v23 }
 0x252   : > { %18867 = vmatprep.subr.bf16.mxu1 %v20424_v28 }
 0x253   : > { %18846 = vmatpush3.bf16.msra.mxu0 %v20423_v27  ;;  %v20462_v27 = vld [vmem:[%s21310_s28 + $0x13b8] sm:$0xff]  }
 0x254   : > { %18875 = vmatprep.subr.bf16.mxu0 %v20427_v31 }
 0x255   : > { %18868 = vmatpush3.bf16.msra.mxu1 %v20426_v29  ;;  %v20463_v29 = vld [vmem:[%s21310_s28 + $0x1370] sm:$0xff]  }
 0x256   : > { %v18583_v40 = vpop.f32.mrf.mxu0  ;;  %12847 = vmatmul.mubr.bf16.vlgmr.msra.gmra.mxu0 %v3213_v30  ;;  %18897 = vmatprep.subr.bf16.mxu1 %v20429_v33  ;;  %v20464_v30 = vld [vmem:[%s21310_s28 + $0x1330] sm:$0xff]  }
 0x257   : > { %18876 = vmatpush3.bf16.msra.mxu0 %v20428_v32  ;;  %v20465_v33 = vld [vmem:[%s21310_s28 + $0x13f0] sm:$0xff]  }
 0x258   : > { %v18584_v44 = vpop.f32.mrf.mxu0  ;;  %v18605_v45 = vpop.f32.mrf.mxu1  ;;  %12887 = vmatmul.mubr.bf16.vlgmr.msra.gmra.mxu1 %v3229_v36  ;;  %18877 = vmatprep.subr.bf16.mxu0 %v20431_v37 }
 0x259   : > { %v18585_v46 = vadd.f32 %v18584_v44, %v18583_v40  ;;  %18898 = vmatpush3.bf16.msra.mxu1 %v20430_v35  ;;  %v20466_v35 = vld [vmem:[%s21310_s28 + $0x13b0] sm:$0xff]  }
 0x25a   : > { %v18586_v48 = vpop.f32.mrf.mxu0  ;;  %v18606_v49 = vpop.f32.mrf.mxu1  ;;  %18899 = vmatprep.subr.bf16.mxu1 %v20433_v38  ;;  %v20468_v38 = vld [vmem:[%s21310_s28 + $0x1328] sm:$0xff]  }
 0x25b   : > { %v12369_v51 = vadd.f32 %v18585_v46, %v22011_v9  ;;  %v18607_v52 = vadd.f32 %v18606_v49, %v18605_v45  ;;  %18878 = vmatpush3.bf16.msra.mxu0 %v20432_v39  ;;  %v248_v9 = vld [vmem:[%s21305_s24 + $0x48] sm:$0xff]  ;;  %v20471_v49 = vld [vmem:[%s21310_s28 + $0x1360] sm:$0xff]  }
 0x25c   : > { %v18587_v54 = vpop.f32.mrf.mxu0  ;;  %18879 = vmatprep.subr.bf16.mxu0 %v20435_v41  ;;  %v18608_v56 = vpop.f32.mrf.mxu1  ;;  %v3239_v11 = vrot.slane %v248_v9, %v21351_v42  ;;  %v3232_v12 = vcombine.high %v248_v9, %v248_v9  ;;  %v20467_v39 = vld [vmem:[%s21310_s28 + $0x1368] sm:$0xff]   ;;  %v20492_v9 = vld [vmem:[%s21310_s28 + $0x1478] sm:$0xff]  }
 0x25d   : > { %v22048_v57 = vadd.f32 %v18607_v52, %v12369_v51  ;;  %18900 = vmatpush3.bf16.msra.mxu1 %v20434_v43  ;;  %v20469_v45 = vld [vmem:[%s21310_s28 + $0x13e8] sm:$0xff]   ;;  %v20472_v52 = vld [vmem:[%s21310_s28 + $0x1320] sm:$0xff]   ;;  %v20475_v56 = vld [vmem:[%s21310_s28 + $0x1358] sm:$0xff]  }
 0x25e   : > { %18901 = vmatprep.subr.bf16.mxu1 %v20437_v50  ;;  %v18609_v60 = vpop.f32.mrf.mxu1  ;;  %v3247_v15 = vcombine.high %v3239_v11, %v3239_v11  ;;  %v22070_v16 = vrot.slane %v3232_v12, %v21351_v42  ;;  %v3255_v19 = vrot.slane %v3239_v11, %v21351_v42  ;;  %v20494_v11 = vld [vmem:[%s21310_s28 + $0x14f8] sm:$0xff]  }
 0x25f   : > { %18880 = vmatpush3.bf16.msra.mxu0 %v20436_v47  ;;  %v20470_v47 = vld [vmem:[%s21310_s28 + $0x13a8] sm:$0xff]   ;;  %v20479_v60 = vld [vmem:[%s21310_s28 + $0x1350] sm:$0xff]   ;;  %v20495_v12 = vld [vmem:[%s21310_s28 + $0x14b8] sm:$0xff]  }
 0x260   : > { %18881 = vmatprep.subr.bf16.mxu0 %v20439_v55  ;;  %v3269_v18 = vrot.slane %v3247_v15, %v21351_v42  ;;  %v3248_v21 = vcombine.high %v22070_v16, %v22070_v16  ;;  %v3277_v28 = vcombine.high %v3255_v19, %v3255_v19  ;;  %v20474_v55 = vld [vmem:[%s21310_s28 + $0x13a0] sm:$0xff]   ;;  %v20497_v15 = vld [vmem:[%s21310_s28 + $0x1430] sm:$0xff]  }
 0x261   : > { %18902 = vmatpush3.bf16.msra.mxu1 %v20438_v53  ;;  %v20473_v53 = vld [vmem:[%s21310_s28 + $0x13e0] sm:$0xff]  }
 0x262   : > { %18903 = vmatprep.subr.bf16.mxu1 %v20441_v59  ;;  %12926 = vmatprep.mubr.bf16.mxu0 %v3269_v18  ;;  %v3279_v24 = vcombine.high %v3269_v18, %v3269_v18  ;;  %v3276_v23 = vrot.slane %v3248_v21, %v21351_v42  ;;  %v20478_v59 = vld [vmem:[%s21310_s28 + $0x1398] sm:$0xff]   ;;  %v20499_v18 = vld [vmem:[%s21310_s28 + $0x14b0] sm:$0xff]  }
 0x263   : > { %18882 = vmatpush3.bf16.msra.mxu0 %v20440_v58  ;;  %v20477_v58 = vld [vmem:[%s21310_s28 + $0x13d8] sm:$0xff]  }
 0x264   : > { %18883 = vmatprep.subr.bf16.mxu0 %v20443_v63  ;;  %12966 = vmatprep.mubr.bf16.mxu1 %v3279_v24  ;;  %v3280_v31 = vcombine.high %v3276_v23, %v3276_v23  ;;  %v20481_v63 = vld [vmem:[%s21310_s28 + $0x13d0] sm:$0xff]   ;;  %v20501_v24 = vld [vmem:[%s21310_s28 + $0x1428] sm:$0xff]  }
 0x265   : > { %18904 = vmatpush3.bf16.msra.mxu1 %v20442_v62  ;;  %v20480_v62 = vld [vmem:[%s21310_s28 + $0x1310] sm:$0xff]  }
 0x266   : > { %18905 = vmatprep.subr.bf16.mxu1 %v20445_v1  ;;  %v20483_v1 = vld [vmem:[%s21310_s28 + $0x1348] sm:$0xff]  }
 0x267   : > { %18884 = vmatpush3.bf16.msra.mxu0 %v20444_v61  ;;  %v20482_v61 = vld [vmem:[%s21310_s28 + $0x1390] sm:$0xff]  }
 0x268   : > { %18885 = vmatprep.subr.bf16.mxu0 %v20447_v3  ;;  %v20485_v3 = vld [vmem:[%s21310_s28 + $0x13c8] sm:$0xff]  }
 0x269   : > { %18906 = vmatpush3.bf16.msra.mxu1 %v20446_v2  ;;  %v20484_v2 = vld [vmem:[%s21310_s28 + $0x1308] sm:$0xff]  }
 0x26a   : > { %18907 = vmatprep.subr.bf16.mxu1 %v20449_v4  ;;  %v20487_v4 = vld [vmem:[%s21310_s28 + $0x1340] sm:$0xff]  }
 0x26b   : > { %18886 = vmatpush3.bf16.msra.mxu0 %v20448_v0  ;;  %v20486_v0 = vld [vmem:[%s21310_s28 + $0x1388] sm:$0xff]  }
 0x26c   : > { %18887 = vmatprep.subr.bf16.mxu0 %v20451_v6  ;;  %v20489_v6 = vld [vmem:[%s21310_s28 + $0x13c0] sm:$0xff]  }
 0x26d   : > { %18908 = vmatpush3.bf16.msra.mxu1 %v20450_v5  ;;  %v20488_v5 = vld [vmem:[%s21310_s28 + $0x1300] sm:$0xff]  }
 0x26e   : > { %18909 = vmatprep.subr.bf16.mxu1 %v20453_v8  ;;  %v3262_v8 = vrot.slane %v22070_v16, %v21351_v42  ;;  %v20498_v16 = vld [vmem:[%s21310_s28 + $0x14f0] sm:$0xff]  }
 0x26f   : > { %18888 = vmatpush3.bf16.msra.mxu0 %v20452_v7  ;;  %v20491_v7 = vld [vmem:[%s21310_s28 + $0x1380] sm:$0xff]  }
 0x270   : > { %18889 = vmatprep.subr.bf16.mxu0 %v20455_v13  ;;  %v3278_v13 = vcombine.high %v3262_v8, %v3262_v8 }
 0x271   : > { %18910 = vmatpush3.bf16.msra.mxu1 %v20454_v10  ;;  %v20493_v10 = vld [vmem:[%s21310_s28 + $0x1438] sm:$0xff]  }
 0x272   : > { %18911 = vmatprep.subr.bf16.mxu1 %v20457_v17 }
 0x273   : > { %18890 = vmatpush3.bf16.msra.mxu0 %v20456_v14  ;;  %v20496_v14 = vld [vmem:[%s21310_s28 + $0x1470] sm:$0xff]  }
 0x274   : > { %18919 = vmatprep.subr.bf16.mxu0 %v20459_v22 }
 0x275   : > { %18912 = vmatpush3.bf16.msra.mxu1 %v20458_v20 }
 0x276   : > { %v18627_v32 = vpop.f32.mrf.mxu0  ;;  %12927 = vmatmul.mubr.bf16.vlgmr.msra.gmra.mxu0 %v3255_v19  ;;  %18941 = vmatprep.subr.bf16.mxu1 %v20461_v26  ;;  %v20500_v19 = vld [vmem:[%s21310_s28 + $0x1468] sm:$0xff]  }
 0x277   : > { %18920 = vmatpush3.bf16.msra.mxu0 %v20460_v25  ;;  %13006 = vmatprep.mubr.bf16.mxu0 %v3276_v23  ;;  %v20502_v26 = vld [vmem:[%s21310_s28 + $0x14e8] sm:$0xff]  }
 0x278   : > { %v18628_v36 = vpop.f32.mrf.mxu0  ;;  %v18649_v37 = vpop.f32.mrf.mxu1  ;;  %12967 = vmatmul.mubr.bf16.vlgmr.msra.gmra.mxu1 %v3277_v28  ;;  %18921 = vmatprep.subr.bf16.mxu0 %v20463_v29  ;;  %v20503_v29 = vld [vmem:[%s21310_s28 + $0x14a8] sm:$0xff]  }
 0x279   : > { %v18629_v40 = vadd.f32 %v18628_v36, %v18627_v32  ;;  %18942 = vmatpush3.bf16.msra.mxu1 %v20462_v27  ;;  %13046 = vmatprep.mubr.bf16.mxu1 %v3280_v31  ;;  %v20504_v31 = vld [vmem:[%s21310_s28 + $0x1460] sm:$0xff]  }
 0x27a   : > { %v18630_v43 = vpop.f32.mrf.mxu0  ;;  %v18650_v44 = vpop.f32.mrf.mxu1  ;;  %18943 = vmatprep.subr.bf16.mxu1 %v20465_v33  ;;  %v20506_v36 = vld [vmem:[%s21310_s28 + $0x14e0] sm:$0xff]  }
 0x27b   : > { %v12449_v41 = vadd.f32 %v18629_v40, %v22048_v57  ;;  %v18651_v46 = vadd.f32 %v18650_v44, %v18649_v37  ;;  %18922 = vmatpush3.bf16.msra.mxu0 %v20464_v30  ;;  %v20476_v57 = vld [vmem:[%s21310_s28 + $0x1318] sm:$0xff]  }
 0x27c   : > { %v18631_v48 = vpop.f32.mrf.mxu0  ;;  %18923 = vmatprep.subr.bf16.mxu0 %v20467_v39  ;;  %v18652_v50 = vpop.f32.mrf.mxu1  ;;  %v20507_v39 = vld [vmem:[%s21310_s28 + $0x14a0] sm:$0xff]   ;;  %v20508_v40 = vld [vmem:[%s21310_s28 + $0x1458] sm:$0xff]  }
 0x27d   : > { %v22093_v51 = vadd.f32 %v18651_v46, %v12449_v41  ;;  %18944 = vmatpush3.bf16.msra.mxu1 %v20466_v35  ;;  %v20505_v35 = vld [vmem:[%s21310_s28 + $0x1420] sm:$0xff]   ;;  %v20510_v43 = vld [vmem:[%s21310_s28 + $0x14d8] sm:$0xff]   ;;  %v20513_v41 = vld [vmem:[%s21310_s28 + $0x1410] sm:$0xff]  }
 0x27e   : > { %18945 = vmatprep.subr.bf16.mxu1 %v20469_v45  ;;  %v18653_v54 = vpop.f32.mrf.mxu1  ;;  %v20511_v44 = vld [vmem:[%s21310_s28 + $0x1498] sm:$0xff]   ;;  %v20512_v45 = vld [vmem:[%s21310_s28 + $0x1450] sm:$0xff]   ;;  %v20516_v48 = vld [vmem:[%s21310_s28 + $0x1448] sm:$0xff]  }
 0x27f   : > { %18924 = vmatpush3.bf16.msra.mxu0 %v20468_v38  ;;  %v20509_v38 = vld [vmem:[%s21310_s28 + $0x1418] sm:$0xff]   ;;  %v20514_v46 = vld [vmem:[%s21310_s28 + $0x14d0] sm:$0xff]   ;;  %v20518_v50 = vld [vmem:[%s21310_s28 + $0x14c8] sm:$0xff]  }
 0x280   : > { %18925 = vmatprep.subr.bf16.mxu0 %v20471_v49  ;;  %v20517_v49 = vld [vmem:[%s21310_s28 + $0x1408] sm:$0xff]  }
 0x281   : > { %18946 = vmatpush3.bf16.msra.mxu1 %v20470_v47  ;;  %v20515_v47 = vld [vmem:[%s21310_s28 + $0x1490] sm:$0xff]  }
 0x282   : > { %18947 = vmatprep.subr.bf16.mxu1 %v20473_v53 }
 0x283   : > { %18926 = vmatpush3.bf16.msra.mxu0 %v20472_v52  ;;  %v20519_v52 = vld [vmem:[%s21310_s28 + $0x1488] sm:$0xff]  }
 0x284   : > { %18927 = vmatprep.subr.bf16.mxu0 %v20475_v56  ;;  %v20521_v56 = vld [vmem:[%s21310_s28 + $0x1400] sm:$0xff]  }
 0x285   : > { %18948 = vmatpush3.bf16.msra.mxu1 %v20474_v55  ;;  %v20520_v55 = vld [vmem:[%s21310_s28 + $0x1440] sm:$0xff]  }
 0x286   : > { %18949 = vmatprep.subr.bf16.mxu1 %v20477_v58 }
 0x287   : > { %18928 = vmatpush3.bf16.msra.mxu0 %v20476_v57 }
 0x288   : > { %18929 = vmatprep.subr.bf16.mxu0 %v20479_v60 }
 0x289   : > { %18950 = vmatpush3.bf16.msra.mxu1 %v20478_v59  ;;  %v20522_v59 = vld [vmem:[%s21310_s28 + $0x14c0] sm:$0xff]  }
 0x28a   : > { %18951 = vmatprep.subr.bf16.mxu1 %v20481_v63 }
 0x28b   : > { %18930 = vmatpush3.bf16.msra.mxu0 %v20480_v62  ;;  %v20523_v62 = vld [vmem:[%s21310_s28 + $0x1480] sm:$0xff]  }
 0x28c   : > { %18931 = vmatprep.subr.bf16.mxu0 %v20483_v1  ;;  %v20524_v1 = vld [vmem:[%s21310_s28 + $0x1578] sm:$0xff]  }
 0x28d   : > { %18952 = vmatpush3.bf16.msra.mxu1 %v20482_v61 }
 0x28e   : > { %18953 = vmatprep.subr.bf16.mxu1 %v20485_v3  ;;  %v20525_v3 = vld [vmem:[%s21310_s28 + $0x1538] sm:$0xff]  }
 0x28f   : > { %18932 = vmatpush3.bf16.msra.mxu0 %v20484_v2 }
 0x290   : > { %18933 = vmatprep.subr.bf16.mxu0 %v20487_v4  ;;  %v20526_v4 = vld [vmem:[%s21310_s28 + $0x15f8] sm:$0xff]  }
 0x291   : > { %18954 = vmatpush3.bf16.msra.mxu1 %v20486_v0 }
 0x292   : > { %18955 = vmatprep.subr.bf16.mxu1 %v20489_v6 }
 0x293   : > { %18934 = vmatpush3.bf16.msra.mxu0 %v20488_v5  ;;  %v20527_v5 = vld [vmem:[%s21310_s28 + $0x15b8] sm:$0xff]  }
 0x294   : > { %18963 = vmatprep.subr.bf16.mxu0 %v20492_v9 }
 0x295   : > { %18956 = vmatpush3.bf16.msra.mxu1 %v20491_v7  ;;  %v20528_v7 = vld [vmem:[%s21310_s28 + $0x1570] sm:$0xff]  }
 0x296   : > { %v18671_v17 = vpop.f32.mrf.mxu0  ;;  %13007 = vmatmul.mubr.bf16.vlgmr.msra.gmra.mxu0 %v3262_v8  ;;  %18985 = vmatprep.subr.bf16.mxu1 %v20494_v11  ;;  %v20529_v8 = vld [vmem:[%s21310_s28 + $0x1530] sm:$0xff]  }
 0x297   : > { %18964 = vmatpush3.bf16.msra.mxu0 %v20493_v10  ;;  %v20530_v11 = vld [vmem:[%s21310_s28 + $0x15f0] sm:$0xff]  }
 0x298   : > { %v18672_v20 = vpop.f32.mrf.mxu0  ;;  %v18693_v21 = vpop.f32.mrf.mxu1  ;;  %13047 = vmatmul.mubr.bf16.vlgmr.msra.gmra.mxu1 %v3278_v13  ;;  %18965 = vmatprep.subr.bf16.mxu0 %v20496_v14 }
 0x299   : > { %v18673_v22 = vadd.f32 %v18672_v20, %v18671_v17  ;;  %18986 = vmatpush3.bf16.msra.mxu1 %v20495_v12  ;;  %v20531_v12 = vld [vmem:[%s21310_s28 + $0x15b0] sm:$0xff]  }
 0x29a   : > { %v18674_v25 = vpop.f32.mrf.mxu0  ;;  %v18694_v23 = vpop.f32.mrf.mxu1  ;;  %18987 = vmatprep.subr.bf16.mxu1 %v20498_v16  ;;  %v20533_v16 = vld [vmem:[%s21310_s28 + $0x1528] sm:$0xff]  }
 0x29b   : > { %v12529_v27 = vadd.f32 %v18673_v22, %v22093_v51  ;;  %v18695_v28 = vadd.f32 %v18694_v23, %v18693_v21  ;;  %18966 = vmatpush3.bf16.msra.mxu0 %v20497_v15  ;;  %v249_v51 = vld [vmem:[%s21305_s24 + $0x50] sm:$0xff]  ;;  %v20532_v15 = vld [vmem:[%s21310_s28 + $0x1568] sm:$0xff]   ;;  %v20536_v23 = vld [vmem:[%s21310_s28 + $0x1560] sm:$0xff]  }
 0x29c   : > { %v18675_v30 = vpop.f32.mrf.mxu0  ;;  %18967 = vmatprep.subr.bf16.mxu0 %v20500_v19  ;;  %v18696_v32 = vpop.f32.mrf.mxu1  ;;  %v3288_v53 = vrot.slane %v249_v51, %v21351_v42  ;;  %v3281_v54 = vcombine.high %v249_v51, %v249_v51  ;;  %v20534_v21 = vld [vmem:[%s21310_s28 + $0x15e8] sm:$0xff]   ;;  %v20557_v51 = vld [vmem:[%s21310_s28 + $0x1678] sm:$0xff]  }
 0x29d   : > { %v22130_v33 = vadd.f32 %v18695_v28, %v12529_v27  ;;  %18988 = vmatpush3.bf16.msra.mxu1 %v20499_v18  ;;  %v20537_v28 = vld [vmem:[%s21310_s28 + $0x1520] sm:$0xff]   ;;  %v20540_v32 = vld [vmem:[%s21310_s28 + $0x1558] sm:$0xff]  }
 0x29e   : > { %18989 = vmatprep.subr.bf16.mxu1 %v20502_v26  ;;  %v18697_v37 = vpop.f32.mrf.mxu1  ;;  %v3296_v57 = vcombine.high %v3288_v53, %v3288_v53  ;;  %v22152_v58 = vrot.slane %v3281_v54, %v21351_v42  ;;  %v3304_v61 = vrot.slane %v3288_v53, %v21351_v42  ;;  %v20559_v53 = vld [vmem:[%s21310_s28 + $0x16f8] sm:$0xff]  }
 0x29f   : > { %18968 = vmatpush3.bf16.msra.mxu0 %v20501_v24  ;;  %v20535_v24 = vld [vmem:[%s21310_s28 + $0x15a8] sm:$0xff]   ;;  %v20544_v37 = vld [vmem:[%s21310_s28 + $0x1550] sm:$0xff]   ;;  %v20560_v54 = vld [vmem:[%s21310_s28 + $0x16b8] sm:$0xff]  }
 0x2a0   : > { %18969 = vmatprep.subr.bf16.mxu0 %v20504_v31  ;;  %v3318_v60 = vrot.slane %v3296_v57, %v21351_v42  ;;  %v3297_v63 = vcombine.high %v22152_v58, %v22152_v58  ;;  %v3326_v6 = vcombine.high %v3304_v61, %v3304_v61  ;;  %v20539_v31 = vld [vmem:[%s21310_s28 + $0x15a0] sm:$0xff]   ;;  %v20562_v57 = vld [vmem:[%s21310_s28 + $0x1630] sm:$0xff]  }
 0x2a1   : > { %18990 = vmatpush3.bf16.msra.mxu1 %v20503_v29  ;;  %v20538_v29 = vld [vmem:[%s21310_s28 + $0x15e0] sm:$0xff]  }
 0x2a2   : > { %18991 = vmatprep.subr.bf16.mxu1 %v20506_v36  ;;  %13086 = vmatprep.mubr.bf16.mxu0 %v3318_v60  ;;  %v3328_v2 = vcombine.high %v3318_v60, %v3318_v60  ;;  %v3325_v0 = vrot.slane %v3297_v63, %v21351_v42  ;;  %v20543_v36 = vld [vmem:[%s21310_s28 + $0x1598] sm:$0xff]   ;;  %v20564_v60 = vld [vmem:[%s21310_s28 + $0x16b0] sm:$0xff]  }
 0x2a3   : > { %18970 = vmatpush3.bf16.msra.mxu0 %v20505_v35  ;;  %v20542_v35 = vld [vmem:[%s21310_s28 + $0x15d8] sm:$0xff]  }
 0x2a4   : > { %18971 = vmatprep.subr.bf16.mxu0 %v20508_v40  ;;  %13126 = vmatprep.mubr.bf16.mxu1 %v3328_v2  ;;  %v3329_v9 = vcombine.high %v3325_v0, %v3325_v0  ;;  %v20546_v40 = vld [vmem:[%s21310_s28 + $0x15d0] sm:$0xff]   ;;  %v20566_v2 = vld [vmem:[%s21310_s28 + $0x1628] sm:$0xff]  }
 0x2a5   : > { %18992 = vmatpush3.bf16.msra.mxu1 %v20507_v39  ;;  %v20545_v39 = vld [vmem:[%s21310_s28 + $0x1510] sm:$0xff]  }
 0x2a6   : > { %18993 = vmatprep.subr.bf16.mxu1 %v20510_v43  ;;  %v20548_v43 = vld [vmem:[%s21310_s28 + $0x1548] sm:$0xff]  }
 0x2a7   : > { %18972 = vmatpush3.bf16.msra.mxu0 %v20509_v38  ;;  %v20547_v38 = vld [vmem:[%s21310_s28 + $0x1590] sm:$0xff]  }
 0x2a8   : > { %18973 = vmatprep.subr.bf16.mxu0 %v20512_v45  ;;  %v20550_v45 = vld [vmem:[%s21310_s28 + $0x15c8] sm:$0xff]  }
 0x2a9   : > { %18994 = vmatpush3.bf16.msra.mxu1 %v20511_v44  ;;  %v20549_v44 = vld [vmem:[%s21310_s28 + $0x1508] sm:$0xff]  }
 0x2aa   : > { %18995 = vmatprep.subr.bf16.mxu1 %v20514_v46  ;;  %v20552_v46 = vld [vmem:[%s21310_s28 + $0x1540] sm:$0xff]  }
 0x2ab   : > { %18974 = vmatpush3.bf16.msra.mxu0 %v20513_v41  ;;  %v20551_v41 = vld [vmem:[%s21310_s28 + $0x1588] sm:$0xff]  }
 0x2ac   : > { %18975 = vmatprep.subr.bf16.mxu0 %v20516_v48  ;;  %v20554_v48 = vld [vmem:[%s21310_s28 + $0x15c0] sm:$0xff]  }
 0x2ad   : > { %18996 = vmatpush3.bf16.msra.mxu1 %v20515_v47  ;;  %v20553_v47 = vld [vmem:[%s21310_s28 + $0x1500] sm:$0xff]  }
 0x2ae   : > { %18997 = vmatprep.subr.bf16.mxu1 %v20518_v50  ;;  %v3311_v50 = vrot.slane %v22152_v58, %v21351_v42  ;;  %v20563_v58 = vld [vmem:[%s21310_s28 + $0x16f0] sm:$0xff]  }
 0x2af   : > { %18976 = vmatpush3.bf16.msra.mxu0 %v20517_v49  ;;  %v20556_v49 = vld [vmem:[%s21310_s28 + $0x1580] sm:$0xff]  }
 0x2b0   : > { %18977 = vmatprep.subr.bf16.mxu0 %v20520_v55  ;;  %v3327_v55 = vcombine.high %v3311_v50, %v3311_v50 }
 0x2b1   : > { %18998 = vmatpush3.bf16.msra.mxu1 %v20519_v52  ;;  %v20558_v52 = vld [vmem:[%s21310_s28 + $0x1638] sm:$0xff]  }
 0x2b2   : > { %18999 = vmatprep.subr.bf16.mxu1 %v20522_v59 }
 0x2b3   : > { %18978 = vmatpush3.bf16.msra.mxu0 %v20521_v56  ;;  %v20561_v56 = vld [vmem:[%s21310_s28 + $0x1670] sm:$0xff]  }
 0x2b4   : > { %19007 = vmatprep.subr.bf16.mxu0 %v20524_v1 }
 0x2b5   : > { %19000 = vmatpush3.bf16.msra.mxu1 %v20523_v62 }
 0x2b6   : > { %v18715_v10 = vpop.f32.mrf.mxu0  ;;  %13087 = vmatmul.mubr.bf16.vlgmr.msra.gmra.mxu0 %v3304_v61  ;;  %19029 = vmatprep.subr.bf16.mxu1 %v20526_v4  ;;  %v20565_v61 = vld [vmem:[%s21310_s28 + $0x1668] sm:$0xff]  }
 0x2b7   : > { %19008 = vmatpush3.bf16.msra.mxu0 %v20525_v3  ;;  %13166 = vmatprep.mubr.bf16.mxu0 %v3325_v0  ;;  %v20567_v4 = vld [vmem:[%s21310_s28 + $0x16e8] sm:$0xff]  }
 0x2b8   : > { %v18716_v13 = vpop.f32.mrf.mxu0  ;;  %v18737_v14 = vpop.f32.mrf.mxu1  ;;  %13127 = vmatmul.mubr.bf16.vlgmr.msra.gmra.mxu1 %v3326_v6  ;;  %19009 = vmatprep.subr.bf16.mxu0 %v20528_v7  ;;  %v20568_v7 = vld [vmem:[%s21310_s28 + $0x16a8] sm:$0xff]  }
 0x2b9   : > { %v18717_v17 = vadd.f32 %v18716_v13, %v18715_v10  ;;  %19030 = vmatpush3.bf16.msra.mxu1 %v20527_v5  ;;  %13206 = vmatprep.mubr.bf16.mxu1 %v3329_v9  ;;  %v20569_v9 = vld [vmem:[%s21310_s28 + $0x1660] sm:$0xff]  }
 0x2ba   : > { %v18718_v18 = vpop.f32.mrf.mxu0  ;;  %v18738_v20 = vpop.f32.mrf.mxu1  ;;  %19031 = vmatprep.subr.bf16.mxu1 %v20530_v11  ;;  %v20571_v13 = vld [vmem:[%s21310_s28 + $0x16e0] sm:$0xff]  }
 0x2bb   : > { %v12609_v19 = vadd.f32 %v18717_v17, %v22130_v33  ;;  %v18739_v22 = vadd.f32 %v18738_v20, %v18737_v14  ;;  %19010 = vmatpush3.bf16.msra.mxu0 %v20529_v8  ;;  %v20541_v33 = vld [vmem:[%s21310_s28 + $0x1518] sm:$0xff]  }
 0x2bc   : > { %v18719_v25 = vpop.f32.mrf.mxu0  ;;  %19011 = vmatprep.subr.bf16.mxu0 %v20532_v15  ;;  %v18740_v26 = vpop.f32.mrf.mxu1  ;;  %v20572_v15 = vld [vmem:[%s21310_s28 + $0x16a0] sm:$0xff]   ;;  %v20573_v17 = vld [vmem:[%s21310_s28 + $0x1658] sm:$0xff]  }
 0x2bd   : > { %v22175_v27 = vadd.f32 %v18739_v22, %v12609_v19  ;;  %19032 = vmatpush3.bf16.msra.mxu1 %v20531_v12  ;;  %v20570_v12 = vld [vmem:[%s21310_s28 + $0x1620] sm:$0xff]   ;;  %v20575_v18 = vld [vmem:[%s21310_s28 + $0x16d8] sm:$0xff]   ;;  %v20578_v19 = vld [vmem:[%s21310_s28 + $0x1610] sm:$0xff]  }
 0x2be   : > { %19033 = vmatprep.subr.bf16.mxu1 %v20534_v21  ;;  %v18741_v30 = vpop.f32.mrf.mxu1  ;;  %v20576_v20 = vld [vmem:[%s21310_s28 + $0x1698] sm:$0xff]   ;;  %v20577_v21 = vld [vmem:[%s21310_s28 + $0x1650] sm:$0xff]   ;;  %v20581_v25 = vld [vmem:[%s21310_s28 + $0x1648] sm:$0xff]  }
 0x2bf   : > { %19012 = vmatpush3.bf16.msra.mxu0 %v20533_v16  ;;  %v20574_v16 = vld [vmem:[%s21310_s28 + $0x1618] sm:$0xff]   ;;  %v20579_v22 = vld [vmem:[%s21310_s28 + $0x16d0] sm:$0xff]   ;;  %v20583_v26 = vld [vmem:[%s21310_s28 + $0x16c8] sm:$0xff]  }
 0x2c0   : > { %19013 = vmatprep.subr.bf16.mxu0 %v20536_v23  ;;  %v20582_v23 = vld [vmem:[%s21310_s28 + $0x1608] sm:$0xff]  }
 0x2c1   : > { %19034 = vmatpush3.bf16.msra.mxu1 %v20535_v24  ;;  %v20580_v24 = vld [vmem:[%s21310_s28 + $0x1690] sm:$0xff]  }
 0x2c2   : > { %19035 = vmatprep.subr.bf16.mxu1 %v20538_v29 }
 0x2c3   : > { %19014 = vmatpush3.bf16.msra.mxu0 %v20537_v28  ;;  %v20584_v28 = vld [vmem:[%s21310_s28 + $0x1688] sm:$0xff]  }
 0x2c4   : > { %19015 = vmatprep.subr.bf16.mxu0 %v20540_v32  ;;  %v20586_v32 = vld [vmem:[%s21310_s28 + $0x1600] sm:$0xff]  }
 0x2c5   : > { %19036 = vmatpush3.bf16.msra.mxu1 %v20539_v31  ;;  %v20585_v31 = vld [vmem:[%s21310_s28 + $0x1640] sm:$0xff]  }
 0x2c6   : > { %19037 = vmatprep.subr.bf16.mxu1 %v20542_v35 }
 0x2c7   : > { %19016 = vmatpush3.bf16.msra.mxu0 %v20541_v33 }
 0x2c8   : > { %19017 = vmatprep.subr.bf16.mxu0 %v20544_v37 }
 0x2c9   : > { %19038 = vmatpush3.bf16.msra.mxu1 %v20543_v36  ;;  %v20587_v36 = vld [vmem:[%s21310_s28 + $0x16c0] sm:$0xff]  }
 0x2ca   : > { %19039 = vmatprep.subr.bf16.mxu1 %v20546_v40 }
 0x2cb   : > { %19018 = vmatpush3.bf16.msra.mxu0 %v20545_v39  ;;  %v20588_v39 = vld [vmem:[%s21310_s28 + $0x1680] sm:$0xff]  }
 0x2cc   : > { %19019 = vmatprep.subr.bf16.mxu0 %v20548_v43  ;;  %v20589_v43 = vld [vmem:[%s21310_s28 + $0x1778] sm:$0xff]  }
 0x2cd   : > { %19040 = vmatpush3.bf16.msra.mxu1 %v20547_v38 }
 0x2ce   : > { %19041 = vmatprep.subr.bf16.mxu1 %v20550_v45  ;;  %v20590_v45 = vld [vmem:[%s21310_s28 + $0x1738] sm:$0xff]  }
 0x2cf   : > { %19020 = vmatpush3.bf16.msra.mxu0 %v20549_v44 }
 0x2d0   : > { %19021 = vmatprep.subr.bf16.mxu0 %v20552_v46  ;;  %v20591_v46 = vld [vmem:[%s21310_s28 + $0x17f8] sm:$0xff]  }
 0x2d1   : > { %19042 = vmatpush3.bf16.msra.mxu1 %v20551_v41 }
 0x2d2   : > { %19043 = vmatprep.subr.bf16.mxu1 %v20554_v48 }
 0x2d3   : > { %19022 = vmatpush3.bf16.msra.mxu0 %v20553_v47  ;;  %v20592_v47 = vld [vmem:[%s21310_s28 + $0x17b8] sm:$0xff]  }
 0x2d4   : > { %19051 = vmatprep.subr.bf16.mxu0 %v20557_v51 }
 0x2d5   : > { %19044 = vmatpush3.bf16.msra.mxu1 %v20556_v49  ;;  %v20593_v49 = vld [vmem:[%s21310_s28 + $0x1770] sm:$0xff]  }
 0x2d6   : > { %v18759_v59 = vpop.f32.mrf.mxu0  ;;  %13167 = vmatmul.mubr.bf16.vlgmr.msra.gmra.mxu0 %v3311_v50  ;;  %19073 = vmatprep.subr.bf16.mxu1 %v20559_v53  ;;  %v20594_v50 = vld [vmem:[%s21310_s28 + $0x1730] sm:$0xff]  }
 0x2d7   : > { %19052 = vmatpush3.bf16.msra.mxu0 %v20558_v52  ;;  %v20595_v53 = vld [vmem:[%s21310_s28 + $0x17f0] sm:$0xff]  }
 0x2d8   : > { %v18760_v62 = vpop.f32.mrf.mxu0  ;;  %v18781_v63 = vpop.f32.mrf.mxu1  ;;  %13207 = vmatmul.mubr.bf16.vlgmr.msra.gmra.mxu1 %v3327_v55  ;;  %19053 = vmatprep.subr.bf16.mxu0 %v20561_v56 }
 0x2d9   : > { %v18761_v1 = vadd.f32 %v18760_v62, %v18759_v59  ;;  %19074 = vmatpush3.bf16.msra.mxu1 %v20560_v54  ;;  %v20596_v54 = vld [vmem:[%s21310_s28 + $0x17b0] sm:$0xff]  }
 0x2da   : > { %v18762_v3 = vpop.f32.mrf.mxu0  ;;  %v18782_v0 = vpop.f32.mrf.mxu1  ;;  %19075 = vmatprep.subr.bf16.mxu1 %v20563_v58  ;;  %v20598_v58 = vld [vmem:[%s21310_s28 + $0x1728] sm:$0xff]  }
 0x2db   : > { %v12689_v5 = vadd.f32 %v18761_v1, %v22175_v27  ;;  %v18783_v6 = vadd.f32 %v18782_v0, %v18781_v63  ;;  %19054 = vmatpush3.bf16.msra.mxu0 %v20562_v57  ;;  %v250_v27 = vld [vmem:[%s21305_s24 + $0x58] sm:$0xff]  ;;  %v20597_v57 = vld [vmem:[%s21310_s28 + $0x1768] sm:$0xff]   ;;  %v20601_v0 = vld [vmem:[%s21310_s28 + $0x1760] sm:$0xff]  }
 0x2dc   : > { %v18763_v8 = vpop.f32.mrf.mxu0  ;;  %19055 = vmatprep.subr.bf16.mxu0 %v20565_v61  ;;  %v18784_v10 = vpop.f32.mrf.mxu1  ;;  %v3337_v29 = vrot.slane %v250_v27, %v21351_v42  ;;  %v3330_v30 = vcombine.high %v250_v27, %v250_v27  ;;  %v20599_v63 = vld [vmem:[%s21310_s28 + $0x17e8] sm:$0xff]   ;;  %v20622_v27 = vld [vmem:[%s21310_s28 + $0x1878] sm:$0xff]  }
 0x2dd   : > { %v22212_v11 = vadd.f32 %v18783_v6, %v12689_v5  ;;  %19076 = vmatpush3.bf16.msra.mxu1 %v20564_v60  ;;  %v20602_v6 = vld [vmem:[%s21310_s28 + $0x1720] sm:$0xff]   ;;  %v20605_v10 = vld [vmem:[%s21310_s28 + $0x1758] sm:$0xff]  }
 0x2de   : > { %19077 = vmatprep.subr.bf16.mxu1 %v20567_v4  ;;  %v18785_v14 = vpop.f32.mrf.mxu1  ;;  %v3345_v33 = vcombine.high %v3337_v29, %v3337_v29  ;;  %v22234_v35 = vrot.slane %v3330_v30, %v21351_v42  ;;  %v3353_v38 = vrot.slane %v3337_v29, %v21351_v42  ;;  %v20624_v29 = vld [vmem:[%s21310_s28 + $0x18f8] sm:$0xff]  }
 0x2df   : > { %19056 = vmatpush3.bf16.msra.mxu0 %v20566_v2  ;;  %v20600_v2 = vld [vmem:[%s21310_s28 + $0x17a8] sm:$0xff]   ;;  %v20609_v14 = vld [vmem:[%s21310_s28 + $0x1750] sm:$0xff]   ;;  %v20625_v30 = vld [vmem:[%s21310_s28 + $0x18b8] sm:$0xff]  }
 0x2e0   : > { %19057 = vmatprep.subr.bf16.mxu0 %v20569_v9  ;;  %v3367_v37 = vrot.slane %v3345_v33, %v21351_v42  ;;  %v3346_v40 = vcombine.high %v22234_v35, %v22234_v35  ;;  %v3375_v48 = vcombine.high %v3353_v38, %v3353_v38  ;;  %v20604_v9 = vld [vmem:[%s21310_s28 + $0x17a0] sm:$0xff]   ;;  %v20627_v33 = vld [vmem:[%s21310_s28 + $0x1830] sm:$0xff]  }
 0x2e1   : > { %19078 = vmatpush3.bf16.msra.mxu1 %v20568_v7  ;;  %v20603_v7 = vld [vmem:[%s21310_s28 + $0x17e0] sm:$0xff]  }
 0x2e2   : > { %19079 = vmatprep.subr.bf16.mxu1 %v20571_v13  ;;  %13246 = vmatprep.mubr.bf16.mxu0 %v3367_v37  ;;  %v3377_v44 = vcombine.high %v3367_v37, %v3367_v37  ;;  %v3374_v41 = vrot.slane %v3346_v40, %v21351_v42  ;;  %v20608_v13 = vld [vmem:[%s21310_s28 + $0x1798] sm:$0xff]   ;;  %v20629_v37 = vld [vmem:[%s21310_s28 + $0x18b0] sm:$0xff]  }
 0x2e3   : > { %19058 = vmatpush3.bf16.msra.mxu0 %v20570_v12  ;;  %v20607_v12 = vld [vmem:[%s21310_s28 + $0x17d8] sm:$0xff]  }
 0x2e4   : > { %19059 = vmatprep.subr.bf16.mxu0 %v20573_v17  ;;  %13286 = vmatprep.mubr.bf16.mxu1 %v3377_v44  ;;  %v3378_v51 = vcombine.high %v3374_v41, %v3374_v41  ;;  %v20611_v17 = vld [vmem:[%s21310_s28 + $0x17d0] sm:$0xff]   ;;  %v20631_v44 = vld [vmem:[%s21310_s28 + $0x1828] sm:$0xff]  }
 0x2e5   : > { %19080 = vmatpush3.bf16.msra.mxu1 %v20572_v15  ;;  %v20610_v15 = vld [vmem:[%s21310_s28 + $0x1710] sm:$0xff]  }
 0x2e6   : > { %19081 = vmatprep.subr.bf16.mxu1 %v20575_v18  ;;  %v20613_v18 = vld [vmem:[%s21310_s28 + $0x1748] sm:$0xff]  }
 0x2e7   : > { %19060 = vmatpush3.bf16.msra.mxu0 %v20574_v16  ;;  %v20612_v16 = vld [vmem:[%s21310_s28 + $0x1790] sm:$0xff]  }
 0x2e8   : > { %19061 = vmatprep.subr.bf16.mxu0 %v20577_v21  ;;  %v20615_v21 = vld [vmem:[%s21310_s28 + $0x17c8] sm:$0xff]  }
 0x2e9   : > { %19082 = vmatpush3.bf16.msra.mxu1 %v20576_v20  ;;  %v20614_v20 = vld [vmem:[%s21310_s28 + $0x1708] sm:$0xff]  }
 0x2ea   : > { %19083 = vmatprep.subr.bf16.mxu1 %v20579_v22  ;;  %v20617_v22 = vld [vmem:[%s21310_s28 + $0x1740] sm:$0xff]  }
 0x2eb   : > { %19062 = vmatpush3.bf16.msra.mxu0 %v20578_v19  ;;  %v20616_v19 = vld [vmem:[%s21310_s28 + $0x1788] sm:$0xff]  }
 0x2ec   : > { %19063 = vmatprep.subr.bf16.mxu0 %v20581_v25  ;;  %v20619_v25 = vld [vmem:[%s21310_s28 + $0x17c0] sm:$0xff]  }
 0x2ed   : > { %19084 = vmatpush3.bf16.msra.mxu1 %v20580_v24  ;;  %v20618_v24 = vld [vmem:[%s21310_s28 + $0x1700] sm:$0xff]  }
 0x2ee   : > { %19085 = vmatprep.subr.bf16.mxu1 %v20583_v26  ;;  %v3360_v26 = vrot.slane %v22234_v35, %v21351_v42  ;;  %v20628_v35 = vld [vmem:[%s21310_s28 + $0x18f0] sm:$0xff]  }
 0x2ef   : > { %19064 = vmatpush3.bf16.msra.mxu0 %v20582_v23  ;;  %v20621_v23 = vld [vmem:[%s21310_s28 + $0x1780] sm:$0xff]  }
 0x2f0   : > { %19065 = vmatprep.subr.bf16.mxu0 %v20585_v31  ;;  %v3376_v31 = vcombine.high %v3360_v26, %v3360_v26 }
 0x2f1   : > { %19086 = vmatpush3.bf16.msra.mxu1 %v20584_v28  ;;  %v20623_v28 = vld [vmem:[%s21310_s28 + $0x1838] sm:$0xff]  }
 0x2f2   : > { %19087 = vmatprep.subr.bf16.mxu1 %v20587_v36 }
 0x2f3   : > { %19066 = vmatpush3.bf16.msra.mxu0 %v20586_v32  ;;  %v20626_v32 = vld [vmem:[%s21310_s28 + $0x1870] sm:$0xff]  }
 0x2f4   : > { %19095 = vmatprep.subr.bf16.mxu0 %v20589_v43 }
 0x2f5   : > { %19088 = vmatpush3.bf16.msra.mxu1 %v20588_v39 }
 0x2f6   : > { %v18803_v52 = vpop.f32.mrf.mxu0  ;;  %13247 = vmatmul.mubr.bf16.vlgmr.msra.gmra.mxu0 %v3353_v38  ;;  %19117 = vmatprep.subr.bf16.mxu1 %v20591_v46  ;;  %v20630_v38 = vld [vmem:[%s21310_s28 + $0x1868] sm:$0xff]  }
 0x2f7   : > { %19096 = vmatpush3.bf16.msra.mxu0 %v20590_v45  ;;  %13326 = vmatprep.mubr.bf16.mxu0 %v3374_v41  ;;  %v20632_v46 = vld [vmem:[%s21310_s28 + $0x18e8] sm:$0xff]  }
 0x2f8   : > { %v18804_v55 = vpop.f32.mrf.mxu0  ;;  %v18825_v56 = vpop.f32.mrf.mxu1  ;;  %13287 = vmatmul.mubr.bf16.vlgmr.msra.gmra.mxu1 %v3375_v48  ;;  %19097 = vmatprep.subr.bf16.mxu0 %v20593_v49  ;;  %v20633_v49 = vld [vmem:[%s21310_s28 + $0x18a8] sm:$0xff]  }
 0x2f9   : > { %v18805_v59 = vadd.f32 %v18804_v55, %v18803_v52  ;;  %19118 = vmatpush3.bf16.msra.mxu1 %v20592_v47  ;;  %13366 = vmatprep.mubr.bf16.mxu1 %v3378_v51  ;;  %v20634_v51 = vld [vmem:[%s21310_s28 + $0x1860] sm:$0xff]  }
 0x2fa   : > { %v18806_v60 = vpop.f32.mrf.mxu0  ;;  %v18826_v62 = vpop.f32.mrf.mxu1  ;;  %19119 = vmatprep.subr.bf16.mxu1 %v20595_v53  ;;  %v20636_v55 = vld [vmem:[%s21310_s28 + $0x18e0] sm:$0xff]  }
 0x2fb   : > { %v12769_v61 = vadd.f32 %v18805_v59, %v22212_v11  ;;  %v18827_v1 = vadd.f32 %v18826_v62, %v18825_v56  ;;  %19098 = vmatpush3.bf16.msra.mxu0 %v20594_v50  ;;  %v20606_v11 = vld [vmem:[%s21310_s28 + $0x1718] sm:$0xff]  }
 0x2fc   : > { %v18807_v3 = vpop.f32.mrf.mxu0  ;;  %19099 = vmatprep.subr.bf16.mxu0 %v20597_v57  ;;  %v18828_v4 = vpop.f32.mrf.mxu1  ;;  %v20637_v57 = vld [vmem:[%s21310_s28 + $0x18a0] sm:$0xff]   ;;  %v20638_v59 = vld [vmem:[%s21310_s28 + $0x1858] sm:$0xff]  }
 0x2fd   : > { %v22257_v5 = vadd.f32 %v18827_v1, %v12769_v61  ;;  %19120 = vmatpush3.bf16.msra.mxu1 %v20596_v54  ;;  %v20635_v54 = vld [vmem:[%s21310_s28 + $0x1820] sm:$0xff]   ;;  %v20640_v60 = vld [vmem:[%s21310_s28 + $0x18d8] sm:$0xff]   ;;  %v20643_v61 = vld [vmem:[%s21310_s28 + $0x1810] sm:$0xff]  }
 0x2fe   : > { %19121 = vmatprep.subr.bf16.mxu1 %v20599_v63  ;;  %v18829_v8 = vpop.f32.mrf.mxu1  ;;  %v20641_v62 = vld [vmem:[%s21310_s28 + $0x1898] sm:$0xff]   ;;  %v20642_v63 = vld [vmem:[%s21310_s28 + $0x1850] sm:$0xff]   ;;  %v20646_v3 = vld [vmem:[%s21310_s28 + $0x1848] sm:$0xff]  }
 0x2ff   : > { %19100 = vmatpush3.bf16.msra.mxu0 %v20598_v58  ;;  %v20639_v58 = vld [vmem:[%s21310_s28 + $0x1818] sm:$0xff]   ;;  %v20644_v1 = vld [vmem:[%s21310_s28 + $0x18d0] sm:$0xff]   ;;  %v20648_v4 = vld [vmem:[%s21310_s28 + $0x18c8] sm:$0xff]  }
 0x300   : > { %19101 = vmatprep.subr.bf16.mxu0 %v20601_v0  ;;  %v20647_v0 = vld [vmem:[%s21310_s28 + $0x1808] sm:$0xff]  }
 0x301   : > { %19122 = vmatpush3.bf16.msra.mxu1 %v20600_v2  ;;  %v20645_v2 = vld [vmem:[%s21310_s28 + $0x1890] sm:$0xff]  }
 0x302   : > { %19123 = vmatprep.subr.bf16.mxu1 %v20603_v7  ;;  %v20650_v7 = vld [vmem:[%s21310_s28 + $0x1840] sm:$0xff]  }
 0x303   : > { %19102 = vmatpush3.bf16.msra.mxu0 %v20602_v6  ;;  %v251_v6 = vld [vmem:[%s21305_s24 + $0x60] sm:$0xff] }
 0x304   : > { %19103 = vmatprep.subr.bf16.mxu0 %v20605_v10  ;;  %v3386_v8 = vrot.slane %v251_v6, %v21351_v42  ;;  %v20651_v10 = vld [vmem:[%s21310_s28 + $0x1800] sm:$0xff]  }
 0x305   : > { %19124 = vmatpush3.bf16.msra.mxu1 %v20604_v9  ;;  %v3379_v9 = vcombine.high %v251_v6, %v251_v6  ;;  %v20688_v6 = vld [vmem:[%s21310_s28 + $0x1a38] sm:$0xff]  }
 0x306   : > { %19125 = vmatprep.subr.bf16.mxu1 %v20607_v12  ;;  %v3394_v12 = vcombine.high %v3386_v8, %v3386_v8 }
 0x307   : > { %19104 = vmatpush3.bf16.msra.mxu0 %v20606_v11  ;;  %v20652_v11 = vld [vmem:[%s21310_s28 + $0x18c0] sm:$0xff]  }
 0x308   : > { %19105 = vmatprep.subr.bf16.mxu0 %v20609_v14  ;;  %v20653_v14 = vld [vmem:[%s21310_s28 + $0x1880] sm:$0xff]  }
 0x309   : > { %19126 = vmatpush3.bf16.msra.mxu1 %v20608_v13  ;;  %v22317_v13 = vrot.slane %v3379_v9, %v21351_v42 }
 0x30a   : > { %19127 = vmatprep.subr.bf16.mxu1 %v20611_v17  ;;  %v3402_v17 = vrot.slane %v3386_v8, %v21351_v42  ;;  %v20690_v8 = vld [vmem:[%s21310_s28 + $0x1ab8] sm:$0xff]  }
 0x30b   : > { %19106 = vmatpush3.bf16.msra.mxu0 %v20610_v15  ;;  %v3416_v15 = vrot.slane %v3394_v12, %v21351_v42 }
 0x30c   : > { %19107 = vmatprep.subr.bf16.mxu0 %v20613_v18  ;;  %v3395_v18 = vcombine.high %v22317_v13, %v22317_v13 }
 0x30d   : > { %19128 = vmatpush3.bf16.msra.mxu1 %v20612_v16  ;;  %v20654_v16 = vld [vmem:[%s21310_s28 + $0x1978] sm:$0xff]  }
 0x30e   : > { %19129 = vmatprep.subr.bf16.mxu1 %v20615_v21  ;;  %v3426_v21 = vcombine.high %v3416_v15, %v3416_v15 }
 0x30f   : > { %19108 = vmatpush3.bf16.msra.mxu0 %v20614_v20  ;;  %v20655_v20 = vld [vmem:[%s21310_s28 + $0x1938] sm:$0xff]  }
 0x310   : > { %19109 = vmatprep.subr.bf16.mxu0 %v20617_v22  ;;  %v3423_v22 = vrot.slane %v3395_v18, %v21351_v42 }
 0x311   : > { %19130 = vmatpush3.bf16.msra.mxu1 %v20616_v19  ;;  %v20656_v19 = vld [vmem:[%s21310_s28 + $0x19f8] sm:$0xff]  }
 0x312   : > { %19131 = vmatprep.subr.bf16.mxu1 %v20619_v25  ;;  %v3424_v25 = vcombine.high %v3402_v17, %v3402_v17 }
 0x313   : > { %19110 = vmatpush3.bf16.msra.mxu0 %v20618_v24  ;;  %v20657_v24 = vld [vmem:[%s21310_s28 + $0x19b8] sm:$0xff]  }
 0x314   : > { %19139 = vmatprep.subr.bf16.mxu0 %v20622_v27  ;;  %v3427_v27 = vcombine.high %v3423_v22, %v3423_v22 }
 0x315   : > { %19132 = vmatpush3.bf16.msra.mxu1 %v20621_v23  ;;  %v20658_v23 = vld [vmem:[%s21310_s28 + $0x1970] sm:$0xff]  }
 0x316   : > { %v18847_v36 = vpop.f32.mrf.mxu0  ;;  %13327 = vmatmul.mubr.bf16.vlgmr.msra.gmra.mxu0 %v3360_v26  ;;  %19161 = vmatprep.subr.bf16.mxu1 %v20624_v29  ;;  %v20659_v26 = vld [vmem:[%s21310_s28 + $0x1930] sm:$0xff]  }
 0x317   : > { %19140 = vmatpush3.bf16.msra.mxu0 %v20623_v28  ;;  %13406 = vmatprep.mubr.bf16.mxu0 %v3416_v15  ;;  %v20660_v29 = vld [vmem:[%s21310_s28 + $0x19f0] sm:$0xff]  }
 0x318   : > { %v18848_v39 = vpop.f32.mrf.mxu0  ;;  %v18869_v40 = vpop.f32.mrf.mxu1  ;;  %13367 = vmatmul.mubr.bf16.vlgmr.msra.gmra.mxu1 %v3376_v31  ;;  %19141 = vmatprep.subr.bf16.mxu0 %v20626_v32 }
 0x319   : > { %v18849_v43 = vadd.f32 %v18848_v39, %v18847_v36  ;;  %19162 = vmatpush3.bf16.msra.mxu1 %v20625_v30  ;;  %13446 = vmatprep.mubr.bf16.mxu1 %v3426_v21  ;;  %v20661_v30 = vld [vmem:[%s21310_s28 + $0x19b0] sm:$0xff]  }
 0x31a   : > { %v18850_v45 = vpop.f32.mrf.mxu0  ;;  %v18870_v41 = vpop.f32.mrf.mxu1  ;;  %19163 = vmatprep.subr.bf16.mxu1 %v20628_v35  ;;  %v20663_v35 = vld [vmem:[%s21310_s28 + $0x1928] sm:$0xff]  }
 0x31b   : > { %v12849_v47 = vadd.f32 %v18849_v43, %v22257_v5  ;;  %v18871_v48 = vadd.f32 %v18870_v41, %v18869_v40  ;;  %19142 = vmatpush3.bf16.msra.mxu0 %v20627_v33  ;;  %v20649_v5 = vld [vmem:[%s21310_s28 + $0x1888] sm:$0xff]   ;;  %v20666_v41 = vld [vmem:[%s21310_s28 + $0x1960] sm:$0xff]  }
 0x31c   : > { %v18851_v50 = vpop.f32.mrf.mxu0  ;;  %19143 = vmatprep.subr.bf16.mxu0 %v20630_v38  ;;  %v18872_v52 = vpop.f32.mrf.mxu1  ;;  %v20662_v33 = vld [vmem:[%s21310_s28 + $0x1968] sm:$0xff]  }
 0x31d   : > { %v22294_v53 = vadd.f32 %v18871_v48, %v12849_v47  ;;  %19164 = vmatpush3.bf16.msra.mxu1 %v20629_v37  ;;  %v20664_v40 = vld [vmem:[%s21310_s28 + $0x19e8] sm:$0xff]   ;;  %v20667_v48 = vld [vmem:[%s21310_s28 + $0x1920] sm:$0xff]   ;;  %v20670_v52 = vld [vmem:[%s21310_s28 + $0x1958] sm:$0xff]  }
 0x31e   : > { %19165 = vmatprep.subr.bf16.mxu1 %v20632_v46  ;;  %v18873_v56 = vpop.f32.mrf.mxu1 }
 0x31f   : > { %19144 = vmatpush3.bf16.msra.mxu0 %v20631_v44  ;;  %v20665_v44 = vld [vmem:[%s21310_s28 + $0x19a8] sm:$0xff]   ;;  %v20674_v56 = vld [vmem:[%s21310_s28 + $0x1950] sm:$0xff]  }
 0x320   : > { %19145 = vmatprep.subr.bf16.mxu0 %v20634_v51  ;;  %v20669_v51 = vld [vmem:[%s21310_s28 + $0x19a0] sm:$0xff]  }
 0x321   : > { %19166 = vmatpush3.bf16.msra.mxu1 %v20633_v49  ;;  %v20668_v49 = vld [vmem:[%s21310_s28 + $0x19e0] sm:$0xff]  }
 0x322   : > { %19167 = vmatprep.subr.bf16.mxu1 %v20636_v55  ;;  %v20673_v55 = vld [vmem:[%s21310_s28 + $0x1998] sm:$0xff]  }
 0x323   : > { %19146 = vmatpush3.bf16.msra.mxu0 %v20635_v54  ;;  %v20672_v54 = vld [vmem:[%s21310_s28 + $0x19d8] sm:$0xff]  }
 0x324   : > { %19147 = vmatprep.subr.bf16.mxu0 %v20638_v59  ;;  %v20676_v59 = vld [vmem:[%s21310_s28 + $0x19d0] sm:$0xff]  }
 0x325   : > { %19168 = vmatpush3.bf16.msra.mxu1 %v20637_v57  ;;  %v20675_v57 = vld [vmem:[%s21310_s28 + $0x1910] sm:$0xff]  }
 0x326   : > { %19169 = vmatprep.subr.bf16.mxu1 %v20640_v60  ;;  %v20678_v60 = vld [vmem:[%s21310_s28 + $0x1948] sm:$0xff]  }
 0x327   : > { %19148 = vmatpush3.bf16.msra.mxu0 %v20639_v58  ;;  %v20677_v58 = vld [vmem:[%s21310_s28 + $0x1990] sm:$0xff]  }
 0x328   : > { %19149 = vmatprep.subr.bf16.mxu0 %v20642_v63  ;;  %v20680_v63 = vld [vmem:[%s21310_s28 + $0x19c8] sm:$0xff]  }
 0x329   : > { %19170 = vmatpush3.bf16.msra.mxu1 %v20641_v62  ;;  %v20679_v62 = vld [vmem:[%s21310_s28 + $0x1908] sm:$0xff]  }
 0x32a   : > { %19171 = vmatprep.subr.bf16.mxu1 %v20644_v1  ;;  %v20682_v1 = vld [vmem:[%s21310_s28 + $0x1940] sm:$0xff]  }
 0x32b   : > { %19150 = vmatpush3.bf16.msra.mxu0 %v20643_v61  ;;  %v20681_v61 = vld [vmem:[%s21310_s28 + $0x1988] sm:$0xff]  }
 0x32c   : > { %19151 = vmatprep.subr.bf16.mxu0 %v20646_v3  ;;  %v20684_v3 = vld [vmem:[%s21310_s28 + $0x19c0] sm:$0xff]  }
 0x32d   : > { %19172 = vmatpush3.bf16.msra.mxu1 %v20645_v2  ;;  %v20683_v2 = vld [vmem:[%s21310_s28 + $0x1900] sm:$0xff]  }
 0x32e   : > { %19173 = vmatprep.subr.bf16.mxu1 %v20648_v4  ;;  %v3409_v4 = vrot.slane %v22317_v13, %v21351_v42  ;;  %v20693_v13 = vld [vmem:[%s21310_s28 + $0x1af0] sm:$0xff]  }
 0x32f   : > { %19152 = vmatpush3.bf16.msra.mxu0 %v20647_v0  ;;  %v20686_v0 = vld [vmem:[%s21310_s28 + $0x1980] sm:$0xff]  }
 0x330   : > { %19153 = vmatprep.subr.bf16.mxu0 %v20650_v7  ;;  %v20689_v7 = vld [vmem:[%s21310_s28 + $0x1af8] sm:$0xff]   ;;  %v3425_v9 = vcombine.high %v3409_v4, %v3409_v4 }
 0x331   : > { %19174 = vmatpush3.bf16.msra.mxu1 %v20649_v5  ;;  %v20687_v5 = vld [vmem:[%s21310_s28 + $0x1a78] sm:$0xff]  }
 0x332   : > { %19175 = vmatprep.subr.bf16.mxu1 %v20652_v11  ;;  %v20692_v11 = vld [vmem:[%s21310_s28 + $0x1a30] sm:$0xff]  }
 0x333   : > { %19154 = vmatpush3.bf16.msra.mxu0 %v20651_v10  ;;  %v20691_v10 = vld [vmem:[%s21310_s28 + $0x1a70] sm:$0xff]  }
 0x334   : > { %19183 = vmatprep.subr.bf16.mxu0 %v20654_v16  ;;  %v20695_v16 = vld [vmem:[%s21310_s28 + $0x1a68] sm:$0xff]  }
 0x335   : > { %19176 = vmatpush3.bf16.msra.mxu1 %v20653_v14  ;;  %v20694_v14 = vld [vmem:[%s21310_s28 + $0x1ab0] sm:$0xff]  }
 0x336   : > { %v18891_v28 = vpop.f32.mrf.mxu0  ;;  %13407 = vmatmul.mubr.bf16.vlgmr.msra.gmra.mxu0 %v3402_v17  ;;  %19205 = vmatprep.subr.bf16.mxu1 %v20656_v19 }
 0x337   : > { %19184 = vmatpush3.bf16.msra.mxu0 %v20655_v20  ;;  %13486 = vmatprep.mubr.bf16.mxu0 %v3423_v22  ;;  %v20696_v20 = vld [vmem:[%s21310_s28 + $0x1a28] sm:$0xff]  }
 0x338   : > { %v18892_v31 = vpop.f32.mrf.mxu0  ;;  %v18913_v32 = vpop.f32.mrf.mxu1  ;;  %13447 = vmatmul.mubr.bf16.vlgmr.msra.gmra.mxu1 %v3424_v25  ;;  %19185 = vmatprep.subr.bf16.mxu0 %v20658_v23  ;;  %v20697_v22 = vld [vmem:[%s21310_s28 + $0x1ae8] sm:$0xff]  }
 0x339   : > { %v18893_v36 = vadd.f32 %v18892_v31, %v18891_v28  ;;  %19206 = vmatpush3.bf16.msra.mxu1 %v20657_v24  ;;  %13526 = vmatprep.mubr.bf16.mxu1 %v3427_v27  ;;  %v20698_v23 = vld [vmem:[%s21310_s28 + $0x1aa8] sm:$0xff]   ;;  %v20699_v27 = vld [vmem:[%s21310_s28 + $0x1a60] sm:$0xff]  }
 0x33a   : > { %v18894_v37 = vpop.f32.mrf.mxu0  ;;  %v18914_v39 = vpop.f32.mrf.mxu1  ;;  %19207 = vmatprep.subr.bf16.mxu1 %v20660_v29  ;;  %v20701_v31 = vld [vmem:[%s21310_s28 + $0x1ae0] sm:$0xff]  }
 0x33b   : > { %v12929_v38 = vadd.f32 %v18893_v36, %v22294_v53  ;;  %v18915_v43 = vadd.f32 %v18914_v39, %v18913_v32  ;;  %19186 = vmatpush3.bf16.msra.mxu0 %v20659_v26  ;;  %v20671_v53 = vld [vmem:[%s21310_s28 + $0x1918] sm:$0xff]  }
 0x33c   : > { %v18895_v45 = vpop.f32.mrf.mxu0  ;;  %19187 = vmatprep.subr.bf16.mxu0 %v20662_v33  ;;  %v18916_v46 = vpop.f32.mrf.mxu1  ;;  %v20702_v33 = vld [vmem:[%s21310_s28 + $0x1aa0] sm:$0xff]   ;;  %v20703_v36 = vld [vmem:[%s21310_s28 + $0x1a58] sm:$0xff]  }
 0x33d   : > { %v22339_v47 = vadd.f32 %v18915_v43, %v12929_v38  ;;  %19208 = vmatpush3.bf16.msra.mxu1 %v20661_v30  ;;  %v20700_v30 = vld [vmem:[%s21310_s28 + $0x1a20] sm:$0xff]   ;;  %v20705_v37 = vld [vmem:[%s21310_s28 + $0x1ad8] sm:$0xff]   ;;  %v20708_v38 = vld [vmem:[%s21310_s28 + $0x1a10] sm:$0xff]  }
 0x33e   : > { %19209 = vmatprep.subr.bf16.mxu1 %v20664_v40  ;;  %v18917_v50 = vpop.f32.mrf.mxu1  ;;  %v20706_v39 = vld [vmem:[%s21310_s28 + $0x1a98] sm:$0xff]   ;;  %v20707_v40 = vld [vmem:[%s21310_s28 + $0x1a50] sm:$0xff]   ;;  %v20711_v45 = vld [vmem:[%s21310_s28 + $0x1a48] sm:$0xff]  }
 0x33f   : > { %19188 = vmatpush3.bf16.msra.mxu0 %v20663_v35  ;;  %v20704_v35 = vld [vmem:[%s21310_s28 + $0x1a18] sm:$0xff]   ;;  %v20709_v43 = vld [vmem:[%s21310_s28 + $0x1ad0] sm:$0xff]   ;;  %v20713_v46 = vld [vmem:[%s21310_s28 + $0x1ac8] sm:$0xff]  }
 0x340   : > { %19189 = vmatprep.subr.bf16.mxu0 %v20666_v41  ;;  %v20712_v41 = vld [vmem:[%s21310_s28 + $0x1a08] sm:$0xff]  }
 0x341   : > { %19210 = vmatpush3.bf16.msra.mxu1 %v20665_v44  ;;  %v20710_v44 = vld [vmem:[%s21310_s28 + $0x1a90] sm:$0xff]  }
 0x342   : > { %19211 = vmatprep.subr.bf16.mxu1 %v20668_v49  ;;  %v20715_v49 = vld [vmem:[%s21310_s28 + $0x1a40] sm:$0xff]  }
 0x343   : > { %19190 = vmatpush3.bf16.msra.mxu0 %v20667_v48  ;;  %v252_v48 = vld [vmem:[%s21305_s24 + $0x68] sm:$0xff] }
 0x344   : > { %19191 = vmatprep.subr.bf16.mxu0 %v20670_v52  ;;  %v3435_v50 = vrot.slane %v252_v48, %v21351_v42  ;;  %v20716_v52 = vld [vmem:[%s21310_s28 + $0x1a00] sm:$0xff]  }
 0x345   : > { %19212 = vmatpush3.bf16.msra.mxu1 %v20669_v51  ;;  %v3428_v51 = vcombine.high %v252_v48, %v252_v48  ;;  %v20753_v48 = vld [vmem:[%s21310_s28 + $0x1c38] sm:$0xff]  }
 0x346   : > { %19213 = vmatprep.subr.bf16.mxu1 %v20672_v54  ;;  %v3443_v54 = vcombine.high %v3435_v50, %v3435_v50 }
 0x347   : > { %19192 = vmatpush3.bf16.msra.mxu0 %v20671_v53  ;;  %v20717_v53 = vld [vmem:[%s21310_s28 + $0x1ac0] sm:$0xff]  }
 0x348   : > { %19193 = vmatprep.subr.bf16.mxu0 %v20674_v56  ;;  %v20718_v56 = vld [vmem:[%s21310_s28 + $0x1a80] sm:$0xff]  }
 0x349   : > { %19214 = vmatpush3.bf16.msra.mxu1 %v20673_v55  ;;  %v22399_v55 = vrot.slane %v3428_v51, %v21351_v42 }
 0x34a   : > { %19215 = vmatprep.subr.bf16.mxu1 %v20676_v59  ;;  %v3451_v59 = vrot.slane %v3435_v50, %v21351_v42  ;;  %v20755_v50 = vld [vmem:[%s21310_s28 + $0x1cb8] sm:$0xff]  }
 0x34b   : > { %19194 = vmatpush3.bf16.msra.mxu0 %v20675_v57  ;;  %v3465_v57 = vrot.slane %v3443_v54, %v21351_v42 }
 0x34c   : > { %19195 = vmatprep.subr.bf16.mxu0 %v20678_v60  ;;  %v3444_v60 = vcombine.high %v22399_v55, %v22399_v55 }
 0x34d   : > { %19216 = vmatpush3.bf16.msra.mxu1 %v20677_v58  ;;  %v20719_v58 = vld [vmem:[%s21310_s28 + $0x1b78] sm:$0xff]  }
 0x34e   : > { %19217 = vmatprep.subr.bf16.mxu1 %v20680_v63  ;;  %v3475_v63 = vcombine.high %v3465_v57, %v3465_v57 }
 0x34f   : > { %19196 = vmatpush3.bf16.msra.mxu0 %v20679_v62  ;;  %v20720_v62 = vld [vmem:[%s21310_s28 + $0x1b38] sm:$0xff]  }
 0x350   : > { %19197 = vmatprep.subr.bf16.mxu0 %v20682_v1  ;;  %v3472_v1 = vrot.slane %v3444_v60, %v21351_v42 }
 0x351   : > { %19218 = vmatpush3.bf16.msra.mxu1 %v20681_v61  ;;  %v20721_v61 = vld [vmem:[%s21310_s28 + $0x1bf8] sm:$0xff]  }
 0x352   : > { %19219 = vmatprep.subr.bf16.mxu1 %v20684_v3  ;;  %v3473_v3 = vcombine.high %v3451_v59, %v3451_v59 }
 0x353   : > { %19198 = vmatpush3.bf16.msra.mxu0 %v20683_v2  ;;  %v20722_v2 = vld [vmem:[%s21310_s28 + $0x1bb8] sm:$0xff]  }
 0x354   : > { %19227 = vmatprep.subr.bf16.mxu0 %v20687_v5  ;;  %v3476_v5 = vcombine.high %v3472_v1, %v3472_v1 }
 0x355   : > { %19220 = vmatpush3.bf16.msra.mxu1 %v20686_v0  ;;  %v20723_v0 = vld [vmem:[%s21310_s28 + $0x1b70] sm:$0xff]  }
 0x356   : > { %v18935_v12 = vpop.f32.mrf.mxu0  ;;  %13487 = vmatmul.mubr.bf16.vlgmr.msra.gmra.mxu0 %v3409_v4  ;;  %19249 = vmatprep.subr.bf16.mxu1 %v20689_v7  ;;  %v20724_v4 = vld [vmem:[%s21310_s28 + $0x1b30] sm:$0xff]  }
 0x357   : > { %19228 = vmatpush3.bf16.msra.mxu0 %v20688_v6  ;;  %13566 = vmatprep.mubr.bf16.mxu0 %v3465_v57  ;;  %v20725_v7 = vld [vmem:[%s21310_s28 + $0x1bf0] sm:$0xff]  }
 0x358   : > { %v18936_v15 = vpop.f32.mrf.mxu0  ;;  %v18957_v17 = vpop.f32.mrf.mxu1  ;;  %13527 = vmatmul.mubr.bf16.vlgmr.msra.gmra.mxu1 %v3425_v9  ;;  %19229 = vmatprep.subr.bf16.mxu0 %v20691_v10 }
 0x359   : > { %v18937_v18 = vadd.f32 %v18936_v15, %v18935_v12  ;;  %19250 = vmatpush3.bf16.msra.mxu1 %v20690_v8  ;;  %13606 = vmatprep.mubr.bf16.mxu1 %v3475_v63  ;;  %v20726_v8 = vld [vmem:[%s21310_s28 + $0x1bb0] sm:$0xff]  }
 0x35a   : > { %v18938_v21 = vpop.f32.mrf.mxu0  ;;  %v18958_v19 = vpop.f32.mrf.mxu1  ;;  %19251 = vmatprep.subr.bf16.mxu1 %v20693_v13  ;;  %v20728_v13 = vld [vmem:[%s21310_s28 + $0x1b28] sm:$0xff]  }
 0x35b   : > { %v13009_v24 = vadd.f32 %v18937_v18, %v22339_v47  ;;  %v18959_v25 = vadd.f32 %v18958_v19, %v18957_v17  ;;  %19230 = vmatpush3.bf16.msra.mxu0 %v20692_v11  ;;  %v20714_v47 = vld [vmem:[%s21310_s28 + $0x1a88] sm:$0xff]   ;;  %v20731_v19 = vld [vmem:[%s21310_s28 + $0x1b60] sm:$0xff]  }
 0x35c   : > { %v18939_v26 = vpop.f32.mrf.mxu0  ;;  %19231 = vmatprep.subr.bf16.mxu0 %v20695_v16  ;;  %v18960_v28 = vpop.f32.mrf.mxu1  ;;  %v20727_v11 = vld [vmem:[%s21310_s28 + $0x1b68] sm:$0xff]  }
 0x35d   : > { %v22376_v29 = vadd.f32 %v18959_v25, %v13009_v24  ;;  %19252 = vmatpush3.bf16.msra.mxu1 %v20694_v14  ;;  %v20729_v17 = vld [vmem:[%s21310_s28 + $0x1be8] sm:$0xff]   ;;  %v20732_v25 = vld [vmem:[%s21310_s28 + $0x1b20] sm:$0xff]   ;;  %v20735_v28 = vld [vmem:[%s21310_s28 + $0x1b58] sm:$0xff]  }
 0x35e   : > { %19253 = vmatprep.subr.bf16.mxu1 %v20697_v22  ;;  %v18961_v32 = vpop.f32.mrf.mxu1 }
 0x35f   : > { %19232 = vmatpush3.bf16.msra.mxu0 %v20696_v20  ;;  %v20730_v20 = vld [vmem:[%s21310_s28 + $0x1ba8] sm:$0xff]   ;;  %v20739_v32 = vld [vmem:[%s21310_s28 + $0x1b50] sm:$0xff]  }
 0x360   : > { %19233 = vmatprep.subr.bf16.mxu0 %v20699_v27  ;;  %v20734_v27 = vld [vmem:[%s21310_s28 + $0x1ba0] sm:$0xff]  }
 0x361   : > { %19254 = vmatpush3.bf16.msra.mxu1 %v20698_v23  ;;  %v20733_v23 = vld [vmem:[%s21310_s28 + $0x1be0] sm:$0xff]  }
 0x362   : > { %19255 = vmatprep.subr.bf16.mxu1 %v20701_v31  ;;  %v20738_v31 = vld [vmem:[%s21310_s28 + $0x1b98] sm:$0xff]  }
 0x363   : > { %19234 = vmatpush3.bf16.msra.mxu0 %v20700_v30  ;;  %v20737_v30 = vld [vmem:[%s21310_s28 + $0x1bd8] sm:$0xff]  }
 0x364   : > { %19235 = vmatprep.subr.bf16.mxu0 %v20703_v36  ;;  %v20741_v36 = vld [vmem:[%s21310_s28 + $0x1bd0] sm:$0xff]  }
 0x365   : > { %19256 = vmatpush3.bf16.msra.mxu1 %v20702_v33  ;;  %v20740_v33 = vld [vmem:[%s21310_s28 + $0x1b10] sm:$0xff]  }
 0x366   : > { %19257 = vmatprep.subr.bf16.mxu1 %v20705_v37  ;;  %v20743_v37 = vld [vmem:[%s21310_s28 + $0x1b48] sm:$0xff]  }
 0x367   : > { %19236 = vmatpush3.bf16.msra.mxu0 %v20704_v35  ;;  %v20742_v35 = vld [vmem:[%s21310_s28 + $0x1b90] sm:$0xff]  }
 0x368   : > { %19237 = vmatprep.subr.bf16.mxu0 %v20707_v40  ;;  %v20745_v40 = vld [vmem:[%s21310_s28 + $0x1bc8] sm:$0xff]  }
 0x369   : > { %19258 = vmatpush3.bf16.msra.mxu1 %v20706_v39  ;;  %v20744_v39 = vld [vmem:[%s21310_s28 + $0x1b08] sm:$0xff]  }
 0x36a   : > { %19259 = vmatprep.subr.bf16.mxu1 %v20709_v43  ;;  %v20747_v43 = vld [vmem:[%s21310_s28 + $0x1b40] sm:$0xff]  }
 0x36b   : > { %19238 = vmatpush3.bf16.msra.mxu0 %v20708_v38  ;;  %v20746_v38 = vld [vmem:[%s21310_s28 + $0x1b88] sm:$0xff]  }
 0x36c   : > { %19239 = vmatprep.subr.bf16.mxu0 %v20711_v45  ;;  %v20749_v45 = vld [vmem:[%s21310_s28 + $0x1bc0] sm:$0xff]  }
 0x36d   : > { %19260 = vmatpush3.bf16.msra.mxu1 %v20710_v44  ;;  %v20748_v44 = vld [vmem:[%s21310_s28 + $0x1b00] sm:$0xff]  }
 0x36e   : > { %19261 = vmatprep.subr.bf16.mxu1 %v20713_v46  ;;  %v3458_v46 = vrot.slane %v22399_v55, %v21351_v42  ;;  %v20758_v55 = vld [vmem:[%s21310_s28 + $0x1cf0] sm:$0xff]  }
 0x36f   : > { %19240 = vmatpush3.bf16.msra.mxu0 %v20712_v41  ;;  %v20751_v41 = vld [vmem:[%s21310_s28 + $0x1b80] sm:$0xff]  }
 0x370   : > { %19241 = vmatprep.subr.bf16.mxu0 %v20715_v49  ;;  %v20754_v49 = vld [vmem:[%s21310_s28 + $0x1cf8] sm:$0xff]   ;;  %v3474_v51 = vcombine.high %v3458_v46, %v3458_v46 }
 0x371   : > { %19262 = vmatpush3.bf16.msra.mxu1 %v20714_v47  ;;  %v20752_v47 = vld [vmem:[%s21310_s28 + $0x1c78] sm:$0xff]  }
 0x372   : > { %19263 = vmatprep.subr.bf16.mxu1 %v20717_v53  ;;  %v20757_v53 = vld [vmem:[%s21310_s28 + $0x1c30] sm:$0xff]  }
 0x373   : > { %19242 = vmatpush3.bf16.msra.mxu0 %v20716_v52  ;;  %v20756_v52 = vld [vmem:[%s21310_s28 + $0x1c70] sm:$0xff]  }
 0x374   : > { %19271 = vmatprep.subr.bf16.mxu0 %v20719_v58  ;;  %v20760_v58 = vld [vmem:[%s21310_s28 + $0x1c68] sm:$0xff]  }
 0x375   : > { %19264 = vmatpush3.bf16.msra.mxu1 %v20718_v56  ;;  %v20759_v56 = vld [vmem:[%s21310_s28 + $0x1cb0] sm:$0xff]  }
 0x376   : > { %v18979_v6 = vpop.f32.mrf.mxu0  ;;  %13567 = vmatmul.mubr.bf16.vlgmr.msra.gmra.mxu0 %v3451_v59  ;;  %19293 = vmatprep.subr.bf16.mxu1 %v20721_v61 }
 0x377   : > { %19272 = vmatpush3.bf16.msra.mxu0 %v20720_v62  ;;  %13646 = vmatprep.mubr.bf16.mxu0 %v3472_v1  ;;  %v20761_v62 = vld [vmem:[%s21310_s28 + $0x1c28] sm:$0xff]  }
 0x378   : > { %v18980_v9 = vpop.f32.mrf.mxu0  ;;  %v19001_v10 = vpop.f32.mrf.mxu1  ;;  %13607 = vmatmul.mubr.bf16.vlgmr.msra.gmra.mxu1 %v3473_v3  ;;  %19273 = vmatprep.subr.bf16.mxu0 %v20723_v0  ;;  %v20762_v1 = vld [vmem:[%s21310_s28 + $0x1ce8] sm:$0xff]  }
 0x379   : > { %v18981_v12 = vadd.f32 %v18980_v9, %v18979_v6  ;;  %19294 = vmatpush3.bf16.msra.mxu1 %v20722_v2  ;;  %13686 = vmatprep.mubr.bf16.mxu1 %v3476_v5  ;;  %v20763_v0 = vld [vmem:[%s21310_s28 + $0x1ca8] sm:$0xff]   ;;  %v20764_v5 = vld [vmem:[%s21310_s28 + $0x1c60] sm:$0xff]  }
 0x37a   : > { %v18982_v14 = vpop.f32.mrf.mxu0  ;;  %v19002_v15 = vpop.f32.mrf.mxu1  ;;  %19295 = vmatprep.subr.bf16.mxu1 %v20725_v7  ;;  %v20766_v9 = vld [vmem:[%s21310_s28 + $0x1ce0] sm:$0xff]  }
 0x37b   : > { %v13089_v16 = vadd.f32 %v18981_v12, %v22376_v29  ;;  %v19003_v18 = vadd.f32 %v19002_v15, %v19001_v10  ;;  %19274 = vmatpush3.bf16.msra.mxu0 %v20724_v4  ;;  %v20736_v29 = vld [vmem:[%s21310_s28 + $0x1b18] sm:$0xff]  }
 0x37c   : > { %v18983_v21 = vpop.f32.mrf.mxu0  ;;  %19275 = vmatprep.subr.bf16.mxu0 %v20727_v11  ;;  %v19004_v22 = vpop.f32.mrf.mxu1  ;;  %v20767_v11 = vld [vmem:[%s21310_s28 + $0x1ca0] sm:$0xff]   ;;  %v20768_v12 = vld [vmem:[%s21310_s28 + $0x1c58] sm:$0xff]  }
 0x37d   : > { %v22421_v24 = vadd.f32 %v19003_v18, %v13089_v16  ;;  %19296 = vmatpush3.bf16.msra.mxu1 %v20726_v8  ;;  %v20765_v8 = vld [vmem:[%s21310_s28 + $0x1c20] sm:$0xff]   ;;  %v20770_v14 = vld [vmem:[%s21310_s28 + $0x1cd8] sm:$0xff]   ;;  %v20773_v16 = vld [vmem:[%s21310_s28 + $0x1c10] sm:$0xff]  }
 0x37e   : > { %19297 = vmatprep.subr.bf16.mxu1 %v20729_v17  ;;  %v19005_v26 = vpop.f32.mrf.mxu1  ;;  %v20771_v15 = vld [vmem:[%s21310_s28 + $0x1c98] sm:$0xff]   ;;  %v20772_v17 = vld [vmem:[%s21310_s28 + $0x1c50] sm:$0xff]   ;;  %v20776_v21 = vld [vmem:[%s21310_s28 + $0x1c48] sm:$0xff]  }
 0x37f   : > { %19276 = vmatpush3.bf16.msra.mxu0 %v20728_v13  ;;  %v20769_v13 = vld [vmem:[%s21310_s28 + $0x1c18] sm:$0xff]   ;;  %v20774_v18 = vld [vmem:[%s21310_s28 + $0x1cd0] sm:$0xff]   ;;  %v20778_v22 = vld [vmem:[%s21310_s28 + $0x1cc8] sm:$0xff]  }
 0x380   : > { %19277 = vmatprep.subr.bf16.mxu0 %v20731_v19  ;;  %v20777_v19 = vld [vmem:[%s21310_s28 + $0x1c08] sm:$0xff]  }
 0x381   : > { %19298 = vmatpush3.bf16.msra.mxu1 %v20730_v20  ;;  %v20775_v20 = vld [vmem:[%s21310_s28 + $0x1c90] sm:$0xff]  }
 0x382   : > { %19299 = vmatprep.subr.bf16.mxu1 %v20733_v23  ;;  %v20780_v23 = vld [vmem:[%s21310_s28 + $0x1c40] sm:$0xff]  }
 0x383   : > { %19278 = vmatpush3.bf16.msra.mxu0 %v20732_v25  ;;  %v253_v25 = vld [vmem:[%s21305_s24 + $0x70] sm:$0xff] }
 0x384   : > { %19279 = vmatprep.subr.bf16.mxu0 %v20735_v28  ;;  %v3484_v26 = vrot.slane %v253_v25, %v21351_v42  ;;  %v20781_v28 = vld [vmem:[%s21310_s28 + $0x1c00] sm:$0xff]  }
 0x385   : > { %19300 = vmatpush3.bf16.msra.mxu1 %v20734_v27  ;;  %v3477_v27 = vcombine.high %v253_v25, %v253_v25  ;;  %v20818_v25 = vld [vmem:[%s21310_s28 + $0x1e38] sm:$0xff]  }
 0x386   : > { %19301 = vmatprep.subr.bf16.mxu1 %v20737_v30  ;;  %v3492_v30 = vcombine.high %v3484_v26, %v3484_v26 }
 0x387   : > { %19280 = vmatpush3.bf16.msra.mxu0 %v20736_v29  ;;  %v20782_v29 = vld [vmem:[%s21310_s28 + $0x1cc0] sm:$0xff]  }
 0x388   : > { %19281 = vmatprep.subr.bf16.mxu0 %v20739_v32  ;;  %v20783_v32 = vld [vmem:[%s21310_s28 + $0x1c80] sm:$0xff]  }
 0x389   : > { %19302 = vmatpush3.bf16.msra.mxu1 %v20738_v31  ;;  %v22481_v31 = vrot.slane %v3477_v27, %v21351_v42 }
 0x38a   : > { %19303 = vmatprep.subr.bf16.mxu1 %v20741_v36  ;;  %v3514_v36 = vrot.slane %v3492_v30, %v21351_v42 }
 0x38b   : > { %19282 = vmatpush3.bf16.msra.mxu0 %v20740_v33  ;;  %v3500_v33 = vrot.slane %v3484_v26, %v21351_v42  ;;  %v20820_v26 = vld [vmem:[%s21310_s28 + $0x1eb8] sm:$0xff]  }
 0x38c   : > { %19283 = vmatprep.subr.bf16.mxu0 %v20743_v37  ;;  %v3493_v37 = vcombine.high %v22481_v31, %v22481_v31 }
 0x38d   : > { %19304 = vmatpush3.bf16.msra.mxu1 %v20742_v35  ;;  %v20784_v35 = vld [vmem:[%s21310_s28 + $0x1d78] sm:$0xff]  }
 0x38e   : > { %19305 = vmatprep.subr.bf16.mxu1 %v20745_v40  ;;  %v3524_v40 = vcombine.high %v3514_v36, %v3514_v36 }
 0x38f   : > { %19284 = vmatpush3.bf16.msra.mxu0 %v20744_v39  ;;  %v20785_v39 = vld [vmem:[%s21310_s28 + $0x1d38] sm:$0xff]  }
 0x390   : > { %19285 = vmatprep.subr.bf16.mxu0 %v20747_v43  ;;  %v3521_v43 = vrot.slane %v3493_v37, %v21351_v42 }
 0x391   : > { %19306 = vmatpush3.bf16.msra.mxu1 %v20746_v38  ;;  %v20786_v38 = vld [vmem:[%s21310_s28 + $0x1df8] sm:$0xff]  }
 0x392   : > { %19307 = vmatprep.subr.bf16.mxu1 %v20749_v45  ;;  %v3522_v45 = vcombine.high %v3500_v33, %v3500_v33 }
 0x393   : > { %19286 = vmatpush3.bf16.msra.mxu0 %v20748_v44  ;;  %v20787_v44 = vld [vmem:[%s21310_s28 + $0x1db8] sm:$0xff]  }
 0x394   : > { %19315 = vmatprep.subr.bf16.mxu0 %v20752_v47  ;;  %v3525_v47 = vcombine.high %v3521_v43, %v3521_v43 }
 0x395   : > { %19308 = vmatpush3.bf16.msra.mxu1 %v20751_v41  ;;  %v20788_v41 = vld [vmem:[%s21310_s28 + $0x1d70] sm:$0xff]  }
 0x396   : > { %v19023_v54 = vpop.f32.mrf.mxu0  ;;  %13647 = vmatmul.mubr.bf16.vlgmr.msra.gmra.mxu0 %v3458_v46  ;;  %19337 = vmatprep.subr.bf16.mxu1 %v20754_v49  ;;  %v20789_v46 = vld [vmem:[%s21310_s28 + $0x1d30] sm:$0xff]  }
 0x397   : > { %19316 = vmatpush3.bf16.msra.mxu0 %v20753_v48  ;;  %13726 = vmatprep.mubr.bf16.mxu0 %v3514_v36  ;;  %v20790_v49 = vld [vmem:[%s21310_s28 + $0x1df0] sm:$0xff]  }
 0x398   : > { %v19024_v57 = vpop.f32.mrf.mxu0  ;;  %v19045_v59 = vpop.f32.mrf.mxu1  ;;  %13687 = vmatmul.mubr.bf16.vlgmr.msra.gmra.mxu1 %v3474_v51  ;;  %19317 = vmatprep.subr.bf16.mxu0 %v20756_v52 }
 0x399   : > { %v19025_v60 = vadd.f32 %v19024_v57, %v19023_v54  ;;  %19338 = vmatpush3.bf16.msra.mxu1 %v20755_v50  ;;  %13766 = vmatprep.mubr.bf16.mxu1 %v3524_v40  ;;  %v20791_v50 = vld [vmem:[%s21310_s28 + $0x1db0] sm:$0xff]  }
 0x39a   : > { %v19026_v63 = vpop.f32.mrf.mxu0  ;;  %v19046_v61 = vpop.f32.mrf.mxu1  ;;  %19339 = vmatprep.subr.bf16.mxu1 %v20758_v55  ;;  %v20793_v55 = vld [vmem:[%s21310_s28 + $0x1d28] sm:$0xff]  }
 0x39b   : > { %v13169_v2 = vadd.f32 %v19025_v60, %v22421_v24  ;;  %v19047_v3 = vadd.f32 %v19046_v61, %v19045_v59  ;;  %19318 = vmatpush3.bf16.msra.mxu0 %v20757_v53  ;;  %v20779_v24 = vld [vmem:[%s21310_s28 + $0x1c88] sm:$0xff]   ;;  %v20796_v61 = vld [vmem:[%s21310_s28 + $0x1d60] sm:$0xff]  }
 0x39c   : > { %v19027_v4 = vpop.f32.mrf.mxu0  ;;  %19319 = vmatprep.subr.bf16.mxu0 %v20760_v58  ;;  %v19048_v6 = vpop.f32.mrf.mxu1  ;;  %v20792_v53 = vld [vmem:[%s21310_s28 + $0x1d68] sm:$0xff]  }
 0x39d   : > { %v22458_v7 = vadd.f32 %v19047_v3, %v13169_v2  ;;  %19340 = vmatpush3.bf16.msra.mxu1 %v20759_v56  ;;  %v20794_v59 = vld [vmem:[%s21310_s28 + $0x1de8] sm:$0xff]   ;;  %v20797_v3 = vld [vmem:[%s21310_s28 + $0x1d20] sm:$0xff]   ;;  %v20800_v6 = vld [vmem:[%s21310_s28 + $0x1d58] sm:$0xff]  }
 0x39e   : > { %19341 = vmatprep.subr.bf16.mxu1 %v20762_v1  ;;  %v19049_v10 = vpop.f32.mrf.mxu1 }
 0x39f   : > { %19320 = vmatpush3.bf16.msra.mxu0 %v20761_v62  ;;  %v20795_v62 = vld [vmem:[%s21310_s28 + $0x1da8] sm:$0xff]   ;;  %v20804_v10 = vld [vmem:[%s21310_s28 + $0x1d50] sm:$0xff]  }
 0x3a0   : > { %19321 = vmatprep.subr.bf16.mxu0 %v20764_v5  ;;  %v20799_v5 = vld [vmem:[%s21310_s28 + $0x1da0] sm:$0xff]  }
 0x3a1   : > { %19342 = vmatpush3.bf16.msra.mxu1 %v20763_v0  ;;  %v20798_v0 = vld [vmem:[%s21310_s28 + $0x1de0] sm:$0xff]  }
 0x3a2   : > { %19343 = vmatprep.subr.bf16.mxu1 %v20766_v9  ;;  %v20803_v9 = vld [vmem:[%s21310_s28 + $0x1d98] sm:$0xff]  }
 0x3a3   : > { %19322 = vmatpush3.bf16.msra.mxu0 %v20765_v8  ;;  %v20802_v8 = vld [vmem:[%s21310_s28 + $0x1dd8] sm:$0xff]  }
 0x3a4   : > { %19323 = vmatprep.subr.bf16.mxu0 %v20768_v12  ;;  %v20806_v12 = vld [vmem:[%s21310_s28 + $0x1dd0] sm:$0xff]  }
 0x3a5   : > { %19344 = vmatpush3.bf16.msra.mxu1 %v20767_v11  ;;  %v20805_v11 = vld [vmem:[%s21310_s28 + $0x1d10] sm:$0xff]  }
 0x3a6   : > { %19345 = vmatprep.subr.bf16.mxu1 %v20770_v14  ;;  %v20808_v14 = vld [vmem:[%s21310_s28 + $0x1d48] sm:$0xff]  }
 0x3a7   : > { %19324 = vmatpush3.bf16.msra.mxu0 %v20769_v13  ;;  %v20807_v13 = vld [vmem:[%s21310_s28 + $0x1d90] sm:$0xff]  }
 0x3a8   : > { %19325 = vmatprep.subr.bf16.mxu0 %v20772_v17  ;;  %v20810_v17 = vld [vmem:[%s21310_s28 + $0x1dc8] sm:$0xff]  }
 0x3a9   : > { %19346 = vmatpush3.bf16.msra.mxu1 %v20771_v15  ;;  %v20809_v15 = vld [vmem:[%s21310_s28 + $0x1d08] sm:$0xff]  }
 0x3aa   : > { %19347 = vmatprep.subr.bf16.mxu1 %v20774_v18  ;;  %v20812_v18 = vld [vmem:[%s21310_s28 + $0x1d40] sm:$0xff]  }
 0x3ab   : > { %19326 = vmatpush3.bf16.msra.mxu0 %v20773_v16  ;;  %v20811_v16 = vld [vmem:[%s21310_s28 + $0x1d88] sm:$0xff]  }
 0x3ac   : > { %19327 = vmatprep.subr.bf16.mxu0 %v20776_v21  ;;  %v20814_v21 = vld [vmem:[%s21310_s28 + $0x1dc0] sm:$0xff]  }
 0x3ad   : > { %19348 = vmatpush3.bf16.msra.mxu1 %v20775_v20  ;;  %v20813_v20 = vld [vmem:[%s21310_s28 + $0x1d00] sm:$0xff]  }
 0x3ae   : > { %19349 = vmatprep.subr.bf16.mxu1 %v20778_v22  ;;  %v3507_v22 = vrot.slane %v22481_v31, %v21351_v42  ;;  %v20823_v31 = vld [vmem:[%s21310_s28 + $0x1ef0] sm:$0xff]  }
 0x3af   : > { %19328 = vmatpush3.bf16.msra.mxu0 %v20777_v19  ;;  %v20816_v19 = vld [vmem:[%s21310_s28 + $0x1d80] sm:$0xff]  }
 0x3b0   : > { %19329 = vmatprep.subr.bf16.mxu0 %v20780_v23  ;;  %v20819_v23 = vld [vmem:[%s21310_s28 + $0x1ef8] sm:$0xff]   ;;  %v3523_v27 = vcombine.high %v3507_v22, %v3507_v22 }
 0x3b1   : > { %19350 = vmatpush3.bf16.msra.mxu1 %v20779_v24  ;;  %v20817_v24 = vld [vmem:[%s21310_s28 + $0x1e78] sm:$0xff]  }
 0x3b2   : > { %19351 = vmatprep.subr.bf16.mxu1 %v20782_v29  ;;  %v20822_v29 = vld [vmem:[%s21310_s28 + $0x1e30] sm:$0xff]  }
 0x3b3   : > { %19330 = vmatpush3.bf16.msra.mxu0 %v20781_v28  ;;  %v20821_v28 = vld [vmem:[%s21310_s28 + $0x1e70] sm:$0xff]  }
 0x3b4   : > { %19359 = vmatprep.subr.bf16.mxu0 %v20784_v35  ;;  %v20825_v35 = vld [vmem:[%s21310_s28 + $0x1e68] sm:$0xff]  }
 0x3b5   : > { %19352 = vmatpush3.bf16.msra.mxu1 %v20783_v32  ;;  %v20824_v32 = vld [vmem:[%s21310_s28 + $0x1eb0] sm:$0xff]  }
 0x3b6   : > { %v19067_v48 = vpop.f32.mrf.mxu0  ;;  %13727 = vmatmul.mubr.bf16.vlgmr.msra.gmra.mxu0 %v3500_v33  ;;  %19381 = vmatprep.subr.bf16.mxu1 %v20786_v38 }
 0x3b7   : > { %19360 = vmatpush3.bf16.msra.mxu0 %v20785_v39  ;;  %13806 = vmatprep.mubr.bf16.mxu0 %v3521_v43  ;;  %v20826_v39 = vld [vmem:[%s21310_s28 + $0x1e28] sm:$0xff]  }
 0x3b8   : > { %v19068_v51 = vpop.f32.mrf.mxu0  ;;  %v19089_v52 = vpop.f32.mrf.mxu1  ;;  %13767 = vmatmul.mubr.bf16.vlgmr.msra.gmra.mxu1 %v3522_v45  ;;  %19361 = vmatprep.subr.bf16.mxu0 %v20788_v41  ;;  %v20827_v43 = vld [vmem:[%s21310_s28 + $0x1ee8] sm:$0xff]  }
 0x3b9   : > { %v19069_v54 = vadd.f32 %v19068_v51, %v19067_v48  ;;  %19382 = vmatpush3.bf16.msra.mxu1 %v20787_v44  ;;  %13846 = vmatprep.mubr.bf16.mxu1 %v3525_v47  ;;  %v20828_v41 = vld [vmem:[%s21310_s28 + $0x1ea8] sm:$0xff]   ;;  %v20829_v47 = vld [vmem:[%s21310_s28 + $0x1e60] sm:$0xff]  }
 0x3ba   : > { %v19070_v56 = vpop.f32.mrf.mxu0  ;;  %v19090_v57 = vpop.f32.mrf.mxu1  ;;  %19383 = vmatprep.subr.bf16.mxu1 %v20790_v49  ;;  %v20831_v51 = vld [vmem:[%s21310_s28 + $0x1ee0] sm:$0xff]  }
 0x3bb   : > { %v13249_v58 = vadd.f32 %v19069_v54, %v22458_v7  ;;  %v19091_v60 = vadd.f32 %v19090_v57, %v19089_v52  ;;  %19362 = vmatpush3.bf16.msra.mxu0 %v20789_v46  ;;  %v20801_v7 = vld [vmem:[%s21310_s28 + $0x1d18] sm:$0xff]  }
 0x3bc   : > { %v19071_v63 = vpop.f32.mrf.mxu0  ;;  %19363 = vmatprep.subr.bf16.mxu0 %v20792_v53  ;;  %v19092_v1 = vpop.f32.mrf.mxu1  ;;  %v20832_v53 = vld [vmem:[%s21310_s28 + $0x1ea0] sm:$0xff]   ;;  %v20833_v54 = vld [vmem:[%s21310_s28 + $0x1e58] sm:$0xff]  }
 0x3bd   : > { %v22503_v2 = vadd.f32 %v19091_v60, %v13249_v58  ;;  %19384 = vmatpush3.bf16.msra.mxu1 %v20791_v50  ;;  %v20830_v50 = vld [vmem:[%s21310_s28 + $0x1e20] sm:$0xff]   ;;  %v20835_v56 = vld [vmem:[%s21310_s28 + $0x1ed8] sm:$0xff]   ;;  %v20838_v58 = vld [vmem:[%s21310_s28 + $0x1e10] sm:$0xff]  }
 0x3be   : > { %19385 = vmatprep.subr.bf16.mxu1 %v20794_v59  ;;  %v19093_v4 = vpop.f32.mrf.mxu1  ;;  %v20836_v57 = vld [vmem:[%s21310_s28 + $0x1e98] sm:$0xff]   ;;  %v20837_v59 = vld [vmem:[%s21310_s28 + $0x1e50] sm:$0xff]   ;;  %v20841_v63 = vld [vmem:[%s21310_s28 + $0x1e48] sm:$0xff]  }
 0x3bf   : > { %19364 = vmatpush3.bf16.msra.mxu0 %v20793_v55  ;;  %v20834_v55 = vld [vmem:[%s21310_s28 + $0x1e18] sm:$0xff]   ;;  %v20839_v60 = vld [vmem:[%s21310_s28 + $0x1ed0] sm:$0xff]   ;;  %v20843_v1 = vld [vmem:[%s21310_s28 + $0x1ec8] sm:$0xff]  }
 0x3c0   : > { %19365 = vmatprep.subr.bf16.mxu0 %v20796_v61  ;;  %v20842_v61 = vld [vmem:[%s21310_s28 + $0x1e08] sm:$0xff]   ;;  %v20846_v4 = vld [vmem:[%s21310_s28 + $0x1e00] sm:$0xff]  }
 0x3c1   : > { %19386 = vmatpush3.bf16.msra.mxu1 %v20795_v62  ;;  %v20840_v62 = vld [vmem:[%s21310_s28 + $0x1e90] sm:$0xff]  }
 0x3c2   : > { %19387 = vmatprep.subr.bf16.mxu1 %v20798_v0  ;;  %v254_v0 = vld [vmem:[%s21305_s24 + $0x78] sm:$0xff] }
 0x3c3   : > { %19366 = vmatpush3.bf16.msra.mxu0 %v20797_v3  ;;  %v20845_v3 = vld [vmem:[%s21310_s28 + $0x1e40] sm:$0xff]  }
 0x3c4   : > { %19367 = vmatprep.subr.bf16.mxu0 %v20800_v6  ;;  %v3526_v6 = vcombine.high %v254_v0, %v254_v0 }
 0x3c5   : > { %19388 = vmatpush3.bf16.msra.mxu1 %v20799_v5  ;;  %v3533_v5 = vrot.slane %v254_v0, %v21351_v42  ;;  %v20884_v0 = vld [vmem:[%s21310_s28 + $0x20f8] sm:$0xff]  }
 0x3c6   : > { %19389 = vmatprep.subr.bf16.mxu1 %v20802_v8 }
 0x3c7   : > { %19368 = vmatpush3.bf16.msra.mxu0 %v20801_v7  ;;  %v20847_v7 = vld [vmem:[%s21310_s28 + $0x1ec0] sm:$0xff]   ;;  %v3541_v8 = vcombine.high %v3533_v5, %v3533_v5 }
 0x3c8   : > { %19369 = vmatprep.subr.bf16.mxu0 %v20804_v10  ;;  %v22564_v10 = vrot.slane %v3526_v6, %v21351_v42  ;;  %v20886_v6 = vld [vmem:[%s21310_s28 + $0x2070] sm:$0xff]  }
 0x3c9   : > { %19390 = vmatpush3.bf16.msra.mxu1 %v20803_v9  ;;  %v20848_v9 = vld [vmem:[%s21310_s28 + $0x1e80] sm:$0xff]  }
 0x3ca   : > { %19391 = vmatprep.subr.bf16.mxu1 %v20806_v12  ;;  %v20849_v12 = vld [vmem:[%s21310_s28 + $0x1f78] sm:$0xff]  }
 0x3cb   : > { %19370 = vmatpush3.bf16.msra.mxu0 %v20805_v11  ;;  %v3549_v11 = vrot.slane %v3533_v5, %v21351_v42 }
 0x3cc   : > { %19371 = vmatprep.subr.bf16.mxu0 %v20808_v14  ;;  %v20850_v14 = vld [vmem:[%s21310_s28 + $0x1f38] sm:$0xff]  }
 0x3cd   : > { %19392 = vmatpush3.bf16.msra.mxu1 %v20807_v13  ;;  %v3563_v13 = vrot.slane %v3541_v8, %v21351_v42 }
 0x3ce   : > { %19393 = vmatprep.subr.bf16.mxu1 %v20810_v17  ;;  %v20851_v17 = vld [vmem:[%s21310_s28 + $0x1ff8] sm:$0xff]  }
 0x3cf   : > { %19372 = vmatpush3.bf16.msra.mxu0 %v20809_v15  ;;  %v3542_v15 = vcombine.high %v22564_v10, %v22564_v10 }
 0x3d0   : > { %19373 = vmatprep.subr.bf16.mxu0 %v20812_v18  ;;  %v20852_v18 = vld [vmem:[%s21310_s28 + $0x1fb8] sm:$0xff]  }
 0x3d1   : > { %19394 = vmatpush3.bf16.msra.mxu1 %v20811_v16  ;;  %v3573_v16 = vcombine.high %v3563_v13, %v3563_v13 }
 0x3d2   : > { %19395 = vmatprep.subr.bf16.mxu1 %v20814_v21  ;;  %v3571_v21 = vcombine.high %v3549_v11, %v3549_v11 }
 0x3d3   : > { %19374 = vmatpush3.bf16.msra.mxu0 %v20813_v20  ;;  %v3570_v20 = vrot.slane %v3542_v15, %v21351_v42  ;;  %v20891_v15 = vld [vmem:[%s21310_s28 + $0x2028] sm:$0xff]  }
 0x3d4   : > { %19403 = vmatprep.subr.bf16.mxu0 %v20817_v24 }
 0x3d5   : > { %19396 = vmatpush3.bf16.msra.mxu1 %v20816_v19  ;;  %v20853_v19 = vld [vmem:[%s21310_s28 + $0x1f70] sm:$0xff]   ;;  %v3574_v24 = vcombine.high %v3570_v20, %v3570_v20 }
 0x3d6   : > { %v19111_v30 = vpop.f32.mrf.mxu0  ;;  %13807 = vmatmul.mubr.bf16.vlgmr.msra.gmra.mxu0 %v3507_v22  ;;  %19425 = vmatprep.subr.bf16.mxu1 %v20819_v23  ;;  %v20854_v22 = vld [vmem:[%s21310_s28 + $0x1f30] sm:$0xff]  }
 0x3d7   : > { %19404 = vmatpush3.bf16.msra.mxu0 %v20818_v25  ;;  %13886 = vmatprep.mubr.bf16.mxu0 %v3563_v13  ;;  %v20855_v23 = vld [vmem:[%s21310_s28 + $0x1ff0] sm:$0xff]   ;;  %v20890_v13 = vld [vmem:[%s21310_s28 + $0x2068] sm:$0xff]  }
 0x3d8   : > { %v19112_v33 = vpop.f32.mrf.mxu0  ;;  %v19133_v36 = vpop.f32.mrf.mxu1  ;;  %13847 = vmatmul.mubr.bf16.vlgmr.msra.gmra.mxu1 %v3523_v27  ;;  %19405 = vmatprep.subr.bf16.mxu0 %v20821_v28 }
 0x3d9   : > { %v19113_v37 = vadd.f32 %v19112_v33, %v19111_v30  ;;  %19426 = vmatpush3.bf16.msra.mxu1 %v20820_v26  ;;  %13926 = vmatprep.mubr.bf16.mxu1 %v3573_v16  ;;  %v20856_v26 = vld [vmem:[%s21310_s28 + $0x1fb0] sm:$0xff]  }
 0x3da   : > { %v19114_v40 = vpop.f32.mrf.mxu0  ;;  %v19134_v38 = vpop.f32.mrf.mxu1  ;;  %19427 = vmatprep.subr.bf16.mxu1 %v20823_v31  ;;  %v20858_v31 = vld [vmem:[%s21310_s28 + $0x1f28] sm:$0xff]  }
 0x3db   : > { %v13329_v44 = vadd.f32 %v19113_v37, %v22503_v2  ;;  %v19135_v45 = vadd.f32 %v19134_v38, %v19133_v36  ;;  %19406 = vmatpush3.bf16.msra.mxu0 %v20822_v29  ;;  %v20844_v2 = vld [vmem:[%s21310_s28 + $0x1e88] sm:$0xff]   ;;  %v20861_v38 = vld [vmem:[%s21310_s28 + $0x1f60] sm:$0xff]  }
 0x3dc   : > { %v19115_v46 = vpop.f32.mrf.mxu0  ;;  %19407 = vmatprep.subr.bf16.mxu0 %v20825_v35  ;;  %v19136_v48 = vpop.f32.mrf.mxu1  ;;  %v20857_v29 = vld [vmem:[%s21310_s28 + $0x1f68] sm:$0xff]  }
 0x3dd   : > { %v22540_v49 = vadd.f32 %v19135_v45, %v13329_v44  ;;  %19428 = vmatpush3.bf16.msra.mxu1 %v20824_v32  ;;  %v20859_v36 = vld [vmem:[%s21310_s28 + $0x1fe8] sm:$0xff]   ;;  %v20862_v45 = vld [vmem:[%s21310_s28 + $0x1f20] sm:$0xff]   ;;  %v20865_v48 = vld [vmem:[%s21310_s28 + $0x1f58] sm:$0xff]  }
 0x3de   : > { %19429 = vmatprep.subr.bf16.mxu1 %v20827_v43  ;;  %v19137_v52 = vpop.f32.mrf.mxu1 }
 0x3df   : > { %19408 = vmatpush3.bf16.msra.mxu0 %v20826_v39  ;;  %v20860_v39 = vld [vmem:[%s21310_s28 + $0x1fa8] sm:$0xff]   ;;  %v20869_v52 = vld [vmem:[%s21310_s28 + $0x1f50] sm:$0xff]  }
 0x3e0   : > { %19409 = vmatprep.subr.bf16.mxu0 %v20829_v47  ;;  %v20864_v47 = vld [vmem:[%s21310_s28 + $0x1fa0] sm:$0xff]  }
 0x3e1   : > { %19430 = vmatpush3.bf16.msra.mxu1 %v20828_v41  ;;  %v20863_v41 = vld [vmem:[%s21310_s28 + $0x1fe0] sm:$0xff]  }
 0x3e2   : > { %19431 = vmatprep.subr.bf16.mxu1 %v20831_v51  ;;  %v20868_v51 = vld [vmem:[%s21310_s28 + $0x1f98] sm:$0xff]  }
 0x3e3   : > { %19410 = vmatpush3.bf16.msra.mxu0 %v20830_v50  ;;  %v20867_v50 = vld [vmem:[%s21310_s28 + $0x1fd8] sm:$0xff]  }
 0x3e4   : > { %19411 = vmatprep.subr.bf16.mxu0 %v20833_v54  ;;  %v20871_v54 = vld [vmem:[%s21310_s28 + $0x1fd0] sm:$0xff]  }
 0x3e5   : > { %19432 = vmatpush3.bf16.msra.mxu1 %v20832_v53  ;;  %v20870_v53 = vld [vmem:[%s21310_s28 + $0x1f10] sm:$0xff]  }
 0x3e6   : > { %19433 = vmatprep.subr.bf16.mxu1 %v20835_v56  ;;  %v20873_v56 = vld [vmem:[%s21310_s28 + $0x1f48] sm:$0xff]  }
 0x3e7   : > { %19412 = vmatpush3.bf16.msra.mxu0 %v20834_v55  ;;  %v20872_v55 = vld [vmem:[%s21310_s28 + $0x1f90] sm:$0xff]  }
 0x3e8   : > { %19413 = vmatprep.subr.bf16.mxu0 %v20837_v59  ;;  %v20875_v59 = vld [vmem:[%s21310_s28 + $0x1fc8] sm:$0xff]  }
 0x3e9   : > { %19434 = vmatpush3.bf16.msra.mxu1 %v20836_v57  ;;  %v20874_v57 = vld [vmem:[%s21310_s28 + $0x1f08] sm:$0xff]  }
 0x3ea   : > { %19435 = vmatprep.subr.bf16.mxu1 %v20839_v60  ;;  %v20877_v60 = vld [vmem:[%s21310_s28 + $0x1f40] sm:$0xff]  }
 0x3eb   : > { %19414 = vmatpush3.bf16.msra.mxu0 %v20838_v58  ;;  %v20876_v58 = vld [vmem:[%s21310_s28 + $0x1f88] sm:$0xff]  }
 0x3ec   : > { %19415 = vmatprep.subr.bf16.mxu0 %v20841_v63  ;;  %v20879_v63 = vld [vmem:[%s21310_s28 + $0x1fc0] sm:$0xff]  }
 0x3ed   : > { %19436 = vmatpush3.bf16.msra.mxu1 %v20840_v62  ;;  %v20878_v62 = vld [vmem:[%s21310_s28 + $0x1f00] sm:$0xff]  }
 0x3ee   : > { %19437 = vmatprep.subr.bf16.mxu1 %v20843_v1  ;;  %v3556_v1 = vrot.slane %v22564_v10, %v21351_v42  ;;  %v20889_v10 = vld [vmem:[%s21310_s28 + $0x20b0] sm:$0xff]  }
 0x3ef   : > { %19416 = vmatpush3.bf16.msra.mxu0 %v20842_v61  ;;  %v20881_v61 = vld [vmem:[%s21310_s28 + $0x1f80] sm:$0xff]  }
 0x3f0   : > { %19417 = vmatprep.subr.bf16.mxu0 %v20845_v3  ;;  %v20883_v3 = vld [vmem:[%s21310_s28 + $0x2038] sm:$0xff]   ;;  %v3572_v5 = vcombine.high %v3556_v1, %v3556_v1 }
 0x3f1   : > { %19438 = vmatpush3.bf16.msra.mxu1 %v20844_v2  ;;  %v20882_v2 = vld [vmem:[%s21310_s28 + $0x2078] sm:$0xff]  }
 0x3f2   : > { %19439 = vmatprep.subr.bf16.mxu1 %v20847_v7  ;;  %v20887_v7 = vld [vmem:[%s21310_s28 + $0x2030] sm:$0xff]  }
 0x3f3   : > { %19418 = vmatpush3.bf16.msra.mxu0 %v20846_v4  ;;  %v20885_v4 = vld [vmem:[%s21310_s28 + $0x20b8] sm:$0xff]  }
 0x3f4   : > { %19447 = vmatprep.subr.bf16.mxu0 %v20849_v12 }
 0x3f5   : > { %19440 = vmatpush3.bf16.msra.mxu1 %v20848_v9  ;;  %v20888_v9 = vld [vmem:[%s21310_s28 + $0x20f0] sm:$0xff]  }
 0x3f6   : > { %v19155_v25 = vpop.f32.mrf.mxu0  ;;  %13887 = vmatmul.mubr.bf16.vlgmr.msra.gmra.mxu0 %v3549_v11  ;;  %19469 = vmatprep.subr.bf16.mxu1 %v20851_v17 }
 0x3f7   : > { %19448 = vmatpush3.bf16.msra.mxu0 %v20850_v14  ;;  %13966 = vmatprep.mubr.bf16.mxu0 %v3570_v20 }
 0x3f8   : > { %v19156_v27 = vpop.f32.mrf.mxu0  ;;  %v19177_v28 = vpop.f32.mrf.mxu1  ;;  %13927 = vmatmul.mubr.bf16.vlgmr.msra.gmra.mxu1 %v3571_v21  ;;  %19449 = vmatprep.subr.bf16.mxu0 %v20853_v19  ;;  %v20893_v19 = vld [vmem:[%s21310_s28 + $0x20a8] sm:$0xff]  }
 0x3f9   : > { %v19157_v30 = vadd.f32 %v19156_v27, %v19155_v25  ;;  %19470 = vmatpush3.bf16.msra.mxu1 %v20852_v18  ;;  %14006 = vmatprep.mubr.bf16.mxu1 %v3574_v24  ;;  %v20892_v18 = vld [vmem:[%s21310_s28 + $0x20e8] sm:$0xff]   ;;  %v20894_v24 = vld [vmem:[%s21310_s28 + $0x2060] sm:$0xff]  }
 0x3fa   : > { %v19158_v32 = vpop.f32.mrf.mxu0  ;;  %v19178_v33 = vpop.f32.mrf.mxu1  ;;  %19471 = vmatprep.subr.bf16.mxu1 %v20855_v23  ;;  %v20896_v27 = vld [vmem:[%s21310_s28 + $0x20e0] sm:$0xff]  }
 0x3fb   : > { %v13409_v35 = vadd.f32 %v19157_v30, %v22540_v49  ;;  %v19179_v37 = vadd.f32 %v19178_v33, %v19177_v28  ;;  %19450 = vmatpush3.bf16.msra.mxu0 %v20854_v22  ;;  %v20866_v49 = vld [vmem:[%s21310_s28 + $0x1f18] sm:$0xff]  }
 0x3fc   : > { %v19159_v40 = vpop.f32.mrf.mxu0  ;;  %19451 = vmatprep.subr.bf16.mxu0 %v20857_v29  ;;  %v19180_v43 = vpop.f32.mrf.mxu1  ;;  %v20897_v29 = vld [vmem:[%s21310_s28 + $0x20a0] sm:$0xff]   ;;  %v20898_v30 = vld [vmem:[%s21310_s28 + $0x2058] sm:$0xff]  }
 0x3fd   : > { %v22585_v44 = vadd.f32 %v19179_v37, %v13409_v35  ;;  %19472 = vmatpush3.bf16.msra.mxu1 %v20856_v26  ;;  %v20895_v26 = vld [vmem:[%s21310_s28 + $0x2020] sm:$0xff]   ;;  %v20900_v32 = vld [vmem:[%s21310_s28 + $0x20d8] sm:$0xff]   ;;  %v20903_v35 = vld [vmem:[%s21310_s28 + $0x2010] sm:$0xff]  }
 0x3fe   : > { %19473 = vmatprep.subr.bf16.mxu1 %v20859_v36  ;;  %v19181_v46 = vpop.f32.mrf.mxu1  ;;  %v20901_v33 = vld [vmem:[%s21310_s28 + $0x2098] sm:$0xff]   ;;  %v20902_v36 = vld [vmem:[%s21310_s28 + $0x2050] sm:$0xff]   ;;  %v20906_v40 = vld [vmem:[%s21310_s28 + $0x2048] sm:$0xff]  }
 0x3ff   : > { %19452 = vmatpush3.bf16.msra.mxu0 %v20858_v31  ;;  %v20899_v31 = vld [vmem:[%s21310_s28 + $0x2018] sm:$0xff]   ;;  %v20904_v37 = vld [vmem:[%s21310_s28 + $0x20d0] sm:$0xff]   ;;  %v20908_v43 = vld [vmem:[%s21310_s28 + $0x20c8] sm:$0xff]  }
 0x400   : > { %19453 = vmatprep.subr.bf16.mxu0 %v20861_v38  ;;  %v20907_v38 = vld [vmem:[%s21310_s28 + $0x2008] sm:$0xff]   ;;  %v20911_v46 = vld [vmem:[%s21310_s28 + $0x2000] sm:$0xff]  }
 0x401   : > { %19474 = vmatpush3.bf16.msra.mxu1 %v20860_v39  ;;  %v20905_v39 = vld [vmem:[%s21310_s28 + $0x2090] sm:$0xff]  }
 0x402   : > { %19475 = vmatprep.subr.bf16.mxu1 %v20863_v41  ;;  %v255_v41 = vld [vmem:[%s21305_s24 + $0x80] sm:$0xff] }
 0x403   : > { %19454 = vmatpush3.bf16.msra.mxu0 %v20862_v45  ;;  %v20910_v45 = vld [vmem:[%s21310_s28 + $0x2040] sm:$0xff]  }
 0x404   : > { %19455 = vmatprep.subr.bf16.mxu0 %v20865_v48  ;;  %v3575_v48 = vcombine.high %v255_v41, %v255_v41 }
 0x405   : > { %19476 = vmatpush3.bf16.msra.mxu1 %v20864_v47  ;;  %v3582_v47 = vrot.slane %v255_v41, %v21351_v42  ;;  %v20949_v41 = vld [vmem:[%s21310_s28 + $0x22f8] sm:$0xff]  }
 0x406   : > { %19477 = vmatprep.subr.bf16.mxu1 %v20867_v50 }
 0x407   : > { %19456 = vmatpush3.bf16.msra.mxu0 %v20866_v49  ;;  %v20912_v49 = vld [vmem:[%s21310_s28 + $0x20c0] sm:$0xff]   ;;  %v3590_v50 = vcombine.high %v3582_v47, %v3582_v47 }
 0x408   : > { %19457 = vmatprep.subr.bf16.mxu0 %v20869_v52  ;;  %v22646_v52 = vrot.slane %v3575_v48, %v21351_v42  ;;  %v20951_v48 = vld [vmem:[%s21310_s28 + $0x2270] sm:$0xff]  }
 0x409   : > { %19478 = vmatpush3.bf16.msra.mxu1 %v20868_v51  ;;  %v20913_v51 = vld [vmem:[%s21310_s28 + $0x2080] sm:$0xff]  }
 0x40a   : > { %19479 = vmatprep.subr.bf16.mxu1 %v20871_v54  ;;  %v20914_v54 = vld [vmem:[%s21310_s28 + $0x2178] sm:$0xff]  }
 0x40b   : > { %19458 = vmatpush3.bf16.msra.mxu0 %v20870_v53  ;;  %v3598_v53 = vrot.slane %v3582_v47, %v21351_v42 }
 0x40c   : > { %19459 = vmatprep.subr.bf16.mxu0 %v20873_v56  ;;  %v20915_v56 = vld [vmem:[%s21310_s28 + $0x2138] sm:$0xff]  }
 0x40d   : > { %19480 = vmatpush3.bf16.msra.mxu1 %v20872_v55  ;;  %v3612_v55 = vrot.slane %v3590_v50, %v21351_v42 }
 0x40e   : > { %19481 = vmatprep.subr.bf16.mxu1 %v20875_v59  ;;  %v20916_v59 = vld [vmem:[%s21310_s28 + $0x21f8] sm:$0xff]  }
 0x40f   : > { %19460 = vmatpush3.bf16.msra.mxu0 %v20874_v57  ;;  %v3591_v57 = vcombine.high %v22646_v52, %v22646_v52 }
 0x410   : > { %19461 = vmatprep.subr.bf16.mxu0 %v20877_v60  ;;  %v20917_v60 = vld [vmem:[%s21310_s28 + $0x21b8] sm:$0xff]  }
 0x411   : > { %19482 = vmatpush3.bf16.msra.mxu1 %v20876_v58  ;;  %v3622_v58 = vcombine.high %v3612_v55, %v3612_v55 }
 0x412   : > { %19483 = vmatprep.subr.bf16.mxu1 %v20879_v63  ;;  %v3620_v63 = vcombine.high %v3598_v53, %v3598_v53 }
 0x413   : > { %19462 = vmatpush3.bf16.msra.mxu0 %v20878_v62  ;;  %v3619_v62 = vrot.slane %v3591_v57, %v21351_v42  ;;  %v20956_v57 = vld [vmem:[%s21310_s28 + $0x2228] sm:$0xff]  }
 0x414   : > { %19491 = vmatprep.subr.bf16.mxu0 %v20882_v2 }
 0x415   : > { %19484 = vmatpush3.bf16.msra.mxu1 %v20881_v61  ;;  %v20918_v61 = vld [vmem:[%s21310_s28 + $0x2170] sm:$0xff]   ;;  %v3623_v2 = vcombine.high %v3619_v62, %v3619_v62 }
 0x416   : > { %v19199_v8 = vpop.f32.mrf.mxu0  ;;  %13967 = vmatmul.mubr.bf16.vlgmr.msra.gmra.mxu0 %v3556_v1  ;;  %19513 = vmatprep.subr.bf16.mxu1 %v20884_v0  ;;  %v20919_v1 = vld [vmem:[%s21310_s28 + $0x2130] sm:$0xff]  }
 0x417   : > { %19492 = vmatpush3.bf16.msra.mxu0 %v20883_v3  ;;  %14046 = vmatprep.mubr.bf16.mxu0 %v3612_v55  ;;  %v20920_v0 = vld [vmem:[%s21310_s28 + $0x21f0] sm:$0xff]   ;;  %v20955_v55 = vld [vmem:[%s21310_s28 + $0x2268] sm:$0xff]  }
 0x418   : > { %v19200_v11 = vpop.f32.mrf.mxu0  ;;  %v19221_v12 = vpop.f32.mrf.mxu1  ;;  %14007 = vmatmul.mubr.bf16.vlgmr.msra.gmra.mxu1 %v3572_v5  ;;  %19493 = vmatprep.subr.bf16.mxu0 %v20886_v6 }
 0x419   : > { %v19201_v14 = vadd.f32 %v19200_v11, %v19199_v8  ;;  %19514 = vmatpush3.bf16.msra.mxu1 %v20885_v4  ;;  %14086 = vmatprep.mubr.bf16.mxu1 %v3622_v58  ;;  %v20921_v4 = vld [vmem:[%s21310_s28 + $0x21b0] sm:$0xff]  }
 0x41a   : > { %v19202_v17 = vpop.f32.mrf.mxu0  ;;  %v19222_v16 = vpop.f32.mrf.mxu1  ;;  %19515 = vmatprep.subr.bf16.mxu1 %v20888_v9  ;;  %v20923_v9 = vld [vmem:[%s21310_s28 + $0x2128] sm:$0xff]  }
 0x41b   : > { %v13489_v20 = vadd.f32 %v19201_v14, %v22585_v44  ;;  %v19223_v21 = vadd.f32 %v19222_v16, %v19221_v12  ;;  %19494 = vmatpush3.bf16.msra.mxu0 %v20887_v7  ;;  %v20909_v44 = vld [vmem:[%s21310_s28 + $0x2088] sm:$0xff]   ;;  %v20926_v16 = vld [vmem:[%s21310_s28 + $0x2160] sm:$0xff]  }
 0x41c   : > { %v19203_v22 = vpop.f32.mrf.mxu0  ;;  %19495 = vmatprep.subr.bf16.mxu0 %v20890_v13  ;;  %v19224_v25 = vpop.f32.mrf.mxu1  ;;  %v20922_v7 = vld [vmem:[%s21310_s28 + $0x2168] sm:$0xff]  }
 0x41d   : > { %v22622_v23 = vadd.f32 %v19223_v21, %v13489_v20  ;;  %19516 = vmatpush3.bf16.msra.mxu1 %v20889_v10  ;;  %v20924_v12 = vld [vmem:[%s21310_s28 + $0x21e8] sm:$0xff]   ;;  %v20927_v21 = vld [vmem:[%s21310_s28 + $0x2120] sm:$0xff]   ;;  %v20930_v25 = vld [vmem:[%s21310_s28 + $0x2158] sm:$0xff]  }
 0x41e   : > { %19517 = vmatprep.subr.bf16.mxu1 %v20892_v18  ;;  %v19225_v28 = vpop.f32.mrf.mxu1 }
 0x41f   : > { %19496 = vmatpush3.bf16.msra.mxu0 %v20891_v15  ;;  %v20925_v15 = vld [vmem:[%s21310_s28 + $0x21a8] sm:$0xff]   ;;  %v20934_v28 = vld [vmem:[%s21310_s28 + $0x2150] sm:$0xff]  }
 0x420   : > { %19497 = vmatprep.subr.bf16.mxu0 %v20894_v24  ;;  %v20929_v24 = vld [vmem:[%s21310_s28 + $0x21a0] sm:$0xff]  }
 0x421   : > { %19518 = vmatpush3.bf16.msra.mxu1 %v20893_v19  ;;  %v20928_v19 = vld [vmem:[%s21310_s28 + $0x21e0] sm:$0xff]  }
 0x422   : > { %19519 = vmatprep.subr.bf16.mxu1 %v20896_v27  ;;  %v20933_v27 = vld [vmem:[%s21310_s28 + $0x2198] sm:$0xff]  }
 0x423   : > { %19498 = vmatpush3.bf16.msra.mxu0 %v20895_v26  ;;  %v20932_v26 = vld [vmem:[%s21310_s28 + $0x21d8] sm:$0xff]  }
 0x424   : > { %19499 = vmatprep.subr.bf16.mxu0 %v20898_v30  ;;  %v20936_v30 = vld [vmem:[%s21310_s28 + $0x21d0] sm:$0xff]  }
 0x425   : > { %19520 = vmatpush3.bf16.msra.mxu1 %v20897_v29  ;;  %v20935_v29 = vld [vmem:[%s21310_s28 + $0x2110] sm:$0xff]  }
 0x426   : > { %19521 = vmatprep.subr.bf16.mxu1 %v20900_v32  ;;  %v20938_v32 = vld [vmem:[%s21310_s28 + $0x2148] sm:$0xff]  }
 0x427   : > { %19500 = vmatpush3.bf16.msra.mxu0 %v20899_v31  ;;  %v20937_v31 = vld [vmem:[%s21310_s28 + $0x2190] sm:$0xff]  }
 0x428   : > { %19501 = vmatprep.subr.bf16.mxu0 %v20902_v36  ;;  %v20940_v36 = vld [vmem:[%s21310_s28 + $0x21c8] sm:$0xff]  }
 0x429   : > { %19522 = vmatpush3.bf16.msra.mxu1 %v20901_v33  ;;  %v20939_v33 = vld [vmem:[%s21310_s28 + $0x2108] sm:$0xff]  }
 0x42a   : > { %19523 = vmatprep.subr.bf16.mxu1 %v20904_v37  ;;  %v20942_v37 = vld [vmem:[%s21310_s28 + $0x2140] sm:$0xff]  }
 0x42b   : > { %19502 = vmatpush3.bf16.msra.mxu0 %v20903_v35  ;;  %v20941_v35 = vld [vmem:[%s21310_s28 + $0x2188] sm:$0xff]  }
 0x42c   : > { %19503 = vmatprep.subr.bf16.mxu0 %v20906_v40  ;;  %v20944_v40 = vld [vmem:[%s21310_s28 + $0x21c0] sm:$0xff]  }
 0x42d   : > { %19524 = vmatpush3.bf16.msra.mxu1 %v20905_v39  ;;  %v20943_v39 = vld [vmem:[%s21310_s28 + $0x2100] sm:$0xff]  }
 0x42e   : > { %19525 = vmatprep.subr.bf16.mxu1 %v20908_v43  ;;  %v3605_v43 = vrot.slane %v22646_v52, %v21351_v42  ;;  %v20954_v52 = vld [vmem:[%s21310_s28 + $0x22b0] sm:$0xff]  }
 0x42f   : > { %19504 = vmatpush3.bf16.msra.mxu0 %v20907_v38  ;;  %v20946_v38 = vld [vmem:[%s21310_s28 + $0x2180] sm:$0xff]  }
 0x430   : > { %19505 = vmatprep.subr.bf16.mxu0 %v20910_v45  ;;  %v20948_v45 = vld [vmem:[%s21310_s28 + $0x2238] sm:$0xff]   ;;  %v3621_v47 = vcombine.high %v3605_v43, %v3605_v43 }
 0x431   : > { %19526 = vmatpush3.bf16.msra.mxu1 %v20909_v44  ;;  %v20947_v44 = vld [vmem:[%s21310_s28 + $0x2278] sm:$0xff]  }
 0x432   : > { %19527 = vmatprep.subr.bf16.mxu1 %v20912_v49  ;;  %v20952_v49 = vld [vmem:[%s21310_s28 + $0x2230] sm:$0xff]  }
 0x433   : > { %19506 = vmatpush3.bf16.msra.mxu0 %v20911_v46  ;;  %v20950_v46 = vld [vmem:[%s21310_s28 + $0x22b8] sm:$0xff]  }
 0x434   : > { %19535 = vmatprep.subr.bf16.mxu0 %v20914_v54 }
 0x435   : > { %19528 = vmatpush3.bf16.msra.mxu1 %v20913_v51  ;;  %v20953_v51 = vld [vmem:[%s21310_s28 + $0x22f0] sm:$0xff]  }
 0x436   : > { %v19243_v3 = vpop.f32.mrf.mxu0  ;;  %14047 = vmatmul.mubr.bf16.vlgmr.msra.gmra.mxu0 %v3598_v53  ;;  %19557 = vmatprep.subr.bf16.mxu1 %v20916_v59 }
 0x437   : > { %19536 = vmatpush3.bf16.msra.mxu0 %v20915_v56  ;;  %14126 = vmatprep.mubr.bf16.mxu0 %v3619_v62 }
 0x438   : > { %v19244_v5 = vpop.f32.mrf.mxu0  ;;  %v19265_v6 = vpop.f32.mrf.mxu1  ;;  %14087 = vmatmul.mubr.bf16.vlgmr.msra.gmra.mxu1 %v3620_v63  ;;  %19537 = vmatprep.subr.bf16.mxu0 %v20918_v61  ;;  %v20958_v61 = vld [vmem:[%s21310_s28 + $0x22a8] sm:$0xff]  }
 0x439   : > { %v19245_v8 = vadd.f32 %v19244_v5, %v19243_v3  ;;  %19558 = vmatpush3.bf16.msra.mxu1 %v20917_v60  ;;  %14166 = vmatprep.mubr.bf16.mxu1 %v3623_v2  ;;  %v20957_v60 = vld [vmem:[%s21310_s28 + $0x22e8] sm:$0xff]   ;;  %v20959_v2 = vld [vmem:[%s21310_s28 + $0x2260] sm:$0xff]  }
 0x43a   : > { %v19246_v10 = vpop.f32.mrf.mxu0  ;;  %v19266_v11 = vpop.f32.mrf.mxu1  ;;  %19559 = vmatprep.subr.bf16.mxu1 %v20920_v0  ;;  %v20961_v5 = vld [vmem:[%s21310_s28 + $0x22e0] sm:$0xff]  }
 0x43b   : > { %v13569_v13 = vadd.f32 %v19245_v8, %v22622_v23  ;;  %v19267_v14 = vadd.f32 %v19266_v11, %v19265_v6  ;;  %19538 = vmatpush3.bf16.msra.mxu0 %v20919_v1  ;;  %v20931_v23 = vld [vmem:[%s21310_s28 + $0x2118] sm:$0xff]  }
 0x43c   : > { %v19247_v17 = vpop.f32.mrf.mxu0  ;;  %19539 = vmatprep.subr.bf16.mxu0 %v20922_v7  ;;  %v19268_v18 = vpop.f32.mrf.mxu1  ;;  %v20962_v7 = vld [vmem:[%s21310_s28 + $0x22a0] sm:$0xff]   ;;  %v20963_v8 = vld [vmem:[%s21310_s28 + $0x2258] sm:$0xff]  }
 0x43d   : > { %v22667_v20 = vadd.f32 %v19267_v14, %v13569_v13  ;;  %19560 = vmatpush3.bf16.msra.mxu1 %v20921_v4  ;;  %v20960_v4 = vld [vmem:[%s21310_s28 + $0x2220] sm:$0xff]   ;;  %v20965_v10 = vld [vmem:[%s21310_s28 + $0x22d8] sm:$0xff]   ;;  %v20968_v13 = vld [vmem:[%s21310_s28 + $0x2210] sm:$0xff]  }
 0x43e   : > { %19561 = vmatprep.subr.bf16.mxu1 %v20924_v12  ;;  %v19269_v22 = vpop.f32.mrf.mxu1  ;;  %v20966_v11 = vld [vmem:[%s21310_s28 + $0x2298] sm:$0xff]   ;;  %v20967_v12 = vld [vmem:[%s21310_s28 + $0x2250] sm:$0xff]   ;;  %v20971_v17 = vld [vmem:[%s21310_s28 + $0x2248] sm:$0xff]  }
 0x43f   : > { %19540 = vmatpush3.bf16.msra.mxu0 %v20923_v9  ;;  %v20964_v9 = vld [vmem:[%s21310_s28 + $0x2218] sm:$0xff]   ;;  %v20969_v14 = vld [vmem:[%s21310_s28 + $0x22d0] sm:$0xff]   ;;  %v20973_v18 = vld [vmem:[%s21310_s28 + $0x22c8] sm:$0xff]  }
 0x440   : > { %19541 = vmatprep.subr.bf16.mxu0 %v20926_v16  ;;  %v20972_v16 = vld [vmem:[%s21310_s28 + $0x2208] sm:$0xff]   ;;  %v20976_v22 = vld [vmem:[%s21310_s28 + $0x2200] sm:$0xff]  }
 0x441   : > { %19562 = vmatpush3.bf16.msra.mxu1 %v20925_v15  ;;  %v20970_v15 = vld [vmem:[%s21310_s28 + $0x2290] sm:$0xff]  }
 0x442   : > { %19563 = vmatprep.subr.bf16.mxu1 %v20928_v19  ;;  %v256_v19 = vld [vmem:[%s21305_s24 + $0x88] sm:$0xff] }
 0x443   : > { %19542 = vmatpush3.bf16.msra.mxu0 %v20927_v21  ;;  %v20975_v21 = vld [vmem:[%s21310_s28 + $0x2240] sm:$0xff]  }
 0x444   : > { %19543 = vmatprep.subr.bf16.mxu0 %v20930_v25  ;;  %v3624_v25 = vcombine.high %v256_v19, %v256_v19 }
 0x445   : > { %19564 = vmatpush3.bf16.msra.mxu1 %v20929_v24  ;;  %v3631_v24 = vrot.slane %v256_v19, %v21351_v42  ;;  %v21014_v19 = vld [vmem:[%s21310_s28 + $0x24f8] sm:$0xff]  }
 0x446   : > { %19565 = vmatprep.subr.bf16.mxu1 %v20932_v26 }
 0x447   : > { %19544 = vmatpush3.bf16.msra.mxu0 %v20931_v23  ;;  %v20977_v23 = vld [vmem:[%s21310_s28 + $0x22c0] sm:$0xff]   ;;  %v3639_v26 = vcombine.high %v3631_v24, %v3631_v24 }
 0x448   : > { %19545 = vmatprep.subr.bf16.mxu0 %v20934_v28  ;;  %v22728_v28 = vrot.slane %v3624_v25, %v21351_v42  ;;  %v21016_v25 = vld [vmem:[%s21310_s28 + $0x2470] sm:$0xff]  }
 0x449   : > { %19566 = vmatpush3.bf16.msra.mxu1 %v20933_v27  ;;  %v20978_v27 = vld [vmem:[%s21310_s28 + $0x2280] sm:$0xff]  }
 0x44a   : > { %19567 = vmatprep.subr.bf16.mxu1 %v20936_v30  ;;  %v20979_v30 = vld [vmem:[%s21310_s28 + $0x2378] sm:$0xff]  }
 0x44b   : > { %19546 = vmatpush3.bf16.msra.mxu0 %v20935_v29  ;;  %v3647_v29 = vrot.slane %v3631_v24, %v21351_v42 }
 0x44c   : > { %19547 = vmatprep.subr.bf16.mxu0 %v20938_v32  ;;  %v20980_v32 = vld [vmem:[%s21310_s28 + $0x2338] sm:$0xff]  }
 0x44d   : > { %19568 = vmatpush3.bf16.msra.mxu1 %v20937_v31  ;;  %v3661_v31 = vrot.slane %v3639_v26, %v21351_v42 }
 0x44e   : > { %19569 = vmatprep.subr.bf16.mxu1 %v20940_v36  ;;  %v20981_v36 = vld [vmem:[%s21310_s28 + $0x23f8] sm:$0xff]  }
 0x44f   : > { %19548 = vmatpush3.bf16.msra.mxu0 %v20939_v33  ;;  %v3640_v33 = vcombine.high %v22728_v28, %v22728_v28 }
 0x450   : > { %19549 = vmatprep.subr.bf16.mxu0 %v20942_v37  ;;  %v20982_v37 = vld [vmem:[%s21310_s28 + $0x23b8] sm:$0xff]  }
 0x451   : > { %19570 = vmatpush3.bf16.msra.mxu1 %v20941_v35  ;;  %v3671_v35 = vcombine.high %v3661_v31, %v3661_v31 }
 0x452   : > { %19571 = vmatprep.subr.bf16.mxu1 %v20944_v40  ;;  %v3669_v40 = vcombine.high %v3647_v29, %v3647_v29 }
 0x453   : > { %19550 = vmatpush3.bf16.msra.mxu0 %v20943_v39  ;;  %v3668_v39 = vrot.slane %v3640_v33, %v21351_v42  ;;  %v21021_v33 = vld [vmem:[%s21310_s28 + $0x2428] sm:$0xff]  }
 0x454   : > { %19579 = vmatprep.subr.bf16.mxu0 %v20947_v44 }
 0x455   : > { %19572 = vmatpush3.bf16.msra.mxu1 %v20946_v38  ;;  %v20983_v38 = vld [vmem:[%s21310_s28 + $0x2370] sm:$0xff]   ;;  %v3672_v44 = vcombine.high %v3668_v39, %v3668_v39 }
 0x456   : > { %v19287_v50 = vpop.f32.mrf.mxu0  ;;  %14127 = vmatmul.mubr.bf16.vlgmr.msra.gmra.mxu0 %v3605_v43  ;;  %19601 = vmatprep.subr.bf16.mxu1 %v20949_v41  ;;  %v20984_v43 = vld [vmem:[%s21310_s28 + $0x2330] sm:$0xff]  }
 0x457   : > { %19580 = vmatpush3.bf16.msra.mxu0 %v20948_v45  ;;  %14206 = vmatprep.mubr.bf16.mxu0 %v3661_v31  ;;  %v20985_v41 = vld [vmem:[%s21310_s28 + $0x23f0] sm:$0xff]   ;;  %v21020_v31 = vld [vmem:[%s21310_s28 + $0x2468] sm:$0xff]  }
 0x458   : > { %v19288_v53 = vpop.f32.mrf.mxu0  ;;  %v19309_v54 = vpop.f32.mrf.mxu1  ;;  %14167 = vmatmul.mubr.bf16.vlgmr.msra.gmra.mxu1 %v3621_v47  ;;  %19581 = vmatprep.subr.bf16.mxu0 %v20951_v48 }
 0x459   : > { %v19289_v56 = vadd.f32 %v19288_v53, %v19287_v50  ;;  %19602 = vmatpush3.bf16.msra.mxu1 %v20950_v46  ;;  %14246 = vmatprep.mubr.bf16.mxu1 %v3671_v35  ;;  %v20986_v46 = vld [vmem:[%s21310_s28 + $0x23b0] sm:$0xff]  }
 0x45a   : > { %v19290_v59 = vpop.f32.mrf.mxu0  ;;  %v19310_v58 = vpop.f32.mrf.mxu1  ;;  %19603 = vmatprep.subr.bf16.mxu1 %v20953_v51  ;;  %v20988_v51 = vld [vmem:[%s21310_s28 + $0x2328] sm:$0xff]  }
 0x45b   : > { %v13649_v62 = vadd.f32 %v19289_v56, %v22667_v20  ;;  %v19311_v63 = vadd.f32 %v19310_v58, %v19309_v54  ;;  %19582 = vmatpush3.bf16.msra.mxu0 %v20952_v49  ;;  %v20974_v20 = vld [vmem:[%s21310_s28 + $0x2288] sm:$0xff]   ;;  %v20991_v58 = vld [vmem:[%s21310_s28 + $0x2360] sm:$0xff]  }
 0x45c   : > { %v19291_v1 = vpop.f32.mrf.mxu0  ;;  %19583 = vmatprep.subr.bf16.mxu0 %v20955_v55  ;;  %v19312_v3 = vpop.f32.mrf.mxu1  ;;  %v20987_v49 = vld [vmem:[%s21310_s28 + $0x2368] sm:$0xff]  }
 0x45d   : > { %v22704_v0 = vadd.f32 %v19311_v63, %v13649_v62  ;;  %19604 = vmatpush3.bf16.msra.mxu1 %v20954_v52  ;;  %v20989_v54 = vld [vmem:[%s21310_s28 + $0x23e8] sm:$0xff]   ;;  %v20992_v63 = vld [vmem:[%s21310_s28 + $0x2320] sm:$0xff]   ;;  %v20995_v3 = vld [vmem:[%s21310_s28 + $0x2358] sm:$0xff]  }
 0x45e   : > { %19605 = vmatprep.subr.bf16.mxu1 %v20957_v60  ;;  %v19313_v6 = vpop.f32.mrf.mxu1 }
 0x45f   : > { %19584 = vmatpush3.bf16.msra.mxu0 %v20956_v57  ;;  %v20990_v57 = vld [vmem:[%s21310_s28 + $0x23a8] sm:$0xff]   ;;  %v20999_v6 = vld [vmem:[%s21310_s28 + $0x2350] sm:$0xff]  }
 0x460   : > { %19585 = vmatprep.subr.bf16.mxu0 %v20959_v2  ;;  %v20994_v2 = vld [vmem:[%s21310_s28 + $0x23a0] sm:$0xff]  }
 0x461   : > { %19606 = vmatpush3.bf16.msra.mxu1 %v20958_v61  ;;  %v20993_v61 = vld [vmem:[%s21310_s28 + $0x23e0] sm:$0xff]  }
 0x462   : > { %19607 = vmatprep.subr.bf16.mxu1 %v20961_v5  ;;  %v20998_v5 = vld [vmem:[%s21310_s28 + $0x2398] sm:$0xff]  }
 0x463   : > { %19586 = vmatpush3.bf16.msra.mxu0 %v20960_v4  ;;  %v20997_v4 = vld [vmem:[%s21310_s28 + $0x23d8] sm:$0xff]  }
 0x464   : > { %19587 = vmatprep.subr.bf16.mxu0 %v20963_v8  ;;  %v21001_v8 = vld [vmem:[%s21310_s28 + $0x23d0] sm:$0xff]  }
 0x465   : > { %19608 = vmatpush3.bf16.msra.mxu1 %v20962_v7  ;;  %v21000_v7 = vld [vmem:[%s21310_s28 + $0x2310] sm:$0xff]  }
 0x466   : > { %19609 = vmatprep.subr.bf16.mxu1 %v20965_v10  ;;  %v21003_v10 = vld [vmem:[%s21310_s28 + $0x2348] sm:$0xff]  }
 0x467   : > { %19588 = vmatpush3.bf16.msra.mxu0 %v20964_v9  ;;  %v21002_v9 = vld [vmem:[%s21310_s28 + $0x2390] sm:$0xff]  }
 0x468   : > { %19589 = vmatprep.subr.bf16.mxu0 %v20967_v12  ;;  %v21005_v12 = vld [vmem:[%s21310_s28 + $0x23c8] sm:$0xff]  }
 0x469   : > { %19610 = vmatpush3.bf16.msra.mxu1 %v20966_v11  ;;  %v21004_v11 = vld [vmem:[%s21310_s28 + $0x2308] sm:$0xff]  }
 0x46a   : > { %19611 = vmatprep.subr.bf16.mxu1 %v20969_v14  ;;  %v21007_v14 = vld [vmem:[%s21310_s28 + $0x2340] sm:$0xff]  }
 0x46b   : > { %19590 = vmatpush3.bf16.msra.mxu0 %v20968_v13  ;;  %v21006_v13 = vld [vmem:[%s21310_s28 + $0x2388] sm:$0xff]  }
 0x46c   : > { %19591 = vmatprep.subr.bf16.mxu0 %v20971_v17  ;;  %v21009_v17 = vld [vmem:[%s21310_s28 + $0x23c0] sm:$0xff]  }
 0x46d   : > { %19612 = vmatpush3.bf16.msra.mxu1 %v20970_v15  ;;  %v21008_v15 = vld [vmem:[%s21310_s28 + $0x2300] sm:$0xff]  }
 0x46e   : > { %19613 = vmatprep.subr.bf16.mxu1 %v20973_v18  ;;  %v3654_v18 = vrot.slane %v22728_v28, %v21351_v42  ;;  %v21019_v28 = vld [vmem:[%s21310_s28 + $0x24b0] sm:$0xff]  }
 0x46f   : > { %19592 = vmatpush3.bf16.msra.mxu0 %v20972_v16  ;;  %v21011_v16 = vld [vmem:[%s21310_s28 + $0x2380] sm:$0xff]  }
 0x470   : > { %19593 = vmatprep.subr.bf16.mxu0 %v20975_v21  ;;  %v21013_v21 = vld [vmem:[%s21310_s28 + $0x2438] sm:$0xff]   ;;  %v3670_v24 = vcombine.high %v3654_v18, %v3654_v18 }
 0x471   : > { %19614 = vmatpush3.bf16.msra.mxu1 %v20974_v20  ;;  %v21012_v20 = vld [vmem:[%s21310_s28 + $0x2478] sm:$0xff]  }
 0x472   : > { %19615 = vmatprep.subr.bf16.mxu1 %v20977_v23  ;;  %v21017_v23 = vld [vmem:[%s21310_s28 + $0x2430] sm:$0xff]  }
 0x473   : > { %19594 = vmatpush3.bf16.msra.mxu0 %v20976_v22  ;;  %v21015_v22 = vld [vmem:[%s21310_s28 + $0x24b8] sm:$0xff]  }
 0x474   : > { %19623 = vmatprep.subr.bf16.mxu0 %v20979_v30 }
 0x475   : > { %19616 = vmatpush3.bf16.msra.mxu1 %v20978_v27  ;;  %v21018_v27 = vld [vmem:[%s21310_s28 + $0x24f0] sm:$0xff]  }
 0x476   : > { %v19331_v45 = vpop.f32.mrf.mxu0  ;;  %14207 = vmatmul.mubr.bf16.vlgmr.msra.gmra.mxu0 %v3647_v29  ;;  %19645 = vmatprep.subr.bf16.mxu1 %v20981_v36 }
 0x477   : > { %19624 = vmatpush3.bf16.msra.mxu0 %v20980_v32  ;;  %14286 = vmatprep.mubr.bf16.mxu0 %v3668_v39 }
 0x478   : > { %v19332_v47 = vpop.f32.mrf.mxu0  ;;  %v19353_v48 = vpop.f32.mrf.mxu1  ;;  %14247 = vmatmul.mubr.bf16.vlgmr.msra.gmra.mxu1 %v3669_v40  ;;  %19625 = vmatprep.subr.bf16.mxu0 %v20983_v38  ;;  %v21023_v38 = vld [vmem:[%s21310_s28 + $0x24a8] sm:$0xff]  }
 0x479   : > { %v19333_v50 = vadd.f32 %v19332_v47, %v19331_v45  ;;  %19646 = vmatpush3.bf16.msra.mxu1 %v20982_v37  ;;  %14326 = vmatprep.mubr.bf16.mxu1 %v3672_v44  ;;  %v21022_v37 = vld [vmem:[%s21310_s28 + $0x24e8] sm:$0xff]   ;;  %v21024_v44 = vld [vmem:[%s21310_s28 + $0x2460] sm:$0xff]  }
 0x47a   : > { %v19334_v52 = vpop.f32.mrf.mxu0  ;;  %v19354_v53 = vpop.f32.mrf.mxu1  ;;  %19647 = vmatprep.subr.bf16.mxu1 %v20985_v41  ;;  %v21026_v47 = vld [vmem:[%s21310_s28 + $0x24e0] sm:$0xff]  }
 0x47b   : > { %v13729_v55 = vadd.f32 %v19333_v50, %v22704_v0  ;;  %v19355_v56 = vadd.f32 %v19354_v53, %v19353_v48  ;;  %19626 = vmatpush3.bf16.msra.mxu0 %v20984_v43  ;;  %v20996_v0 = vld [vmem:[%s21310_s28 + $0x2318] sm:$0xff]  }
 0x47c   : > { %v19335_v59 = vpop.f32.mrf.mxu0  ;;  %19627 = vmatprep.subr.bf16.mxu0 %v20987_v49  ;;  %v19356_v60 = vpop.f32.mrf.mxu1  ;;  %v21027_v49 = vld [vmem:[%s21310_s28 + $0x24a0] sm:$0xff]   ;;  %v21028_v50 = vld [vmem:[%s21310_s28 + $0x2458] sm:$0xff]  }
 0x47d   : > { %v22749_v62 = vadd.f32 %v19355_v56, %v13729_v55  ;;  %19648 = vmatpush3.bf16.msra.mxu1 %v20986_v46  ;;  %v21025_v46 = vld [vmem:[%s21310_s28 + $0x2420] sm:$0xff]   ;;  %v21030_v52 = vld [vmem:[%s21310_s28 + $0x24d8] sm:$0xff]   ;;  %v21033_v55 = vld [vmem:[%s21310_s28 + $0x2410] sm:$0xff]  }
 0x47e   : > { %19649 = vmatprep.subr.bf16.mxu1 %v20989_v54  ;;  %v19357_v1 = vpop.f32.mrf.mxu1  ;;  %v21031_v53 = vld [vmem:[%s21310_s28 + $0x2498] sm:$0xff]   ;;  %v21032_v54 = vld [vmem:[%s21310_s28 + $0x2450] sm:$0xff]   ;;  %v21036_v59 = vld [vmem:[%s21310_s28 + $0x2448] sm:$0xff]  }
 0x47f   : > { %19628 = vmatpush3.bf16.msra.mxu0 %v20988_v51  ;;  %v21029_v51 = vld [vmem:[%s21310_s28 + $0x2418] sm:$0xff]   ;;  %v21034_v56 = vld [vmem:[%s21310_s28 + $0x24d0] sm:$0xff]   ;;  %v21038_v60 = vld [vmem:[%s21310_s28 + $0x24c8] sm:$0xff]  }
 0x480   : > { %19629 = vmatprep.subr.bf16.mxu0 %v20991_v58  ;;  %v21037_v58 = vld [vmem:[%s21310_s28 + $0x2408] sm:$0xff]   ;;  %v21042_v1 = vld [vmem:[%s21310_s28 + $0x24c0] sm:$0xff]  }
 0x481   : > { %19650 = vmatpush3.bf16.msra.mxu1 %v20990_v57  ;;  %v21035_v57 = vld [vmem:[%s21310_s28 + $0x2490] sm:$0xff]  }
 0x482   : > { %19651 = vmatprep.subr.bf16.mxu1 %v20993_v61  ;;  %v257_v61 = vld [vmem:[%s21305_s24 + $0x90] sm:$0xff] }
 0x483   : > { %19630 = vmatpush3.bf16.msra.mxu0 %v20992_v63  ;;  %v21040_v63 = vld [vmem:[%s21310_s28 + $0x2440] sm:$0xff]  }
 0x484   : > { %19631 = vmatprep.subr.bf16.mxu0 %v20995_v3  ;;  %v3673_v3 = vcombine.high %v257_v61, %v257_v61 }
 0x485   : > { %19652 = vmatpush3.bf16.msra.mxu1 %v20994_v2  ;;  %v3680_v2 = vrot.slane %v257_v61, %v21351_v42  ;;  %v21078_v61 = vld [vmem:[%s21310_s28 + $0x2638] sm:$0xff]  }
 0x486   : > { %19653 = vmatprep.subr.bf16.mxu1 %v20997_v4 }
 0x487   : > { %19632 = vmatpush3.bf16.msra.mxu0 %v20996_v0  ;;  %v21041_v0 = vld [vmem:[%s21310_s28 + $0x2400] sm:$0xff]   ;;  %v3688_v4 = vcombine.high %v3680_v2, %v3680_v2 }
 0x488   : > { %19633 = vmatprep.subr.bf16.mxu0 %v20999_v6  ;;  %v21044_v6 = vld [vmem:[%s21310_s28 + $0x2578] sm:$0xff]  }
 0x489   : > { %19654 = vmatpush3.bf16.msra.mxu1 %v20998_v5  ;;  %v3696_v5 = vrot.slane %v3680_v2, %v21351_v42  ;;  %v21081_v2 = vld [vmem:[%s21310_s28 + $0x2670] sm:$0xff]  }
 0x48a   : > { %19655 = vmatprep.subr.bf16.mxu1 %v21001_v8  ;;  %v21043_v8 = vld [vmem:[%s21310_s28 + $0x2480] sm:$0xff]  }
 0x48b   : > { %19634 = vmatpush3.bf16.msra.mxu0 %v21000_v7  ;;  %v22811_v7 = vrot.slane %v3673_v3, %v21351_v42  ;;  %v21080_v3 = vld [vmem:[%s21310_s28 + $0x26b8] sm:$0xff]  }
 0x48c   : > { %19635 = vmatprep.subr.bf16.mxu0 %v21003_v10  ;;  %v21045_v10 = vld [vmem:[%s21310_s28 + $0x2538] sm:$0xff]  }
 0x48d   : > { %19656 = vmatpush3.bf16.msra.mxu1 %v21002_v9  ;;  %v3710_v9 = vrot.slane %v3688_v4, %v21351_v42  ;;  %v21083_v4 = vld [vmem:[%s21310_s28 + $0x26f0] sm:$0xff]  }
 0x48e   : > { %19657 = vmatprep.subr.bf16.mxu1 %v21005_v12  ;;  %v21046_v12 = vld [vmem:[%s21310_s28 + $0x25f8] sm:$0xff]  }
 0x48f   : > { %19636 = vmatpush3.bf16.msra.mxu0 %v21004_v11  ;;  %v3689_v11 = vcombine.high %v22811_v7, %v22811_v7 }
 0x490   : > { %19637 = vmatprep.subr.bf16.mxu0 %v21007_v14  ;;  %v3718_v14 = vcombine.high %v3696_v5, %v3696_v5 }
 0x491   : > { %19658 = vmatpush3.bf16.msra.mxu1 %v21006_v13  ;;  %v3720_v13 = vcombine.high %v3710_v9, %v3710_v9 }
 0x492   : > { %19659 = vmatprep.subr.bf16.mxu1 %v21009_v17  ;;  %v3717_v17 = vrot.slane %v3689_v11, %v21351_v42 }
 0x493   : > { %19638 = vmatpush3.bf16.msra.mxu0 %v21008_v15  ;;  %v21048_v15 = vld [vmem:[%s21310_s28 + $0x2570] sm:$0xff]  }
 0x494   : > { %19667 = vmatprep.subr.bf16.mxu0 %v21012_v20  ;;  %v21050_v20 = vld [vmem:[%s21310_s28 + $0x25f0] sm:$0xff]  }
 0x495   : > { %19660 = vmatpush3.bf16.msra.mxu1 %v21011_v16  ;;  %v21047_v16 = vld [vmem:[%s21310_s28 + $0x25b8] sm:$0xff]  }
 0x496   : > { %v19375_v26 = vpop.f32.mrf.mxu0  ;;  %14287 = vmatmul.mubr.bf16.vlgmr.msra.gmra.mxu0 %v3654_v18  ;;  %19689 = vmatprep.subr.bf16.mxu1 %v21014_v19  ;;  %v21049_v19 = vld [vmem:[%s21310_s28 + $0x2530] sm:$0xff]  }
 0x497   : > { %19668 = vmatpush3.bf16.msra.mxu0 %v21013_v21  ;;  %14366 = vmatprep.mubr.bf16.mxu0 %v3710_v9  ;;  %v3721_v21 = vcombine.high %v3717_v17, %v3717_v17 }
 0x498   : > { %v19376_v29 = vpop.f32.mrf.mxu0  ;;  %v19397_v30 = vpop.f32.mrf.mxu1  ;;  %14327 = vmatmul.mubr.bf16.vlgmr.msra.gmra.mxu1 %v3670_v24  ;;  %19669 = vmatprep.subr.bf16.mxu0 %v21016_v25  ;;  %v21052_v25 = vld [vmem:[%s21310_s28 + $0x2568] sm:$0xff]  }
 0x499   : > { %v19377_v32 = vadd.f32 %v19376_v29, %v19375_v26  ;;  %19690 = vmatpush3.bf16.msra.mxu1 %v21015_v22  ;;  %14406 = vmatprep.mubr.bf16.mxu1 %v3720_v13  ;;  %v21051_v26 = vld [vmem:[%s21310_s28 + $0x25b0] sm:$0xff]   ;;  %v21054_v29 = vld [vmem:[%s21310_s28 + $0x25e8] sm:$0xff]  }
 0x49a   : > { %v19378_v36 = vpop.f32.mrf.mxu0  ;;  %v19398_v35 = vpop.f32.mrf.mxu1  ;;  %19691 = vmatprep.subr.bf16.mxu1 %v21018_v27  ;;  %v21087_v13 = vld [vmem:[%s21310_s28 + $0x26e8] sm:$0xff]  }
 0x49b   : > { %v13809_v39 = vadd.f32 %v19377_v32, %v22749_v62  ;;  %v19399_v40 = vadd.f32 %v19398_v35, %v19397_v30  ;;  %19670 = vmatpush3.bf16.msra.mxu0 %v21017_v23  ;;  %v21039_v62 = vld [vmem:[%s21310_s28 + $0x2488] sm:$0xff]   ;;  %v21056_v36 = vld [vmem:[%s21310_s28 + $0x2560] sm:$0xff]  }
 0x49c   : > { %v19379_v43 = vpop.f32.mrf.mxu0  ;;  %19671 = vmatprep.subr.bf16.mxu0 %v21020_v31  ;;  %v19400_v45 = vpop.f32.mrf.mxu1  ;;  %v21053_v32 = vld [vmem:[%s21310_s28 + $0x2528] sm:$0xff]  }
 0x49d   : > { %v22786_v41 = vadd.f32 %v19399_v40, %v13809_v39  ;;  %19692 = vmatpush3.bf16.msra.mxu1 %v21019_v28  ;;  %v21055_v39 = vld [vmem:[%s21310_s28 + $0x25a8] sm:$0xff]   ;;  %v21058_v40 = vld [vmem:[%s21310_s28 + $0x25e0] sm:$0xff]  }
 0x49e   : > { %19693 = vmatprep.subr.bf16.mxu1 %v21022_v37  ;;  %v19401_v48 = vpop.f32.mrf.mxu1  ;;  %v21057_v43 = vld [vmem:[%s21310_s28 + $0x2520] sm:$0xff]  }
 0x49f   : > { %19672 = vmatpush3.bf16.msra.mxu0 %v21021_v33  ;;  %v21059_v45 = vld [vmem:[%s21310_s28 + $0x25a0] sm:$0xff]   ;;  %v21063_v48 = vld [vmem:[%s21310_s28 + $0x2598] sm:$0xff]  }
 0x4a0   : > { %19673 = vmatprep.subr.bf16.mxu0 %v21024_v44  ;;  %v21060_v44 = vld [vmem:[%s21310_s28 + $0x2558] sm:$0xff]  }
 0x4a1   : > { %19694 = vmatpush3.bf16.msra.mxu1 %v21023_v38 }
 0x4a2   : > { %19695 = vmatprep.subr.bf16.mxu1 %v21026_v47  ;;  %v21064_v47 = vld [vmem:[%s21310_s28 + $0x2550] sm:$0xff]  }
 0x4a3   : > { %19674 = vmatpush3.bf16.msra.mxu0 %v21025_v46  ;;  %v21061_v46 = vld [vmem:[%s21310_s28 + $0x2518] sm:$0xff]  }
 0x4a4   : > { %19675 = vmatprep.subr.bf16.mxu0 %v21028_v50  ;;  %v21065_v50 = vld [vmem:[%s21310_s28 + $0x2510] sm:$0xff]  }
 0x4a5   : > { %19696 = vmatpush3.bf16.msra.mxu1 %v21027_v49  ;;  %v21066_v49 = vld [vmem:[%s21310_s28 + $0x25d0] sm:$0xff]  }
 0x4a6   : > { %19697 = vmatprep.subr.bf16.mxu1 %v21030_v52  ;;  %v21067_v52 = vld [vmem:[%s21310_s28 + $0x2590] sm:$0xff]  }
 0x4a7   : > { %19676 = vmatpush3.bf16.msra.mxu0 %v21029_v51  ;;  %v21068_v51 = vld [vmem:[%s21310_s28 + $0x2548] sm:$0xff]  }
 0x4a8   : > { %19677 = vmatprep.subr.bf16.mxu0 %v21032_v54  ;;  %v21069_v54 = vld [vmem:[%s21310_s28 + $0x2508] sm:$0xff]  }
 0x4a9   : > { %19698 = vmatpush3.bf16.msra.mxu1 %v21031_v53  ;;  %v21070_v53 = vld [vmem:[%s21310_s28 + $0x25c8] sm:$0xff]  }
 0x4aa   : > { %19699 = vmatprep.subr.bf16.mxu1 %v21034_v56  ;;  %v21071_v56 = vld [vmem:[%s21310_s28 + $0x2588] sm:$0xff]  }
 0x4ab   : > { %19678 = vmatpush3.bf16.msra.mxu0 %v21033_v55  ;;  %v21072_v55 = vld [vmem:[%s21310_s28 + $0x2540] sm:$0xff]  }
 0x4ac   : > { %19679 = vmatprep.subr.bf16.mxu0 %v21036_v59  ;;  %v21073_v59 = vld [vmem:[%s21310_s28 + $0x2500] sm:$0xff]  }
 0x4ad   : > { %19700 = vmatpush3.bf16.msra.mxu1 %v21035_v57  ;;  %v21074_v57 = vld [vmem:[%s21310_s28 + $0x25c0] sm:$0xff]  }
 0x4ae   : > { %19701 = vmatprep.subr.bf16.mxu1 %v21038_v60  ;;  %v21077_v60 = vld [vmem:[%s21310_s28 + $0x2678] sm:$0xff]  }
 0x4af   : > { %19680 = vmatpush3.bf16.msra.mxu0 %v21037_v58  ;;  %v3703_v58 = vrot.slane %v22811_v7, %v21351_v42 }
 0x4b0   : > { %19681 = vmatprep.subr.bf16.mxu0 %v21040_v63  ;;  %v21079_v63 = vld [vmem:[%s21310_s28 + $0x26f8] sm:$0xff]  }
 0x4b1   : > { %19702 = vmatpush3.bf16.msra.mxu1 %v21039_v62  ;;  %v21076_v62 = vld [vmem:[%s21310_s28 + $0x2580] sm:$0xff]  }
 0x4b2   : > { %19703 = vmatprep.subr.bf16.mxu1 %v21042_v1  ;;  %v3719_v1 = vcombine.high %v3703_v58, %v3703_v58 }
 0x4b3   : > { %19682 = vmatpush3.bf16.msra.mxu0 %v21041_v0 }
 0x4b4   : > { %19711 = vmatprep.subr.bf16.mxu0 %v21044_v6 }
 0x4b5   : > { %19704 = vmatpush3.bf16.msra.mxu1 %v21043_v8  ;;  %v21085_v8 = vld [vmem:[%s21310_s28 + $0x2668] sm:$0xff]  }
 0x4b6   : > { %v19419_v18 = vpop.f32.mrf.mxu0  ;;  %14367 = vmatmul.mubr.bf16.vlgmr.msra.gmra.mxu0 %v3696_v5  ;;  %19733 = vmatprep.subr.bf16.mxu1 %v21046_v12  ;;  %v21082_v5 = vld [vmem:[%s21310_s28 + $0x2630] sm:$0xff]  }
 0x4b7   : > { %19712 = vmatpush3.bf16.msra.mxu0 %v21045_v10  ;;  %14446 = vmatprep.mubr.bf16.mxu0 %v3717_v17  ;;  %v21084_v10 = vld [vmem:[%s21310_s28 + $0x26b0] sm:$0xff]   ;;  %v21086_v17 = vld [vmem:[%s21310_s28 + $0x2628] sm:$0xff]  }
 0x4b8   : > { %v19420_v22 = vpop.f32.mrf.mxu0  ;;  %v19441_v24 = vpop.f32.mrf.mxu1  ;;  %14407 = vmatmul.mubr.bf16.vlgmr.msra.gmra.mxu1 %v3718_v14  ;;  %19713 = vmatprep.subr.bf16.mxu0 %v21048_v15 }
 0x4b9   : > { %v19421_v23 = vadd.f32 %v19420_v22, %v19419_v18  ;;  %19734 = vmatpush3.bf16.msra.mxu1 %v21047_v16  ;;  %14486 = vmatprep.mubr.bf16.mxu1 %v3721_v21  ;;  %v21089_v18 = vld [vmem:[%s21310_s28 + $0x2660] sm:$0xff]  }
 0x4ba   : > { %v19422_v27 = vpop.f32.mrf.mxu0  ;;  %v19442_v28 = vpop.f32.mrf.mxu1  ;;  %19735 = vmatprep.subr.bf16.mxu1 %v21050_v20  ;;  %v21091_v22 = vld [vmem:[%s21310_s28 + $0x26e0] sm:$0xff]  }
 0x4bb   : > { %v13889_v30 = vadd.f32 %v19421_v23, %v22786_v41  ;;  %v19443_v31 = vadd.f32 %v19442_v28, %v19441_v24  ;;  %19714 = vmatpush3.bf16.msra.mxu0 %v21049_v19  ;;  %v21062_v41 = vld [vmem:[%s21310_s28 + $0x25d8] sm:$0xff]   ;;  %v21088_v19 = vld [vmem:[%s21310_s28 + $0x26a8] sm:$0xff]  }
 0x4bc   : > { %v19423_v33 = vpop.f32.mrf.mxu0  ;;  %19715 = vmatprep.subr.bf16.mxu0 %v21052_v25  ;;  %v19444_v35 = vpop.f32.mrf.mxu1  ;;  %v21090_v25 = vld [vmem:[%s21310_s28 + $0x2620] sm:$0xff]   ;;  %v21093_v23 = vld [vmem:[%s21310_s28 + $0x2658] sm:$0xff]  }
 0x4bd   : > { %v22830_v37 = vadd.f32 %v19443_v31, %v13889_v30  ;;  %19736 = vmatpush3.bf16.msra.mxu1 %v21051_v26  ;;  %v21092_v26 = vld [vmem:[%s21310_s28 + $0x26a0] sm:$0xff]   ;;  %v21095_v27 = vld [vmem:[%s21310_s28 + $0x26d8] sm:$0xff]   ;;  %v21099_v31 = vld [vmem:[%s21310_s28 + $0x26d0] sm:$0xff]  }
 0x4be   : > { %19737 = vmatprep.subr.bf16.mxu1 %v21054_v29  ;;  %v19445_v38 = vpop.f32.mrf.mxu1  ;;  %v21094_v28 = vld [vmem:[%s21310_s28 + $0x2618] sm:$0xff]   ;;  %v21097_v29 = vld [vmem:[%s21310_s28 + $0x2650] sm:$0xff]   ;;  %v21101_v33 = vld [vmem:[%s21310_s28 + $0x2648] sm:$0xff]  }
 0x4bf   : > { %19716 = vmatpush3.bf16.msra.mxu0 %v21053_v32  ;;  %v21096_v30 = vld [vmem:[%s21310_s28 + $0x2698] sm:$0xff]   ;;  %v21098_v32 = vld [vmem:[%s21310_s28 + $0x2610] sm:$0xff]   ;;  %v21103_v35 = vld [vmem:[%s21310_s28 + $0x26c8] sm:$0xff]  }
 0x4c0   : > { %19717 = vmatprep.subr.bf16.mxu0 %v21056_v36  ;;  %v21100_v36 = vld [vmem:[%s21310_s28 + $0x2690] sm:$0xff]   ;;  %v258_v38 = vld [vmem:[%s21305_s24 + $0x98] sm:$0x1f] }
 0x4c1   : > { %19738 = vmatpush3.bf16.msra.mxu1 %v21055_v39  ;;  %v21105_v39 = vld [vmem:[%s21310_s28 + $0x2640] sm:$0xff]  }
 0x4c2   : > { %19739 = vmatprep.subr.bf16.mxu1 %v21058_v40  ;;  %v21104_v40 = vld [vmem:[%s21310_s28 + $0x2688] sm:$0xff]  }
 0x4c3   : > { %19718 = vmatpush3.bf16.msra.mxu0 %v21057_v43  ;;  %v21107_v43 = vld [vmem:[%s21310_s28 + $0x26c0] sm:$0xff]  }
 0x4c4   : > { %19719 = vmatprep.subr.bf16.mxu0 %v21060_v44  ;;  %v3729_v44 = vrot.slane %v258_v38, %v21351_v42 }
 0x4c5   : > { %19740 = vmatpush3.bf16.msra.mxu1 %v21059_v45  ;;  %v21106_v45 = vld [vmem:[%s21310_s28 + $0x2600] sm:$0xff]  }
 0x4c6   : > { %19741 = vmatprep.subr.bf16.mxu1 %v21062_v41  ;;  %v3737_v41 = vcombine.high %v3729_v44, %v3729_v44 }
 0x4c7   : > { %19720 = vmatpush3.bf16.msra.mxu0 %v21061_v46  ;;  %v3744_v46 = vrot.slane %v3729_v44, %v21351_v42 }
 0x4c8   : > { %19721 = vmatprep.subr.bf16.mxu0 %v21064_v47  ;;  %v21109_v47 = vld [vmem:[%s21310_s28 + $0x2680] sm:$0xff]  }
 0x4c9   : > { %19742 = vmatpush3.bf16.msra.mxu1 %v21063_v48  ;;  %v3758_v48 = vrot.slane %v3737_v41, %v21351_v42 }
 0x4ca   : > { %19743 = vmatprep.subr.bf16.mxu1 %v21066_v49  ;;  %v21110_v49 = vld [vmem:[%s21310_s28 + $0x2738] sm:$0xff]  }
 0x4cb   : > { %19722 = vmatpush3.bf16.msra.mxu0 %v21065_v50  ;;  %v21256_v50 = vmov 0.0  }
 0x4cc   : > { %19723 = vmatprep.subr.bf16.mxu0 %v21068_v51  ;;  %v3760_v51 = vcombine.high %v3758_v48, %v3758_v48 }
 0x4cd   : > { %19744 = vmatpush3.bf16.msra.mxu1 %v21067_v52  ;;  %v3759_v52 = vcombine.high %v3744_v46, %v3744_v46 }
 0x4ce   : > { %19745 = vmatprep.subr.bf16.mxu1 %v21070_v53 }
 0x4cf   : > { %19724 = vmatpush3.bf16.msra.mxu0 %v21069_v54  ;;  %v21111_v54 = vld [vmem:[%s21310_s28 + $0x2730] sm:$0xff]  }
 0x4d0   : > { %19725 = vmatprep.subr.bf16.mxu0 %v21072_v55 }
 0x4d1   : > { %19746 = vmatpush3.bf16.msra.mxu1 %v21071_v56 }
 0x4d2   : > { %19747 = vmatprep.subr.bf16.mxu1 %v21074_v57 }
 0x4d3   : > { %19726 = vmatpush3.bf16.msra.mxu0 %v21073_v59 }
 0x4d4   : > { %19755 = vmatprep.subr.bf16.mxu0 %v21077_v60 }
 0x4d5   : > { %19748 = vmatpush3.bf16.msra.mxu1 %v21076_v62 }
 0x4d6   : > { %v19463_v0 = vpop.f32.mrf.mxu0  ;;  %14447 = vmatmul.mubr.bf16.vlgmr.msra.gmra.mxu0 %v3703_v58  ;;  %19777 = vmatprep.subr.bf16.mxu1 %v21079_v63  ;;  %v21112_v63 = vld [vmem:[%s21310_s28 + $0x2728] sm:$0xff]  }
 0x4d7   : > { %19756 = vmatpush3.bf16.msra.mxu0 %v21078_v61  ;;  %14526 = vmatprep.mubr.bf16.mxu0 %v3758_v48 }
 0x4d8   : > { %v19464_v6 = vpop.f32.mrf.mxu0  ;;  %v19485_v7 = vpop.f32.mrf.mxu1  ;;  %14487 = vmatmul.mubr.bf16.vlgmr.msra.gmra.mxu1 %v3719_v1  ;;  %19757 = vmatprep.subr.bf16.mxu0 %v21081_v2 }
 0x4d9   : > { %v19465_v9 = vadd.f32 %v19464_v6, %v19463_v0  ;;  %19778 = vmatpush3.bf16.msra.mxu1 %v21080_v3  ;;  %14566 = vmatprep.mubr.bf16.mxu1 %v3760_v51  ;;  %v21113_v0 = vld [vmem:[%s21310_s28 + $0x2720] sm:$0xff]   ;;  %v3722_v6 = vcombine.high %v258_v38, %v258_v38 }
 0x4da   : > { %v19466_v11 = vpop.f32.mrf.mxu0  ;;  %v19486_v12 = vpop.f32.mrf.mxu1  ;;  %19779 = vmatprep.subr.bf16.mxu1 %v21083_v4  ;;  %v21114_v4 = vld [vmem:[%s21310_s28 + $0x2718] sm:$0xff]  }
 0x4db   : > { %v13969_v14 = vadd.f32 %v19465_v9, %v22830_v37  ;;  %v19487_v15 = vadd.f32 %v19486_v12, %v19485_v7  ;;  %19758 = vmatpush3.bf16.msra.mxu0 %v21082_v5  ;;  %v21102_v37 = vld [vmem:[%s21310_s28 + $0x2608] sm:$0xff]   ;;  %v21115_v5 = vld [vmem:[%s21310_s28 + $0x2710] sm:$0xff]   ;;  %v21117_v9 = vld [vmem:[%s21310_s28 + $0x2700] sm:$0xff]  }
 0x4dc   : > { %v19467_v16 = vpop.f32.mrf.mxu0  ;;  %19759 = vmatprep.subr.bf16.mxu0 %v21085_v8  ;;  %v19488_v20 = vpop.f32.mrf.mxu1  ;;  %v21116_v7 = vld [vmem:[%s21310_s28 + $0x2708] sm:$0xff]   ;;  %v3736_v8 = vrot.slane %v3722_v6, %v21351_v42 }
 0x4dd   : > { %v22867_v21 = vadd.f32 %v19487_v15, %v13969_v14  ;;  %19780 = vmatpush3.bf16.msra.mxu1 %v21084_v10 }
 0x4de   : > { %19781 = vmatprep.subr.bf16.mxu1 %v21087_v13  ;;  %v19489_v24 = vpop.f32.mrf.mxu1  ;;  %v3751_v10 = vrot.slane %v3736_v8, %v21351_v42 }
 0x4df   : > { %19760 = vmatpush3.bf16.msra.mxu0 %v21086_v17 }
 0x4e0   : > { %19761 = vmatprep.subr.bf16.mxu0 %v21089_v18 }
 0x4e1   : > { %19782 = vmatpush3.bf16.msra.mxu1 %v21088_v19 }
 0x4e2   : > { %19783 = vmatprep.subr.bf16.mxu1 %v21091_v22 }
 0x4e3   : > { %19762 = vmatpush3.bf16.msra.mxu0 %v21090_v25 }
 0x4e4   : > { %19763 = vmatprep.subr.bf16.mxu0 %v21093_v23 }
 0x4e5   : > { %19784 = vmatpush3.bf16.msra.mxu1 %v21092_v26 }
 0x4e6   : > { %19785 = vmatprep.subr.bf16.mxu1 %v21095_v27 }
 0x4e7   : > { %19764 = vmatpush3.bf16.msra.mxu0 %v21094_v28 }
 0x4e8   : > { %19765 = vmatprep.subr.bf16.mxu0 %v21097_v29 }
 0x4e9   : > { %19786 = vmatpush3.bf16.msra.mxu1 %v21096_v30 }
 0x4ea   : > { %19787 = vmatprep.subr.bf16.mxu1 %v21099_v31 }
 0x4eb   : > { %19766 = vmatpush3.bf16.msra.mxu0 %v21098_v32 }
 0x4ec   : > { %19767 = vmatprep.subr.bf16.mxu0 %v21101_v33 }
 0x4ed   : > { %19788 = vmatpush3.bf16.msra.mxu1 %v21100_v36 }
 0x4ee   : > { %19789 = vmatprep.subr.bf16.mxu1 %v21103_v35 }
 0x4ef   : > { %19768 = vmatpush3.bf16.msra.mxu0 %v21102_v37 }
 0x4f0   : > { %19769 = vmatprep.subr.bf16.mxu0 %v21105_v39 }
 0x4f1   : > { %19790 = vmatpush3.bf16.msra.mxu1 %v21104_v40 }
 0x4f2   : > { %19791 = vmatprep.subr.bf16.mxu1 %v21107_v43 }
 0x4f3   : > { %19770 = vmatpush3.bf16.msra.mxu0 %v21106_v45 }
 0x4f4   : > { %19808 = vmatprep.subr.bf16.mxu0 %v21256_v50 }
 0x4f5   : > { %19792 = vmatpush3.bf16.msra.mxu1 %v21109_v47 }
 0x4f6   : > { %v19507_v53 = vpop.f32.mrf.mxu0  ;;  %14527 = vmatmul.mubr.bf16.vlgmr.msra.gmra.mxu0 %v3744_v46 }
 0x4f7   : > { %19809 = vmatpush3.bf16.msra.mxu0 %v21110_v49  ;;  %19824 = vmatprep.mubr.msk.bf16.mxu0 %vm21257_vm1, %v21256_v50 }
 0x4f8   : > { %v19508_v55 = vpop.f32.mrf.mxu0  ;;  %v19529_v56 = vpop.f32.mrf.mxu1  ;;  %14567 = vmatmul.mubr.bf16.vlgmr.msra.gmra.mxu1 %v3759_v52  ;;  %19810 = vmatprep.subr.bf16.mxu0 %v21256_v50 }
 0x4f9   : > { %v19509_v57 = vadd.f32 %v19508_v55, %v19507_v53 }
 0x4fa   : > { %v19510_v59 = vpop.f32.mrf.mxu0  ;;  %v19530_v58 = vpop.f32.mrf.mxu1 }
 0x4fb   : > { %v14049_v60 = vadd.f32 %v19509_v57, %v22867_v21  ;;  %v19531_v62 = vadd.f32 %v19530_v58, %v19529_v56  ;;  %19811 = vmatpush3.bf16.msra.mxu0 %v21111_v54 }
 0x4fc   : > { %v19511_v61 = vpop.f32.mrf.mxu0  ;;  %19812 = vmatprep.subr.bf16.mxu0 %v21256_v50  ;;  %v19532_v1 = vpop.f32.mrf.mxu1 }
 0x4fd   : > { %v14089_v2 = vadd.f32 %v19531_v62, %v14049_v60 }
 0x4fe   : > { %v19533_v3 = vpop.f32.mrf.mxu1 }
 0x4ff   : > { %19813 = vmatpush3.bf16.msra.mxu0 %v21112_v63 }
 0x500   : > { %19814 = vmatprep.subr.bf16.mxu0 %v21256_v50 }
 0x503   : > { %19815 = vmatpush3.bf16.msra.mxu0 %v21113_v0 }
 0x504   : > { %19816 = vmatprep.subr.bf16.mxu0 %v21256_v50 }
 0x507   : > { %19817 = vmatpush3.bf16.msra.mxu0 %v21114_v4 }
 0x508   : > { %19818 = vmatprep.subr.bf16.mxu0 %v21256_v50 }
 0x50b   : > { %19819 = vmatpush3.bf16.msra.mxu0 %v21115_v5 }
 0x50c   : > { %19820 = vmatprep.subr.bf16.mxu0 %v21256_v50 }
 0x50f   : > { %19821 = vmatpush3.bf16.msra.mxu0 %v21116_v7 }
 0x510   : > { %19822 = vmatprep.subr.bf16.mxu0 %v21256_v50 }
 0x513   : > { %19823 = vmatpush3.bf16.msra.mxu0 %v21117_v9 }
 0x516   : > { %v19551_v11 = vpop.f32.mrf.mxu0  ;;  %19825 = vmatmul.mubr.bf16.vlgmr.msra.gmra.mxu0 %v3751_v10 }
 0x518   : > { %v19552_v12 = vpop.f32.mrf.mxu0  ;;  %v19573_v13 = vpop.f32.mrf.mxu1 }
 0x519   : > { %v19553_v14 = vadd.f32 %v19552_v12, %v19551_v11 }
 0x51a   : > { %v19554_v15 = vpop.f32.mrf.mxu0  ;;  %v19574_v17 = vpop.f32.mrf.mxu1 }
 0x51b   : > { %v14129_v16 = vadd.f32 %v19553_v14, %v14089_v2  ;;  %v19575_v18 = vadd.f32 %v19574_v17, %v19573_v13 }
 0x51c   : > { %v19555_v20 = vpop.f32.mrf.mxu0  ;;  %v19576_v21 = vpop.f32.mrf.mxu1 }
 0x51d   : > { %v14169_v19 = vadd.f32 %v19575_v18, %v14129_v16  ;;  %v238_v21 = vld [vmem:[#allocation2] sm:$0x3] }
 0x51e   : > { %v19577_v22 = vpop.f32.mrf.mxu1 }
 0x536   : > { %v19595_v24 = vpop.f32.mrf.mxu0 }
 0x538   : > { %v19596_v25 = vpop.f32.mrf.mxu0  ;;  %v19617_v23 = vpop.f32.mrf.mxu1 }
 0x539   : > { %v19597_v26 = vadd.f32 %v19596_v25, %v19595_v24 }
 0x53a   : > { %v19598_v27 = vpop.f32.mrf.mxu0  ;;  %v19618_v42 = vpop.f32.mrf.mxu1 }
 0x53b   : > { %v14209_v28 = vadd.f32 %v19597_v26, %v14169_v19  ;;  %v19619_v29 = vadd.f32 %v19618_v42, %v19617_v23 }
 0x53c   : > { %v19599_v30 = vpop.f32.mrf.mxu0  ;;  %v19620_v31 = vpop.f32.mrf.mxu1 }
 0x53d   : > { %v14249_v32 = vadd.f32 %v19619_v29, %v14209_v28 }
 0x53e   : > { %v19621_v33 = vpop.f32.mrf.mxu1 }
 0x556   : > { %v19639_v36 = vpop.f32.mrf.mxu0 }
 0x558   : > { %v19640_v35 = vpop.f32.mrf.mxu0  ;;  %v19661_v37 = vpop.f32.mrf.mxu1 }
 0x559   : > { %v19641_v39 = vadd.f32 %v19640_v35, %v19639_v36 }
 0x55a   : > { %v19642_v40 = vpop.f32.mrf.mxu0  ;;  %v19662_v38 = vpop.f32.mrf.mxu1 }
 0x55b   : > { %v14289_v43 = vadd.f32 %v19641_v39, %v14249_v32  ;;  %v19663_v44 = vadd.f32 %v19662_v38, %v19661_v37 }
 0x55c   : > { %v19643_v45 = vpop.f32.mrf.mxu0  ;;  %v19664_v41 = vpop.f32.mrf.mxu1 }
 0x55d   : > { %v14329_v46 = vadd.f32 %v19663_v44, %v14289_v43 }
 0x55e   : > { %v19665_v47 = vpop.f32.mrf.mxu1 }
 0x576   : > { %v19683_v48 = vpop.f32.mrf.mxu0 }
 0x578   : > { %v19684_v49 = vpop.f32.mrf.mxu0  ;;  %v19705_v50 = vpop.f32.mrf.mxu1 }
 0x579   : > { %v19685_v51 = vadd.f32 %v19684_v49, %v19683_v48 }
 0x57a   : > { %v19686_v52 = vpop.f32.mrf.mxu0  ;;  %v19706_v53 = vpop.f32.mrf.mxu1 }
 0x57b   : > { %v14369_v54 = vadd.f32 %v19685_v51, %v14329_v46  ;;  %v19707_v55 = vadd.f32 %v19706_v53, %v19705_v50 }
 0x57c   : > { %v19687_v56 = vpop.f32.mrf.mxu0  ;;  %v19708_v57 = vpop.f32.mrf.mxu1 }
 0x57d   : > { %v14409_v59 = vadd.f32 %v19707_v55, %v14369_v54 }
 0x57e   : > { %v19709_v58 = vpop.f32.mrf.mxu1 }
 0x596   : > { %v19727_v60 = vpop.f32.mrf.mxu0 }
 0x598   : > { %v19728_v62 = vpop.f32.mrf.mxu0  ;;  %v19749_v63 = vpop.f32.mrf.mxu1 }
 0x599   : > { %v19729_v12 = vadd.f32 %v19728_v62, %v19727_v60 }
 0x59a   : > { %v19730_v61 = vpop.f32.mrf.mxu0  ;;  %v19750_v1 = vpop.f32.mrf.mxu1 }
 0x59b   : > { %v14449_v13 = vadd.f32 %v19729_v12, %v14409_v59  ;;  %v19751_v14 = vadd.f32 %v19750_v1, %v19749_v63 }
 0x59c   : > { %v19731_v2 = vpop.f32.mrf.mxu0  ;;  %v19752_v3 = vpop.f32.mrf.mxu1 }
 0x59d   : > { %v14489_v17 = vadd.f32 %v19751_v14, %v14449_v13 }
 0x59e   : > { %v19753_v0 = vpop.f32.mrf.mxu1 }
 0x5b6   : > { %v19771_v4 = vpop.f32.mrf.mxu0 }
 0x5b8   : > { %v19772_v5 = vpop.f32.mrf.mxu0  ;;  %v19793_v6 = vpop.f32.mrf.mxu1 }
 0x5b9   : > { %v19773_v15 = vadd.f32 %v19772_v5, %v19771_v4 }
 0x5ba   : > { %v19774_v7 = vpop.f32.mrf.mxu0  ;;  %v19794_v8 = vpop.f32.mrf.mxu1 }
 0x5bb   : > { %v14529_v16 = vadd.f32 %v19773_v15, %v14489_v17  ;;  %v19795_v18 = vadd.f32 %v19794_v8, %v19793_v6 }
 0x5bc   : > { %v19775_v9 = vpop.f32.mrf.mxu0  ;;  %v19796_v10 = vpop.f32.mrf.mxu1 }
 0x5bd   : > { %v14569_v20 = vadd.f32 %v19795_v18, %v14529_v16 }
 0x5be   : > { %v19797_v11 = vpop.f32.mrf.mxu1 }
 0x5d6   : > { %v14608_v19 = vpop.f32.mrf.mxu0 }
 0x5d7   : > { %v14609_v22 = vadd.f32 %v14608_v19, %v14569_v20 }
 0x5d8   : > { %v19826_v24 = vpop.f32.mrf.mxu0  ;;  %14620 = sbr.rel (%p17903_p6) target bundleno = 1874 (0x752), region = 48 }
 0x5d9   : > { %v14614_v25 = vadd.f32 %v14609_v22, %v238_v21 }
 0x5da   : > { %v14611_v23 = vpop.f32.mrf.mxu0 }
 0x5db   : > { %14616 = vst.msk [vmem:[#allocation2] sm:$0x3] %vm14615_vm2, %v14614_v25 }
 0x5dc   : > { %v19827_v26 = vpop.f32.mrf.mxu0 }
 0x5dd   : > { %v14728_v27 = vld [vmem:[%s23489_s3 + $0x300] sm:$0xff]  ;;  %v14729_v28 = vld [vmem:[%s23489_s3 + $0x308] sm:$0xff]  ;;  %v21258_v36 = vmov 0   ;;  %v14730_v63 = vld [vmem:[%s23489_s3 + $0x310] sm:$0xff]  ;;  %vm15568_vm3 = vcmask 523264  }
 0x5de   : > { %v14744_v42 = vld [vmem:[%s23489_s3 + $0x380] sm:$0xff]  ;;  %v14745_v30 = vld [vmem:[%s23489_s3 + $0x388] sm:$0xff]  ;;  %15604 = vmatprep.mubr.bf16.mxu0 %v21258_v36  ;;  %15645 = vmatprep.mubr.bf16.mxu1 %v21258_v36  ;;  %v14746_v61 = vld [vmem:[%s23489_s3 + $0x390] sm:$0xff] }
 0x5df   : > { %v18002_v29 = vcombine.high %v14728_v27, %v14744_v42  ;;  %v18001_v31 = vcombine.low %v14728_v27, %v14744_v42  ;;  %v14696_v32 = vld [vmem:[%s23489_s3 + $0x200] sm:$0xff]  ;;  %v18004_v35 = vcombine.high %v14729_v28, %v14745_v30  ;;  %v18003_v37 = vcombine.low %v14729_v28, %v14745_v30  ;;  %v14697_v40 = vld [vmem:[%s23489_s3 + $0x208] sm:$0xff]  ;;  %v14731_v2 = vld [vmem:[%s23489_s3 + $0x318] sm:$0xff] }
 0x5e0   : > { %v14712_v33 = vld [vmem:[%s23489_s3 + $0x280] sm:$0xff]  ;;  %v14713_v38 = vld [vmem:[%s23489_s3 + $0x288] sm:$0xff]  ;;  %v14747_v3 = vld [vmem:[%s23489_s3 + $0x398] sm:$0xff]  ;;  %v18006_v5 = vcombine.high %v14730_v63, %v14746_v61  ;;  %v18005_v12 = vcombine.low %v14730_v63, %v14746_v61 }
 0x5e1   : > { %v17970_v39 = vcombine.high %v14696_v32, %v14712_v33  ;;  %v14664_v43 = vld [vmem:[%s23489_s3 + $0x100] sm:$0xff]  ;;  %15580 = vmatprep.subr.bf16.mxu0 %v18002_v29  ;;  %v17972_v44 = vcombine.high %v14697_v40, %v14713_v38  ;;  %v14665_v41 = vld [vmem:[%s23489_s3 + $0x108] sm:$0xff]  ;;  %15621 = vmatprep.subr.bf16.mxu1 %v18004_v35  ;;  %v17969_v47 = vcombine.low %v14696_v32, %v14712_v33  ;;  %v14698_v7 = vld [vmem:[%s23489_s3 + $0x210] sm:$0xff] }
 0x5e2   : > { %v14680_v45 = vld [vmem:[%s23489_s3 + $0x180] sm:$0xff]  ;;  %v14681_v46 = vld [vmem:[%s23489_s3 + $0x188] sm:$0xff]  ;;  %15581 = vmatpush1.bf16.msra.mxu0 %v18001_v31  ;;  %15622 = vmatpush1.bf16.msra.mxu1 %v18003_v37  ;;  %v17971_v48 = vcombine.low %v14697_v40, %v14713_v38  ;;  %v18008_v6 = vcombine.high %v14731_v2, %v14747_v3  ;;  %v14714_v8 = vld [vmem:[%s23489_s3 + $0x290] sm:$0xff]  ;;  %v18007_v13 = vcombine.low %v14731_v2, %v14747_v3 }
 0x5e3   : > { %15582 = vmatprep.subr.bf16.mxu0 %v17970_v39  ;;  %v17938_v49 = vcombine.high %v14664_v43, %v14680_v45  ;;  %v14621_v50 = vld [vmem:[#allocation2] sm:$0x3]  ;;  %15623 = vmatprep.subr.bf16.mxu1 %v17972_v44  ;;  %v17940_v52 = vcombine.high %v14665_v41, %v14681_v46  ;;  %v14633_v55 = vld [vmem:[%s23489_s3 + $0x8] sm:$0xff]  ;;  %v17937_v59 = vcombine.low %v14664_v43, %v14680_v45  ;;  %v14699_v10 = vld [vmem:[%s23489_s3 + $0x218] sm:$0xff] }
 0x5e4   : > { %v17904_v51 = vld [vmem:[%s23488_s2] ss:$0 sm:$0xff]  ;;  %v14649_v56 = vld [vmem:[%s23489_s3 + $0x88] sm:$0xff]  ;;  %v17939_v58 = vcombine.low %v14665_v41, %v14681_v46  ;;  %v14715_v11 = vld [vmem:[%s23489_s3 + $0x298] sm:$0xff]  ;;  %v17974_v14 = vcombine.high %v14698_v7, %v14714_v8  ;;  %v17973_v21 = vcombine.low %v14698_v7, %v14714_v8 }
 0x5e5   : > { %v14632_v53 = vld [vmem:[%s23489_s3] sm:$0xff]  ;;  %v14629_v57 = vadd.f32 %v17904_v51, %v14621_v50  ;;  %v17908_v62 = vcombine.high %v14633_v55, %v14649_v56  ;;  %v17907_v4 = vcombine.low %v14633_v55, %v14649_v56  ;;  %v17976_v15 = vcombine.high %v14699_v10, %v14715_v11  ;;  %v14666_v17 = vld [vmem:[%s23489_s3 + $0x110] sm:$0xff]  ;;  %v14667_v18 = vld [vmem:[%s23489_s3 + $0x118] sm:$0xff] }
 0x5e6   : > { %v14648_v54 = vld [vmem:[%s23489_s3 + $0x80] sm:$0xff]  ;;  %15583 = vmatpush1.bf16.msra.mxu0 %v17969_v47  ;;  %15624 = vmatpush1.bf16.msra.mxu1 %v17971_v48  ;;  %v14682_v16 = vld [vmem:[%s23489_s3 + $0x190] sm:$0xff]  ;;  %v14683_v20 = vld [vmem:[%s23489_s3 + $0x198] sm:$0xff]  ;;  %v17975_v19 = vcombine.low %v14699_v10, %v14715_v11 }
 0x5e7   : > { %15584 = vmatprep.subr.bf16.mxu0 %v17938_v49  ;;  %v17906_v60 = vcombine.high %v14632_v53, %v14648_v54  ;;  %15625 = vmatprep.subr.bf16.mxu1 %v17940_v52  ;;  %v14630_v1 = vmax.f32 %v14629_v57, 0.0  ;;  %v17905_v0 = vcombine.low %v14632_v53, %v14648_v54  ;;  %v17942_v22 = vcombine.high %v14666_v17, %v14682_v16  ;;  %v14634_v25 = vld [vmem:[%s23489_s3 + $0x10] sm:$0xff]  ;;  %v14635_v26 = vld [vmem:[%s23489_s3 + $0x18] sm:$0xff]  ;;  %v14732_v31 = vld [vmem:[%s23489_s3 + $0x320] sm:$0xff] }
 0x5e8   : > { %v17944_v24 = vcombine.high %v14667_v18, %v14683_v20  ;;  %v14650_v23 = vld [vmem:[%s23489_s3 + $0x90] sm:$0xff]  ;;  %v14651_v27 = vld [vmem:[%s23489_s3 + $0x98] sm:$0xff]  ;;  %v17941_v42 = vcombine.low %v14666_v17, %v14682_v16  ;;  %v17943_v28 = vcombine.low %v14667_v18, %v14683_v20  ;;  %v14748_v32 = vld [vmem:[%s23489_s3 + $0x3a0] sm:$0xff] }
 0x5e9   : > { %v22976_v9 = vpack.c.bf16 %v14630_v1, %v14630_v1  ;;  %v17910_v29 = vcombine.high %v14634_v25, %v14650_v23  ;;  %v17912_v30 = vcombine.high %v14635_v26, %v14651_v27  ;;  %v14733_v33 = vld [vmem:[%s23489_s3 + $0x328] sm:$0xff]  ;;  %v17909_v37 = vcombine.low %v14634_v25, %v14650_v23  ;;  %v14700_v43 = vld [vmem:[%s23489_s3 + $0x220] sm:$0xff]  ;;  %v14734_v3 = vld [vmem:[%s23489_s3 + $0x330] sm:$0xff] }
 0x5ea   : > { %15585 = vmatpush1.bf16.msra.mxu0 %v17937_v59  ;;  %15626 = vmatpush1.bf16.msra.mxu1 %v17939_v58  ;;  %v14749_v35 = vld [vmem:[%s23489_s3 + $0x3a8] sm:$0xff]  ;;  %v17911_v39 = vcombine.low %v14635_v26, %v14651_v27  ;;  %v18010_v40 = vcombine.high %v14732_v31, %v14748_v32  ;;  %v14716_v44 = vld [vmem:[%s23489_s3 + $0x2a0] sm:$0xff]  ;;  %v18009_v46 = vcombine.low %v14732_v31, %v14748_v32  ;;  %v14702_v11 = vld [vmem:[%s23489_s3 + $0x230] sm:$0xff] }
 0x5eb   : > { %15586 = vmatprep.subr.bf16.mxu0 %v17906_v60  ;;  %15627 = vmatprep.subr.bf16.mxu1 %v17908_v62  ;;  %v18012_v38 = vcombine.high %v14733_v33, %v14749_v35  ;;  %v14701_v45 = vld [vmem:[%s23489_s3 + $0x228] sm:$0xff]  ;;  %v18011_v47 = vcombine.low %v14733_v33, %v14749_v35  ;;  %v17978_v48 = vcombine.high %v14700_v43, %v14716_v44  ;;  %v14668_v50 = vld [vmem:[%s23489_s3 + $0x120] sm:$0xff]  ;;  %v14670_v20 = vld [vmem:[%s23489_s3 + $0x130] sm:$0xff] }
 0x5ec   : > { %v14717_v41 = vld [vmem:[%s23489_s3 + $0x2a8] sm:$0xff]  ;;  %v14684_v51 = vld [vmem:[%s23489_s3 + $0x1a0] sm:$0xff]  ;;  %v17977_v54 = vcombine.low %v14700_v43, %v14716_v44  ;;  %v14638_v27 = vld [vmem:[%s23489_s3 + $0x30] sm:$0xff] }
 0x5ed   : > { %v17980_v49 = vcombine.high %v14701_v45, %v14717_v41  ;;  %v14669_v52 = vld [vmem:[%s23489_s3 + $0x128] sm:$0xff]  ;;  %v17979_v55 = vcombine.low %v14701_v45, %v14717_v41  ;;  %v17946_v56 = vcombine.high %v14668_v50, %v14684_v51  ;;  %v14636_v59 = vld [vmem:[%s23489_s3 + $0x20] sm:$0xff]  ;;  %v17945_v63 = vcombine.low %v14668_v50, %v14684_v51 }
 0x5ee   : > { %15587 = vmatpush1.bf16.msra.mxu0 %v17905_v0  ;;  %15628 = vmatpush1.bf16.msra.mxu1 %v17907_v4  ;;  %v14685_v53 = vld [vmem:[%s23489_s3 + $0x1a8] sm:$0xff]  ;;  %v14652_v58 = vld [vmem:[%s23489_s3 + $0xa0] sm:$0xff]  ;;  %v14750_v0 = vld [vmem:[%s23489_s3 + $0x3b0] sm:$0xff] }
 0x5ef   : > { %15662 = vmatprep.subr.bf16.mxu0 %v18006_v5  ;;  %15703 = vmatprep.subr.bf16.mxu1 %v18008_v6  ;;  %v17948_v57 = vcombine.high %v14669_v52, %v14685_v53  ;;  %v14637_v60 = vld [vmem:[%s23489_s3 + $0x28] sm:$0xff]  ;;  %v17947_v61 = vcombine.low %v14669_v52, %v14685_v53  ;;  %v17914_v1 = vcombine.high %v14636_v59, %v14652_v58  ;;  %v14735_v4 = vld [vmem:[%s23489_s3 + $0x338] sm:$0xff]  ;;  %v14736_v35 = vld [vmem:[%s23489_s3 + $0x340] sm:$0xff] }
 0x5f0   : > { %v14653_v62 = vld [vmem:[%s23489_s3 + $0xa8] sm:$0xff]  ;;  %v14751_v5 = vld [vmem:[%s23489_s3 + $0x3b8] sm:$0xff]  ;;  %v17913_v6 = vcombine.low %v14636_v59, %v14652_v58  ;;  %v18014_v8 = vcombine.high %v14734_v3, %v14750_v0  ;;  %v14704_v41 = vld [vmem:[%s23489_s3 + $0x240] sm:$0xff] }
 0x5f1   : > { %18033 = vmatmul.mubr.msk.bf16.vlgmr.msra.gmra.mxu0 %vm15568_vm3, %v22976_v9  ;;  %18034 = vmatmul.mubr.msk.bf16.vlgmr.msra.gmra.mxu1 %vm15568_vm3, %v22976_v9  ;;  %v17916_v2 = vcombine.high %v14637_v60, %v14653_v62  ;;  %v17915_v7 = vcombine.low %v14637_v60, %v14653_v62  ;;  %v18016_v10 = vcombine.high %v14735_v4, %v14751_v5  ;;  %v14672_v53 = vld [vmem:[%s23489_s3 + $0x140] sm:$0xff] }
 0x5f2   : > { %15663 = vmatpush1.bf16.msra.mxu0 %v18005_v12  ;;  %15704 = vmatpush1.bf16.msra.mxu1 %v18007_v13  ;;  %v14718_v12 = vld [vmem:[%s23489_s3 + $0x2b0] sm:$0xff]  ;;  %v14703_v13 = vld [vmem:[%s23489_s3 + $0x238] sm:$0xff]  ;;  %v18015_v17 = vcombine.low %v14735_v4, %v14751_v5  ;;  %v14640_v62 = vld [vmem:[%s23489_s3 + $0x40] sm:$0xff] }
 0x5f3   : > { %15664 = vmatprep.subr.bf16.mxu0 %v17974_v14  ;;  %15705 = vmatprep.subr.bf16.mxu1 %v17976_v15  ;;  %v14719_v14 = vld [vmem:[%s23489_s3 + $0x2b8] sm:$0xff]  ;;  %v18013_v15 = vcombine.low %v14734_v3, %v14750_v0  ;;  %v17982_v16 = vcombine.high %v14702_v11, %v14718_v12  ;;  %v14738_v5 = vld [vmem:[%s23489_s3 + $0x350] sm:$0xff] }
 0x5f4   : > { %15686 = vmatprep.mubr.bf16.mxu0 %v21258_v36  ;;  %15727 = vmatprep.mubr.bf16.mxu1 %v21258_v36  ;;  %v17984_v18 = vcombine.high %v14703_v13, %v14719_v14  ;;  %v17983_v25 = vcombine.low %v14703_v13, %v14719_v14  ;;  %v14706_v14 = vld [vmem:[%s23489_s3 + $0x250] sm:$0xff] }
 0x5f6   : > { %15665 = vmatpush1.bf16.msra.mxu0 %v17973_v21  ;;  %15706 = vmatpush1.bf16.msra.mxu1 %v17975_v19  ;;  %v14686_v21 = vld [vmem:[%s23489_s3 + $0x1b0] sm:$0xff]  ;;  %v14671_v19 = vld [vmem:[%s23489_s3 + $0x138] sm:$0xff] }
 0x5f7   : > { %15666 = vmatprep.subr.bf16.mxu0 %v17942_v22  ;;  %15707 = vmatprep.subr.bf16.mxu1 %v17944_v24  ;;  %v14687_v22 = vld [vmem:[%s23489_s3 + $0x1b8] sm:$0xff]  ;;  %v17981_v24 = vcombine.low %v14702_v11, %v14718_v12  ;;  %v17950_v23 = vcombine.high %v14670_v20, %v14686_v21 }
 0x5f8   : > { %v17952_v26 = vcombine.high %v14671_v19, %v14687_v22  ;;  %v17951_v31 = vcombine.low %v14671_v19, %v14687_v22  ;;  %v14674_v22 = vld [vmem:[%s23489_s3 + $0x150] sm:$0xff] }
 0x5fa   : > { %15667 = vmatpush1.bf16.msra.mxu0 %v17941_v42  ;;  %15708 = vmatpush1.bf16.msra.mxu1 %v17943_v28  ;;  %v14654_v42 = vld [vmem:[%s23489_s3 + $0xb0] sm:$0xff]  ;;  %v14639_v28 = vld [vmem:[%s23489_s3 + $0x38] sm:$0xff] }
 0x5fb   : > { %15668 = vmatprep.subr.bf16.mxu0 %v17910_v29  ;;  %15709 = vmatprep.subr.bf16.mxu1 %v17912_v30  ;;  %v14655_v29 = vld [vmem:[%s23489_s3 + $0xb8] sm:$0xff]  ;;  %v17949_v30 = vcombine.low %v14670_v20, %v14686_v21  ;;  %v17918_v32 = vcombine.high %v14638_v27, %v14654_v42 }
 0x5fc   : > { %v17920_v33 = vcombine.high %v14639_v28, %v14655_v29  ;;  %v17919_v43 = vcombine.low %v14639_v28, %v14655_v29  ;;  %v14642_v29 = vld [vmem:[%s23489_s3 + $0x50] sm:$0xff] }
 0x5fe   : > { %15669 = vmatpush1.bf16.msra.mxu0 %v17909_v37  ;;  %15710 = vmatpush1.bf16.msra.mxu1 %v17911_v39  ;;  %v14752_v37 = vld [vmem:[%s23489_s3 + $0x3c0] sm:$0xff]  ;;  %v14737_v39 = vld [vmem:[%s23489_s3 + $0x348] sm:$0xff] }
 0x5ff   : > { %15744 = vmatprep.subr.bf16.mxu0 %v18010_v40  ;;  %15785 = vmatprep.subr.bf16.mxu1 %v18012_v38  ;;  %v14753_v40 = vld [vmem:[%s23489_s3 + $0x3c8] sm:$0xff]  ;;  %v17917_v38 = vcombine.low %v14638_v27, %v14654_v42  ;;  %v18018_v44 = vcombine.high %v14736_v35, %v14752_v37 }
 0x600   : > { %v18020_v45 = vcombine.high %v14737_v39, %v14753_v40  ;;  %v18019_v50 = vcombine.low %v14737_v39, %v14753_v40  ;;  %v14740_v40 = vld [vmem:[%s23489_s3 + $0x360] sm:$0xff] }
 0x601   : > { %18035 = vmatmul.mubr.msk.bf16.vlgmr.msra.gmra.mxu0 %vm15568_vm3, %v22976_v9  ;;  %18036 = vmatmul.mubr.msk.bf16.vlgmr.msra.gmra.mxu1 %vm15568_vm3, %v22976_v9 }
 0x602   : > { %15745 = vmatpush1.bf16.msra.mxu0 %v18009_v46  ;;  %15786 = vmatpush1.bf16.msra.mxu1 %v18011_v47  ;;  %v14720_v46 = vld [vmem:[%s23489_s3 + $0x2c0] sm:$0xff]  ;;  %v14705_v47 = vld [vmem:[%s23489_s3 + $0x248] sm:$0xff] }
 0x603   : > { %15746 = vmatprep.subr.bf16.mxu0 %v17978_v48  ;;  %15787 = vmatprep.subr.bf16.mxu1 %v17980_v49  ;;  %v14721_v48 = vld [vmem:[%s23489_s3 + $0x2c8] sm:$0xff]  ;;  %v18017_v49 = vcombine.low %v14736_v35, %v14752_v37  ;;  %v17986_v51 = vcombine.high %v14704_v41, %v14720_v46 }
 0x604   : > { %15768 = vmatprep.mubr.bf16.mxu0 %v21258_v36  ;;  %15809 = vmatprep.mubr.bf16.mxu1 %v21258_v36  ;;  %v17988_v52 = vcombine.high %v14705_v47, %v14721_v48  ;;  %v17987_v59 = vcombine.low %v14705_v47, %v14721_v48  ;;  %v14708_v48 = vld [vmem:[%s23489_s3 + $0x260] sm:$0xff] }
 0x606   : > { %15747 = vmatpush1.bf16.msra.mxu0 %v17977_v54  ;;  %15788 = vmatpush1.bf16.msra.mxu1 %v17979_v55  ;;  %v14688_v54 = vld [vmem:[%s23489_s3 + $0x1c0] sm:$0xff]  ;;  %v14673_v55 = vld [vmem:[%s23489_s3 + $0x148] sm:$0xff] }
 0x607   : > { %15748 = vmatprep.subr.bf16.mxu0 %v17946_v56  ;;  %15789 = vmatprep.subr.bf16.mxu1 %v17948_v57  ;;  %v14689_v56 = vld [vmem:[%s23489_s3 + $0x1c8] sm:$0xff]  ;;  %v17985_v57 = vcombine.low %v14704_v41, %v14720_v46  ;;  %v17954_v58 = vcombine.high %v14672_v53, %v14688_v54 }
 0x608   : > { %v17956_v60 = vcombine.high %v14673_v55, %v14689_v56  ;;  %v17955_v3 = vcombine.low %v14673_v55, %v14689_v56  ;;  %v14676_v56 = vld [vmem:[%s23489_s3 + $0x160] sm:$0xff] }
 0x60a   : > { %15749 = vmatpush1.bf16.msra.mxu0 %v17945_v63  ;;  %15790 = vmatpush1.bf16.msra.mxu1 %v17947_v61  ;;  %v14656_v63 = vld [vmem:[%s23489_s3 + $0xc0] sm:$0xff]  ;;  %v14641_v61 = vld [vmem:[%s23489_s3 + $0x48] sm:$0xff] }
 0x60b   : > { %15750 = vmatprep.subr.bf16.mxu0 %v17914_v1  ;;  %15791 = vmatprep.subr.bf16.mxu1 %v17916_v2  ;;  %v14657_v1 = vld [vmem:[%s23489_s3 + $0xc8] sm:$0xff]  ;;  %v17953_v2 = vcombine.low %v14672_v53, %v14688_v54  ;;  %v17922_v0 = vcombine.high %v14640_v62, %v14656_v63 }
 0x60c   : > { %v17924_v4 = vcombine.high %v14641_v61, %v14657_v1  ;;  %v17923_v11 = vcombine.low %v14641_v61, %v14657_v1  ;;  %v14644_v1 = vld [vmem:[%s23489_s3 + $0x60] sm:$0xff] }
 0x60e   : > { %15751 = vmatpush1.bf16.msra.mxu0 %v17913_v6  ;;  %15792 = vmatpush1.bf16.msra.mxu1 %v17915_v7  ;;  %v14754_v6 = vld [vmem:[%s23489_s3 + $0x3d0] sm:$0xff]  ;;  %v14739_v7 = vld [vmem:[%s23489_s3 + $0x358] sm:$0xff] }
 0x60f   : > { %15826 = vmatprep.subr.bf16.mxu0 %v18014_v8  ;;  %15867 = vmatprep.subr.bf16.mxu1 %v18016_v10  ;;  %v14755_v8 = vld [vmem:[%s23489_s3 + $0x3d8] sm:$0xff]  ;;  %v17921_v10 = vcombine.low %v14640_v62, %v14656_v63  ;;  %v18022_v12 = vcombine.high %v14738_v5, %v14754_v6 }
 0x610   : > { %v18024_v13 = vcombine.high %v14739_v7, %v14755_v8  ;;  %v18023_v20 = vcombine.low %v14739_v7, %v14755_v8  ;;  %v14742_v8 = vld [vmem:[%s23489_s3 + $0x370] sm:$0xff] }
 0x611   : > { %18037 = vmatmul.mubr.msk.bf16.vlgmr.msra.gmra.mxu0 %vm15568_vm3, %v22976_v9  ;;  %18038 = vmatmul.mubr.msk.bf16.vlgmr.msra.gmra.mxu1 %vm15568_vm3, %v22976_v9 }
 0x612   : > { %15827 = vmatpush1.bf16.msra.mxu0 %v18013_v15  ;;  %15868 = vmatpush1.bf16.msra.mxu1 %v18015_v17  ;;  %v14722_v15 = vld [vmem:[%s23489_s3 + $0x2d0] sm:$0xff]  ;;  %v14707_v17 = vld [vmem:[%s23489_s3 + $0x258] sm:$0xff] }
 0x613   : > { %15828 = vmatprep.subr.bf16.mxu0 %v17982_v16  ;;  %15869 = vmatprep.subr.bf16.mxu1 %v17984_v18  ;;  %v14723_v16 = vld [vmem:[%s23489_s3 + $0x2d8] sm:$0xff]  ;;  %v18021_v18 = vcombine.low %v14738_v5, %v14754_v6  ;;  %v17990_v21 = vcombine.high %v14706_v14, %v14722_v15 }
 0x614   : > { %15850 = vmatprep.mubr.bf16.mxu0 %v21258_v36  ;;  %15891 = vmatprep.mubr.bf16.mxu1 %v21258_v36  ;;  %v17992_v19 = vcombine.high %v14707_v17, %v14723_v16  ;;  %v17991_v27 = vcombine.low %v14707_v17, %v14723_v16  ;;  %v14710_v16 = vld [vmem:[%s23489_s3 + $0x270] sm:$0xff] }
 0x616   : > { %15829 = vmatpush1.bf16.msra.mxu0 %v17981_v24  ;;  %15870 = vmatpush1.bf16.msra.mxu1 %v17983_v25  ;;  %v14690_v24 = vld [vmem:[%s23489_s3 + $0x1d0] sm:$0xff]  ;;  %v14675_v25 = vld [vmem:[%s23489_s3 + $0x158] sm:$0xff] }
 0x617   : > { %15830 = vmatprep.subr.bf16.mxu0 %v17950_v23  ;;  %15871 = vmatprep.subr.bf16.mxu1 %v17952_v26  ;;  %v14691_v23 = vld [vmem:[%s23489_s3 + $0x1d8] sm:$0xff]  ;;  %v17989_v26 = vcombine.low %v14706_v14, %v14722_v15  ;;  %v17958_v42 = vcombine.high %v14674_v22, %v14690_v24 }
 0x618   : > { %v17960_v28 = vcombine.high %v14675_v25, %v14691_v23  ;;  %v17959_v35 = vcombine.low %v14675_v25, %v14691_v23  ;;  %v14678_v23 = vld [vmem:[%s23489_s3 + $0x170] sm:$0xff] }
 0x61a   : > { %15831 = vmatpush1.bf16.msra.mxu0 %v17949_v30  ;;  %15872 = vmatpush1.bf16.msra.mxu1 %v17951_v31  ;;  %v14658_v30 = vld [vmem:[%s23489_s3 + $0xd0] sm:$0xff]  ;;  %v14643_v31 = vld [vmem:[%s23489_s3 + $0x58] sm:$0xff] }
 0x61b   : > { %15832 = vmatprep.subr.bf16.mxu0 %v17918_v32  ;;  %15873 = vmatprep.subr.bf16.mxu1 %v17920_v33  ;;  %v14659_v32 = vld [vmem:[%s23489_s3 + $0xd8] sm:$0xff]  ;;  %v17957_v33 = vcombine.low %v14674_v22, %v14690_v24  ;;  %v17926_v37 = vcombine.high %v14642_v29, %v14658_v30 }
 0x61c   : > { %v17928_v39 = vcombine.high %v14643_v31, %v14659_v32  ;;  %v17927_v41 = vcombine.low %v14643_v31, %v14659_v32  ;;  %v14646_v32 = vld [vmem:[%s23489_s3 + $0x70] sm:$0xff] }
 0x61e   : > { %15833 = vmatpush1.bf16.msra.mxu0 %v17917_v38  ;;  %15874 = vmatpush1.bf16.msra.mxu1 %v17919_v43  ;;  %v14756_v38 = vld [vmem:[%s23489_s3 + $0x3e0] sm:$0xff]  ;;  %v14741_v43 = vld [vmem:[%s23489_s3 + $0x368] sm:$0xff] }
 0x61f   : > { %15908 = vmatprep.subr.bf16.mxu0 %v18018_v44  ;;  %15949 = vmatprep.subr.bf16.mxu1 %v18020_v45  ;;  %v14757_v44 = vld [vmem:[%s23489_s3 + $0x3e8] sm:$0xff]  ;;  %v17925_v45 = vcombine.low %v14642_v29, %v14658_v30  ;;  %v18026_v46 = vcombine.high %v14740_v40, %v14756_v38 }
 0x620   : > { %v18028_v47 = vcombine.high %v14741_v43, %v14757_v44  ;;  %v18027_v53 = vcombine.low %v14741_v43, %v14757_v44 }
 0x621   : > { %18039 = vmatmul.mubr.msk.bf16.vlgmr.msra.gmra.mxu0 %vm15568_vm3, %v22976_v9  ;;  %18040 = vmatmul.mubr.msk.bf16.vlgmr.msra.gmra.mxu1 %vm15568_vm3, %v22976_v9 }
 0x622   : > { %15909 = vmatpush1.bf16.msra.mxu0 %v18017_v49  ;;  %15950 = vmatpush1.bf16.msra.mxu1 %v18019_v50  ;;  %v14724_v49 = vld [vmem:[%s23489_s3 + $0x2e0] sm:$0xff]  ;;  %v14709_v50 = vld [vmem:[%s23489_s3 + $0x268] sm:$0xff] }
 0x623   : > { %15910 = vmatprep.subr.bf16.mxu0 %v17986_v51  ;;  %15951 = vmatprep.subr.bf16.mxu1 %v17988_v52  ;;  %v14725_v51 = vld [vmem:[%s23489_s3 + $0x2e8] sm:$0xff]  ;;  %v18025_v52 = vcombine.low %v14740_v40, %v14756_v38  ;;  %v17994_v54 = vcombine.high %v14708_v48, %v14724_v49 }
 0x624   : > { %15932 = vmatprep.mubr.bf16.mxu0 %v21258_v36  ;;  %15973 = vmatprep.mubr.bf16.mxu1 %v21258_v36  ;;  %v17996_v55 = vcombine.high %v14709_v50, %v14725_v51  ;;  %v17995_v62 = vcombine.low %v14709_v50, %v14725_v51 }
 0x626   : > { %15911 = vmatpush1.bf16.msra.mxu0 %v17985_v57  ;;  %15952 = vmatpush1.bf16.msra.mxu1 %v17987_v59  ;;  %v14692_v57 = vld [vmem:[%s23489_s3 + $0x1e0] sm:$0xff]  ;;  %v14677_v59 = vld [vmem:[%s23489_s3 + $0x168] sm:$0xff] }
 0x627   : > { %15912 = vmatprep.subr.bf16.mxu0 %v17954_v58  ;;  %15953 = vmatprep.subr.bf16.mxu1 %v17956_v60  ;;  %v14693_v58 = vld [vmem:[%s23489_s3 + $0x1e8] sm:$0xff]  ;;  %v17993_v60 = vcombine.low %v14708_v48, %v14724_v49  ;;  %v17962_v63 = vcombine.high %v14676_v56, %v14692_v57  ;;  %v23355_v48 = vsub.s32 3, %v21345_v34 }
 0x628   : > { %v17964_v61 = vcombine.high %v14677_v59, %v14693_v58  ;;  %v17963_v5 = vcombine.low %v14677_v59, %v14693_v58 }
 0x62a   : > { %15913 = vmatpush1.bf16.msra.mxu0 %v17953_v2  ;;  %15954 = vmatpush1.bf16.msra.mxu1 %v17955_v3  ;;  %v14660_v2 = vld [vmem:[%s23489_s3 + $0xe0] sm:$0xff]  ;;  %v14645_v3 = vld [vmem:[%s23489_s3 + $0x68] sm:$0xff] }
 0x62b   : > { %15914 = vmatprep.subr.bf16.mxu0 %v17922_v0  ;;  %15955 = vmatprep.subr.bf16.mxu1 %v17924_v4  ;;  %v14661_v0 = vld [vmem:[%s23489_s3 + $0xe8] sm:$0xff]  ;;  %v17961_v4 = vcombine.low %v14676_v56, %v14692_v57  ;;  %v17930_v6 = vcombine.high %v14644_v1, %v14660_v2 }
 0x62c   : > { %v17932_v7 = vcombine.high %v14645_v3, %v14661_v0  ;;  %v17931_v14 = vcombine.low %v14645_v3, %v14661_v0 }
 0x62e   : > { %15915 = vmatpush1.bf16.msra.mxu0 %v17921_v10  ;;  %15956 = vmatpush1.bf16.msra.mxu1 %v17923_v11  ;;  %v14758_v10 = vld [vmem:[%s23489_s3 + $0x3f0] sm:$0xff]  ;;  %v14743_v11 = vld [vmem:[%s23489_s3 + $0x378] sm:$0xff] }
 0x62f   : > { %15990 = vmatprep.subr.bf16.mxu0 %v18022_v12  ;;  %16031 = vmatprep.subr.bf16.mxu1 %v18024_v13  ;;  %v14759_v12 = vld [vmem:[%s23489_s3 + $0x3f8] sm:$0xff]  ;;  %v17929_v13 = vcombine.low %v14644_v1, %v14660_v2  ;;  %v18030_v15 = vcombine.high %v14742_v8, %v14758_v10 }
 0x630   : > { %v18032_v17 = vcombine.high %v14743_v11, %v14759_v12  ;;  %v18031_v22 = vcombine.low %v14743_v11, %v14759_v12 }
 0x631   : > { %18041 = vmatmul.mubr.msk.bf16.vlgmr.msra.gmra.mxu0 %vm15568_vm3, %v22976_v9  ;;  %18042 = vmatmul.mubr.msk.bf16.vlgmr.msra.gmra.mxu1 %vm15568_vm3, %v22976_v9 }
 0x632   : > { %15991 = vmatpush1.bf16.msra.mxu0 %v18021_v18  ;;  %16032 = vmatpush1.bf16.msra.mxu1 %v18023_v20  ;;  %v14726_v18 = vld [vmem:[%s23489_s3 + $0x2f0] sm:$0xff]  ;;  %v14711_v20 = vld [vmem:[%s23489_s3 + $0x278] sm:$0xff] }
 0x633   : > { %15992 = vmatprep.subr.bf16.mxu0 %v17990_v21  ;;  %16033 = vmatprep.subr.bf16.mxu1 %v17992_v19  ;;  %v14727_v21 = vld [vmem:[%s23489_s3 + $0x2f8] sm:$0xff]  ;;  %v18029_v19 = vcombine.low %v14742_v8, %v14758_v10  ;;  %v17998_v24 = vcombine.high %v14710_v16, %v14726_v18 }
 0x634   : > { %16014 = vmatprep.mubr.bf16.mxu0 %v21258_v36  ;;  %16055 = vmatprep.mubr.bf16.mxu1 %v21258_v36  ;;  %v18000_v25 = vcombine.high %v14711_v20, %v14727_v21  ;;  %v17999_v29 = vcombine.low %v14711_v20, %v14727_v21 }
 0x636   : > { %15993 = vmatpush1.bf16.msra.mxu0 %v17989_v26  ;;  %16034 = vmatpush1.bf16.msra.mxu1 %v17991_v27  ;;  %v14694_v26 = vld [vmem:[%s23489_s3 + $0x1f0] sm:$0xff]  ;;  %v14679_v27 = vld [vmem:[%s23489_s3 + $0x178] sm:$0xff] }
 0x637   : > { %15994 = vmatprep.subr.bf16.mxu0 %v17958_v42  ;;  %16035 = vmatprep.subr.bf16.mxu1 %v17960_v28  ;;  %v14695_v42 = vld [vmem:[%s23489_s3 + $0x1f8] sm:$0xff]  ;;  %v17997_v28 = vcombine.low %v14710_v16, %v14726_v18  ;;  %v17966_v30 = vcombine.high %v14678_v23, %v14694_v26 }
 0x638   : > { %v17968_v31 = vcombine.high %v14679_v27, %v14695_v42  ;;  %v17967_v40 = vcombine.low %v14679_v27, %v14695_v42 }
 0x63a   : > { %15995 = vmatpush1.bf16.msra.mxu0 %v17957_v33  ;;  %16036 = vmatpush1.bf16.msra.mxu1 %v17959_v35  ;;  %v14662_v33 = vld [vmem:[%s23489_s3 + $0xf0] sm:$0xff]  ;;  %v14647_v35 = vld [vmem:[%s23489_s3 + $0x78] sm:$0xff] }
 0x63b   : > { %15996 = vmatprep.subr.bf16.mxu0 %v17926_v37  ;;  %16037 = vmatprep.subr.bf16.mxu1 %v17928_v39  ;;  %v14663_v37 = vld [vmem:[%s23489_s3 + $0xf8] sm:$0xff]  ;;  %v17965_v39 = vcombine.low %v14678_v23, %v14694_v26  ;;  %v17934_v38 = vcombine.high %v14646_v32, %v14662_v33  ;;  %v17933_v44 = vcombine.low %v14646_v32, %v14662_v33 }
 0x63c   : > { %v17936_v43 = vcombine.high %v14647_v35, %v14663_v37 }
 0x63e   : > { %15997 = vmatpush1.bf16.msra.mxu0 %v17925_v45  ;;  %16038 = vmatpush1.bf16.msra.mxu1 %v17927_v41  ;;  %v17935_v45 = vcombine.low %v14647_v35, %v14663_v37  ;;  %v14760_v41 = vld [vmem:[%s23490_s4] sm:$0xff] }
 0x63f   : > { %16072 = vmatprep.subr.bf16.mxu0 %v18026_v46  ;;  %16113 = vmatprep.subr.bf16.mxu1 %v18028_v47  ;;  %v23349_v46 = vsub.s32 2, %v21345_v34  ;;  %v23352_v47 = vsub.s32 1, %v21345_v34 }
 0x641   : > { %18043 = vmatmul.mubr.msk.bf16.vlgmr.msra.gmra.mxu0 %vm15568_vm3, %v22976_v9  ;;  %18044 = vmatmul.mubr.msk.bf16.vlgmr.msra.gmra.mxu1 %vm15568_vm3, %v22976_v9  ;;  %v14775_v50 = vrot.slane %v14760_v41, %v23352_v47 }
 0x642   : > { %16073 = vmatpush1.bf16.msra.mxu0 %v18025_v52  ;;  %16114 = vmatpush1.bf16.msra.mxu1 %v18027_v53  ;;  %v14783_v52 = vrot.slane %v14760_v41, %v23355_v48 }
 0x643   : > { %16074 = vmatprep.subr.bf16.mxu0 %v17994_v54  ;;  %16115 = vmatprep.subr.bf16.mxu1 %v17996_v55 }
 0x644   : > { %16096 = vmatprep.mubr.bf16.mxu0 %v21258_v36  ;;  %16137 = vmatprep.mubr.bf16.mxu1 %v21258_v36 }
 0x646   : > { %16075 = vmatpush1.bf16.msra.mxu0 %v17993_v60  ;;  %16116 = vmatpush1.bf16.msra.mxu1 %v17995_v62 }
 0x647   : > { %16076 = vmatprep.subr.bf16.mxu0 %v17962_v63  ;;  %16117 = vmatprep.subr.bf16.mxu1 %v17964_v61 }
 0x64a   : > { %16077 = vmatpush1.bf16.msra.mxu0 %v17961_v4  ;;  %16118 = vmatpush1.bf16.msra.mxu1 %v17963_v5  ;;  %v23362_v4 = vsub.s32 4, %v21345_v34  ;;  %v23365_v5 = vsub.s32 6, %v21345_v34 }
 0x64b   : > { %16078 = vmatprep.subr.bf16.mxu0 %v17930_v6  ;;  %16119 = vmatprep.subr.bf16.mxu1 %v17932_v7  ;;  %v23368_v6 = vsub.s32 5, %v21345_v34  ;;  %v23371_v7 = vsub.s32 7, %v21345_v34 }
 0x64c   : > { %v14787_v8 = vrot.slane %v14760_v41, %v23362_v4  ;;  %v14795_v10 = vrot.slane %v14760_v41, %v23365_v5 }
 0x64d   : > { %v14791_v11 = vrot.slane %v14760_v41, %v23368_v6 }
 0x64e   : > { %16079 = vmatpush1.bf16.msra.mxu0 %v17929_v13  ;;  %16120 = vmatpush1.bf16.msra.mxu1 %v17931_v14  ;;  %v14799_v13 = vrot.slane %v14760_v41, %v23371_v7 }
 0x64f   : > { %16154 = vmatprep.subr.bf16.mxu0 %v18030_v15  ;;  %16195 = vmatprep.subr.bf16.mxu1 %v18032_v17 }
 0x651   : > { %18045 = vmatmul.mubr.msk.bf16.vlgmr.msra.gmra.mxu0 %vm15568_vm3, %v22976_v9  ;;  %18046 = vmatmul.mubr.msk.bf16.vlgmr.msra.gmra.mxu1 %vm15568_vm3, %v22976_v9 }
 0x652   : > { %16155 = vmatpush1.bf16.msra.mxu0 %v18029_v19  ;;  %16196 = vmatpush1.bf16.msra.mxu1 %v18031_v22 }
 0x653   : > { %16156 = vmatprep.subr.bf16.mxu0 %v17998_v24  ;;  %16197 = vmatprep.subr.bf16.mxu1 %v18000_v25 }
 0x654   : > { %16178 = vmatprep.mubr.bf16.mxu0 %v21258_v36  ;;  %16219 = vmatprep.mubr.bf16.mxu1 %v21258_v36  ;;  %v23343_v36 = vsub.s32 0, %v21345_v34 }
 0x656   : > { %16157 = vmatpush1.bf16.msra.mxu0 %v17997_v28  ;;  %16198 = vmatpush1.bf16.msra.mxu1 %v17999_v29  ;;  %v14771_v49 = vrot.slane %v14760_v41, %v23343_v36 }
 0x657   : > { %16158 = vmatprep.subr.bf16.mxu0 %v17966_v30  ;;  %16199 = vmatprep.subr.bf16.mxu1 %v17968_v31 }
 0x65a   : > { %16159 = vmatpush1.bf16.msra.mxu0 %v17965_v39  ;;  %16200 = vmatpush1.bf16.msra.mxu1 %v17967_v40  ;;  %v23380_v39 = vld [vmem:[%s23490_s4 + $0x8] sm:$0xff]  ;;  %v21259_v40 = vmov 1983009808  }
 0x65b   : > { %16160 = vmatprep.subr.bf16.mxu0 %v17934_v38  ;;  %16201 = vmatprep.subr.bf16.mxu1 %v17936_v43  ;;  %v16455_v38 = vunpack.c.l.s4 %v21259_v40  ;;  %v14803_v43 = vrot.slane %v23380_v39, %v23343_v36 }
 0x65e   : > { %16161 = vmatpush1.bf16.msra.mxu0 %v17933_v44  ;;  %16202 = vmatpush1.bf16.msra.mxu1 %v17935_v45  ;;  %v14811_v44 = vrot.slane %v23380_v39, %v23349_v46  ;;  %v16456_v45 = vunpack.c.0.s8 %v16455_v38 }
 0x661   : > { %18047 = vmatmul.mubr.msk.bf16.vlgmr.msra.gmra.mxu0 %vm15568_vm3, %v22976_v9  ;;  %18048 = vmatmul.mubr.msk.bf16.vlgmr.msra.gmra.mxu1 %vm15568_vm3, %v22976_v9  ;;  %v14779_v9 = vrot.slane %v14760_v41, %v23349_v46  ;;  %v14807_v41 = vrot.slane %v23380_v39, %v23352_v47 }
 0x6b1   : > { %v15606_v51 = vpop.f32.mrf.mxu0  ;;  %v15647_v54 = vpop.f32.mrf.mxu1 }
 0x6b2   : > { %v15607_v53 = vadd.f32 %v15606_v51, %v14771_v49  ;;  %v15648_v55 = vadd.f32 %v15647_v54, %v14779_v9  ;;  %v14815_v9 = vrot.slane %v23380_v39, %v23355_v48 }
 0x6b3   : > { %v15608_v56 = vpop.f32.mrf.mxu0  ;;  %v15649_v58 = vpop.f32.mrf.mxu1 }
 0x6b4   : > { %v18049_v57 = vmul.f32 -1.442695, %v15607_v53  ;;  %v15609_v59 = vadd.f32 %v15608_v56, %v14775_v50  ;;  %v18051_v60 = vmul.f32 -1.442695, %v15648_v55  ;;  %v15650_v62 = vadd.f32 %v15649_v58, %v14783_v52 }
 0x6b5   : > { %v15610_v63 = vpop.f32.mrf.mxu0  ;;  %v15651_v1 = vpop.f32.mrf.mxu1  ;;  %v23391_v56 = vsub.s32 %v16456_v45, %v21345_v34 }
 0x6b6   : > { %21118 = vpow2.f32 %v18049_v57  ;;  %v18050_v61 = vmul.f32 -1.442695, %v15609_v59  ;;  %v18052_v2 = vmul.f32 -1.442695, %v15650_v62 }
 0x6b7   : > { %21120 = vpow2.f32 %v18051_v60  ;;  %v15611_v3 = vpop.f32.mrf.mxu0  ;;  %v15652_v0 = vpop.f32.mrf.mxu1 }
 0x6b8   : > { %21122 = vpow2.f32 %v18050_v61 }
 0x6b9   : > { %21124 = vpow2.f32 %v18052_v2 }
 0x6c1   : > { %v15688_v12 = vpop.f32.mrf.mxu0  ;;  %v15729_v15 = vpop.f32.mrf.mxu1 }
 0x6c2   : > { %v15689_v14 = vadd.f32 %v15688_v12, %v14787_v8  ;;  %v15730_v16 = vadd.f32 %v15729_v15, %v14795_v10 }
 0x6c3   : > { %v21119_v17 = vpop.eup %21118  ;;  %v15690_v18 = vpop.f32.mrf.mxu0 }
 0x6c4   : > { %v21121_v20 = vpop.eup %21120  ;;  %v16324_v21 = vadd.f32 1.0, %v21119_v17  ;;  %v15691_v19 = vadd.f32 %v15690_v18, %v14791_v11  ;;  %v15731_v22 = vpop.f32.mrf.mxu1  ;;  %v18053_v28 = vmul.f32 -1.442695, %v15689_v14  ;;  %v18055_v31 = vmul.f32 -1.442695, %v15730_v16 }
 0x6c5   : > { %v21123_v24 = vpop.eup %21122  ;;  %v16326_v25 = vadd.f32 1.0, %v21121_v20  ;;  %v15732_v23 = vadd.f32 %v15731_v22, %v14799_v13  ;;  %v15692_v26 = vpop.f32.mrf.mxu0 }
 0x6c6   : > { %v21125_v27 = vpop.eup %21124  ;;  %21126 = vrcp.f32 %v16324_v21  ;;  %v16325_v42 = vadd.f32 1.0, %v21123_v24  ;;  %v15733_v29 = vpop.f32.mrf.mxu1  ;;  %v18054_v33 = vmul.f32 -1.442695, %v15691_v19  ;;  %v14819_v24 = vrot.slane %v23380_v39, %v23362_v4 }
 0x6c7   : > { %21128 = vrcp.f32 %v16326_v25  ;;  %v16327_v30 = vadd.f32 1.0, %v21125_v27  ;;  %v15693_v32 = vpop.f32.mrf.mxu0  ;;  %v18056_v37 = vmul.f32 -1.442695, %v15732_v23  ;;  %v14827_v25 = vrot.slane %v23380_v39, %v23365_v5 }
 0x6c8   : > { %21130 = vrcp.f32 %v16325_v42  ;;  %v15734_v35 = vpop.f32.mrf.mxu1  ;;  %v14823_v23 = vrot.slane %v23380_v39, %v23368_v6  ;;  %v14831_v27 = vrot.slane %v23380_v39, %v23371_v7 }
 0x6c9   : > { %21132 = vrcp.f32 %v16327_v30 }
 0x6ca   : > { %21134 = vpow2.f32 %v18053_v28 }
 0x6cb   : > { %21136 = vpow2.f32 %v18055_v31 }
 0x6cc   : > { %21138 = vpow2.f32 %v18054_v33 }
 0x6cd   : > { %21140 = vpow2.f32 %v18056_v37 }
 0x6d1   : > { %v15770_v49 = vpop.f32.mrf.mxu0  ;;  %v15811_v51 = vpop.f32.mrf.mxu1 }
 0x6d2   : > { %v15771_v50 = vadd.f32 %v15770_v49, %v14803_v43  ;;  %v15812_v53 = vadd.f32 %v15811_v51, %v14811_v44 }
 0x6d3   : > { %v21127_v52 = vpop.eup %21126  ;;  %v15772_v54 = vpop.f32.mrf.mxu0 }
 0x6d4   : > { %v21129_v55 = vpop.eup %21128  ;;  %v18057_v57 = vmul.f32 -1.442695, %v15771_v50  ;;  %v15773_v59 = vadd.f32 %v15772_v54, %v14807_v41  ;;  %v15813_v58 = vpop.f32.mrf.mxu1  ;;  %v18059_v62 = vmul.f32 -1.442695, %v15812_v53 }
 0x6d5   : > { %v21131_v60 = vpop.eup %21130  ;;  %v15814_v63 = vadd.f32 %v15813_v58, %v14815_v9  ;;  %v15774_v61 = vpop.f32.mrf.mxu0 }
 0x6d6   : > { %v21133_v1 = vpop.eup %21132  ;;  %v16452_v2 = vcombine.low %v21127_v52, %v21131_v60  ;;  %21142 = vpow2.f32 %v18057_v57  ;;  %v18058_v3 = vmul.f32 -1.442695, %v15773_v59  ;;  %v15815_v0 = vpop.f32.mrf.mxu1 }
 0x6d7   : > { %v21135_v8 = vpop.eup %21134  ;;  %v16453_v10 = vcombine.low %v21129_v55, %v21133_v1  ;;  %21144 = vpow2.f32 %v18059_v62  ;;  %v18060_v11 = vmul.f32 -1.442695, %v15814_v63  ;;  %v15775_v12 = vpop.f32.mrf.mxu0  ;;  %v23409_v63 = vld [vmem:[%s23490_s4 + $0x10] sm:$0xff] }
 0x6d8   : > { %v21137_v13 = vpop.eup %21136  ;;  %v16460_v34 = vrot.slane %v16452_v2, %v23391_v56  ;;  %v16328_v14 = vadd.f32 1.0, %v21135_v8  ;;  %21146 = vpow2.f32 %v18058_v3  ;;  %v15816_v15 = vpop.f32.mrf.mxu1  ;;  %v14835_v2 = vrot.slane %v23409_v63, %v23343_v36 }
 0x6d9   : > { %v21139_v17 = vpop.eup %21138  ;;  %v16467_v16 = vrot.slane %v16453_v10, %v23391_v56  ;;  %v16330_v18 = vadd.f32 1.0, %v21137_v13  ;;  %21148 = vpow2.f32 %v18060_v11  ;;  %v14843_v0 = vrot.slane %v23409_v63, %v23349_v46 }
 0x6da   : > { %v21141_v20 = vpop.eup %21140  ;;  %21150 = vrcp.f32 %v16328_v14  ;;  %v16329_v21 = vadd.f32 1.0, %v21139_v17  ;;  %v14839_v8 = vrot.slane %v23409_v63, %v23352_v47  ;;  %v14847_v11 = vrot.slane %v23409_v63, %v23355_v48 }
 0x6db   : > { %v16468_v19 = vcombine.low %v16460_v34, %v16467_v16  ;;  %21152 = vrcp.f32 %v16330_v18  ;;  %v16331_v22 = vadd.f32 1.0, %v21141_v20 }
 0x6dc   : > { %21154 = vrcp.f32 %v16329_v21 }
 0x6dd   : > { %16596 = vst [vmem:[%s23491_s5] sm:$0xff] %v16468_v19  ;;  %21156 = vrcp.f32 %v16331_v22 }
 0x6e1   : > { %v15852_v26 = vpop.f32.mrf.mxu0  ;;  %v15893_v28 = vpop.f32.mrf.mxu1 }
 0x6e2   : > { %v15853_v42 = vadd.f32 %v15852_v26, %v14819_v24  ;;  %v15894_v30 = vadd.f32 %v15893_v28, %v14827_v25 }
 0x6e3   : > { %v21143_v29 = vpop.eup %21142  ;;  %v15854_v31 = vpop.f32.mrf.mxu0 }
 0x6e4   : > { %v21145_v32 = vpop.eup %21144  ;;  %v16332_v33 = vadd.f32 1.0, %v21143_v29  ;;  %v15855_v35 = vadd.f32 %v15854_v31, %v14823_v23  ;;  %v15895_v37 = vpop.f32.mrf.mxu1  ;;  %v18061_v49 = vmul.f32 -1.442695, %v15853_v42  ;;  %v18063_v51 = vmul.f32 -1.442695, %v15894_v30 }
 0x6e5   : > { %v21147_v40 = vpop.eup %21146  ;;  %v16334_v38 = vadd.f32 1.0, %v21145_v32  ;;  %v15896_v43 = vadd.f32 %v15895_v37, %v14831_v27  ;;  %v15856_v44 = vpop.f32.mrf.mxu0 }
 0x6e6   : > { %v21149_v45 = vpop.eup %21148  ;;  %21158 = vrcp.f32 %v16332_v33  ;;  %v16333_v41 = vadd.f32 1.0, %v21147_v40  ;;  %v15897_v9 = vpop.f32.mrf.mxu1  ;;  %v18062_v54 = vmul.f32 -1.442695, %v15855_v35 }
 0x6e7   : > { %v21151_v50 = vpop.eup %21150  ;;  %21160 = vrcp.f32 %v16334_v38  ;;  %v16335_v39 = vadd.f32 1.0, %v21149_v45  ;;  %v15857_v52 = vpop.f32.mrf.mxu0  ;;  %v18064_v59 = vmul.f32 -1.442695, %v15896_v43  ;;  %v14859_v9 = vrot.slane %v23409_v63, %v23365_v5 }
 0x6e8   : > { %v21153_v53 = vpop.eup %21152  ;;  %21162 = vrcp.f32 %v16333_v41  ;;  %v15898_v55 = vpop.f32.mrf.mxu1 }
 0x6e9   : > { %v21155_v57 = vpop.eup %21154  ;;  %21164 = vrcp.f32 %v16335_v39 }
 0x6ea   : > { %v21157_v58 = vpop.eup %21156  ;;  %v16469_v60 = vcombine.low %v21151_v50, %v21155_v57  ;;  %21166 = vpow2.f32 %v18061_v49  ;;  %v14851_v49 = vrot.slane %v23409_v63, %v23362_v4  ;;  %v14855_v50 = vrot.slane %v23409_v63, %v23368_v6 }
 0x6eb   : > { %v16470_v62 = vcombine.low %v21153_v53, %v21157_v58  ;;  %21168 = vpow2.f32 %v18063_v51  ;;  %v14863_v51 = vrot.slane %v23409_v63, %v23371_v7 }
 0x6ec   : > { %v16477_v61 = vrot.slane %v16469_v60, %v23391_v56  ;;  %21170 = vpow2.f32 %v18062_v54 }
 0x6ed   : > { %v16484_v1 = vrot.slane %v16470_v62, %v23391_v56  ;;  %21172 = vpow2.f32 %v18064_v59 }
 0x6ef   : > { %v16485_v3 = vcombine.low %v16477_v61, %v16484_v1 }
 0x6f1   : > { %16597 = vst [vmem:[%s23491_s5 + $0x8] sm:$0xff] %v16485_v3  ;;  %v15934_v10 = vpop.f32.mrf.mxu0  ;;  %v15975_v13 = vpop.f32.mrf.mxu1 }
 0x6f2   : > { %v15935_v12 = vadd.f32 %v15934_v10, %v14835_v2  ;;  %v15976_v14 = vadd.f32 %v15975_v13, %v14843_v0 }
 0x6f3   : > { %v21159_v34 = vpop.eup %21158  ;;  %v15936_v15 = vpop.f32.mrf.mxu0 }
 0x6f4   : > { %v21161_v17 = vpop.eup %21160  ;;  %v18065_v16 = vmul.f32 -1.442695, %v15935_v12  ;;  %v15937_v18 = vadd.f32 %v15936_v15, %v14839_v8  ;;  %v15977_v20 = vpop.f32.mrf.mxu1  ;;  %v18067_v19 = vmul.f32 -1.442695, %v15976_v14 }
 0x6f5   : > { %v21163_v21 = vpop.eup %21162  ;;  %v15978_v22 = vadd.f32 %v15977_v20, %v14847_v11  ;;  %v15938_v24 = vpop.f32.mrf.mxu0 }
 0x6f6   : > { %v21165_v25 = vpop.eup %21164  ;;  %v16486_v23 = vcombine.low %v21159_v34, %v21163_v21  ;;  %21174 = vpow2.f32 %v18065_v16  ;;  %v18066_v26 = vmul.f32 -1.442695, %v15937_v18  ;;  %v15979_v27 = vpop.f32.mrf.mxu1 }
 0x6f7   : > { %v21167_v42 = vpop.eup %21166  ;;  %v16487_v28 = vcombine.low %v21161_v17, %v21165_v25  ;;  %21176 = vpow2.f32 %v18067_v19  ;;  %v18068_v29 = vmul.f32 -1.442695, %v15978_v22  ;;  %v15939_v30 = vpop.f32.mrf.mxu0  ;;  %v23440_v22 = vld [vmem:[%s23490_s4 + $0x18] sm:$0xff] }
 0x6f8   : > { %v21169_v31 = vpop.eup %21168  ;;  %v16494_v32 = vrot.slane %v16486_v23, %v23391_v56  ;;  %v16336_v33 = vadd.f32 1.0, %v21167_v42  ;;  %21178 = vpow2.f32 %v18066_v26  ;;  %v15980_v35 = vpop.f32.mrf.mxu1  ;;  %v14867_v23 = vrot.slane %v23440_v22, %v23343_v36 }
 0x6f9   : > { %v21171_v37 = vpop.eup %21170  ;;  %v16501_v40 = vrot.slane %v16487_v28, %v23391_v56  ;;  %v16338_v38 = vadd.f32 1.0, %v21169_v31  ;;  %21180 = vpow2.f32 %v18068_v29  ;;  %v14875_v27 = vrot.slane %v23440_v22, %v23349_v46 }
 0x6fa   : > { %v21173_v43 = vpop.eup %21172  ;;  %21182 = vrcp.f32 %v16336_v33  ;;  %v16337_v44 = vadd.f32 1.0, %v21171_v37  ;;  %v14871_v42 = vrot.slane %v23440_v22, %v23352_v47  ;;  %v14879_v29 = vrot.slane %v23440_v22, %v23355_v48 }
 0x6fb   : > { %v16502_v45 = vcombine.low %v16494_v32, %v16501_v40  ;;  %21184 = vrcp.f32 %v16338_v38  ;;  %v16339_v41 = vadd.f32 1.0, %v21173_v43 }
 0x6fc   : > { %21186 = vrcp.f32 %v16337_v44 }
 0x6fd   : > { %16598 = vst [vmem:[%s23491_s5 + $0x10] sm:$0xff] %v16502_v45  ;;  %21188 = vrcp.f32 %v16339_v41 }
 0x701   : > { %v16016_v39 = vpop.f32.mrf.mxu0  ;;  %v16057_v53 = vpop.f32.mrf.mxu1 }
 0x702   : > { %v16017_v52 = vadd.f32 %v16016_v39, %v14851_v49  ;;  %v16058_v55 = vadd.f32 %v16057_v53, %v14859_v9 }
 0x703   : > { %v21175_v54 = vpop.eup %21174  ;;  %v16018_v57 = vpop.f32.mrf.mxu0 }
 0x704   : > { %v21177_v59 = vpop.eup %21176  ;;  %v16340_v58 = vadd.f32 1.0, %v21175_v54  ;;  %v16019_v60 = vadd.f32 %v16018_v57, %v14855_v50  ;;  %v16059_v62 = vpop.f32.mrf.mxu1  ;;  %v18069_v10 = vmul.f32 -1.442695, %v16017_v52  ;;  %v18071_v13 = vmul.f32 -1.442695, %v16058_v55 }
 0x705   : > { %v21179_v61 = vpop.eup %21178  ;;  %v16342_v1 = vadd.f32 1.0, %v21177_v59  ;;  %v16060_v2 = vadd.f32 %v16059_v62, %v14863_v51  ;;  %v16020_v3 = vpop.f32.mrf.mxu0 }
 0x706   : > { %v21181_v0 = vpop.eup %21180  ;;  %21190 = vrcp.f32 %v16340_v58  ;;  %v16341_v8 = vadd.f32 1.0, %v21179_v61  ;;  %v16061_v11 = vpop.f32.mrf.mxu1  ;;  %v18070_v15 = vmul.f32 -1.442695, %v16019_v60  ;;  %v14891_v3 = vrot.slane %v23440_v22, %v23365_v5 }
 0x707   : > { %v21183_v12 = vpop.eup %21182  ;;  %21192 = vrcp.f32 %v16342_v1  ;;  %v16343_v63 = vadd.f32 1.0, %v21181_v0  ;;  %v16021_v34 = vpop.f32.mrf.mxu0  ;;  %v18072_v18 = vmul.f32 -1.442695, %v16060_v2  ;;  %v14883_v2 = vrot.slane %v23440_v22, %v23362_v4 }
 0x708   : > { %v21185_v14 = vpop.eup %21184  ;;  %21194 = vrcp.f32 %v16341_v8  ;;  %v16062_v17 = vpop.f32.mrf.mxu1  ;;  %v14887_v0 = vrot.slane %v23440_v22, %v23368_v6 }
 0x709   : > { %v21187_v16 = vpop.eup %21186  ;;  %21196 = vrcp.f32 %v16343_v63 }
 0x70a   : > { %v21189_v20 = vpop.eup %21188  ;;  %v16503_v21 = vcombine.low %v21183_v12, %v21187_v16  ;;  %21198 = vpow2.f32 %v18069_v10  ;;  %v14895_v10 = vrot.slane %v23440_v22, %v23371_v7 }
 0x70b   : > { %v16504_v19 = vcombine.low %v21185_v14, %v21189_v20  ;;  %21200 = vpow2.f32 %v18071_v13 }
 0x70c   : > { %v16511_v24 = vrot.slane %v16503_v21, %v23391_v56  ;;  %21202 = vpow2.f32 %v18070_v15 }
 0x70d   : > { %v16518_v25 = vrot.slane %v16504_v19, %v23391_v56  ;;  %21204 = vpow2.f32 %v18072_v18 }
 0x70f   : > { %v16519_v26 = vcombine.low %v16511_v24, %v16518_v25 }
 0x711   : > { %16599 = vst [vmem:[%s23491_s5 + $0x18] sm:$0xff] %v16519_v26  ;;  %v16098_v28 = vpop.f32.mrf.mxu0  ;;  %v16139_v31 = vpop.f32.mrf.mxu1 }
 0x712   : > { %v16099_v30 = vadd.f32 %v16098_v28, %v14867_v23  ;;  %v16140_v33 = vadd.f32 %v16139_v31, %v14875_v27 }
 0x713   : > { %v21191_v32 = vpop.eup %21190  ;;  %v16100_v36 = vpop.f32.mrf.mxu0 }
 0x714   : > { %v21193_v35 = vpop.eup %21192  ;;  %v18073_v37 = vmul.f32 -1.442695, %v16099_v30  ;;  %v16101_v40 = vadd.f32 %v16100_v36, %v14871_v42  ;;  %v16141_v46 = vpop.f32.mrf.mxu1  ;;  %v18075_v43 = vmul.f32 -1.442695, %v16140_v33 }
 0x715   : > { %v21195_v38 = vpop.eup %21194  ;;  %v16142_v47 = vadd.f32 %v16141_v46, %v14879_v29  ;;  %v16102_v44 = vpop.f32.mrf.mxu0 }
 0x716   : > { %v21197_v45 = vpop.eup %21196  ;;  %v16520_v41 = vcombine.low %v21191_v32, %v21195_v38  ;;  %21206 = vpow2.f32 %v18073_v37  ;;  %v18074_v49 = vmul.f32 -1.442695, %v16101_v40  ;;  %v16143_v9 = vpop.f32.mrf.mxu1 }
 0x717   : > { %v21199_v50 = vpop.eup %21198  ;;  %v16521_v48 = vcombine.low %v21193_v35, %v21197_v45  ;;  %21208 = vpow2.f32 %v18075_v43  ;;  %v18076_v39 = vmul.f32 -1.442695, %v16142_v47  ;;  %v16103_v51 = vpop.f32.mrf.mxu0 }
 0x718   : > { %v21201_v52 = vpop.eup %21200  ;;  %v16528_v53 = vrot.slane %v16520_v41, %v23391_v56  ;;  %v16344_v54 = vadd.f32 1.0, %v21199_v50  ;;  %21210 = vpow2.f32 %v18074_v49  ;;  %v16144_v55 = vpop.f32.mrf.mxu1 }
 0x719   : > { %v21203_v57 = vpop.eup %21202  ;;  %v16535_v59 = vrot.slane %v16521_v48, %v23391_v56  ;;  %v16346_v58 = vadd.f32 1.0, %v21201_v52  ;;  %21212 = vpow2.f32 %v18076_v39 }
 0x71a   : > { %v21205_v60 = vpop.eup %21204  ;;  %21214 = vrcp.f32 %v16344_v54  ;;  %v16345_v62 = vadd.f32 1.0, %v21203_v57 }
 0x71b   : > { %v16536_v61 = vcombine.low %v16528_v53, %v16535_v59  ;;  %21216 = vrcp.f32 %v16346_v58  ;;  %v16347_v1 = vadd.f32 1.0, %v21205_v60 }
 0x71c   : > { %21218 = vrcp.f32 %v16345_v62 }
 0x71d   : > { %16600 = vst [vmem:[%s23491_s5 + $0x20] sm:$0xff] %v16536_v61  ;;  %21220 = vrcp.f32 %v16347_v1 }
 0x721   : > { %v16180_v8 = vpop.f32.mrf.mxu0  ;;  %v16221_v12 = vpop.f32.mrf.mxu1 }
 0x722   : > { %v16181_v11 = vadd.f32 %v16180_v8, %v14883_v2  ;;  %v16222_v13 = vadd.f32 %v16221_v12, %v14891_v3 }
 0x723   : > { %v21207_v63 = vpop.eup %21206  ;;  %v16182_v34 = vpop.f32.mrf.mxu0 }
 0x724   : > { %v21209_v14 = vpop.eup %21208  ;;  %v16348_v15 = vadd.f32 1.0, %v21207_v63  ;;  %v16183_v17 = vadd.f32 %v16182_v34, %v14887_v0  ;;  %v16223_v16 = vpop.f32.mrf.mxu1  ;;  %v18077_v19 = vmul.f32 -1.442695, %v16181_v11  ;;  %v18079_v22 = vmul.f32 -1.442695, %v16222_v13 }
 0x725   : > { %v21211_v4 = vpop.eup %21210  ;;  %v16350_v18 = vadd.f32 1.0, %v21209_v14  ;;  %v16224_v20 = vadd.f32 %v16223_v16, %v14895_v10  ;;  %v16184_v5 = vpop.f32.mrf.mxu0 }
 0x726   : > { %v21213_v21 = vpop.eup %21212  ;;  %21222 = vrcp.f32 %v16348_v15  ;;  %v16349_v6 = vadd.f32 1.0, %v21211_v4  ;;  %v16225_v24 = vpop.f32.mrf.mxu1  ;;  %v18078_v27 = vmul.f32 -1.442695, %v16183_v17 }
 0x727   : > { %v21215_v25 = vpop.eup %21214  ;;  %21224 = vrcp.f32 %v16350_v18  ;;  %v16351_v7 = vadd.f32 1.0, %v21213_v21  ;;  %v16185_v23 = vpop.f32.mrf.mxu0  ;;  %v18080_v29 = vmul.f32 -1.442695, %v16224_v20 }
 0x728   : > { %v21217_v26 = vpop.eup %21216  ;;  %21226 = vrcp.f32 %v16349_v6  ;;  %v16226_v42 = vpop.f32.mrf.mxu1 }
 0x729   : > { %v21219_v28 = vpop.eup %21218  ;;  %21228 = vrcp.f32 %v16351_v7 }
 0x72a   : > { %v21221_v30 = vpop.eup %21220  ;;  %v16537_v31 = vcombine.low %v21215_v25, %v21219_v28  ;;  %21230 = vpow2.f32 %v18077_v19 }
 0x72b   : > { %v16538_v32 = vcombine.low %v21217_v26, %v21221_v30  ;;  %21232 = vpow2.f32 %v18079_v22 }
 0x72c   : > { %v16545_v33 = vrot.slane %v16537_v31, %v23391_v56  ;;  %21234 = vpow2.f32 %v18078_v27 }
 0x72d   : > { %v16552_v36 = vrot.slane %v16538_v32, %v23391_v56  ;;  %21236 = vpow2.f32 %v18080_v29 }
 0x72f   : > { %v16553_v35 = vcombine.low %v16545_v33, %v16552_v36 }
 0x731   : > { %16601 = vst [vmem:[%s23491_s5 + $0x28] sm:$0xff] %v16553_v35 }
 0x733   : > { %v21223_v37 = vpop.eup %21222 }
 0x734   : > { %v21225_v40 = vpop.eup %21224 }
 0x735   : > { %v21227_v46 = vpop.eup %21226 }
 0x736   : > { %v21229_v38 = vpop.eup %21228  ;;  %v16554_v43 = vcombine.low %v21223_v37, %v21227_v46 }
 0x737   : > { %v21231_v47 = vpop.eup %21230  ;;  %v16555_v44 = vcombine.low %v21225_v40, %v21229_v38 }
 0x738   : > { %v21233_v45 = vpop.eup %21232  ;;  %v16562_v41 = vrot.slane %v16554_v43, %v23391_v56  ;;  %v16352_v49 = vadd.f32 1.0, %v21231_v47 }
 0x739   : > { %v21235_v9 = vpop.eup %21234  ;;  %v16569_v50 = vrot.slane %v16555_v44, %v23391_v56  ;;  %v16354_v48 = vadd.f32 1.0, %v21233_v45 }
 0x73a   : > { %v21237_v39 = vpop.eup %21236  ;;  %21238 = vrcp.f32 %v16352_v49  ;;  %v16353_v51 = vadd.f32 1.0, %v21235_v9 }
 0x73b   : > { %v16570_v52 = vcombine.low %v16562_v41, %v16569_v50  ;;  %21240 = vrcp.f32 %v16354_v48  ;;  %v16355_v53 = vadd.f32 1.0, %v21237_v39 }
 0x73c   : > { %21242 = vrcp.f32 %v16353_v51 }
 0x73d   : > { %16602 = vst [vmem:[%s23491_s5 + $0x30] sm:$0xff] %v16570_v52  ;;  %21244 = vrcp.f32 %v16355_v53 }
 0x747   : > { %v21239_v54 = vpop.eup %21238 }
 0x748   : > { %v21241_v55 = vpop.eup %21240 }
 0x749   : > { %v21243_v57 = vpop.eup %21242 }
 0x74a   : > { %v21245_v59 = vpop.eup %21244  ;;  %v16571_v58 = vcombine.low %v21239_v54, %v21243_v57 }
 0x74b   : > { %v16572_v60 = vcombine.low %v21241_v55, %v21245_v59 }
 0x74c   : > { %v16579_v62 = vrot.slane %v16571_v58, %v23391_v56 }
 0x74d   : > { %v16586_v61 = vrot.slane %v16572_v60, %v23391_v56 }
 0x74f   : > { %v16587_v1 = vcombine.low %v16579_v62, %v16586_v61 }
 0x751   : > { %16603 = vst [vmem:[%s23491_s5 + $0x38] sm:$0xff] %v16587_v1 }
 0x752 PF: > { %s15_s18 = sadd.s32 1, %s21252_s18  }
 0x753   : > { %p12_p7 = scmp.ge.s32.totalorder %s15_s18, 4  }
 0x755   :  { %14 = sbr.rel (!%p12_p7) target bundleno = 1 (0x1), region = 77 }

</bundles_post_ra>
